<compile_context>
chip_gen: v7x
topology: tpu7x:2x2x1
jax: 0.10.0
libtpu: 0.0.40
codegen_flags: <defaults>
</compile_context>

<pallas_src>
import jax
import jax.numpy as jnp
from jax.experimental import pallas as pl
from jax.experimental.pallas import tpu as pltpu

EPS = 1e-5          # PyTorch InstanceNorm1d default eps
LANE = 128
_BIAS_ROWS = 16     # bf16 sublane tile; keeps the folded-bias rows layout-aligned


def _round_up(n, m):
    return (n + m - 1) // m * m


# ----------------------------------------------------------------------------
# In-kernel stage: conv(K) [+folded bias] [+InstanceNorm affine] [+GLU]
# operating on a (Cin, T_pad) channel-by-time slab.
# ----------------------------------------------------------------------------
def _apply_stage(y, w_ref, gb_ref, cfg, T_valid, T_pad):
    K, has_bias, has_norm, glu = cfg
    cin = y.shape[0]
    xb = y.astype(jnp.bfloat16)

    # im2col: stack the K shifted slabs along sublanes -> one deep MXU matmul.
    if K > 1:
        p = K // 2
        z = jnp.zeros((cin, p), jnp.bfloat16)
        xpad = jnp.concatenate([z, xb, z], axis=1)            # (Cin, T_pad + 2p)
        xcol = jnp.concatenate(
            [xpad[:, k:k + T_pad] for k in range(K)], axis=0)  # (K*Cin, T_pad)
    else:
        xcol = xb
    if has_bias:
        # Folded bias: append _BIAS_ROWS rows whose first row is all-ones
        # (rest zero); the weight carries the bias in the matching column.
        rid = jax.lax.broadcasted_iota(jnp.int32, (_BIAS_ROWS, T_pad), 0)
        xcol = jnp.concatenate([xcol, (rid == 0).astype(jnp.bfloat16)], axis=0)

    acc = jnp.dot(w_ref[...], xcol,
                  preferred_element_type=jnp.float32)          # (Cout_blk, T_pad)

    # Zero the lane tail so stats / the next conv see proper zero padding.
    if T_pad != T_valid:
        lane = jax.lax.broadcasted_iota(jnp.int32, (1, T_pad), 1)
        tmask = (lane < T_valid).astype(jnp.float32)
        acc = acc * tmask

    if has_norm:
        # One-pass InstanceNorm1d statistics (f32), biased variance.
        inv_t = 1.0 / float(T_valid)
        s = jnp.sum(acc, axis=1, keepdims=True)
        ss = jnp.sum(acc * acc, axis=1, keepdims=True)
        mean = s * inv_t
        var = jnp.maximum(ss * inv_t - mean * mean, 0.0)
        gamma = gb_ref[:, 0:1]
        beta = gb_ref[:, 1:2]
        acc = (acc - mean) * jax.lax.rsqrt(var + EPS) * gamma + beta
        if T_pad != T_valid:
            acc = acc * tmask

    if glu:
        half = acc.shape[0] // 2
        acc = acc[:half] * jax.nn.sigmoid(acc[half:])
    return acc


def _make_block_kernel(stage_cfgs, T_valid, T_pad):
    def kernel(*refs):
        x_ref = refs[0]
        out_ref = refs[-1]
        y = x_ref[0]                                  # (Cin, T_pad)
        i = 1
        for cfg in stage_cfgs:
            w_ref = refs[i]; i += 1
            gb_ref = None
            if cfg[2]:                                # has_norm
                gb_ref = refs[i]; i += 1
            y = _apply_stage(y, w_ref, gb_ref, cfg, T_valid, T_pad)
        out_ref[0] = y.astype(out_ref.dtype)
    return kernel


# ----------------------------------------------------------------------------
# Host wrapper: one pallas_call running 1 or 2 fused conv stages.
# ----------------------------------------------------------------------------
def conv_block(x, stages, T_valid, out_dtype=jnp.bfloat16):
    """x: (B, Cin, T_pad) activations (zero beyond T_valid).

    stages: list of dicts with keys
      w     : (Cout, Cin, K) f32 conv weight
      b     : (Cout,) bias or None (only used when no InstanceNorm follows)
      gamma, beta : (Cout,) InstanceNorm affine params or None
      glu   : bool — GLU over the channel axis (halves Cout)
    """
    B, Cin, T_pad = x.shape
    n_stages = len(stages)

    def c_out_of(st):
        co = st['w'].shape[0]
        return co // 2 if st['glu'] else co

    c_final = c_out_of(stages[-1])

    # Second (parallel) grid axis: channel tiles for wide single-stage layers.
    if n_stages == 1 and c_final > 128 and c_final % 128 == 0:
        n_co = c_final // 128
    else:
        n_co = 1

    inputs = [x]
    in_specs = [pl.BlockSpec((1, Cin, T_pad), lambda bi, ci: (bi, 0, 0))]
    stage_cfgs = []
    cin_s = Cin
    for st in stages:
        w = st['w']
        cout, cin_w, K = w.shape
        assert cin_w == cin_s, (cin_w, cin_s)
        has_bias = st.get('b', None) is not None
        has_norm = st.get('gamma', None) is not None
        glu = st['glu']

        # im2col weight layout (tap-major rows to match the kernel's stacking).
        w2 = jnp.transpose(w, (0, 2, 1)).reshape(cout, K * cin_w)
        if has_bias:
            extra = jnp.concatenate(
                [st['b'][:, None],
                 jnp.zeros((cout, _BIAS_ROWS - 1), w2.dtype)], axis=1)
            w2 = jnp.concatenate([w2, extra], axis=1)
        gb = None
        if has_norm:
            gb = jnp.stack([st['gamma'], st['beta']], axis=1)   # (Cout, 2)

        # Re-order rows so each channel tile carries matched GLU (a, b) pairs.
        if n_co > 1 and glu:
            h = cout // 2
            tc = h // n_co

            def pair_perm(a):
                return a.reshape((2, n_co, tc) + a.shape[1:]).transpose(
                    (1, 0, 2) + tuple(range(3, a.ndim + 1))
                ).reshape((cout,) + a.shape[1:])

            w2 = pair_perm(w2)
            if gb is not None:
                gb = pair_perm(gb)

        c_blk = cout // n_co
        D = w2.shape[1]
        inputs.append(w2.astype(jnp.bfloat16))
        in_specs.append(pl.BlockSpec((c_blk, D), lambda bi, ci: (ci, 0)))
        if has_norm:
            inputs.append(gb.astype(jnp.float32))
            in_specs.append(pl.BlockSpec((c_blk, 2), lambda bi, ci: (ci, 0)))
        stage_cfgs.append((K, has_bias, has_norm, glu))
        cin_s = cout // 2 if glu else cout

    c_out_blk = c_final // n_co
    out_specs = pl.BlockSpec((1, c_out_blk, T_pad), lambda bi, ci: (bi, ci, 0))

    kernel = _make_block_kernel(tuple(stage_cfgs), T_valid, T_pad)
    return pl.pallas_call(
        kernel,
        out_shape=jax.ShapeDtypeStruct((B, c_final, T_pad), out_dtype),
        grid_spec=pltpu.PrefetchScalarGridSpec(
            num_scalar_prefetch=0,
            grid=(B, n_co),
            in_specs=in_specs,
            out_specs=out_specs,
        ),
        compiler_params=pltpu.CompilerParams(
            dimension_semantics=("parallel", "parallel"),
            vmem_limit_bytes=64 * 1024 * 1024,
        ),
    )(*inputs)


# ----------------------------------------------------------------------------
# conv1 bank fusion: 8 convs (k = 1,1,3,3,5,5,7,7) -> one K=7 conv 80 -> 256.
# ----------------------------------------------------------------------------
def _fuse_conv1_bank(conv1_params):
    KMAX = 7
    ws, bs = [], []
    for w, b in conv1_params:
        k = w.shape[2]
        pk = (KMAX - k) // 2
        ws.append(jnp.pad(w, ((0, 0), (0, 0), (pk, pk))))
        bs.append(b)
    return jnp.concatenate(ws, axis=0), jnp.concatenate(bs, axis=0)


# ----------------------------------------------------------------------------
# Deterministic parameter construction (PyTorch-like uniform fan-in init).
# ----------------------------------------------------------------------------
def _init_conv(key, cout, cin, k, bias=True):
    kw, kb = jax.random.split(key)
    bound = 1.0 / jnp.sqrt(jnp.float32(cin * k))
    w = jax.random.uniform(kw, (cout, cin, k), jnp.float32, -bound, bound)
    if bias:
        bvec = jax.random.uniform(kb, (cout,), jnp.float32, -bound, bound)
        return w, bvec
    return w, None


def _init_norm(key, c):
    kg, kb = jax.random.split(key)
    gamma = 1.0 + 0.01 * jax.random.normal(kg, (c,), jnp.float32)
    beta = 0.01 * jax.random.normal(kb, (c,), jnp.float32)
    return gamma, beta


def make_params(key, hidden_size=64):
    ks = jax.random.split(key, 16)
    h = hidden_size
    p = {}

    conv1_kernels = [1, 1, 3, 3, 5, 5, 7, 7]
    conv1_keys = jax.random.split(ks[0], len(conv1_kernels))
    p['conv1'] = [_init_conv(conv1_keys[i], 32, 80, k)
                  for i, k in enumerate(conv1_kernels)]

    # NOTE: biases of convs that are immediately followed by InstanceNorm are
    # still generated (mirrors the torch module) but are mathematically inert
    # (IN subtracts the per-channel mean), so the kernels omit them.
    w, b = _init_conv(ks[1], 2 * h, 256, 9)
    g, be = _init_norm(ks[2], 2 * h)
    p['down2'] = dict(w=w, b=b, gamma=g, beta=be)

    w1, b1 = _init_conv(ks[3], 2 * h, h, 9)
    g1, be1 = _init_norm(ks[4], 2 * h)
    w2, _ = _init_conv(ks[5], h, h, 1, bias=False)
    g2, be2 = _init_norm(ks[6], h)
    p['down3'] = dict(w1=w1, b1=b1, g1=g1, be1=be1, w2=w2, g2=g2, be2=be2)

    w1, _ = _init_conv(ks[7], h, h, 1, bias=False)
    g1, be1 = _init_norm(ks[8], h)
    w2, b2 = _init_conv(ks[9], 2 * h, h, 9)
    g2, be2 = _init_norm(ks[10], 2 * h)
    p['up1'] = dict(w1=w1, g1=g1, be1=be1, w2=w2, b2=b2, g2=g2, be2=be2)

    w, b = _init_conv(ks[11], h, h, 9)
    g, be = _init_norm(ks[12], h)
    p['up2'] = dict(w=w, b=b, gamma=g, beta=be)

    w, _ = _init_conv(ks[13], 80, h // 2, 5, bias=False)
    p['out_w'] = w
    return p


# ----------------------------------------------------------------------------
# Forward pass (mirrors GeneratorPlain.forward)
# ----------------------------------------------------------------------------
def generator_forward(params, x, c_src, c_trg):
    if x.ndim == 4:
        x = x[:, 0]                                       # squeeze(1) -> (B, 80, T)
    B, _, T = x.shape
    T_pad = _round_up(max(T, LANE), LANE)
    x = jnp.pad(x, ((0, 0), (0, 0), (0, T_pad - T))).astype(jnp.bfloat16)

    # conv1 bank (8 convs fused into one K=7 conv, output = channel concat order)
    bank_w, bank_b = _fuse_conv1_bank(params['conv1'])
    h = conv_block(x, [dict(w=bank_w, b=bank_b, gamma=None, beta=None, glu=False)], T)

    # down_sample_2: conv9(256 -> 2h) + IN + GLU
    p = params['down2']
    h = conv_block(h, [dict(w=p['w'], b=None, gamma=p['gamma'], beta=p['beta'],
                            glu=True)], T)

    # down_sample_3: conv9(h -> 2h)+IN+GLU then conv1(h -> h, no bias)+IN  (one kernel)
    p = params['down3']
    h = conv_block(h, [dict(w=p['w1'], b=None, gamma=p['g1'], beta=p['be1'], glu=True),
                       dict(w=p['w2'], b=None, gamma=p['g2'], beta=p['be2'], glu=False)],
                   T)

    # TODO(synk): Style2ResidualBlock1DBeta is not defined in the provided source
    # (instantiated via eval); the res_blocks stack is treated as identity on
    # (h, c_src, c_trg).

    # up_sample_1: conv1(h -> h, no bias)+IN then conv9(h -> 2h)+IN+GLU  (one kernel)
    p = params['up1']
    h = conv_block(h, [dict(w=p['w1'], b=None, gamma=p['g1'], beta=p['be1'], glu=False),
                       dict(w=p['w2'], b=None, gamma=p['g2'], beta=p['be2'], glu=True)],
                   T)

    # up_sample_2: conv9(h -> h) + IN + GLU
    p = params['up2']
    h = conv_block(h, [dict(w=p['w'], b=None, gamma=p['gamma'], beta=p['beta'],
                            glu=True)], T)

    # out: conv5(h//2 -> 80, no bias)
    h = conv_block(h, [dict(w=params['out_w'], b=None, gamma=None, beta=None,
                            glu=False)], T, out_dtype=jnp.float32)

    return h[:, None, :, :T]                              # (B, 1, 80, T)


if __name__ == "__main__":
    key = jax.random.PRNGKey(0)
    kp, kx, ksrc, ktrg = jax.random.split(key, 4)

    B, T = 2, 128          # T chosen lane-dense (multiple of 128)
    hidden = 64            # scaled-down hidden_size (default 512 in the module)
    spk_dim = 16

    params = make_params(kp, hidden_size=hidden)
    x = jax.random.normal(kx, (B, 1, 80, T), jnp.float32)       # NCHW-style input
    c_src = jax.random.normal(ksrc, (B, spk_dim), jnp.float32)  # unused (identity res blocks)
    c_trg = jax.random.normal(ktrg, (B, spk_dim), jnp.float32)

    fwd = jax.jit(generator_forward)
    out = fwd(params, x, c_src, c_trg)
    jax.block_until_ready(out)
    assert out.shape == (B, 1, 80, T), out.shape
    assert bool(jnp.all(jnp.isfinite(out)))
    print("KERNEL_OK")
</pallas_src>

<mosaic_0001>
module attributes {stable_mosaic.version = 11 : i64} {
  func.func @kernel(%arg0: i32, %arg1: i32, %arg2: memref<1x80x128xbf16, #tpu.memory_space<vmem>>, %arg3: memref<128x576xbf16, #tpu.memory_space<vmem>>, %arg4: memref<1x128x128xbf16, #tpu.memory_space<vmem>>) attributes {dimension_semantics = [#tpu.dimension_semantics<parallel>, #tpu.dimension_semantics<parallel>], iteration_bounds = array<i64: 2, 2>, scalar_prefetch = 0 : i64, scratch_operands = 0 : i64, tpu.core_type = #tpu.core_type<tc>, window_params = [{transform_indices = @transform_0, window_bounds = array<i64: 1, 80, 128>}, {transform_indices = @transform_1, window_bounds = array<i64: 128, 576>}, {transform_indices = @transform_2, window_bounds = array<i64: 1, 128, 128>}]} {
    %c0 = arith.constant 0 : index
    %c0_0 = arith.constant 0 : index
    %c0_1 = arith.constant 0 : index
    %0 = vector.load %arg2[%c0, %c0_0, %c0_1] : memref<1x80x128xbf16, #tpu.memory_space<vmem>>, vector<1x80x128xbf16>
    %1 = vector.shape_cast %0 : vector<1x80x128xbf16> to vector<80x128xbf16>
    %cst = arith.constant 0.000000e+00 : bf16
    %2 = vector.broadcast %cst : bf16 to vector<80x3xbf16>
    %3 = tpu.concatenate %2, %1, %2 in 1 : vector<80x3xbf16>, vector<80x128xbf16>, vector<80x3xbf16> -> vector<80x134xbf16>
    %4 = vector.extract_strided_slice %3 {offsets = [0, 0], sizes = [80, 128], strides = [1, 1]} : vector<80x134xbf16> to vector<80x128xbf16>
    %5 = vector.extract_strided_slice %3 {offsets = [0, 1], sizes = [80, 128], strides = [1, 1]} : vector<80x134xbf16> to vector<80x128xbf16>
    %6 = vector.extract_strided_slice %3 {offsets = [0, 2], sizes = [80, 128], strides = [1, 1]} : vector<80x134xbf16> to vector<80x128xbf16>
    %7 = vector.extract_strided_slice %3 {offsets = [0, 3], sizes = [80, 128], strides = [1, 1]} : vector<80x134xbf16> to vector<80x128xbf16>
    %8 = vector.extract_strided_slice %3 {offsets = [0, 4], sizes = [80, 128], strides = [1, 1]} : vector<80x134xbf16> to vector<80x128xbf16>
    %9 = vector.extract_strided_slice %3 {offsets = [0, 5], sizes = [80, 128], strides = [1, 1]} : vector<80x134xbf16> to vector<80x128xbf16>
    %10 = vector.extract_strided_slice %3 {offsets = [0, 6], sizes = [80, 128], strides = [1, 1]} : vector<80x134xbf16> to vector<80x128xbf16>
    %11 = tpu.concatenate %4, %5, %6, %7, %8, %9, %10 in 0 : vector<80x128xbf16>, vector<80x128xbf16>, vector<80x128xbf16>, vector<80x128xbf16>, vector<80x128xbf16>, vector<80x128xbf16>, vector<80x128xbf16> -> vector<560x128xbf16>
    %12 = tpu.iota {dimensions = array<i32: 0>} : vector<16x128xi32>
    %c0_i32 = arith.constant 0 : i32
    %13 = vector.broadcast %c0_i32 : i32 to vector<16x128xi32>
    %14 = arith.cmpi eq, %12, %13 : vector<16x128xi32>
    %15 = arith.extui %14 : vector<16x128xi1> to vector<16x128xi32>
    %16 = arith.sitofp %15 : vector<16x128xi32> to vector<16x128xf32>
    %17 = arith.truncf %16 : vector<16x128xf32> to vector<16x128xbf16>
    %18 = tpu.concatenate %11, %17 in 0 : vector<560x128xbf16>, vector<16x128xbf16> -> vector<576x128xbf16>
    %c0_2 = arith.constant 0 : index
    %c0_3 = arith.constant 0 : index
    %19 = vector.load %arg3[%c0_2, %c0_3] : memref<128x576xbf16, #tpu.memory_space<vmem>>, vector<128x576xbf16>
    %cst_4 = arith.constant dense<0.000000e+00> : vector<128x128xf32>
    %20 = tpu.matmul %19, %18, %cst_4 {dimension_numbers = #tpu.dot_dimension_numbers<[1], [0], [0], [1], [0, 0, 1, 1], [], []>} : vector<128x576xbf16>, vector<576x128xbf16>, vector<128x128xf32> -> vector<128x128xf32>
    %21 = arith.truncf %20 : vector<128x128xf32> to vector<128x128xbf16>
    %c0_5 = arith.constant 0 : index
    %c0_6 = arith.constant 0 : index
    %c0_7 = arith.constant 0 : index
    %22 = vector.load %arg4[%c0_5, %c0_6, %c0_7] : memref<1x128x128xbf16, #tpu.memory_space<vmem>>, vector<1x128x128xbf16>
    %23 = vector.shape_cast %22 : vector<1x128x128xbf16> to vector<128x128xbf16>
    %24 = vector.shape_cast %21 : vector<128x128xbf16> to vector<1x128x128xbf16>
    tpu.vector_store %arg4[%c0_5, %c0_6, %c0_7], %24 {strides = array<i32>} : memref<1x128x128xbf16, #tpu.memory_space<vmem>>, vector<1x128x128xbf16>,
    return
  }
  func.func @transform_0(%arg0: i32, %arg1: i32) -> (i32, i32, i32) {
    %c0_i32 = arith.constant 0 : i32
    %c0_i32_0 = arith.constant 0 : i32
    %c0_i32_1 = arith.constant 0 : i32
    return %arg0, %c0_i32, %c0_i32_0 : i32, i32, i32
  }
  func.func @transform_1(%arg0: i32, %arg1: i32) -> (i32, i32) {
    %c0_i32 = arith.constant 0 : i32
    %c0_i32_0 = arith.constant 0 : i32
    return %arg1, %c0_i32 : i32, i32
  }
  func.func @transform_2(%arg0: i32, %arg1: i32) -> (i32, i32, i32) {
    %c0_i32 = arith.constant 0 : i32
    %c0_i32_0 = arith.constant 0 : i32
    return %arg0, %arg1, %c0_i32 : i32, i32, i32
  }
}

module attributes {stable_mosaic.version = 11 : i64} {
  func.func @kernel(%arg0: i32, %arg1: i32, %arg2: memref<1x256x128xbf16, #tpu.memory_space<vmem>>, %arg3: memref<128x2304xbf16, #tpu.memory_space<vmem>>, %arg4: memref<128x2xf32, #tpu.memory_space<vmem>>, %arg5: memref<1x64x128xbf16, #tpu.memory_space<vmem>>) attributes {dimension_semantics = [#tpu.dimension_semantics<parallel>, #tpu.dimension_semantics<parallel>], iteration_bounds = array<i64: 2, 1>, scalar_prefetch = 0 : i64, scratch_operands = 0 : i64, tpu.core_type = #tpu.core_type<tc>, window_params = [{transform_indices = @transform_0, window_bounds = array<i64: 1, 256, 128>}, {transform_indices = @transform_1, window_bounds = array<i64: 128, 2304>}, {transform_indices = @transform_2, window_bounds = array<i64: 128, 2>}, {transform_indices = @transform_3, window_bounds = array<i64: 1, 64, 128>}]} {
    %c0 = arith.constant 0 : index
    %c0_0 = arith.constant 0 : index
    %c0_1 = arith.constant 0 : index
    %0 = vector.load %arg2[%c0, %c0_0, %c0_1] : memref<1x256x128xbf16, #tpu.memory_space<vmem>>, vector<1x256x128xbf16>
    %1 = vector.shape_cast %0 : vector<1x256x128xbf16> to vector<256x128xbf16>
    %cst = arith.constant 0.000000e+00 : bf16
    %2 = vector.broadcast %cst : bf16 to vector<256x4xbf16>
    %3 = tpu.concatenate %2, %1, %2 in 1 : vector<256x4xbf16>, vector<256x128xbf16>, vector<256x4xbf16> -> vector<256x136xbf16>
    %4 = vector.extract_strided_slice %3 {offsets = [0, 0], sizes = [256, 128], strides = [1, 1]} : vector<256x136xbf16> to vector<256x128xbf16>
    %5 = vector.extract_strided_slice %3 {offsets = [0, 1], sizes = [256, 128], strides = [1, 1]} : vector<256x136xbf16> to vector<256x128xbf16>
    %6 = vector.extract_strided_slice %3 {offsets = [0, 2], sizes = [256, 128], strides = [1, 1]} : vector<256x136xbf16> to vector<256x128xbf16>
    %7 = vector.extract_strided_slice %3 {offsets = [0, 3], sizes = [256, 128], strides = [1, 1]} : vector<256x136xbf16> to vector<256x128xbf16>
    %8 = vector.extract_strided_slice %3 {offsets = [0, 4], sizes = [256, 128], strides = [1, 1]} : vector<256x136xbf16> to vector<256x128xbf16>
    %9 = vector.extract_strided_slice %3 {offsets = [0, 5], sizes = [256, 128], strides = [1, 1]} : vector<256x136xbf16> to vector<256x128xbf16>
    %10 = vector.extract_strided_slice %3 {offsets = [0, 6], sizes = [256, 128], strides = [1, 1]} : vector<256x136xbf16> to vector<256x128xbf16>
    %11 = vector.extract_strided_slice %3 {offsets = [0, 7], sizes = [256, 128], strides = [1, 1]} : vector<256x136xbf16> to vector<256x128xbf16>
    %12 = vector.extract_strided_slice %3 {offsets = [0, 8], sizes = [256, 128], strides = [1, 1]} : vector<256x136xbf16> to vector<256x128xbf16>
    %13 = tpu.concatenate %4, %5, %6, %7, %8, %9, %10, %11, %12 in 0 : vector<256x128xbf16>, vector<256x128xbf16>, vector<256x128xbf16>, vector<256x128xbf16>, vector<256x128xbf16>, vector<256x128xbf16>, vector<256x128xbf16>, vector<256x128xbf16>, vector<256x128xbf16> -> vector<2304x128xbf16>
    %c0_2 = arith.constant 0 : index
    %c0_3 = arith.constant 0 : index
    %14 = vector.load %arg3[%c0_2, %c0_3] : memref<128x2304xbf16, #tpu.memory_space<vmem>>, vector<128x2304xbf16>
    %cst_4 = arith.constant dense<0.000000e+00> : vector<128x128xf32>
    %15 = tpu.matmul %14, %13, %cst_4 {dimension_numbers = #tpu.dot_dimension_numbers<[1], [0], [0], [1], [0, 0, 1, 1], [], []>} : vector<128x2304xbf16>, vector<2304x128xbf16>, vector<128x128xf32> -> vector<128x128xf32>
    %cst_5 = arith.constant dense<0.000000e+00> : vector<128xf32>
    %16 = vector.multi_reduction <add>, %15, %cst_5 [1] : vector<128x128xf32> to vector<128xf32>
    %17 = vector.shape_cast %16 : vector<128xf32> to vector<128x1xf32>
    %18 = arith.mulf %15, %15 : vector<128x128xf32>
    %cst_6 = arith.constant dense<0.000000e+00> : vector<128xf32>
    %19 = vector.multi_reduction <add>, %18, %cst_6 [1] : vector<128x128xf32> to vector<128xf32>
    %20 = vector.shape_cast %19 : vector<128xf32> to vector<128x1xf32>
    %cst_7 = arith.constant 7.812500e-03 : f32
    %21 = vector.broadcast %cst_7 : f32 to vector<128x1xf32>
    %22 = arith.mulf %17, %21 : vector<128x1xf32>
    %cst_8 = arith.constant 7.812500e-03 : f32
    %23 = vector.broadcast %cst_8 : f32 to vector<128x1xf32>
    %24 = arith.mulf %20, %23 : vector<128x1xf32>
    %25 = arith.mulf %22, %22 : vector<128x1xf32>
    %26 = arith.subf %24, %25 : vector<128x1xf32>
    %cst_9 = arith.constant 0.000000e+00 : f32
    %27 = vector.broadcast %cst_9 : f32 to vector<128x1xf32>
    %28 = arith.maximumf %26, %27 : vector<128x1xf32>
    %c0_10 = arith.constant 0 : index
    %c0_11 = arith.constant 0 : index
    %29 = vector.load %arg4[%c0_10, %c0_11] : memref<128x2xf32, #tpu.memory_space<vmem>>, vector<128x1xf32>
    %c0_12 = arith.constant 0 : index
    %c1 = arith.constant 1 : index
    %30 = vector.load %arg4[%c0_12, %c1] : memref<128x2xf32, #tpu.memory_space<vmem>>, vector<128x1xf32>
    %31 = vector.broadcast %22 : vector<128x1xf32> to vector<128x128xf32>
    %32 = arith.subf %15, %31 : vector<128x128xf32>
    %cst_13 = arith.constant 9.99999974E-6 : f32
    %33 = vector.broadcast %cst_13 : f32 to vector<128x1xf32>
    %34 = arith.addf %28, %33 : vector<128x1xf32>
    %35 = math.rsqrt %34 : vector<128x1xf32>
    %36 = vector.broadcast %35 : vector<128x1xf32> to vector<128x128xf32>
    %37 = arith.mulf %32, %36 : vector<128x128xf32>
    %38 = vector.broadcast %29 : vector<128x1xf32> to vector<128x128xf32>
    %39 = arith.mulf %37, %38 : vector<128x128xf32>
    %40 = vector.broadcast %30 : vector<128x1xf32> to vector<128x128xf32>
    %41 = arith.addf %39, %40 : vector<128x128xf32>
    %42 = vector.extract_strided_slice %41 {offsets = [0, 0], sizes = [64, 128], strides = [1, 1]} : vector<128x128xf32> to vector<64x128xf32>
    %43 = vector.extract_strided_slice %41 {offsets = [64, 0], sizes = [64, 128], strides = [1, 1]} : vector<128x128xf32> to vector<64x128xf32>
    %44 = arith.negf %43 : vector<64x128xf32>
    %45 = math.exp %44 : vector<64x128xf32>
    %cst_14 = arith.constant 1.000000e+00 : f32
    %46 = vector.broadcast %cst_14 : f32 to vector<64x128xf32>
    %47 = arith.addf %46, %45 : vector<64x128xf32>
    %48 = arith.divf %46, %47 : vector<64x128xf32>
    %49 = arith.mulf %42, %48 : vector<64x128xf32>
    %50 = arith.truncf %49 : vector<64x128xf32> to vector<64x128xbf16>
    %c0_15 = arith.constant 0 : index
    %c0_16 = arith.constant 0 : index
    %c0_17 = arith.constant 0 : index
    %51 = vector.load %arg5[%c0_15, %c0_16, %c0_17] : memref<1x64x128xbf16, #tpu.memory_space<vmem>>, vector<1x64x128xbf16>
    %52 = vector.shape_cast %51 : vector<1x64x128xbf16> to vector<64x128xbf16>
    %53 = vector.shape_cast %50 : vector<64x128xbf16> to vector<1x64x128xbf16>
    tpu.vector_store %arg5[%c0_15, %c0_16, %c0_17], %53 {strides = array<i32>} : memref<1x64x128xbf16, #tpu.memory_space<vmem>>, vector<1x64x128xbf16>,
    return
  }
  func.func @transform_0(%arg0: i32, %arg1: i32) -> (i32, i32, i32) {
    %c0_i32 = arith.constant 0 : i32
    %c0_i32_0 = arith.constant 0 : i32
    %c0_i32_1 = arith.constant 0 : i32
    return %arg0, %c0_i32, %c0_i32_0 : i32, i32, i32
  }
  func.func @transform_1(%arg0: i32, %arg1: i32) -> (i32, i32) {
    %c0_i32 = arith.constant 0 : i32
    %c0_i32_0 = arith.constant 0 : i32
    return %arg1, %c0_i32 : i32, i32
  }
  func.func @transform_2(%arg0: i32, %arg1: i32) -> (i32, i32) {
    %c0_i32 = arith.constant 0 : i32
    %c0_i32_0 = arith.constant 0 : i32
    return %arg1, %c0_i32 : i32, i32
  }
  func.func @transform_3(%arg0: i32, %arg1: i32) -> (i32, i32, i32) {
    %c0_i32 = arith.constant 0 : i32
    %c0_i32_0 = arith.constant 0 : i32
    return %arg0, %arg1, %c0_i32 : i32, i32, i32
  }
}

module attributes {stable_mosaic.version = 11 : i64} {
  func.func @kernel(%arg0: i32, %arg1: i32, %arg2: memref<1x64x128xbf16, #tpu.memory_space<vmem>>, %arg3: memref<128x576xbf16, #tpu.memory_space<vmem>>, %arg4: memref<128x2xf32, #tpu.memory_space<vmem>>, %arg5: memref<64x64xbf16, #tpu.memory_space<vmem>>, %arg6: memref<64x2xf32, #tpu.memory_space<vmem>>, %arg7: memref<1x64x128xbf16, #tpu.memory_space<vmem>>) attributes {dimension_semantics = [#tpu.dimension_semantics<parallel>, #tpu.dimension_semantics<parallel>], iteration_bounds = array<i64: 2, 1>, scalar_prefetch = 0 : i64, scratch_operands = 0 : i64, tpu.core_type = #tpu.core_type<tc>, window_params = [{transform_indices = @transform_0, window_bounds = array<i64: 1, 64, 128>}, {transform_indices = @transform_1, window_bounds = array<i64: 128, 576>}, {transform_indices = @transform_2, window_bounds = array<i64: 128, 2>}, {transform_indices = @transform_3, window_bounds = array<i64: 64, 64>}, {transform_indices = @transform_4, window_bounds = array<i64: 64, 2>}, {transform_indices = @transform_5, window_bounds = array<i64: 1, 64, 128>}]} {
    %c0 = arith.constant 0 : index
    %c0_0 = arith.constant 0 : index
    %c0_1 = arith.constant 0 : index
    %0 = vector.load %arg2[%c0, %c0_0, %c0_1] : memref<1x64x128xbf16, #tpu.memory_space<vmem>>, vector<1x64x128xbf16>
    %1 = vector.shape_cast %0 : vector<1x64x128xbf16> to vector<64x128xbf16>
    %cst = arith.constant 0.000000e+00 : bf16
    %2 = vector.broadcast %cst : bf16 to vector<64x4xbf16>
    %3 = tpu.concatenate %2, %1, %2 in 1 : vector<64x4xbf16>, vector<64x128xbf16>, vector<64x4xbf16> -> vector<64x136xbf16>
    %4 = vector.extract_strided_slice %3 {offsets = [0, 0], sizes = [64, 128], strides = [1, 1]} : vector<64x136xbf16> to vector<64x128xbf16>
    %5 = vector.extract_strided_slice %3 {offsets = [0, 1], sizes = [64, 128], strides = [1, 1]} : vector<64x136xbf16> to vector<64x128xbf16>
    %6 = vector.extract_strided_slice %3 {offsets = [0, 2], sizes = [64, 128], strides = [1, 1]} : vector<64x136xbf16> to vector<64x128xbf16>
    %7 = vector.extract_strided_slice %3 {offsets = [0, 3], sizes = [64, 128], strides = [1, 1]} : vector<64x136xbf16> to vector<64x128xbf16>
    %8 = vector.extract_strided_slice %3 {offsets = [0, 4], sizes = [64, 128], strides = [1, 1]} : vector<64x136xbf16> to vector<64x128xbf16>
    %9 = vector.extract_strided_slice %3 {offsets = [0, 5], sizes = [64, 128], strides = [1, 1]} : vector<64x136xbf16> to vector<64x128xbf16>
    %10 = vector.extract_strided_slice %3 {offsets = [0, 6], sizes = [64, 128], strides = [1, 1]} : vector<64x136xbf16> to vector<64x128xbf16>
    %11 = vector.extract_strided_slice %3 {offsets = [0, 7], sizes = [64, 128], strides = [1, 1]} : vector<64x136xbf16> to vector<64x128xbf16>
    %12 = vector.extract_strided_slice %3 {offsets = [0, 8], sizes = [64, 128], strides = [1, 1]} : vector<64x136xbf16> to vector<64x128xbf16>
    %13 = tpu.concatenate %4, %5, %6, %7, %8, %9, %10, %11, %12 in 0 : vector<64x128xbf16>, vector<64x128xbf16>, vector<64x128xbf16>, vector<64x128xbf16>, vector<64x128xbf16>, vector<64x128xbf16>, vector<64x128xbf16>, vector<64x128xbf16>, vector<64x128xbf16> -> vector<576x128xbf16>
    %c0_2 = arith.constant 0 : index
    %c0_3 = arith.constant 0 : index
    %14 = vector.load %arg3[%c0_2, %c0_3] : memref<128x576xbf16, #tpu.memory_space<vmem>>, vector<128x576xbf16>
    %cst_4 = arith.constant dense<0.000000e+00> : vector<128x128xf32>
    %15 = tpu.matmul %14, %13, %cst_4 {dimension_numbers = #tpu.dot_dimension_numbers<[1], [0], [0], [1], [0, 0, 1, 1], [], []>} : vector<128x576xbf16>, vector<576x128xbf16>, vector<128x128xf32> -> vector<128x128xf32>
    %cst_5 = arith.constant dense<0.000000e+00> : vector<128xf32>
    %16 = vector.multi_reduction <add>, %15, %cst_5 [1] : vector<128x128xf32> to vector<128xf32>
    %17 = vector.shape_cast %16 : vector<128xf32> to vector<128x1xf32>
    %18 = arith.mulf %15, %15 : vector<128x128xf32>
    %cst_6 = arith.constant dense<0.000000e+00> : vector<128xf32>
    %19 = vector.multi_reduction <add>, %18, %cst_6 [1] : vector<128x128xf32> to vector<128xf32>
    %20 = vector.shape_cast %19 : vector<128xf32> to vector<128x1xf32>
    %cst_7 = arith.constant 7.812500e-03 : f32
    %21 = vector.broadcast %cst_7 : f32 to vector<128x1xf32>
    %22 = arith.mulf %17, %21 : vector<128x1xf32>
    %cst_8 = arith.constant 7.812500e-03 : f32
    %23 = vector.broadcast %cst_8 : f32 to vector<128x1xf32>
    %24 = arith.mulf %20, %23 : vector<128x1xf32>
    %25 = arith.mulf %22, %22 : vector<128x1xf32>
    %26 = arith.subf %24, %25 : vector<128x1xf32>
    %cst_9 = arith.constant 0.000000e+00 : f32
    %27 = vector.broadcast %cst_9 : f32 to vector<128x1xf32>
    %28 = arith.maximumf %26, %27 : vector<128x1xf32>
    %c0_10 = arith.constant 0 : index
    %c0_11 = arith.constant 0 : index
    %29 = vector.load %arg4[%c0_10, %c0_11] : memref<128x2xf32, #tpu.memory_space<vmem>>, vector<128x1xf32>
    %c0_12 = arith.constant 0 : index
    %c1 = arith.constant 1 : index
    %30 = vector.load %arg4[%c0_12, %c1] : memref<128x2xf32, #tpu.memory_space<vmem>>, vector<128x1xf32>
    %31 = vector.broadcast %22 : vector<128x1xf32> to vector<128x128xf32>
    %32 = arith.subf %15, %31 : vector<128x128xf32>
    %cst_13 = arith.constant 9.99999974E-6 : f32
    %33 = vector.broadcast %cst_13 : f32 to vector<128x1xf32>
    %34 = arith.addf %28, %33 : vector<128x1xf32>
    %35 = math.rsqrt %34 : vector<128x1xf32>
    %36 = vector.broadcast %35 : vector<128x1xf32> to vector<128x128xf32>
    %37 = arith.mulf %32, %36 : vector<128x128xf32>
    %38 = vector.broadcast %29 : vector<128x1xf32> to vector<128x128xf32>
    %39 = arith.mulf %37, %38 : vector<128x128xf32>
    %40 = vector.broadcast %30 : vector<128x1xf32> to vector<128x128xf32>
    %41 = arith.addf %39, %40 : vector<128x128xf32>
    %42 = vector.extract_strided_slice %41 {offsets = [0, 0], sizes = [64, 128], strides = [1, 1]} : vector<128x128xf32> to vector<64x128xf32>
    %43 = vector.extract_strided_slice %41 {offsets = [64, 0], sizes = [64, 128], strides = [1, 1]} : vector<128x128xf32> to vector<64x128xf32>
    %44 = arith.negf %43 : vector<64x128xf32>
    %45 = math.exp %44 : vector<64x128xf32>
    %cst_14 = arith.constant 1.000000e+00 : f32
    %46 = vector.broadcast %cst_14 : f32 to vector<64x128xf32>
    %47 = arith.addf %46, %45 : vector<64x128xf32>
    %48 = arith.divf %46, %47 : vector<64x128xf32>
    %49 = arith.mulf %42, %48 : vector<64x128xf32>
    %50 = arith.truncf %49 : vector<64x128xf32> to vector<64x128xbf16>
    %c0_15 = arith.constant 0 : index
    %c0_16 = arith.constant 0 : index
    %51 = vector.load %arg5[%c0_15, %c0_16] : memref<64x64xbf16, #tpu.memory_space<vmem>>, vector<64x64xbf16>
    %cst_17 = arith.constant dense<0.000000e+00> : vector<64x128xf32>
    %52 = tpu.matmul %51, %50, %cst_17 {dimension_numbers = #tpu.dot_dimension_numbers<[1], [0], [0], [1], [0, 0, 1, 1], [], []>} : vector<64x64xbf16>, vector<64x128xbf16>, vector<64x128xf32> -> vector<64x128xf32>
    %cst_18 = arith.constant dense<0.000000e+00> : vector<64xf32>
    %53 = vector.multi_reduction <add>, %52, %cst_18 [1] : vector<64x128xf32> to vector<64xf32>
    %54 = vector.shape_cast %53 : vector<64xf32> to vector<64x1xf32>
    %55 = arith.mulf %52, %52 : vector<64x128xf32>
    %cst_19 = arith.constant dense<0.000000e+00> : vector<64xf32>
    %56 = vector.multi_reduction <add>, %55, %cst_19 [1] : vector<64x128xf32> to vector<64xf32>
    %57 = vector.shape_cast %56 : vector<64xf32> to vector<64x1xf32>
    %cst_20 = arith.constant 7.812500e-03 : f32
    %58 = vector.broadcast %cst_20 : f32 to vector<64x1xf32>
    %59 = arith.mulf %54, %58 : vector<64x1xf32>
    %cst_21 = arith.constant 7.812500e-03 : f32
    %60 = vector.broadcast %cst_21 : f32 to vector<64x1xf32>
    %61 = arith.mulf %57, %60 : vector<64x1xf32>
    %62 = arith.mulf %59, %59 : vector<64x1xf32>
    %63 = arith.subf %61, %62 : vector<64x1xf32>
    %cst_22 = arith.constant 0.000000e+00 : f32
    %64 = vector.broadcast %cst_22 : f32 to vector<64x1xf32>
    %65 = arith.maximumf %63, %64 : vector<64x1xf32>
    %c0_23 = arith.constant 0 : index
    %c0_24 = arith.constant 0 : index
    %66 = vector.load %arg6[%c0_23, %c0_24] : memref<64x2xf32, #tpu.memory_space<vmem>>, vector<64x1xf32>
    %c0_25 = arith.constant 0 : index
    %c1_26 = arith.constant 1 : index
    %67 = vector.load %arg6[%c0_25, %c1_26] : memref<64x2xf32, #tpu.memory_space<vmem>>, vector<64x1xf32>
    %68 = vector.broadcast %59 : vector<64x1xf32> to vector<64x128xf32>
    %69 = arith.subf %52, %68 : vector<64x128xf32>
    %cst_27 = arith.constant 9.99999974E-6 : f32
    %70 = vector.broadcast %cst_27 : f32 to vector<64x1xf32>
    %71 = arith.addf %65, %70 : vector<64x1xf32>
    %72 = math.rsqrt %71 : vector<64x1xf32>
    %73 = vector.broadcast %72 : vector<64x1xf32> to vector<64x128xf32>
    %74 = arith.mulf %69, %73 : vector<64x128xf32>
    %75 = vector.broadcast %66 : vector<64x1xf32> to vector<64x128xf32>
    %76 = arith.mulf %74, %75 : vector<64x128xf32>
    %77 = vector.broadcast %67 : vector<64x1xf32> to vector<64x128xf32>
    %78 = arith.addf %76, %77 : vector<64x128xf32>
    %79 = arith.truncf %78 : vector<64x128xf32> to vector<64x128xbf16>
    %c0_28 = arith.constant 0 : index
    %c0_29 = arith.constant 0 : index
    %c0_30 = arith.constant 0 : index
    %80 = vector.load %arg7[%c0_28, %c0_29, %c0_30] : memref<1x64x128xbf16, #tpu.memory_space<vmem>>, vector<1x64x128xbf16>
    %81 = vector.shape_cast %80 : vector<1x64x128xbf16> to vector<64x128xbf16>
    %82 = vector.shape_cast %79 : vector<64x128xbf16> to vector<1x64x128xbf16>
    tpu.vector_store %arg7[%c0_28, %c0_29, %c0_30], %82 {strides = array<i32>} : memref<1x64x128xbf16, #tpu.memory_space<vmem>>, vector<1x64x128xbf16>,
    return
  }
  func.func @transform_0(%arg0: i32, %arg1: i32) -> (i32, i32, i32) {
    %c0_i32 = arith.constant 0 : i32
    %c0_i32_0 = arith.constant 0 : i32
    %c0_i32_1 = arith.constant 0 : i32
    return %arg0, %c0_i32, %c0_i32_0 : i32, i32, i32
  }
  func.func @transform_1(%arg0: i32, %arg1: i32) -> (i32, i32) {
    %c0_i32 = arith.constant 0 : i32
    %c0_i32_0 = arith.constant 0 : i32
    return %arg1, %c0_i32 : i32, i32
  }
  func.func @transform_2(%arg0: i32, %arg1: i32) -> (i32, i32) {
    %c0_i32 = arith.constant 0 : i32
    %c0_i32_0 = arith.constant 0 : i32
    return %arg1, %c0_i32 : i32, i32
  }
  func.func @transform_3(%arg0: i32, %arg1: i32) -> (i32, i32) {
    %c0_i32 = arith.constant 0 : i32
    %c0_i32_0 = arith.constant 0 : i32
    return %arg1, %c0_i32 : i32, i32
  }
  func.func @transform_4(%arg0: i32, %arg1: i32) -> (i32, i32) {
    %c0_i32 = arith.constant 0 : i32
    %c0_i32_0 = arith.constant 0 : i32
    return %arg1, %c0_i32 : i32, i32
  }
  func.func @transform_5(%arg0: i32, %arg1: i32) -> (i32, i32, i32) {
    %c0_i32 = arith.constant 0 : i32
    %c0_i32_0 = arith.constant 0 : i32
    return %arg0, %arg1, %c0_i32 : i32, i32, i32
  }
}

module attributes {stable_mosaic.version = 11 : i64} {
  func.func @kernel(%arg0: i32, %arg1: i32, %arg2: memref<1x64x128xbf16, #tpu.memory_space<vmem>>, %arg3: memref<64x64xbf16, #tpu.memory_space<vmem>>, %arg4: memref<64x2xf32, #tpu.memory_space<vmem>>, %arg5: memref<128x576xbf16, #tpu.memory_space<vmem>>, %arg6: memref<128x2xf32, #tpu.memory_space<vmem>>, %arg7: memref<1x64x128xbf16, #tpu.memory_space<vmem>>) attributes {dimension_semantics = [#tpu.dimension_semantics<parallel>, #tpu.dimension_semantics<parallel>], iteration_bounds = array<i64: 2, 1>, scalar_prefetch = 0 : i64, scratch_operands = 0 : i64, tpu.core_type = #tpu.core_type<tc>, window_params = [{transform_indices = @transform_0, window_bounds = array<i64: 1, 64, 128>}, {transform_indices = @transform_1, window_bounds = array<i64: 64, 64>}, {transform_indices = @transform_2, window_bounds = array<i64: 64, 2>}, {transform_indices = @transform_3, window_bounds = array<i64: 128, 576>}, {transform_indices = @transform_4, window_bounds = array<i64: 128, 2>}, {transform_indices = @transform_5, window_bounds = array<i64: 1, 64, 128>}]} {
    %c0 = arith.constant 0 : index
    %c0_0 = arith.constant 0 : index
    %c0_1 = arith.constant 0 : index
    %0 = vector.load %arg2[%c0, %c0_0, %c0_1] : memref<1x64x128xbf16, #tpu.memory_space<vmem>>, vector<1x64x128xbf16>
    %1 = vector.shape_cast %0 : vector<1x64x128xbf16> to vector<64x128xbf16>
    %c0_2 = arith.constant 0 : index
    %c0_3 = arith.constant 0 : index
    %2 = vector.load %arg3[%c0_2, %c0_3] : memref<64x64xbf16, #tpu.memory_space<vmem>>, vector<64x64xbf16>
    %cst = arith.constant dense<0.000000e+00> : vector<64x128xf32>
    %3 = tpu.matmul %2, %1, %cst {dimension_numbers = #tpu.dot_dimension_numbers<[1], [0], [0], [1], [0, 0, 1, 1], [], []>} : vector<64x64xbf16>, vector<64x128xbf16>, vector<64x128xf32> -> vector<64x128xf32>
    %cst_4 = arith.constant dense<0.000000e+00> : vector<64xf32>
    %4 = vector.multi_reduction <add>, %3, %cst_4 [1] : vector<64x128xf32> to vector<64xf32>
    %5 = vector.shape_cast %4 : vector<64xf32> to vector<64x1xf32>
    %6 = arith.mulf %3, %3 : vector<64x128xf32>
    %cst_5 = arith.constant dense<0.000000e+00> : vector<64xf32>
    %7 = vector.multi_reduction <add>, %6, %cst_5 [1] : vector<64x128xf32> to vector<64xf32>
    %8 = vector.shape_cast %7 : vector<64xf32> to vector<64x1xf32>
    %cst_6 = arith.constant 7.812500e-03 : f32
    %9 = vector.broadcast %cst_6 : f32 to vector<64x1xf32>
    %10 = arith.mulf %5, %9 : vector<64x1xf32>
    %cst_7 = arith.constant 7.812500e-03 : f32
    %11 = vector.broadcast %cst_7 : f32 to vector<64x1xf32>
    %12 = arith.mulf %8, %11 : vector<64x1xf32>
    %13 = arith.mulf %10, %10 : vector<64x1xf32>
    %14 = arith.subf %12, %13 : vector<64x1xf32>
    %cst_8 = arith.constant 0.000000e+00 : f32
    %15 = vector.broadcast %cst_8 : f32 to vector<64x1xf32>
    %16 = arith.maximumf %14, %15 : vector<64x1xf32>
    %c0_9 = arith.constant 0 : index
    %c0_10 = arith.constant 0 : index
    %17 = vector.load %arg4[%c0_9, %c0_10] : memref<64x2xf32, #tpu.memory_space<vmem>>, vector<64x1xf32>
    %c0_11 = arith.constant 0 : index
    %c1 = arith.constant 1 : index
    %18 = vector.load %arg4[%c0_11, %c1] : memref<64x2xf32, #tpu.memory_space<vmem>>, vector<64x1xf32>
    %19 = vector.broadcast %10 : vector<64x1xf32> to vector<64x128xf32>
    %20 = arith.subf %3, %19 : vector<64x128xf32>
    %cst_12 = arith.constant 9.99999974E-6 : f32
    %21 = vector.broadcast %cst_12 : f32 to vector<64x1xf32>
    %22 = arith.addf %16, %21 : vector<64x1xf32>
    %23 = math.rsqrt %22 : vector<64x1xf32>
    %24 = vector.broadcast %23 : vector<64x1xf32> to vector<64x128xf32>
    %25 = arith.mulf %20, %24 : vector<64x128xf32>
    %26 = vector.broadcast %17 : vector<64x1xf32> to vector<64x128xf32>
    %27 = arith.mulf %25, %26 : vector<64x128xf32>
    %28 = vector.broadcast %18 : vector<64x1xf32> to vector<64x128xf32>
    %29 = arith.addf %27, %28 : vector<64x128xf32>
    %30 = arith.truncf %29 : vector<64x128xf32> to vector<64x128xbf16>
    %cst_13 = arith.constant 0.000000e+00 : bf16
    %31 = vector.broadcast %cst_13 : bf16 to vector<64x4xbf16>
    %32 = tpu.concatenate %31, %30, %31 in 1 : vector<64x4xbf16>, vector<64x128xbf16>, vector<64x4xbf16> -> vector<64x136xbf16>
    %33 = vector.extract_strided_slice %32 {offsets = [0, 0], sizes = [64, 128], strides = [1, 1]} : vector<64x136xbf16> to vector<64x128xbf16>
    %34 = vector.extract_strided_slice %32 {offsets = [0, 1], sizes = [64, 128], strides = [1, 1]} : vector<64x136xbf16> to vector<64x128xbf16>
    %35 = vector.extract_strided_slice %32 {offsets = [0, 2], sizes = [64, 128], strides = [1, 1]} : vector<64x136xbf16> to vector<64x128xbf16>
    %36 = vector.extract_strided_slice %32 {offsets = [0, 3], sizes = [64, 128], strides = [1, 1]} : vector<64x136xbf16> to vector<64x128xbf16>
    %37 = vector.extract_strided_slice %32 {offsets = [0, 4], sizes = [64, 128], strides = [1, 1]} : vector<64x136xbf16> to vector<64x128xbf16>
    %38 = vector.extract_strided_slice %32 {offsets = [0, 5], sizes = [64, 128], strides = [1, 1]} : vector<64x136xbf16> to vector<64x128xbf16>
    %39 = vector.extract_strided_slice %32 {offsets = [0, 6], sizes = [64, 128], strides = [1, 1]} : vector<64x136xbf16> to vector<64x128xbf16>
    %40 = vector.extract_strided_slice %32 {offsets = [0, 7], sizes = [64, 128], strides = [1, 1]} : vector<64x136xbf16> to vector<64x128xbf16>
    %41 = vector.extract_strided_slice %32 {offsets = [0, 8], sizes = [64, 128], strides = [1, 1]} : vector<64x136xbf16> to vector<64x128xbf16>
    %42 = tpu.concatenate %33, %34, %35, %36, %37, %38, %39, %40, %41 in 0 : vector<64x128xbf16>, vector<64x128xbf16>, vector<64x128xbf16>, vector<64x128xbf16>, vector<64x128xbf16>, vector<64x128xbf16>, vector<64x128xbf16>, vector<64x128xbf16>, vector<64x128xbf16> -> vector<576x128xbf16>
    %c0_14 = arith.constant 0 : index
    %c0_15 = arith.constant 0 : index
    %43 = vector.load %arg5[%c0_14, %c0_15] : memref<128x576xbf16, #tpu.memory_space<vmem>>, vector<128x576xbf16>
    %cst_16 = arith.constant dense<0.000000e+00> : vector<128x128xf32>
    %44 = tpu.matmul %43, %42, %cst_16 {dimension_numbers = #tpu.dot_dimension_numbers<[1], [0], [0], [1], [0, 0, 1, 1], [], []>} : vector<128x576xbf16>, vector<576x128xbf16>, vector<128x128xf32> -> vector<128x128xf32>
    %cst_17 = arith.constant dense<0.000000e+00> : vector<128xf32>
    %45 = vector.multi_reduction <add>, %44, %cst_17 [1] : vector<128x128xf32> to vector<128xf32>
    %46 = vector.shape_cast %45 : vector<128xf32> to vector<128x1xf32>
    %47 = arith.mulf %44, %44 : vector<128x128xf32>
    %cst_18 = arith.constant dense<0.000000e+00> : vector<128xf32>
    %48 = vector.multi_reduction <add>, %47, %cst_18 [1] : vector<128x128xf32> to vector<128xf32>
    %49 = vector.shape_cast %48 : vector<128xf32> to vector<128x1xf32>
    %cst_19 = arith.constant 7.812500e-03 : f32
    %50 = vector.broadcast %cst_19 : f32 to vector<128x1xf32>
    %51 = arith.mulf %46, %50 : vector<128x1xf32>
    %cst_20 = arith.constant 7.812500e-03 : f32
    %52 = vector.broadcast %cst_20 : f32 to vector<128x1xf32>
    %53 = arith.mulf %49, %52 : vector<128x1xf32>
    %54 = arith.mulf %51, %51 : vector<128x1xf32>
    %55 = arith.subf %53, %54 : vector<128x1xf32>
    %cst_21 = arith.constant 0.000000e+00 : f32
    %56 = vector.broadcast %cst_21 : f32 to vector<128x1xf32>
    %57 = arith.maximumf %55, %56 : vector<128x1xf32>
    %c0_22 = arith.constant 0 : index
    %c0_23 = arith.constant 0 : index
    %58 = vector.load %arg6[%c0_22, %c0_23] : memref<128x2xf32, #tpu.memory_space<vmem>>, vector<128x1xf32>
    %c0_24 = arith.constant 0 : index
    %c1_25 = arith.constant 1 : index
    %59 = vector.load %arg6[%c0_24, %c1_25] : memref<128x2xf32, #tpu.memory_space<vmem>>, vector<128x1xf32>
    %60 = vector.broadcast %51 : vector<128x1xf32> to vector<128x128xf32>
    %61 = arith.subf %44, %60 : vector<128x128xf32>
    %cst_26 = arith.constant 9.99999974E-6 : f32
    %62 = vector.broadcast %cst_26 : f32 to vector<128x1xf32>
    %63 = arith.addf %57, %62 : vector<128x1xf32>
    %64 = math.rsqrt %63 : vector<128x1xf32>
    %65 = vector.broadcast %64 : vector<128x1xf32> to vector<128x128xf32>
    %66 = arith.mulf %61, %65 : vector<128x128xf32>
    %67 = vector.broadcast %58 : vector<128x1xf32> to vector<128x128xf32>
    %68 = arith.mulf %66, %67 : vector<128x128xf32>
    %69 = vector.broadcast %59 : vector<128x1xf32> to vector<128x128xf32>
    %70 = arith.addf %68, %69 : vector<128x128xf32>
    %71 = vector.extract_strided_slice %70 {offsets = [0, 0], sizes = [64, 128], strides = [1, 1]} : vector<128x128xf32> to vector<64x128xf32>
    %72 = vector.extract_strided_slice %70 {offsets = [64, 0], sizes = [64, 128], strides = [1, 1]} : vector<128x128xf32> to vector<64x128xf32>
    %73 = arith.negf %72 : vector<64x128xf32>
    %74 = math.exp %73 : vector<64x128xf32>
    %cst_27 = arith.constant 1.000000e+00 : f32
    %75 = vector.broadcast %cst_27 : f32 to vector<64x128xf32>
    %76 = arith.addf %75, %74 : vector<64x128xf32>
    %77 = arith.divf %75, %76 : vector<64x128xf32>
    %78 = arith.mulf %71, %77 : vector<64x128xf32>
    %79 = arith.truncf %78 : vector<64x128xf32> to vector<64x128xbf16>
    %c0_28 = arith.constant 0 : index
    %c0_29 = arith.constant 0 : index
    %c0_30 = arith.constant 0 : index
    %80 = vector.load %arg7[%c0_28, %c0_29, %c0_30] : memref<1x64x128xbf16, #tpu.memory_space<vmem>>, vector<1x64x128xbf16>
    %81 = vector.shape_cast %80 : vector<1x64x128xbf16> to vector<64x128xbf16>
    %82 = vector.shape_cast %79 : vector<64x128xbf16> to vector<1x64x128xbf16>
    tpu.vector_store %arg7[%c0_28, %c0_29, %c0_30], %82 {strides = array<i32>} : memref<1x64x128xbf16, #tpu.memory_space<vmem>>, vector<1x64x128xbf16>,
    return
  }
  func.func @transform_0(%arg0: i32, %arg1: i32) -> (i32, i32, i32) {
    %c0_i32 = arith.constant 0 : i32
    %c0_i32_0 = arith.constant 0 : i32
    %c0_i32_1 = arith.constant 0 : i32
    return %arg0, %c0_i32, %c0_i32_0 : i32, i32, i32
  }
  func.func @transform_1(%arg0: i32, %arg1: i32) -> (i32, i32) {
    %c0_i32 = arith.constant 0 : i32
    %c0_i32_0 = arith.constant 0 : i32
    return %arg1, %c0_i32 : i32, i32
  }
  func.func @transform_2(%arg0: i32, %arg1: i32) -> (i32, i32) {
    %c0_i32 = arith.constant 0 : i32
    %c0_i32_0 = arith.constant 0 : i32
    return %arg1, %c0_i32 : i32, i32
  }
  func.func @transform_3(%arg0: i32, %arg1: i32) -> (i32, i32) {
    %c0_i32 = arith.constant 0 : i32
    %c0_i32_0 = arith.constant 0 : i32
    return %arg1, %c0_i32 : i32, i32
  }
  func.func @transform_4(%arg0: i32, %arg1: i32) -> (i32, i32) {
    %c0_i32 = arith.constant 0 : i32
    %c0_i32_0 = arith.constant 0 : i32
    return %arg1, %c0_i32 : i32, i32
  }
  func.func @transform_5(%arg0: i32, %arg1: i32) -> (i32, i32, i32) {
    %c0_i32 = arith.constant 0 : i32
    %c0_i32_0 = arith.constant 0 : i32
    return %arg0, %arg1, %c0_i32 : i32, i32, i32
  }
}

module attributes {stable_mosaic.version = 11 : i64} {
  func.func @kernel(%arg0: i32, %arg1: i32, %arg2: memref<1x64x128xbf16, #tpu.memory_space<vmem>>, %arg3: memref<64x576xbf16, #tpu.memory_space<vmem>>, %arg4: memref<64x2xf32, #tpu.memory_space<vmem>>, %arg5: memref<1x32x128xbf16, #tpu.memory_space<vmem>>) attributes {dimension_semantics = [#tpu.dimension_semantics<parallel>, #tpu.dimension_semantics<parallel>], iteration_bounds = array<i64: 2, 1>, scalar_prefetch = 0 : i64, scratch_operands = 0 : i64, tpu.core_type = #tpu.core_type<tc>, window_params = [{transform_indices = @transform_0, window_bounds = array<i64: 1, 64, 128>}, {transform_indices = @transform_1, window_bounds = array<i64: 64, 576>}, {transform_indices = @transform_2, window_bounds = array<i64: 64, 2>}, {transform_indices = @transform_3, window_bounds = array<i64: 1, 32, 128>}]} {
    %c0 = arith.constant 0 : index
    %c0_0 = arith.constant 0 : index
    %c0_1 = arith.constant 0 : index
    %0 = vector.load %arg2[%c0, %c0_0, %c0_1] : memref<1x64x128xbf16, #tpu.memory_space<vmem>>, vector<1x64x128xbf16>
    %1 = vector.shape_cast %0 : vector<1x64x128xbf16> to vector<64x128xbf16>
    %cst = arith.constant 0.000000e+00 : bf16
    %2 = vector.broadcast %cst : bf16 to vector<64x4xbf16>
    %3 = tpu.concatenate %2, %1, %2 in 1 : vector<64x4xbf16>, vector<64x128xbf16>, vector<64x4xbf16> -> vector<64x136xbf16>
    %4 = vector.extract_strided_slice %3 {offsets = [0, 0], sizes = [64, 128], strides = [1, 1]} : vector<64x136xbf16> to vector<64x128xbf16>
    %5 = vector.extract_strided_slice %3 {offsets = [0, 1], sizes = [64, 128], strides = [1, 1]} : vector<64x136xbf16> to vector<64x128xbf16>
    %6 = vector.extract_strided_slice %3 {offsets = [0, 2], sizes = [64, 128], strides = [1, 1]} : vector<64x136xbf16> to vector<64x128xbf16>
    %7 = vector.extract_strided_slice %3 {offsets = [0, 3], sizes = [64, 128], strides = [1, 1]} : vector<64x136xbf16> to vector<64x128xbf16>
    %8 = vector.extract_strided_slice %3 {offsets = [0, 4], sizes = [64, 128], strides = [1, 1]} : vector<64x136xbf16> to vector<64x128xbf16>
    %9 = vector.extract_strided_slice %3 {offsets = [0, 5], sizes = [64, 128], strides = [1, 1]} : vector<64x136xbf16> to vector<64x128xbf16>
    %10 = vector.extract_strided_slice %3 {offsets = [0, 6], sizes = [64, 128], strides = [1, 1]} : vector<64x136xbf16> to vector<64x128xbf16>
    %11 = vector.extract_strided_slice %3 {offsets = [0, 7], sizes = [64, 128], strides = [1, 1]} : vector<64x136xbf16> to vector<64x128xbf16>
    %12 = vector.extract_strided_slice %3 {offsets = [0, 8], sizes = [64, 128], strides = [1, 1]} : vector<64x136xbf16> to vector<64x128xbf16>
    %13 = tpu.concatenate %4, %5, %6, %7, %8, %9, %10, %11, %12 in 0 : vector<64x128xbf16>, vector<64x128xbf16>, vector<64x128xbf16>, vector<64x128xbf16>, vector<64x128xbf16>, vector<64x128xbf16>, vector<64x128xbf16>, vector<64x128xbf16>, vector<64x128xbf16> -> vector<576x128xbf16>
    %c0_2 = arith.constant 0 : index
    %c0_3 = arith.constant 0 : index
    %14 = vector.load %arg3[%c0_2, %c0_3] : memref<64x576xbf16, #tpu.memory_space<vmem>>, vector<64x576xbf16>
    %cst_4 = arith.constant dense<0.000000e+00> : vector<64x128xf32>
    %15 = tpu.matmul %14, %13, %cst_4 {dimension_numbers = #tpu.dot_dimension_numbers<[1], [0], [0], [1], [0, 0, 1, 1], [], []>} : vector<64x576xbf16>, vector<576x128xbf16>, vector<64x128xf32> -> vector<64x128xf32>
    %cst_5 = arith.constant dense<0.000000e+00> : vector<64xf32>
    %16 = vector.multi_reduction <add>, %15, %cst_5 [1] : vector<64x128xf32> to vector<64xf32>
    %17 = vector.shape_cast %16 : vector<64xf32> to vector<64x1xf32>
    %18 = arith.mulf %15, %15 : vector<64x128xf32>
    %cst_6 = arith.constant dense<0.000000e+00> : vector<64xf32>
    %19 = vector.multi_reduction <add>, %18, %cst_6 [1] : vector<64x128xf32> to vector<64xf32>
    %20 = vector.shape_cast %19 : vector<64xf32> to vector<64x1xf32>
    %cst_7 = arith.constant 7.812500e-03 : f32
    %21 = vector.broadcast %cst_7 : f32 to vector<64x1xf32>
    %22 = arith.mulf %17, %21 : vector<64x1xf32>
    %cst_8 = arith.constant 7.812500e-03 : f32
    %23 = vector.broadcast %cst_8 : f32 to vector<64x1xf32>
    %24 = arith.mulf %20, %23 : vector<64x1xf32>
    %25 = arith.mulf %22, %22 : vector<64x1xf32>
    %26 = arith.subf %24, %25 : vector<64x1xf32>
    %cst_9 = arith.constant 0.000000e+00 : f32
    %27 = vector.broadcast %cst_9 : f32 to vector<64x1xf32>
    %28 = arith.maximumf %26, %27 : vector<64x1xf32>
    %c0_10 = arith.constant 0 : index
    %c0_11 = arith.constant 0 : index
    %29 = vector.load %arg4[%c0_10, %c0_11] : memref<64x2xf32, #tpu.memory_space<vmem>>, vector<64x1xf32>
    %c0_12 = arith.constant 0 : index
    %c1 = arith.constant 1 : index
    %30 = vector.load %arg4[%c0_12, %c1] : memref<64x2xf32, #tpu.memory_space<vmem>>, vector<64x1xf32>
    %31 = vector.broadcast %22 : vector<64x1xf32> to vector<64x128xf32>
    %32 = arith.subf %15, %31 : vector<64x128xf32>
    %cst_13 = arith.constant 9.99999974E-6 : f32
    %33 = vector.broadcast %cst_13 : f32 to vector<64x1xf32>
    %34 = arith.addf %28, %33 : vector<64x1xf32>
    %35 = math.rsqrt %34 : vector<64x1xf32>
    %36 = vector.broadcast %35 : vector<64x1xf32> to vector<64x128xf32>
    %37 = arith.mulf %32, %36 : vector<64x128xf32>
    %38 = vector.broadcast %29 : vector<64x1xf32> to vector<64x128xf32>
    %39 = arith.mulf %37, %38 : vector<64x128xf32>
    %40 = vector.broadcast %30 : vector<64x1xf32> to vector<64x128xf32>
    %41 = arith.addf %39, %40 : vector<64x128xf32>
    %42 = vector.extract_strided_slice %41 {offsets = [0, 0], sizes = [32, 128], strides = [1, 1]} : vector<64x128xf32> to vector<32x128xf32>
    %43 = vector.extract_strided_slice %41 {offsets = [32, 0], sizes = [32, 128], strides = [1, 1]} : vector<64x128xf32> to vector<32x128xf32>
    %44 = arith.negf %43 : vector<32x128xf32>
    %45 = math.exp %44 : vector<32x128xf32>
    %cst_14 = arith.constant 1.000000e+00 : f32
    %46 = vector.broadcast %cst_14 : f32 to vector<32x128xf32>
    %47 = arith.addf %46, %45 : vector<32x128xf32>
    %48 = arith.divf %46, %47 : vector<32x128xf32>
    %49 = arith.mulf %42, %48 : vector<32x128xf32>
    %50 = arith.truncf %49 : vector<32x128xf32> to vector<32x128xbf16>
    %c0_15 = arith.constant 0 : index
    %c0_16 = arith.constant 0 : index
    %c0_17 = arith.constant 0 : index
    %51 = vector.load %arg5[%c0_15, %c0_16, %c0_17] : memref<1x32x128xbf16, #tpu.memory_space<vmem>>, vector<1x32x128xbf16>
    %52 = vector.shape_cast %51 : vector<1x32x128xbf16> to vector<32x128xbf16>
    %53 = vector.shape_cast %50 : vector<32x128xbf16> to vector<1x32x128xbf16>
    tpu.vector_store %arg5[%c0_15, %c0_16, %c0_17], %53 {strides = array<i32>} : memref<1x32x128xbf16, #tpu.memory_space<vmem>>, vector<1x32x128xbf16>,
    return
  }
  func.func @transform_0(%arg0: i32, %arg1: i32) -> (i32, i32, i32) {
    %c0_i32 = arith.constant 0 : i32
    %c0_i32_0 = arith.constant 0 : i32
    %c0_i32_1 = arith.constant 0 : i32
    return %arg0, %c0_i32, %c0_i32_0 : i32, i32, i32
  }
  func.func @transform_1(%arg0: i32, %arg1: i32) -> (i32, i32) {
    %c0_i32 = arith.constant 0 : i32
    %c0_i32_0 = arith.constant 0 : i32
    return %arg1, %c0_i32 : i32, i32
  }
  func.func @transform_2(%arg0: i32, %arg1: i32) -> (i32, i32) {
    %c0_i32 = arith.constant 0 : i32
    %c0_i32_0 = arith.constant 0 : i32
    return %arg1, %c0_i32 : i32, i32
  }
  func.func @transform_3(%arg0: i32, %arg1: i32) -> (i32, i32, i32) {
    %c0_i32 = arith.constant 0 : i32
    %c0_i32_0 = arith.constant 0 : i32
    return %arg0, %arg1, %c0_i32 : i32, i32, i32
  }
}

module attributes {stable_mosaic.version = 11 : i64} {
  func.func @kernel(%arg0: i32, %arg1: i32, %arg2: memref<1x32x128xbf16, #tpu.memory_space<vmem>>, %arg3: memref<80x160xbf16, #tpu.memory_space<vmem>>, %arg4: memref<1x80x128xf32, #tpu.memory_space<vmem>>) attributes {dimension_semantics = [#tpu.dimension_semantics<parallel>, #tpu.dimension_semantics<parallel>], iteration_bounds = array<i64: 2, 1>, scalar_prefetch = 0 : i64, scratch_operands = 0 : i64, tpu.core_type = #tpu.core_type<tc>, window_params = [{transform_indices = @transform_0, window_bounds = array<i64: 1, 32, 128>}, {transform_indices = @transform_1, window_bounds = array<i64: 80, 160>}, {transform_indices = @transform_2, window_bounds = array<i64: 1, 80, 128>}]} {
    %c0 = arith.constant 0 : index
    %c0_0 = arith.constant 0 : index
    %c0_1 = arith.constant 0 : index
    %0 = vector.load %arg2[%c0, %c0_0, %c0_1] : memref<1x32x128xbf16, #tpu.memory_space<vmem>>, vector<1x32x128xbf16>
    %1 = vector.shape_cast %0 : vector<1x32x128xbf16> to vector<32x128xbf16>
    %cst = arith.constant 0.000000e+00 : bf16
    %2 = vector.broadcast %cst : bf16 to vector<32x2xbf16>
    %3 = tpu.concatenate %2, %1, %2 in 1 : vector<32x2xbf16>, vector<32x128xbf16>, vector<32x2xbf16> -> vector<32x132xbf16>
    %4 = vector.extract_strided_slice %3 {offsets = [0, 0], sizes = [32, 128], strides = [1, 1]} : vector<32x132xbf16> to vector<32x128xbf16>
    %5 = vector.extract_strided_slice %3 {offsets = [0, 1], sizes = [32, 128], strides = [1, 1]} : vector<32x132xbf16> to vector<32x128xbf16>
    %6 = vector.extract_strided_slice %3 {offsets = [0, 2], sizes = [32, 128], strides = [1, 1]} : vector<32x132xbf16> to vector<32x128xbf16>
    %7 = vector.extract_strided_slice %3 {offsets = [0, 3], sizes = [32, 128], strides = [1, 1]} : vector<32x132xbf16> to vector<32x128xbf16>
    %8 = vector.extract_strided_slice %3 {offsets = [0, 4], sizes = [32, 128], strides = [1, 1]} : vector<32x132xbf16> to vector<32x128xbf16>
    %9 = tpu.concatenate %4, %5, %6, %7, %8 in 0 : vector<32x128xbf16>, vector<32x128xbf16>, vector<32x128xbf16>, vector<32x128xbf16>, vector<32x128xbf16> -> vector<160x128xbf16>
    %c0_2 = arith.constant 0 : index
    %c0_3 = arith.constant 0 : index
    %10 = vector.load %arg3[%c0_2, %c0_3] : memref<80x160xbf16, #tpu.memory_space<vmem>>, vector<80x160xbf16>
    %cst_4 = arith.constant dense<0.000000e+00> : vector<80x128xf32>
    %11 = tpu.matmul %10, %9, %cst_4 {dimension_numbers = #tpu.dot_dimension_numbers<[1], [0], [0], [1], [0, 0, 1, 1], [], []>} : vector<80x160xbf16>, vector<160x128xbf16>, vector<80x128xf32> -> vector<80x128xf32>
    %c0_5 = arith.constant 0 : index
    %c0_6 = arith.constant 0 : index
    %c0_7 = arith.constant 0 : index
    %12 = vector.load %arg4[%c0_5, %c0_6, %c0_7] : memref<1x80x128xf32, #tpu.memory_space<vmem>>, vector<1x80x128xf32>
    %13 = vector.shape_cast %12 : vector<1x80x128xf32> to vector<80x128xf32>
    %14 = vector.shape_cast %11 : vector<80x128xf32> to vector<1x80x128xf32>
    tpu.vector_store %arg4[%c0_5, %c0_6, %c0_7], %14 {strides = array<i32>} : memref<1x80x128xf32, #tpu.memory_space<vmem>>, vector<1x80x128xf32>,
    return
  }
  func.func @transform_0(%arg0: i32, %arg1: i32) -> (i32, i32, i32) {
    %c0_i32 = arith.constant 0 : i32
    %c0_i32_0 = arith.constant 0 : i32
    %c0_i32_1 = arith.constant 0 : i32
    return %arg0, %c0_i32, %c0_i32_0 : i32, i32, i32
  }
  func.func @transform_1(%arg0: i32, %arg1: i32) -> (i32, i32) {
    %c0_i32 = arith.constant 0 : i32
    %c0_i32_0 = arith.constant 0 : i32
    return %arg1, %c0_i32 : i32, i32
  }
  func.func @transform_2(%arg0: i32, %arg1: i32) -> (i32, i32, i32) {
    %c0_i32 = arith.constant 0 : i32
    %c0_i32_0 = arith.constant 0 : i32
    return %arg0, %arg1, %c0_i32 : i32, i32, i32
  }
}

</mosaic_0001>

<bundles_post_ra>
// kernel: generator_forward.6
= control target key start
LH: loop header
LB: loop body
LE: loop exit
PB: predicated region body
PF: predicated region fallthrough
CT: control target
= control target key end

     0   :  { %s2628_s0 = inlined_call_operand.hbm [shape: bf16[2,80,128], index: 0, kind: input, shape index: {}]   ;;  %s2629_s1 = inlined_call_operand.hbm [shape: bf16[256,576], index: 1, kind: input, shape index: {}]   ;;  %s2630_s2 = inlined_call_operand.hbm [shape: bf16[2,256,128], index: 2, kind: output, shape index: {}]  }
   0x1   :  { %2641 = sst [smem:[#allocation16_spill]] %s2628_s0 }
   0x2   :  { %2642 = sst [smem:[#allocation17_spill]] %s2630_s2 }
   0x3   :  { %7 = vsyncpa [#allocation3], 0 }
   0x4   :  { %9 = vsyncpa [#allocation3 + $0x1], 0 }
   0x5   :  { %10 = vsyncpa [#allocation6], 0 }
   0x6   :  { %12 = vsyncpa [#allocation6 + $0x1], 0 }
   0x7   :  { %13 = vsyncpa [#allocation4], 0 }
   0x8   :  { %15 = vsyncpa [#allocation4 + $0x1], 0  ;;  %s2057_s9 = smov 0   ;;  %s2059_s10 = smov 0  }
   0x9   :  { %s2061_s11 = smov 0   ;;  %s2063_s12 = smov 0  }
   0xa   :  { %s2065_s13 = smov 0   ;;  %s2067_s14 = smov 0  }
   0xb   :  { %s2069_s15 = smov 0   ;;  %s2071_s16 = smov 0  }
   0xc   :  { %s2073_s17 = smov 0   ;;  %s2075_s18 = smov 0  }
   0xd   :  { %s2077_s19 = smov 0   ;;  %s2079_s20 = smov 0  }
   0xe   :  { %s2081_s21 = smov 0   ;;  %s2083_s22 = smov 0  }
   0xf LB: > { %2643 = sst [smem:[#allocation11_spill]] %s2009_s19  ;;  %s1263_s23 = sadd.s32 4294967295, %s2021_s22   ;;  %s2021_s22 = sphi %s2083_s22, %s21_s22   ;;  %s2017_s21 = sphi %s2081_s21, %s2676_s21   ;;  %s2013_s20 = sphi %s2079_s20, %s2687_s20   ;;  %s2009_s19 = sphi %s2077_s19, %s2674_s19   ;;  %s2005_s18 = sphi %s2075_s18, %s2673_s18   ;;  %s2001_s17 = sphi %s2073_s17, %s2686_s17   ;;  %s1997_s16 = sphi %s2071_s16, %s2685_s16   ;;  %s1993_s15 = sphi %s2069_s15, %s2684_s15   ;;  %s1989_s14 = sphi %s2067_s14, %s2683_s14   ;;  %s1985_s13 = sphi %s2065_s13, %s2682_s13   ;;  %s1981_s12 = sphi %s2063_s12, %s2681_s12   ;;  %s1977_s11 = sphi %s2061_s11, %s2680_s11   ;;  %s1973_s10 = sphi %s2059_s10, %s2679_s10   ;;  %s1969_s9 = sphi %s2057_s9, %s2678_s9  }
  0x10   : > { %2644 = sst [smem:[#allocation12_spill]] %s2013_s20  ;;  %p47_p0 = scmp.ne.s32.totalorder %s2001_s17, %s1997_s16 }
  0x11   : > { %2645 = sst [smem:[#allocation13_spill]] %s2017_s21  ;;  %p2633_p1 = scmp.eq.s32.totalorder %s2021_s22, 0 }
  0x12   : > { %p53_p2 = scmp.ne.s32.totalorder %s1997_s16, %s1993_s15  ;;  %p2132_p3 = scmp.eq.s32.totalorder %s1263_s23, 0 }
  0x13   : > { %p2136_p4 = scmp.eq.s32.totalorder %s1263_s23, 3  ;;  %p49_p5 = por %p2633_p1, %p47_p0 }
  0x14   : > { %p2144_p6 = por %p2132_p3, %p53_p2  ;;  %p2632_p7 = scmp.lt.s32.totalorder %s2021_s22, 4 }
  0x15   : > { %s2647_s27 = scalar_select %p2136_p4, 1, 0 }
  0x16   : > { %s2648_s28 = scalar_select %p2144_p6, 1, 0 }
  0x17   : > { %s131_s29 = sand.u32 1, %s2001_s17   ;;  %s1598_s30 = smul.u32 640, %s2017_s21 }
  0x18   : > { %s1597_s3 = smul.u32 40, %s131_s29  ;;  %s2649_s0 = sld [smem:[#allocation16_spill]] }
  0x19   : > { %p2158_p8 = pnand %p2632_p7, %p49_p5  ;;  %s2164_s23 = scalar_lea.sflag [#allocation3], %s131_s29 }
  0x1a   : > { %s135_s8 = scalar_lea.vmem [#allocation2], %s1597_s3 }
  0x1b   : > { %s142_s15 = sshll.u32 %s135_s8, 4  ;;  %p1813_p10 = pneg %p2158_p8  ;;  %s2162_s15 = int_to_ptr.vmem [resolvable:$true] %s142_s15 }
  0x1e   : > { %s2154_s6 = scalar_lea.hbm %s2649_s0, %s1598_s30  ;;  %s1816_s25 = scalar_lea.hbm %s2649_s0, 1280 }
  0x1f   : > { %s1811_s4 = scalar_lea.hbm %s2154_s6, 640  ;;  %p1817_p13 = scmp.lt.u32.totalorder %s2154_s6, %s2649_s0 }
  0x20   : > { %p1812_p9 = scmp.ne.s32.totalorder %s2154_s6, %s1811_s4  ;;  %p1818_p0 = scmp.lt.u32.totalorder %s1816_s25, %s1811_s4 }
  0x21   : > { %p1820_p5 = scmp.lt.u32.totalorder %s1811_s4, %s2154_s6 }
  0x22   : > { %p1814_p11 = pnand %p1813_p10, %p1812_p9  ;;  %p1819_p2 = por %p1818_p0, %p1817_p13 }
  0x24   : > { %p1815_p12 = pneg %p1814_p11  ;;  %p1821_p7 = por %p1820_p5, %p1819_p2 }
  0x26   : > { %p1822_p1 = pnand %p1821_p7, %p1815_p12 }
  0x28   : > { %1825 = shalt.err (!%p1822_p1)
}
  0x29   : > { %s1826_s29 = scalar_lea.vmem %s2162_s15, 640  ;;  %s2023_s3 = smov [#allocation2]  }
  0x2a   : > { %p1827_p9 = scmp.ne.s32.totalorder %s2162_s15, %s1826_s29  ;;  %s1831_s8 = sshll.u32 %s2023_s3, 4  ;;  %s1832_s8 = int_to_ptr.vmem [resolvable:$false] %s1831_s8 }
  0x2b   : > { %s1833_s2 = scalar_lea.vmem %s1832_s8, 1280  ;;  %p1834_p4 = scmp.lt.s32.totalorder %s2162_s15, %s1832_s8 }
  0x2c   : > { %p1829_p11 = pnand %p1827_p9, %p1813_p10  ;;  %p1835_p13 = scmp.lt.s32.totalorder %s1833_s2, %s1826_s29 }
  0x2e   : > { %p1830_p6 = pneg %p1829_p11  ;;  %p1836_p0 = por %p1835_p13, %p1834_p4 }
  0x30   : > { %p1837_p2 = pnand %p1836_p0, %p1830_p6 }
  0x32   : > { %1840 = shalt.err (!%p1837_p2)
}
  0x33   : > { %s2024_s24 = smov 64   ;;  %s2025_s25 = smov 4  }
  0x34   : > { %1612 = dma.hbm_to_vmem [thread:$0]  (!%p2158_p8), %s2154_s6, 640, %s2162_s15, %s2164_s23, %s2024_s24, %s2024_s24, %s2025_s25  }
  0x35   : > { %p1271_p1 = scmp.ge.s32.totalorder %s2021_s22, 1  ;;  %p172_p4 = scmp.lt.s32.totalorder %s2021_s22, 5 }
  0x36   : > { %s1264_s30 = sadd.s32 4294967294, %s2021_s22   ;;  %s30_s5 = sadd.s32 1, %s2013_s20 }
  0x37   : > { %p2194_p6 = pnand %p1271_p1, %p172_p4  ;;  %s66_s29 = sadd.s32 1, %s1989_s14 }
  0x38   : > { %p31_p7 = scmp.ge.s32.totalorder %s30_s5, 2  ;;  %p73_p10 = scmp.ne.s32.totalorder %s1989_s14, %s1985_s13 }
  0x39   : > { %p79_p12 = scmp.ne.s32.totalorder %s1985_s13, %s1981_s12  ;;  %s94_s7 = sadd.s32 1, %s1977_s11 }
  0x3a   : > { %s2689_s5 = smov (%p31_p7, %s30_s5), 0  ;;  %s2653_s6 = sadd.s32 1, %s2017_s21 }
  0x3b   : > { %2652 = sst [smem:[#allocation14_spill]] %s2689_s5  ;;  %s2691_s6 = smov (!%p31_p7, %s2653_s6), %s2017_s21 }
  0x3c   : > { %s63_s15 = ssub.s32 %s2013_s20, %s2689_s5  ;;  %p2654_p8 = scmp.eq.s32.totalorder %s2021_s22, 0 }
  0x3d   : > { %p35_p9 = scmp.ge.s32.totalorder %s2691_s6, 2  ;;  %p64_p11 = scmp.eq.s32.totalorder %s63_s15, 0 }
  0x3e   : > { %p2215_p5 = por %p73_p10, %p2654_p8  ;;  %p2221_p13 = por %p79_p12, %p2132_p3 }
  0x3f   : > { %p104_p0 = scmp.ne.s32.totalorder %s1977_s11, %s1973_s10  ;;  %s2693_s6 = smov (%p35_p9, %s2691_s6), 0 }
  0x40   : > { %s2656_s12 = scalar_select %p2221_p13, 1, 0 }
  0x41   : > { %2657 = sst [smem:[#allocation15_spill]] %s2693_s6  ;;  %s37_s8 = ssub.s32 %s2017_s21, %s2693_s6 }
  0x42   : > { %s2230_s3 = scalar_select %p64_p11, %s1989_s14, %s66_s29  }
  0x43   : > { %p2658_p2 = scmp.ne.s32.totalorder %s2647_s27, 0  ;;  %p38_p4 = scmp.eq.s32.totalorder %s37_s8, 0 }
  0x44   : > { %s91_s26 = sor.u32 %s63_s15, %s37_s8  ;;  %p110_p7 = scmp.ne.s32.totalorder %s1973_s10, %s1969_s9 }
  0x45   : > { %p2236_p1 = por %p2658_p2, %p104_p0  ;;  %p92_p3 = scmp.eq.s32.totalorder %s91_s26, 0 }
  0x46   : > { %s2660_s24 = sadd.s32 1, %s2001_s17  ;;  %p111_p10 = scmp.eq.s32.totalorder %s1264_s30, 3 }
  0x47   : > { %s2659_s2 = scalar_select %p2236_p1, 1, 0 }
  0x48   : > { %s2245_s25 = scalar_select %p38_p4, %s2001_s17, %s2660_s24  }
  0x49   : > { %s2248_s0 = scalar_select %p92_p3, %s1977_s11, %s94_s7  }
  0x4a   : > { %s152_s5 = sand.u32 1, %s1989_s14   ;;  %p2251_p12 = por %p111_p10, %p110_p7 }
  0x4b   : > { %s1599_s19 = smul.u32 320, %s152_s5  ;;  %p2662_p8 = scmp.lt.s32.totalorder %s2021_s22, 4 }
  0x4c   : > { %s2661_s29 = scalar_select %p2251_p12, 1, 0 }
  0x4d   : > { %s1600_s27 = smul.u32 5120, %s2013_s20  ;;  %p2260_p9 = pnand %p2662_p8, %p2215_p5 }
  0x4e   : > { %s156_s30 = scalar_lea.vmem [#allocation5], %s1599_s19  ;;  %s2271_s23 = scalar_lea.sflag [#allocation6], %s152_s5 }
  0x4f   : > { %s2267_s7 = scalar_lea.hbm %s2629_s1, %s1600_s27  ;;  %s164_s26 = sshll.u32 %s156_s30, 4  ;;  %s2269_s26 = int_to_ptr.vmem [resolvable:$true] %s164_s26 }
  0x50   : > { %s1841_s24 = scalar_lea.hbm %s2267_s7, 5120  ;;  %p1843_p11 = pneg %p2260_p9 }
  0x51   : > { %p1842_p5 = scmp.ne.s32.totalorder %s2267_s7, %s1841_s24  ;;  %s1846_s8 = scalar_lea.hbm %s2629_s1, 10240 }
  0x52   : > { %p1847_p4 = scmp.lt.u32.totalorder %s2267_s7, %s2629_s1  ;;  %p1848_p3 = scmp.lt.u32.totalorder %s1846_s8, %s1841_s24 }
  0x53   : > { %p1844_p0 = pnand %p1843_p11, %p1842_p5  ;;  %p1850_p10 = scmp.lt.u32.totalorder %s1841_s24, %s2267_s7 }
  0x54   : > { %p1849_p7 = por %p1848_p3, %p1847_p4 }
  0x55   : > { %p1845_p2 = pneg %p1844_p0 }
  0x56   : > { %p1851_p8 = por %p1850_p10, %p1849_p7 }
  0x58   : > { %p1852_p12 = pnand %p1851_p8, %p1845_p2 }
  0x5a   : > { %1855 = shalt.err (!%p1852_p12)
}
  0x5b   : > { %s1856_s19 = scalar_lea.vmem %s2269_s26, 5120  ;;  %s2026_s5 = smov [#allocation5]  }
  0x5c   : > { %p1857_p5 = scmp.ne.s32.totalorder %s2269_s26, %s1856_s19  ;;  %s1861_s30 = sshll.u32 %s2026_s5, 4  ;;  %s1862_s30 = int_to_ptr.vmem [resolvable:$false] %s1861_s30 }
  0x5d   : > { %s1863_s20 = scalar_lea.vmem %s1862_s30, 10240  ;;  %p1864_p13 = scmp.lt.s32.totalorder %s2269_s26, %s1862_s30 }
  0x5e   : > { %p1859_p0 = pnand %p1857_p5, %p1843_p11  ;;  %p1865_p4 = scmp.lt.s32.totalorder %s1863_s20, %s1856_s19 }
  0x60   : > { %p1860_p1 = pneg %p1859_p0  ;;  %p1866_p3 = por %p1865_p4, %p1864_p13 }
  0x62   : > { %p1867_p7 = pnand %p1866_p3, %p1860_p1 }
  0x64   : > { %1870 = shalt.err (!%p1867_p7)
}
  0x65   : > { %s2027_s21 = smov 320   ;;  %s2028_s24 = smov 20  }
  0x66   : > { %1615 = dma.hbm_to_vmem [thread:$0]  (!%p2260_p9), %s2267_s7, 5120, %s2269_s26, %s2271_s23, %s2027_s21, %s2027_s21, %s2028_s24  }
  0x67   : > { %176 = sbr.rel (%p2194_p6) target bundleno = 762 (0x2fa), region = 28  ;;  %s178_s27 = sand.u32 (!%p2194_p6), 1, %s1997_s16  }
  0x68   : > { %s1601_s15 = smul.u32 (!%p2194_p6), 40, %s178_s27  ;;  %s179_s8 = scalar_lea.sflag (!%p2194_p6), [#allocation3], %s178_s27 }
  0x69   : > { %p2664_p13 = scmp.ne.s32.totalorder (!%p2194_p6), %s2648_s28, 0 }
  0x6a   : > { %s182_s19 = scalar_lea.vmem (!%p2194_p6), [#allocation2], %s1601_s15 }
  0x6e   : > { %1956 = dma.done.wait (%p2664_p13), %s179_s8, 640  }
  0x6f   : > { %1958 = vsyncadd (%p2664_p13), %s179_s8, 4294966656  ;;  %s187_s5 = sand.u32 1, %s1985_s13   ;;  %p2665_p1 = scmp.ne.s32.totalorder %s2656_s12, 0 }
  0x70   : > { %s1602_s30 = smul.u32 320, %s187_s5  ;;  %s188_s6 = scalar_lea.sflag [#allocation6], %s187_s5 }
  0x72   : > { %s2307_s7 = scalar_lea.vmem [#allocation5], %s1602_s30 }
  0x73   : > { %1960 = dma.done.wait (%p2665_p1), %s188_s6, 5120  }
  0x74   : > { %1962 = vsyncadd (%p2665_p1), %s188_s6, 4294962176  ;;  %v1750_v0 = vld [vmem:[%s182_s19 + $0x18] sm:$0xff]   ;;  %v1751_v1 = vld [vmem:[%s182_s19 + $0x20] sm:$0xff]   ;;  %s2029_s4 = smov 3   ;;  %vm265_vm0 = vcmask 23552   ;;  %s2030_s28 = smov 127  }
  0x75   : > { %261 = vrot.lane.b32.xlu0 %v1750_v0, %s2029_s4  ;;  %v1752_v2 = vld [vmem:[%s182_s19 + $0x8] sm:$0xff]   ;;  %v1753_v3 = vld [vmem:[%s182_s19] sm:$0xff]   ;;  %v1754_v4 = vld [vmem:[%s182_s19 + $0x10] sm:$0xff]   ;;  %s2031_s12 = smov 124   ;;  %s2032_s26 = smov 125   ;;  %vm317_vm1 = vcmask 1039360  }
  0x76   : > { %257 = vrot.lane.b32.xlu1 %v1752_v2, %s2029_s4  ;;  %s2033_s23 = smov 123   ;;  %s2034_s20 = smov 126   ;;  %v1757_v20 = vld [vmem:[%s2307_s7 + $0x4] ss:$20 sps:$4 sm:$0xff]   ;;  %v1760_v21 = vld [vmem:[%s2307_s7 + $0xc] ss:$20 sps:$4 sm:$0xff]   ;;  %vm2407_vm2 = vmneg %vm265_vm0 }
  0x77   : > { %s2035_s21 = smov 122   ;;  %798 = vmatprep.mubr.bf16.mxu0 %v1757_v20  ;;  %895 = vmatprep.mubr.bf16.mxu1 %v1760_v21  ;;  %vm410_vm3 = vcmask 1014784   ;;  %vm379_vm4 = vcmask 1022976   ;;  %vm441_vm5 = vcmask 1006592   ;;  %vm348_vm6 = vcmask 1031168   ;;  %s214_s24 = sand.u32 1, %s1973_s10  }
  0x78   : > { %vm472_vm7 = vcmask 998400   ;;  %vm2038_vm9 = vmmov 1   ;;  %vm741_vm11 = vcmask 523264   ;;  %s1272_s27 = sshll.u32 %s214_s24, 6  ;;  %s2668_s15 = sld [smem:[#allocation11_spill]] }
  0x79   : > { %263 = vrot.lane.b32.xlu0 %v1751_v1, %s2029_s4  ;;  %s2526_s8 = scalar_lea.vmem [#allocation7], %s1272_s27  ;;  %s1357_s19 = sshll.u32 %s2005_s18, 4 }
  0x7a   : > { %255 = vrot.lane.b32.xlu1 %v1753_v3, %s2029_s4  ;;  %s1153_s18 = sshll.u32 %s2526_s8, 4  ;;  %p2670_p12 = scmp.ne.s32.totalorder %s2659_s2, 0  ;;  %s2541_s18 = int_to_ptr.vmem [resolvable:$true] %s1153_s18 }
  0x7d   : > { %259 = vrot.lane.b32.xlu0 %v1754_v4, %s2029_s4 }
  0x7e   : > { %s1358_s5 = sshll.u32 %s2668_s15, 5 }
  0x7f   : > { %s1150_s30 = sadd.s32 %s1358_s5, %s1357_s19 }
  0x80   : > { %s1359_s6 = sshll.u32 %s1150_s30, 6 }
  0xe7   : > { %v2313_v5 = vpop.permute.xlu0 %261 }
  0xe8   : > { %v2317_v6 = vsel %vm265_vm0, 0, %v2313_v5  ;;  %v2321_v7 = vsel %vm265_vm0, %v2313_v5, 0  ;;  %v2329_v9 = vpop.permute.xlu1 %257 }
  0xe9   : > { %311 = vrot.lane.b32.xlu0 %v2321_v7, %s2030_s28  ;;  %309 = vrot.lane.b32.xlu1 %v2317_v6, %s2030_s28  ;;  %v271_v12 = vsel %vm265_vm0, 0, %v2329_v9  ;;  %v283_v13 = vsel %vm265_vm0, %v2329_v9, 0 }
  0xeb   : > { %v2327_v8 = vpop.permute.xlu0 %263 }
  0xec   : > { %v2333_v10 = vsel %vm265_vm0, 0, %v2327_v8  ;;  %v2337_v11 = vsel %vm265_vm0, %v2327_v8, 0  ;;  %v2349_v14 = vpop.permute.xlu1 %255 }
  0xed   : > { %408 = vrot.lane.b32.xlu0 %v2337_v11, %s2031_s12  ;;  %406 = vrot.lane.b32.xlu1 %v2333_v10, %s2031_s12  ;;  %v268_v15 = vsel %vm265_vm0, 0, %v2349_v14  ;;  %v282_v16 = vsel %vm265_vm0, %v2349_v14, 0 }
  0xef   : > { %v2359_v17 = vpop.permute.xlu0 %259 }
  0xf0   : > { %v274_v18 = vsel %vm265_vm0, 0, %v2359_v17  ;;  %v284_v19 = vsel %vm265_vm0, %v2359_v17, 0 }
  0xf1   : > { %365 = vrot.lane.b32.xlu0 %v283_v13, %s2032_s26  ;;  %363 = vrot.lane.b32.xlu1 %v271_v12, %s2032_s26 }
  0xf5   : > { %315 = vrot.lane.b32.xlu0 %v2337_v11, %s2030_s28  ;;  %313 = vrot.lane.b32.xlu1 %v2333_v10, %s2030_s28 }
  0xf9   : > { %423 = vrot.lane.b32.xlu0 %v282_v16, %s2033_s23  ;;  %421 = vrot.lane.b32.xlu1 %v268_v15, %s2033_s23 }
  0xfd   : > { %369 = vrot.lane.b32.xlu0 %v284_v19, %s2032_s26  ;;  %367 = vrot.lane.b32.xlu1 %v274_v18, %s2032_s26 }
 0x101   : > { %330 = vrot.lane.b32.xlu0 %v282_v16, %s2034_s20  ;;  %328 = vrot.lane.b32.xlu1 %v268_v15, %s2034_s20 }
 0x105   : > { %427 = vrot.lane.b32.xlu0 %v283_v13, %s2033_s23  ;;  %425 = vrot.lane.b32.xlu1 %v271_v12, %s2033_s23 }
 0x109   : > { %373 = vrot.lane.b32.xlu0 %v2321_v7, %s2032_s26  ;;  %371 = vrot.lane.b32.xlu1 %v2317_v6, %s2032_s26 }
 0x10d   : > { %334 = vrot.lane.b32.xlu0 %v283_v13, %s2034_s20  ;;  %332 = vrot.lane.b32.xlu1 %v271_v12, %s2034_s20 }
 0x111   : > { %431 = vrot.lane.b32.xlu0 %v284_v19, %s2033_s23  ;;  %429 = vrot.lane.b32.xlu1 %v274_v18, %s2033_s23 }
 0x115   : > { %377 = vrot.lane.b32.xlu0 %v2337_v11, %s2032_s26  ;;  %375 = vrot.lane.b32.xlu1 %v2333_v10, %s2032_s26 }
 0x119   : > { %338 = vrot.lane.b32.xlu0 %v284_v19, %s2034_s20  ;;  %336 = vrot.lane.b32.xlu1 %v274_v18, %s2034_s20 }
 0x11d   : > { %435 = vrot.lane.b32.xlu0 %v2321_v7, %s2033_s23  ;;  %433 = vrot.lane.b32.xlu1 %v2317_v6, %s2033_s23 }
 0x121   : > { %392 = vrot.lane.b32.xlu0 %v282_v16, %s2031_s12  ;;  %390 = vrot.lane.b32.xlu1 %v268_v15, %s2031_s12 }
 0x125   : > { %342 = vrot.lane.b32.xlu0 %v2321_v7, %s2034_s20  ;;  %340 = vrot.lane.b32.xlu1 %v2317_v6, %s2034_s20 }
 0x129   : > { %439 = vrot.lane.b32.xlu0 %v2337_v11, %s2033_s23  ;;  %437 = vrot.lane.b32.xlu1 %v2333_v10, %s2033_s23  ;;  %s1871_s23 = scalar_lea.vmem %s2541_s18, 1024 }
 0x12a   : > { %p1872_p6 = scmp.ne.s32.totalorder %s2541_s18, %s1871_s23 }
 0x12c   : > { %p1873_p9 = pnand %p1872_p6, %p2670_p12 }
 0x12d   : > { %299 = vrot.lane.b32.xlu0 %v282_v16, %s2030_s28  ;;  %297 = vrot.lane.b32.xlu1 %v268_v15, %s2030_s28 }
 0x12e   : > { %p1874_p11 = pneg %p1873_p9 }
 0x131   : > { %396 = vrot.lane.b32.xlu0 %v283_v13, %s2031_s12  ;;  %394 = vrot.lane.b32.xlu1 %v271_v12, %s2031_s12 }
 0x135   : > { %346 = vrot.lane.b32.xlu0 %v2337_v11, %s2034_s20  ;;  %344 = vrot.lane.b32.xlu1 %v2333_v10, %s2034_s20  ;;  %s2039_s20 = smov [#allocation7]  }
 0x139   : > { %454 = vrot.lane.b32.xlu0 %v282_v16, %s2035_s21  ;;  %452 = vrot.lane.b32.xlu1 %v268_v15, %s2035_s21 }
 0x13d   : > { %303 = vrot.lane.b32.xlu0 %v283_v13, %s2030_s28  ;;  %301 = vrot.lane.b32.xlu1 %v271_v12, %s2030_s28 }
 0x141   : > { %400 = vrot.lane.b32.xlu0 %v284_v19, %s2031_s12  ;;  %398 = vrot.lane.b32.xlu1 %v274_v18, %s2031_s12 }
 0x145   : > { %361 = vrot.lane.b32.xlu0 %v282_v16, %s2032_s26  ;;  %359 = vrot.lane.b32.xlu1 %v268_v15, %s2032_s26  ;;  %s2552_s26 = scalar_lea.sflag [#allocation4], %s214_s24 }
 0x149   : > { %458 = vrot.lane.b32.xlu0 %v283_v13, %s2035_s21  ;;  %456 = vrot.lane.b32.xlu1 %v271_v12, %s2035_s21 }
 0x14d   : > { %307 = vrot.lane.b32.xlu0 %v284_v19, %s2030_s28  ;;  %305 = vrot.lane.b32.xlu1 %v274_v18, %s2030_s28  ;;  %s2669_s28 = sld [smem:[#allocation17_spill]] }
 0x151   : > { %404 = vrot.lane.b32.xlu0 %v2321_v7, %s2031_s12  ;;  %402 = vrot.lane.b32.xlu1 %v2317_v6, %s2031_s12 }
 0x153   : > { %s2546_s12 = scalar_lea.hbm %s2669_s28, %s1359_s6 }
 0x155   : > { %462 = vrot.lane.b32.xlu0 %v284_v19, %s2035_s21  ;;  %460 = vrot.lane.b32.xlu1 %v274_v18, %s2035_s21 }
 0x159   : > { %466 = vrot.lane.b32.xlu0 %v2321_v7, %s2035_s21  ;;  %464 = vrot.lane.b32.xlu1 %v2317_v6, %s2035_s21 }
 0x15b   : > { %v312_v22 = vpop.permute.xlu0 %311  ;;  %v310_v23 = vpop.permute.xlu1 %309 }
 0x15c   : > { %v321_v24 = vsel %vm317_vm1, %v310_v23, %v312_v22 }
 0x15d   : > { %470 = vrot.lane.b32.xlu0 %v2337_v11, %s2035_s21  ;;  %468 = vrot.lane.b32.xlu1 %v2333_v10, %s2035_s21  ;;  %s1875_s21 = sshll.u32 %s2039_s20, 4  ;;  %s1876_s21 = int_to_ptr.vmem [resolvable:$false] %s1875_s21 }
 0x15e   : > { %1425 = vmatprep.subr.bf16.mxu0 %v321_v24  ;;  %s1877_s27 = scalar_lea.vmem %s1876_s21, 2048  ;;  %p1878_p2 = scmp.lt.s32.totalorder %s2541_s18, %s1876_s21 }
 0x15f   : > { %1426 = vmatpush3.bf16.msk.msra.mxu0 %vm2407_vm2, %v2349_v14  ;;  %v409_v26 = vpop.permute.xlu0 %408  ;;  %v407_v27 = vpop.permute.xlu1 %406  ;;  %p1879_p10 = scmp.lt.s32.totalorder %s1877_s27, %s1871_s23 }
 0x160   : > { %v415_v28 = vsel %vm410_vm3, %v407_v27, %v409_v26 }
 0x161   : > { %1489 = vmatprep.subr.bf16.mxu1 %v415_v28  ;;  %p1880_p8 = por %p1879_p10, %p1878_p2 }
 0x163   : > { %v366_v29 = vpop.permute.xlu0 %365  ;;  %v364_v30 = vpop.permute.xlu1 %363  ;;  %p1881_p5 = pnand %p1880_p8, %p1874_p11 }
 0x164   : > { %v381_v31 = vsel %vm379_vm4, %v364_v30, %v366_v29 }
 0x165   : > { %1490 = vmatpush3.bf16.msra.mxu1 %v381_v31 }
 0x167   : > { %v316_v32 = vpop.permute.xlu0 %315  ;;  %v314_v33 = vpop.permute.xlu1 %313 }
 0x168   : > { %v322_v34 = vsel %vm317_vm1, %v314_v33, %v316_v32 }
 0x169   : > { %1427 = vmatprep.subr.bf16.mxu0 %v322_v34 }
 0x16a   : > { %1428 = vmatpush3.bf16.msk.msra.mxu0 %vm2407_vm2, %v2329_v9 }
 0x16b   : > { %v424_v35 = vpop.permute.xlu0 %423  ;;  %v422_v36 = vpop.permute.xlu1 %421 }
 0x16c   : > { %v442_v37 = vsel %vm441_vm5, %v422_v36, %v424_v35 }
 0x16d   : > { %1491 = vmatprep.subr.bf16.mxu1 %v442_v37  ;;  %v1755_v37 = vld [vmem:[%s2307_s7] ss:$20 sps:$4 sm:$0xff]  }
 0x16f   : > { %v370_v38 = vpop.permute.xlu0 %369  ;;  %v368_v39 = vpop.permute.xlu1 %367 }
 0x170   : > { %v382_v40 = vsel %vm379_vm4, %v368_v39, %v370_v38  ;;  %v1761_v38 = vld [vmem:[%s2307_s7 + $0x2c] ss:$20 sps:$4 sm:$0xff]  }
 0x171   : > { %1492 = vmatpush3.bf16.msra.mxu1 %v382_v40 }
 0x173   : > { %v331_v41 = vpop.permute.xlu0 %330  ;;  %v329_v42 = vpop.permute.xlu1 %328 }
 0x174   : > { %v349_v43 = vsel %vm348_vm6, %v329_v42, %v331_v41  ;;  %v1758_v42 = vld [vmem:[%s2307_s7 + $0x8] ss:$20 sps:$4 sm:$0xff]  }
 0x175   : > { %1429 = vmatprep.subr.bf16.mxu0 %v349_v43  ;;  %v483_v43 = vlaneseq }
 0x176   : > { %1430 = vmatpush3.bf16.msk.msra.mxu0 %vm2407_vm2, %v2359_v17 }
 0x177   : > { %v428_v44 = vpop.permute.xlu0 %427  ;;  %v426_v45 = vpop.permute.xlu1 %425 }
 0x178   : > { %v443_v46 = vsel %vm441_vm5, %v426_v45, %v428_v44 }
 0x179   : > { %1493 = vmatprep.subr.bf16.mxu1 %v443_v46  ;;  %v1764_v46 = vld [vmem:[%s2307_s7 + $0x34] ss:$20 sps:$4 sm:$0xff]  }
 0x17b   : > { %v374_v47 = vpop.permute.xlu0 %373  ;;  %v372_v48 = vpop.permute.xlu1 %371 }
 0x17c   : > { %v383_v49 = vsel %vm379_vm4, %v372_v48, %v374_v47  ;;  %v1763_v48 = vld [vmem:[%s2307_s7 + $0x28] ss:$20 sps:$4 sm:$0xff]  }
 0x17d   : > { %1494 = vmatpush3.bf16.msra.mxu1 %v383_v49  ;;  %v484_v49 = vshrl.u32 %v483_v43, 7 }
 0x17f   : > { %v335_v50 = vpop.permute.xlu0 %334  ;;  %v333_v51 = vpop.permute.xlu1 %332  ;;  %vm486_vm8 = vcmp.eq.s32.totalorder %v484_v49, 0 }
 0x180   : > { %v350_v52 = vsel %vm348_vm6, %v333_v51, %v335_v50  ;;  %vm1329_vm10 = vmpackc.low %vm2038_vm9, %vm486_vm8 }
 0x181   : > { %1431 = vmatprep.subr.bf16.mxu0 %v350_v52  ;;  %v1767_v52 = vld [vmem:[%s2307_s7 + $0x54] ss:$20 sps:$4 sm:$0xff]  }
 0x182   : > { %1432 = vmatpush3.bf16.msk.msra.mxu0 %vm2407_vm2, %v2313_v5 }
 0x183   : > { %v432_v53 = vpop.permute.xlu0 %431  ;;  %v430_v54 = vpop.permute.xlu1 %429 }
 0x184   : > { %v444_v55 = vsel %vm441_vm5, %v430_v54, %v432_v53  ;;  %v1766_v54 = vld [vmem:[%s2307_s7 + $0x30] ss:$20 sps:$4 sm:$0xff]  }
 0x185   : > { %1495 = vmatprep.subr.bf16.mxu1 %v444_v55 }
 0x187   : > { %v378_v56 = vpop.permute.xlu0 %377  ;;  %v376_v57 = vpop.permute.xlu1 %375 }
 0x188   : > { %v384_v58 = vsel %vm379_vm4, %v376_v57, %v378_v56  ;;  %v1770_v57 = vld [vmem:[%s2307_s7 + $0x5c] ss:$20 sps:$4 sm:$0xff]  }
 0x189   : > { %1496 = vmatpush3.bf16.msra.mxu1 %v384_v58  ;;  %v2036_v58 = vmov 0.0  }
 0x18b   : > { %v339_v59 = vpop.permute.xlu0 %338  ;;  %v337_v60 = vpop.permute.xlu1 %336 }
 0x18c   : > { %v351_v61 = vsel %vm348_vm6, %v337_v60, %v339_v59  ;;  %v2037_v59 = vmov 1.0  }
 0x18d   : > { %1433 = vmatprep.subr.bf16.mxu0 %v351_v61  ;;  %v1330_v60 = vpack.c.bf16 %v2036_v58, %v2037_v59 }
 0x18e   : > { %1434 = vmatpush3.bf16.msk.msra.mxu0 %vm2407_vm2, %v2327_v8 }
 0x18f   : > { %v436_v62 = vpop.permute.xlu0 %435  ;;  %v434_v63 = vpop.permute.xlu1 %433 }
 0x190   : > { %v445_v0 = vsel %vm441_vm5, %v434_v63, %v436_v62  ;;  %v1769_v62 = vld [vmem:[%s2307_s7 + $0x50] ss:$20 sps:$4 sm:$0xff]  }
 0x191   : > { %1497 = vmatprep.subr.bf16.mxu1 %v445_v0  ;;  %v1773_v63 = vld [vmem:[%s2307_s7 + $0x7c] ss:$20 sps:$4 sm:$0xff]   ;;  %v1772_v0 = vld [vmem:[%s2307_s7 + $0x58] ss:$20 sps:$4 sm:$0xff]  }
 0x193   : > { %v393_v1 = vpop.permute.xlu0 %392  ;;  %v391_v2 = vpop.permute.xlu1 %390 }
 0x194   : > { %v411_v3 = vsel %vm410_vm3, %v391_v2, %v393_v1  ;;  %v1776_v1 = vld [vmem:[%s2307_s7 + $0x84] ss:$20 sps:$4 sm:$0xff]  }
 0x195   : > { %1498 = vmatpush3.bf16.msra.mxu1 %v411_v3  ;;  %v1775_v2 = vld [vmem:[%s2307_s7 + $0x78] ss:$20 sps:$4 sm:$0xff]  }
 0x196   : > { %v1779_v3 = vld [vmem:[%s2307_s7 + $0xa4] ss:$20 sps:$4 sm:$0xff]  }
 0x197   : > { %v343_v4 = vpop.permute.xlu0 %342  ;;  %v341_v5 = vpop.permute.xlu1 %340 }
 0x198   : > { %v352_v6 = vsel %vm348_vm6, %v341_v5, %v343_v4  ;;  %v1778_v4 = vld [vmem:[%s2307_s7 + $0x80] ss:$20 sps:$4 sm:$0xff]  }
 0x199   : > { %1435 = vmatprep.subr.bf16.mxu0 %v352_v6  ;;  %v1782_v5 = vld [vmem:[%s2307_s7 + $0xac] ss:$20 sps:$4 sm:$0xff]  }
 0x19a   : > { %v1781_v6 = vld [vmem:[%s2307_s7 + $0xa0] ss:$20 sps:$4 sm:$0xff]  }
 0x19b   : > { %v440_v7 = vpop.permute.xlu0 %439  ;;  %v438_v9 = vpop.permute.xlu1 %437 }
 0x19c   : > { %v446_v10 = vsel %vm441_vm5, %v438_v9, %v440_v7  ;;  %v1785_v7 = vld [vmem:[%s2307_s7 + $0xcc] ss:$20 sps:$4 sm:$0xff]   ;;  %v1784_v9 = vld [vmem:[%s2307_s7 + $0xa8] ss:$20 sps:$4 sm:$0xff]  }
 0x19d   : > { %1499 = vmatprep.subr.bf16.mxu1 %v446_v10  ;;  %v1788_v10 = vld [vmem:[%s2307_s7 + $0xd4] ss:$20 sps:$4 sm:$0xff]  }
 0x19f   : > { %v300_v8 = vpop.permute.xlu0 %299  ;;  %v298_v11 = vpop.permute.xlu1 %297 }
 0x1a0   : > { %v318_v12 = vsel %vm317_vm1, %v298_v11, %v300_v8  ;;  %v1787_v8 = vld [vmem:[%s2307_s7 + $0xc8] ss:$20 sps:$4 sm:$0xff]  }
 0x1a1   : > { %1436 = vmatpush3.bf16.msra.mxu0 %v318_v12  ;;  %v1791_v11 = vld [vmem:[%s2307_s7 + $0xf4] ss:$20 sps:$4 sm:$0xff]   ;;  %v1790_v12 = vld [vmem:[%s2307_s7 + $0xd0] ss:$20 sps:$4 sm:$0xff]  }
 0x1a3   : > { %v397_v13 = vpop.permute.xlu0 %396  ;;  %v395_v14 = vpop.permute.xlu1 %394 }
 0x1a4   : > { %v412_v15 = vsel %vm410_vm3, %v395_v14, %v397_v13  ;;  %v1794_v13 = vld [vmem:[%s2307_s7 + $0xfc] ss:$20 sps:$4 sm:$0xff]  }
 0x1a5   : > { %1500 = vmatpush3.bf16.msra.mxu1 %v412_v15  ;;  %v1793_v14 = vld [vmem:[%s2307_s7 + $0xf0] ss:$20 sps:$4 sm:$0xff]  }
 0x1a6   : > { %v1797_v15 = vld [vmem:[%s2307_s7 + $0x11c] ss:$20 sps:$4 sm:$0xff]  }
 0x1a7   : > { %v347_v16 = vpop.permute.xlu0 %346  ;;  %v345_v17 = vpop.permute.xlu1 %344 }
 0x1a8   : > { %v353_v18 = vsel %vm348_vm6, %v345_v17, %v347_v16  ;;  %v1796_v16 = vld [vmem:[%s2307_s7 + $0xf8] ss:$20 sps:$4 sm:$0xff]  }
 0x1a9   : > { %1437 = vmatprep.subr.bf16.mxu0 %v353_v18  ;;  %v1800_v17 = vld [vmem:[%s2307_s7 + $0x124] ss:$20 sps:$4 sm:$0xff]  }
 0x1aa   : > { %v1799_v18 = vld [vmem:[%s2307_s7 + $0x118] ss:$20 sps:$4 sm:$0xff]  }
 0x1ab   : > { %v455_v19 = vpop.permute.xlu0 %454  ;;  %v453_v20 = vpop.permute.xlu1 %452 }
 0x1ac   : > { %v473_v21 = vsel %vm472_vm7, %v453_v20, %v455_v19  ;;  %v1803_v19 = vld [vmem:[%s2307_s7 + $0x10] ss:$20 sps:$4 sm:$0xff]   ;;  %v1802_v20 = vld [vmem:[%s2307_s7 + $0x120] ss:$20 sps:$4 sm:$0xff]  }
 0x1ad   : > { %1501 = vmatprep.subr.bf16.mxu1 %v473_v21  ;;  %v1805_v21 = vld [vmem:[%s2307_s7 + $0xb0] ss:$20 sps:$4 sm:$0xff]  }
 0x1af   : > { %v304_v22 = vpop.permute.xlu0 %303  ;;  %v302_v23 = vpop.permute.xlu1 %301 }
 0x1b0   : > { %v319_v24 = vsel %vm317_vm1, %v302_v23, %v304_v22  ;;  %v1804_v22 = vld [vmem:[%s2307_s7 + $0x38] ss:$20 sps:$4 sm:$0xff]   ;;  %v1807_v23 = vld [vmem:[%s2307_s7 + $0x60] ss:$20 sps:$4 sm:$0xff]  }
 0x1b1   : > { %1438 = vmatpush3.bf16.msra.mxu0 %v319_v24  ;;  %v1806_v24 = vld [vmem:[%s2307_s7 + $0xd8] ss:$20 sps:$4 sm:$0xff]  }
 0x1b3   : > { %v401_v25 = vpop.permute.xlu0 %400  ;;  %v399_v26 = vpop.permute.xlu1 %398 }
 0x1b4   : > { %v413_v27 = vsel %vm410_vm3, %v399_v26, %v401_v25  ;;  %v1809_v25 = vld [vmem:[%s2307_s7 + $0x100] ss:$20 sps:$4 sm:$0xff]   ;;  %v1808_v26 = vld [vmem:[%s2307_s7 + $0x88] ss:$20 sps:$4 sm:$0xff]  }
 0x1b5   : > { %1502 = vmatpush3.bf16.msra.mxu1 %v413_v27  ;;  %v1810_v27 = vld [vmem:[%s2307_s7 + $0x128] ss:$20 sps:$4 sm:$0xff]  }
 0x1b7   : > { %v362_v28 = vpop.permute.xlu0 %361  ;;  %v360_v29 = vpop.permute.xlu1 %359 }
 0x1b8   : > { %v380_v30 = vsel %vm379_vm4, %v360_v29, %v362_v28 }
 0x1b9   : > { %1439 = vmatprep.subr.bf16.mxu0 %v380_v30 }
 0x1bb   : > { %v459_v31 = vpop.permute.xlu0 %458  ;;  %v457_v32 = vpop.permute.xlu1 %456 }
 0x1bc   : > { %v474_v33 = vsel %vm472_vm7, %v457_v32, %v459_v31 }
 0x1bd   : > { %1503 = vmatprep.subr.bf16.mxu1 %v474_v33 }
 0x1bf   : > { %v308_v34 = vpop.permute.xlu0 %307  ;;  %v306_v35 = vpop.permute.xlu1 %305 }
 0x1c0   : > { %v320_v36 = vsel %vm317_vm1, %v306_v35, %v308_v34 }
 0x1c1   : > { %1440 = vmatpush3.bf16.msra.mxu0 %v320_v36 }
 0x1c3   : > { %v405_v39 = vpop.permute.xlu0 %404  ;;  %v403_v40 = vpop.permute.xlu1 %402 }
 0x1c4   : > { %799 = vmatmul.mubr.bf16.vlgmr.msra.gmra.mrb[0].mxu0 %v1755_v37  ;;  %v414_v41 = vsel %vm410_vm3, %v403_v40, %v405_v39 }
 0x1c5   : > { %1504 = vmatpush3.bf16.msra.mxu1 %v414_v41  ;;  %806 = vmatprep.mubr.bf16.mxu0 %v1761_v38 }
 0x1c7   : > { %v463_v44 = vpop.permute.xlu0 %462  ;;  %v461_v45 = vpop.permute.xlu1 %460 }
 0x1c8   : > { %v475_v47 = vsel %vm472_vm7, %v461_v45, %v463_v44  ;;  %896 = vmatmul.mubr.bf16.vlgmr.msra.gmra.mrb[0].mxu1 %v1758_v42 }
 0x1c9   : > { %1565 = vmatprep.subr.bf16.mxu0 %v475_v47  ;;  %1589 = vmatprep.subr.bf16.mxu1 %v475_v47 }
 0x1ca   : > { %1566 = vmatpush3.bf16.msra.mxu0 %v475_v47  ;;  %1593 = vmatpush3.bf16.msra.mxu1 %v475_v47 }
 0x1cb   : > { %v467_v50 = vpop.permute.xlu0 %466  ;;  %v465_v51 = vpop.permute.xlu1 %464  ;;  %903 = vmatprep.mubr.bf16.mxu1 %v1764_v46 }
 0x1cc   : > { %v476_v53 = vsel %vm472_vm7, %v465_v51, %v467_v50  ;;  %807 = vmatmul.mubr.bf16.gmra.mrb[4].mxu0 %v1763_v48 }
 0x1cd   : > { %1567 = vmatprep.subr.bf16.mxu0 %v476_v53  ;;  %1590 = vmatprep.subr.bf16.mxu1 %v476_v53 }
 0x1ce   : > { %1568 = vmatpush3.bf16.msra.mxu0 %v476_v53  ;;  %1594 = vmatpush3.bf16.msra.mxu1 %v476_v53 }
 0x1cf   : > { %v471_v55 = vpop.permute.xlu0 %470  ;;  %v469_v56 = vpop.permute.xlu1 %468  ;;  %814 = vmatprep.mubr.bf16.mxu0 %v1767_v52 }
 0x1d0   : > { %v477_v61 = vsel %vm472_vm7, %v469_v56, %v471_v55  ;;  %904 = vmatmul.mubr.bf16.gmra.mrb[4].mxu1 %v1766_v54 }
 0x1d1   : > { %1569 = vmatprep.subr.bf16.mxu0 %v477_v61  ;;  %1591 = vmatprep.subr.bf16.mxu1 %v477_v61 }
 0x1d2   : > { %1570 = vmatpush3.bf16.msra.mxu0 %v477_v61  ;;  %1595 = vmatpush3.bf16.msra.mxu1 %v477_v61 }
 0x1d3   : > { %911 = vmatprep.mubr.bf16.mxu1 %v1770_v57  ;;  %1571 = vmatprep.subr.msk.bf16.mxu0 %vm1329_vm10, %v1330_v60 }
 0x1d4   : > { %815 = vmatmul.mubr.bf16.gmra.mrb[8].mxu0 %v1769_v62  ;;  %1592 = vmatprep.subr.msk.bf16.mxu1 %vm1329_vm10, %v1330_v60 }
 0x1d5   : > { %822 = vmatprep.mubr.bf16.mxu0 %v1773_v63 }
 0x1d6   : > { %1572 = vmatpush3.bf16.msk.msra.mxu0 %vm1329_vm10, %v1330_v60  ;;  %1596 = vmatpush3.bf16.msk.msra.mxu1 %vm1329_vm10, %v1330_v60 }
 0x1d8   : > { %912 = vmatmul.mubr.bf16.gmra.mrb[8].mxu1 %v1772_v0 }
 0x1d9   : > { %919 = vmatprep.mubr.bf16.mxu1 %v1776_v1 }
 0x1dc   : > { %823 = vmatmul.mubr.bf16.gmra.mrb[12].mxu0 %v1775_v2 }
 0x1dd   : > { %830 = vmatprep.mubr.bf16.mxu0 %v1779_v3 }
 0x1e0   : > { %920 = vmatmul.mubr.bf16.gmra.mrb[12].mxu1 %v1778_v4 }
 0x1e1   : > { %927 = vmatprep.mubr.bf16.mxu1 %v1782_v5 }
 0x1e4   : > { %831 = vmatmul.mubr.bf16.gmra.mrb[16].mxu0 %v1781_v6 }
 0x1e5   : > { %838 = vmatprep.mubr.bf16.mxu0 %v1785_v7 }
 0x1e8   : > { %928 = vmatmul.mubr.bf16.gmra.mrb[16].mxu1 %v1784_v9 }
 0x1e9   : > { %935 = vmatprep.mubr.bf16.mxu1 %v1788_v10 }
 0x1ec   : > { %839 = vmatmul.mubr.bf16.gmra.mrb[20].mxu0 %v1787_v8 }
 0x1ed   : > { %846 = vmatprep.mubr.bf16.mxu0 %v1791_v11 }
 0x1f0   : > { %936 = vmatmul.mubr.bf16.gmra.mrb[20].mxu1 %v1790_v12 }
 0x1f1   : > { %943 = vmatprep.mubr.bf16.mxu1 %v1794_v13 }
 0x1f4   : > { %847 = vmatmul.mubr.bf16.gmra.mrb[24].mxu0 %v1793_v14 }
 0x1f5   : > { %854 = vmatprep.mubr.bf16.mxu0 %v1797_v15 }
 0x1f8   : > { %944 = vmatmul.mubr.bf16.gmra.mrb[24].mxu1 %v1796_v16 }
 0x1f9   : > { %951 = vmatprep.mubr.bf16.mxu1 %v1800_v17 }
 0x1fc   : > { %855 = vmatmul.mubr.bf16.gmra.mrb[28].mxu0 %v1799_v18 }
 0x1fd   : > { %1573 = vmatprep.mubr.msk.bf16.mxu0 %vm741_vm11, %v1803_v19 }
 0x200   : > { %952 = vmatmul.mubr.bf16.gmra.mrb[28].mxu1 %v1802_v20 }
 0x201   : > { %1581 = vmatprep.mubr.msk.bf16.mxu1 %vm741_vm11, %v1805_v21 }
 0x204   : > { %1574 = vmatmul.mubr.msk.bf16.vlgmr.msra.gmra.mrb[32].mxu0 %vm741_vm11, %v1804_v22 }
 0x205   : > { %1577 = vmatprep.mubr.msk.bf16.mxu0 %vm741_vm11, %v1807_v23 }
 0x208   : > { %1582 = vmatmul.mubr.msk.bf16.vlgmr.msra.gmra.mrb[32].mxu1 %vm741_vm11, %v1806_v24 }
 0x209   : > { %1585 = vmatprep.mubr.msk.bf16.mxu1 %vm741_vm11, %v1809_v25 }
 0x20c   : > { %1578 = vmatmul.mubr.msk.bf16.gmra.mrb[36].mxu0 %vm741_vm11, %v1808_v26 }
 0x210   : > { %1586 = vmatmul.mubr.msk.bf16.gmra.mrb[36].mxu1 %vm741_vm11, %v1810_v27 }
 0x297   : > { %v1441_v28 = vpop.f32.mrb[0].mxu0 }
 0x298   : > { %v1442_v29 = vpop.f32.mrb[1].mxu0 }
 0x299   : > { %v1443_v30 = vadd.f32 %v1442_v29, %v1441_v28  ;;  %v1444_v31 = vpop.f32.mrb[2].mxu0 }
 0x29a   : > { %v1445_v32 = vpop.f32.mrb[3].mxu0 }
 0x29b   : > { %v1505_v33 = vpop.f32.mrb[0].mxu1  ;;  %v1446_v34 = vadd.f32 %v1445_v32, %v1444_v31 }
 0x29c   : > { %v1506_v35 = vpop.f32.mrb[1].mxu1 }
 0x29d   : > { %v1507_v36 = vadd.f32 %v1506_v35, %v1505_v33  ;;  %v1508_v37 = vpop.f32.mrb[2].mxu1 }
 0x29e   : > { %v1509_v38 = vpop.f32.mrb[3].mxu1 }
 0x29f   : > { %v1510_v39 = vadd.f32 %v1509_v38, %v1508_v37  ;;  %v1447_v40 = vpop.f32.mrb[4].mxu0  ;;  %v2503_v41 = vadd.f32 %v1507_v36, %v1443_v30 }
 0x2a0   : > { %v1448_v42 = vpop.f32.mrb[5].mxu0 }
 0x2a1   : > { %v1449_v43 = vadd.f32 %v1448_v42, %v1447_v40  ;;  %v1450_v44 = vpop.f32.mrb[6].mxu0  ;;  %v2505_v45 = vadd.f32 %v1510_v39, %v1446_v34 }
 0x2a2   : > { %v1451_v46 = vpop.f32.mrb[7].mxu0 }
 0x2a3   : > { %v1511_v47 = vpop.f32.mrb[4].mxu1  ;;  %v1452_v48 = vadd.f32 %v1451_v46, %v1450_v44 }
 0x2a4   : > { %v1512_v49 = vpop.f32.mrb[5].mxu1 }
 0x2a5   : > { %v1513_v50 = vadd.f32 %v1512_v49, %v1511_v47  ;;  %v1514_v51 = vpop.f32.mrb[6].mxu1 }
 0x2a6   : > { %v1515_v52 = vpop.f32.mrb[7].mxu1 }
 0x2a7   : > { %v1516_v53 = vadd.f32 %v1515_v52, %v1514_v51  ;;  %v1453_v54 = vpop.f32.mrb[8].mxu0  ;;  %v2507_v55 = vadd.f32 %v1513_v50, %v1449_v43 }
 0x2a8   : > { %v1454_v56 = vpop.f32.mrb[9].mxu0 }
 0x2a9   : > { %v1455_v57 = vadd.f32 %v1454_v56, %v1453_v54  ;;  %v1456_v58 = vpop.f32.mrb[10].mxu0  ;;  %v2509_v59 = vadd.f32 %v1516_v53, %v1452_v48 }
 0x2aa   : > { %v1457_v60 = vpop.f32.mrb[11].mxu0 }
 0x2ab   : > { %v1517_v61 = vpop.f32.mrb[8].mxu1  ;;  %v1458_v62 = vadd.f32 %v1457_v60, %v1456_v58 }
 0x2ac   : > { %v1518_v63 = vpop.f32.mrb[9].mxu1 }
 0x2ad   : > { %v1519_v0 = vadd.f32 %v1518_v63, %v1517_v61  ;;  %v1520_v1 = vpop.f32.mrb[10].mxu1 }
 0x2ae   : > { %v1521_v2 = vpop.f32.mrb[11].mxu1 }
 0x2af   : > { %v1522_v3 = vadd.f32 %v1521_v2, %v1520_v1  ;;  %v1459_v4 = vpop.f32.mrb[12].mxu0  ;;  %v2511_v5 = vadd.f32 %v1519_v0, %v1455_v57 }
 0x2b0   : > { %v1460_v6 = vpop.f32.mrb[13].mxu0 }
 0x2b1   : > { %v1461_v7 = vadd.f32 %v1460_v6, %v1459_v4  ;;  %v1462_v9 = vpop.f32.mrb[14].mxu0  ;;  %v2513_v10 = vadd.f32 %v1522_v3, %v1458_v62 }
 0x2b2   : > { %v1463_v8 = vpop.f32.mrb[15].mxu0 }
 0x2b3   : > { %v1523_v11 = vpop.f32.mrb[12].mxu1  ;;  %v1464_v12 = vadd.f32 %v1463_v8, %v1462_v9 }
 0x2b4   : > { %v1524_v13 = vpop.f32.mrb[13].mxu1 }
 0x2b5   : > { %v1525_v14 = vadd.f32 %v1524_v13, %v1523_v11  ;;  %v1526_v15 = vpop.f32.mrb[14].mxu1 }
 0x2b6   : > { %v1527_v16 = vpop.f32.mrb[15].mxu1 }
 0x2b7   : > { %v1528_v17 = vadd.f32 %v1527_v16, %v1526_v15  ;;  %v1465_v18 = vpop.f32.mrb[16].mxu0  ;;  %v2515_v19 = vadd.f32 %v1525_v14, %v1461_v7 }
 0x2b8   : > { %v1466_v20 = vpop.f32.mrb[17].mxu0 }
 0x2b9   : > { %v1467_v21 = vadd.f32 %v1466_v20, %v1465_v18  ;;  %v1468_v22 = vpop.f32.mrb[18].mxu0  ;;  %v2517_v23 = vadd.f32 %v1528_v17, %v1464_v12 }
 0x2ba   : > { %v1469_v24 = vpop.f32.mrb[19].mxu0 }
 0x2bb   : > { %v1529_v25 = vpop.f32.mrb[16].mxu1  ;;  %v1470_v26 = vadd.f32 %v1469_v24, %v1468_v22 }
 0x2bc   : > { %v1530_v27 = vpop.f32.mrb[17].mxu1 }
 0x2bd   : > { %v1531_v28 = vadd.f32 %v1530_v27, %v1529_v25  ;;  %v1532_v29 = vpop.f32.mrb[18].mxu1 }
 0x2be   : > { %v1533_v30 = vpop.f32.mrb[19].mxu1 }
 0x2bf   : > { %v1534_v31 = vadd.f32 %v1533_v30, %v1532_v29  ;;  %v1471_v32 = vpop.f32.mrb[20].mxu0  ;;  %v930_v33 = vadd.f32 %v1531_v28, %v1467_v21 }
 0x2c0   : > { %v1472_v34 = vpop.f32.mrb[21].mxu0 }
 0x2c1   : > { %v1473_v35 = vadd.f32 %v1472_v34, %v1471_v32  ;;  %v1474_v36 = vpop.f32.mrb[22].mxu0  ;;  %v933_v37 = vadd.f32 %v1534_v31, %v1470_v26 }
 0x2c2   : > { %v1475_v38 = vpop.f32.mrb[23].mxu0 }
 0x2c3   : > { %v1535_v39 = vpop.f32.mrb[20].mxu1  ;;  %v1476_v40 = vadd.f32 %v1475_v38, %v1474_v36 }
 0x2c4   : > { %v1536_v42 = vpop.f32.mrb[21].mxu1 }
 0x2c5   : > { %v1537_v43 = vadd.f32 %v1536_v42, %v1535_v39  ;;  %v1538_v44 = vpop.f32.mrb[22].mxu1 }
 0x2c6   : > { %v1539_v46 = vpop.f32.mrb[23].mxu1 }
 0x2c7   : > { %v1540_v47 = vadd.f32 %v1539_v46, %v1538_v44  ;;  %v1477_v48 = vpop.f32.mrb[24].mxu0  ;;  %v938_v49 = vadd.f32 %v1537_v43, %v1473_v35 }
 0x2c8   : > { %v1478_v50 = vpop.f32.mrb[25].mxu0 }
 0x2c9   : > { %v1479_v51 = vadd.f32 %v1478_v50, %v1477_v48  ;;  %v1480_v52 = vpop.f32.mrb[26].mxu0  ;;  %v941_v53 = vadd.f32 %v1540_v47, %v1476_v40 }
 0x2ca   : > { %v1481_v54 = vpop.f32.mrb[27].mxu0 }
 0x2cb   : > { %v1541_v56 = vpop.f32.mrb[24].mxu1  ;;  %v1482_v57 = vadd.f32 %v1481_v54, %v1480_v52 }
 0x2cc   : > { %v1542_v58 = vpop.f32.mrb[25].mxu1 }
 0x2cd   : > { %v1543_v60 = vadd.f32 %v1542_v58, %v1541_v56  ;;  %v1544_v61 = vpop.f32.mrb[26].mxu1 }
 0x2ce   : > { %v1545_v62 = vpop.f32.mrb[27].mxu1 }
 0x2cf   : > { %v1546_v63 = vadd.f32 %v1545_v62, %v1544_v61  ;;  %v1483_v0 = vpop.f32.mrb[28].mxu0  ;;  %v946_v1 = vadd.f32 %v1543_v60, %v1479_v51 }
 0x2d0   : > { %v1484_v2 = vpop.f32.mrb[29].mxu0 }
 0x2d1   : > { %v1485_v3 = vadd.f32 %v1484_v2, %v1483_v0  ;;  %v1486_v4 = vpop.f32.mrb[30].mxu0  ;;  %v949_v6 = vadd.f32 %v1546_v63, %v1482_v57 }
 0x2d2   : > { %v1487_v7 = vpop.f32.mrb[31].mxu0 }
 0x2d3   : > { %v1547_v9 = vpop.f32.mrb[28].mxu1  ;;  %v1488_v8 = vadd.f32 %v1487_v7, %v1486_v4 }
 0x2d4   : > { %v1548_v11 = vpop.f32.mrb[29].mxu1 }
 0x2d5   : > { %v1549_v12 = vadd.f32 %v1548_v11, %v1547_v9  ;;  %v1550_v13 = vpop.f32.mrb[30].mxu1 }
 0x2d6   : > { %v1551_v14 = vpop.f32.mrb[31].mxu1 }
 0x2d7   : > { %v1552_v15 = vadd.f32 %v1551_v14, %v1550_v13  ;;  %v1575_v16 = vpop.f32.mrb[32].mxu0  ;;  %v954_v17 = vadd.f32 %v1549_v12, %v1485_v3 }
 0x2d8   : > { %v1003_v18 = vadd.f32 %v1575_v16, %v2507_v55  ;;  %v994_v20 = vpop.f32.mrb[33].mxu0 }
 0x2d9   : > { %v995_v21 = vadd.f32 %v994_v20, %v2503_v41  ;;  %v1576_v22 = vpop.f32.mrb[34].mxu0  ;;  %v957_v24 = vadd.f32 %v1552_v15, %v1488_v8 }
 0x2da   : > { %v1006_v25 = vadd.f32 %v1576_v22, %v2509_v59  ;;  %v997_v26 = vpop.f32.mrb[35].mxu0 }
 0x2db   : > { %v998_v27 = vadd.f32 %v997_v26, %v2505_v45  ;;  %v1583_v28 = vpop.f32.mrb[32].mxu1 }
 0x2dc   : > { %v1386_v29 = vpack.c.bf16 %v1006_v25, %v1003_v18  ;;  %v1035_v30 = vadd.f32 %v1583_v28, %v938_v49  ;;  %v1026_v31 = vpop.f32.mrb[33].mxu1 }
 0x2dd   : > { %v1381_v32 = vpack.c.bf16 %v998_v27, %v995_v21  ;;  %v1027_v55 = vadd.f32 %v1026_v31, %v930_v33  ;;  %v1584_v34 = vpop.f32.mrb[34].mxu1 }
 0x2de   : > { %1418 = vst [vmem:[%s2526_s8 + $0x8] sm:$0xff] %v1386_v29   ;;  %v1038_v41 = vadd.f32 %v1584_v34, %v941_v53  ;;  %v1029_v59 = vpop.f32.mrb[35].mxu1 }
 0x2df   : > { %1382 = vst [vmem:[%s2526_s8] sm:$0xff] %v1381_v32   ;;  %v1030_v45 = vadd.f32 %v1029_v59, %v933_v37  ;;  %v1579_v35 = vpop.f32.mrb[36].mxu0 }
 0x2e0   : > { %v1406_v36 = vpack.c.bf16 %v1038_v41, %v1035_v30  ;;  %v1019_v38 = vadd.f32 %v1579_v35, %v2515_v19  ;;  %v1010_v39 = vpop.f32.mrb[37].mxu0 }
 0x2e1   : > { %v1401_v33 = vpack.c.bf16 %v1030_v45, %v1027_v55  ;;  %v1011_v40 = vadd.f32 %v1010_v39, %v2511_v5  ;;  %v1580_v42 = vpop.f32.mrb[38].mxu0 }
 0x2e2   : > { %1422 = vst [vmem:[%s2526_s8 + $0x28] sm:$0xff] %v1406_v36   ;;  %v1022_v43 = vadd.f32 %v1580_v42, %v2517_v23  ;;  %v1013_v44 = vpop.f32.mrb[39].mxu0 }
 0x2e3   : > { %1421 = vst [vmem:[%s2526_s8 + $0x20] sm:$0xff] %v1401_v33   ;;  %v1014_v37 = vadd.f32 %v1013_v44, %v2513_v10  ;;  %v1587_v46 = vpop.f32.mrb[36].mxu1 }
 0x2e4   : > { %v1396_v19 = vpack.c.bf16 %v1022_v43, %v1019_v38  ;;  %v1051_v47 = vadd.f32 %v1587_v46, %v954_v17  ;;  %v1042_v48 = vpop.f32.mrb[37].mxu1 }
 0x2e5   : > { %v1391_v5 = vpack.c.bf16 %v1014_v37, %v1011_v40  ;;  %v1043_v49 = vadd.f32 %v1042_v48, %v946_v1  ;;  %v1588_v50 = vpop.f32.mrb[38].mxu1 }
 0x2e6   : > { %1420 = vst [vmem:[%s2526_s8 + $0x18] sm:$0xff] %v1396_v19   ;;  %v1054_v23 = vadd.f32 %v1588_v50, %v957_v24  ;;  %v1045_v51 = vpop.f32.mrb[39].mxu1 }
 0x2e7   : > { %1419 = vst [vmem:[%s2526_s8 + $0x10] sm:$0xff] %v1391_v5   ;;  %v1046_v52 = vadd.f32 %v1045_v51, %v949_v6 }
 0x2e8   : > { %v1416_v10 = vpack.c.bf16 %v1054_v23, %v1051_v47 }
 0x2e9   : > { %v1411_v53 = vpack.c.bf16 %v1046_v52, %v1043_v49 }
 0x2ea   : > { %1424 = vst [vmem:[%s2526_s8 + $0x38] sm:$0xff] %v1416_v10  }
 0x2eb   : > { %1423 = vst [vmem:[%s2526_s8 + $0x30] sm:$0xff] %v1411_v53  }
 0x2ec   : > { %1884 = shalt.err (!%p1881_p5)
}
 0x2ed   : > { %s1885_s24 = scalar_lea.hbm %s2546_s12, 1024  ;;  %s1889_s19 = scalar_lea.hbm %s2669_s28, 4096 }
 0x2ee   : > { %p1886_p0 = scmp.ne.s32.totalorder %s2546_s12, %s1885_s24  ;;  %p1890_p7 = scmp.lt.u32.totalorder %s2546_s12, %s2669_s28 }
 0x2ef   : > { %p1891_p13 = scmp.lt.u32.totalorder %s1889_s19, %s1885_s24  ;;  %p1893_p6 = scmp.lt.u32.totalorder %s1885_s24, %s2546_s12 }
 0x2f0   : > { %p1887_p4 = pnand %p1886_p0, %p2670_p12 }
 0x2f1   : > { %p1892_p1 = por %p1891_p13, %p1890_p7 }
 0x2f2   : > { %p1888_p3 = pneg %p1887_p4 }
 0x2f3   : > { %p1894_p9 = por %p1893_p6, %p1892_p1 }
 0x2f5   : > { %p1895_p11 = pnand %p1894_p9, %p1888_p3 }
 0x2f7   : > { %1898 = shalt.err (!%p1895_p11)
}
 0x2f8   : > { %s2040_s6 = smov 64   ;;  %s2041_s7 = smov 4  }
 0x2f9   : > { %1607 = dma.vmem_to_hbm [thread:$0]  (%p2670_p12), %s2541_s18, 1024, %s2546_s12, %s2552_s26, %s2040_s6, %s2040_s6, %s2041_s7  }
 0x2fa PF: > { %p1621_p2 = scmp.ge.s32.totalorder %s2021_s22, 2  ;;  %s1168_s4 = sand.u32 1, %s1969_s9  }
 0x2fb   : > { %p2671_p10 = scmp.ne.s32.totalorder %s2661_s29, 0  ;;  %s1169_s23 = scalar_lea.sflag [#allocation4], %s1168_s4 }
 0x2fd   : > { %p1617_p8 = pnand %p1621_p2, %p2671_p10 }
 0x2ff   : > { %1964 = dma.done.wait (!%p1617_p8), %s1169_s23, 1024  }
 0x300   : > { %1966 = vsyncadd (!%p1617_p8), %s1169_s23, 4294966272  ;;  %s21_s22 = sadd.s32 1, %s2021_s22   ;;  %s2673_s18 = sld [smem:[#allocation12_spill]] }
 0x301   : > { %p2581_p5 = scmp.ge.s32.totalorder %s21_s22, 6   ;;  %s2674_s19 = sld [smem:[#allocation13_spill]] }
 0x302   : > { %s2675_s2 = sld [smem:[#allocation14_spill]]  ;;  %s2676_s21 = sld [smem:[#allocation15_spill]] }
 0x303   : > { %s2678_s9 = smov %s1973_s10  ;;  %s2679_s10 = smov %s1977_s11 }
 0x304   : > { %s2680_s11 = smov %s2248_s0  ;;  %s2681_s12 = smov %s1985_s13 }
 0x305   : > { %s2682_s13 = smov %s1989_s14  ;;  %s2683_s14 = smov %s2230_s3 }
 0x306   : > { %s2684_s15 = smov %s1997_s16  ;;  %s2685_s16 = smov %s2001_s17 }
 0x307   : > { %s2686_s17 = smov %s2245_s25  ;;  %20 = sbr.rel (!%p2581_p5) target bundleno = 15 (0xf), region = 86 }
 0x308   : > { %s2687_s20 = smov %s2675_s2 }
 0x30e   :  { %1174 = vsyncpa [#allocation3], 1 }
 0x30f   :  { %1176 = vsyncpa [#allocation3 + $0x1], 1 }
 0x310   :  { %1177 = vsyncpa [#allocation6], 1 }
 0x311   :  { %1179 = vsyncpa [#allocation6 + $0x1], 1 }
 0x312   :  { %1180 = vsyncpa [#allocation4], 1 }
 0x313   :  { %1182 = vsyncpa [#allocation4 + $0x1], 1 }

// kernel: generator_forward.7
= control target key start
LH: loop header
LB: loop body
LE: loop exit
PB: predicated region body
PF: predicated region fallthrough
CT: control target
= control target key end

     0   :  { %8 = vsyncpa [#allocation3], 0  ;;  %s6791_s0 = inlined_call_operand.hbm [shape: bf16[2,256,128], index: 0, kind: input, shape index: {}]   ;;  %s6792_s1 = inlined_call_operand.hbm [shape: bf16[128,2304], index: 1, kind: input, shape index: {}]   ;;  %s6793_s2 = inlined_call_operand.hbm [shape: f32[128,2], index: 2, kind: input, shape index: {}]   ;;  %s6794_s3 = inlined_call_operand.hbm [shape: bf16[2,64,128], index: 3, kind: output, shape index: {}]  }
   0x1   :  { %10 = vsyncpa [#allocation3 + $0x1], 0 }
   0x2   :  { %11 = vsyncpa [#allocation6], 0 }
   0x3   :  { %12 = vsyncpa [#allocation4], 0 }
   0x4   :  { %14 = vsyncpa [#allocation4 + $0x1], 0  ;;  %s5118_s12 = smov 0   ;;  %s5120_s13 = smov 0  }
   0x5   :  { %s5122_s14 = smov 0   ;;  %s5124_s15 = smov 0  }
   0x6   :  { %s5126_s16 = smov 0   ;;  %s5128_s17 = smov 0  }
   0x7 LB: > { %s3643_s18 = sadd.s32 4294967295, %s5074_s17   ;;  %s3644_s19 = sadd.s32 4294967294, %s5074_s17   ;;  %s5074_s17 = sphi %s5128_s17, %s20_s17   ;;  %s5070_s16 = sphi %s5126_s16, %s6851_s16   ;;  %s5066_s15 = sphi %s5124_s15, %s6850_s15   ;;  %s5062_s14 = sphi %s5122_s14, %s6849_s14   ;;  %s5058_s13 = sphi %s5120_s13, %s6848_s13   ;;  %s5054_s12 = sphi %s5118_s12, %s6847_s12  }
   0x8   : > { %p52_p0 = scmp.ne.s32.totalorder %s5058_s13, %s5054_s12  ;;  %p5152_p1 = scmp.eq.s32.totalorder %s3643_s18, 0 }
   0x9   : > { %p5156_p2 = scmp.eq.s32.totalorder %s3643_s18, 1  ;;  %p136_p3 = scmp.eq.s32.totalorder %s3644_s19, 1 }
   0xa   : > { %s6806_s20 = scalar_select %p5152_p1, 1, 0 }
   0xb   : > { %p5162_p4 = por %p5152_p1, %p52_p0  ;;  %p3645_p5 = scmp.ge.s32.totalorder %s5074_s17, 1 }
   0xc   : > { %p5167_p6 = por %p136_p3, %p52_p0  ;;  %p143_p7 = scmp.lt.s32.totalorder %s5074_s17, 3 }
   0xd   : > { %s6808_s22 = scalar_select %p5162_p4, 1, 0 }
   0xe   : > { %s6809_s23 = scalar_select %p5167_p6, 1, 0 }
   0xf   : > { %p5172_p8 = pnand %p3645_p5, %p143_p7  ;;  %s5076_s25 = smov [#allocation5]  }
  0x10   : > { %s159_s26 = sshll.u32 %s5076_s25, 4  ;;  %s5077_s28 = smov [#allocation7]   ;;  %s5176_s26 = int_to_ptr.vmem [resolvable:$true] %s159_s26 }
  0x11   : > { %p4507_p9 = pneg %p5172_p8  ;;  %s175_s29 = sshll.u32 %s5077_s28, 4  ;;  %s5187_s29 = int_to_ptr.vmem [resolvable:$true] %s175_s29 }
  0x12   : > { %s4902_s5 = scalar_lea.hbm %s6792_s1, 18432 }
  0x13   : > { %p5183_p11 = pnand %p4507_p9, %p5152_p1  ;;  %p4903_p12 = scmp.ne.s32.totalorder %s6792_s1, %s4902_s5 }
  0x14   : > { %p4909_p5 = scmp.lt.u32.totalorder %s4902_s5, %s6792_s1 }
  0x15   : > { %p4904_p13 = pneg %p5183_p11 }
  0x17   : > { %p4905_p0 = pnand %p4904_p13, %p4903_p12 }
  0x19   : > { %p4906_p3 = pneg %p4905_p0 }
  0x1b   : > { %p4911_p7 = pnand %p4909_p5, %p4906_p3 }
  0x1d   : > { %4914 = shalt.err (!%p4911_p7)
}
  0x1e   : > { %s4915_s10 = scalar_lea.vmem %s5176_s26, 18432  ;;  %p4923_p1 = scmp.lt.s32.totalorder %s5176_s26, %s5176_s26 }
  0x1f   : > { %p4916_p9 = scmp.ne.s32.totalorder %s5176_s26, %s4915_s10  ;;  %p4924_p12 = scmp.lt.s32.totalorder %s4915_s10, %s4915_s10 }
  0x21   : > { %p4918_p10 = pnand %p4916_p9, %p4904_p13  ;;  %p4925_p0 = por %p4924_p12, %p4923_p1 }
  0x23   : > { %p4919_p6 = pneg %p4918_p10 }
  0x25   : > { %p4926_p4 = pnand %p4925_p0, %p4919_p6 }
  0x27   : > { %4929 = shalt.err (!%p4926_p4)
}
  0x28   : > { %s5078_s11 = smov 1152   ;;  %s5079_s18 = smov 72  }
  0x29   : > { %4510 = dma.hbm_to_vmem [thread:$0]  (!%p5183_p11), %s6792_s1, 18432, %s5176_s26, [#allocation6], %s5078_s11, %s5078_s11, %s5079_s18  }
  0x2a   : > { %s4930_s4 = scalar_lea.hbm %s6793_s2, 2048 }
  0x2b   : > { %p4931_p1 = scmp.ne.s32.totalorder %s6793_s2, %s4930_s4  ;;  %p4937_p10 = scmp.lt.u32.totalorder %s4930_s4, %s6793_s2 }
  0x2d   : > { %p4933_p4 = pnand %p4931_p1, %p4904_p13 }
  0x2f   : > { %p4934_p6 = pneg %p4933_p4 }
  0x31   : > { %p4939_p3 = pnand %p4937_p10, %p4934_p6 }
  0x33   : > { %4942 = shalt.err (!%p4939_p3)
}
  0x34   : > { %s4943_s26 = scalar_lea.vmem %s5187_s29, 2048  ;;  %p4951_p12 = scmp.lt.s32.totalorder %s5187_s29, %s5187_s29 }
  0x35   : > { %p4944_p5 = scmp.ne.s32.totalorder %s5187_s29, %s4943_s26  ;;  %p4952_p0 = scmp.lt.s32.totalorder %s4943_s26, %s4943_s26 }
  0x37   : > { %p4946_p7 = pnand %p4944_p5, %p4904_p13  ;;  %p4953_p1 = por %p4952_p0, %p4951_p12 }
  0x39   : > { %p4947_p9 = pneg %p4946_p7 }
  0x3b   : > { %p4954_p4 = pnand %p4953_p1, %p4947_p9 }
  0x3d   : > { %4957 = shalt.err (!%p4954_p4)
}
  0x3e   : > { %s5080_s9 = smov 128   ;;  %s5081_s10 = smov 8  }
  0x3f   : > { %4513 = dma.hbm_to_vmem [thread:$0]  (!%p5183_p11), %s6793_s2, 2048, %s5187_s29, [#allocation6], %s5080_s9, %s5080_s9, %s5081_s10  }
  0x40   : > { %s32_s19 = sadd.s32 1, %s5070_s16  ;;  %s39_s25 = sadd.s32 1, %s5062_s14 }
  0x41   : > { %p34_p13 = scmp.ge.s32.totalorder %s32_s19, 2  ;;  %p46_p6 = scmp.ne.s32.totalorder %s5062_s14, %s5058_s13 }
  0x42   : > { %p47_p10 = scmp.eq.s32.totalorder %s5074_s17, 0  ;;  %p4524_p3 = scmp.lt.s32.totalorder %s5074_s17, 2 }
  0x43   : > { %s6853_s19 = smov (%p34_p13, %s32_s19), 0  ;;  %p5251_p7 = por %p5156_p2, %p46_p6 }
  0x44   : > { %p48_p5 = por %p47_p10, %p46_p6  ;;  %s36_s27 = ssub.s32 %s5070_s16, %s6853_s19 }
  0x45   : > { %s6812_s28 = scalar_select %p5251_p7, 1, 0 }
  0x46   : > { %s189_s30 = sand.u32 1, %s5062_s14   ;;  %p37_p9 = scmp.eq.s32.totalorder %s36_s27, 0 }
  0x47   : > { %s3649_s29 = sshll.u32 %s189_s30, 7  ;;  %s3870_s4 = sshll.u32 %s5070_s16, 11 }
  0x48   : > { %s5260_s5 = scalar_select %p37_p9, %s5062_s14, %s39_s25  }
  0x49   : > { %s5265_s8 = scalar_lea.hbm %s6791_s0, %s3870_s4  ;;  %s193_s21 = scalar_lea.vmem [#allocation2], %s3649_s29 }
  0x4a   : > { %s200_s26 = sshll.u32 %s193_s21, 4  ;;  %p5269_p2 = pnand %p4524_p3, %p48_p5  ;;  %s5273_s26 = int_to_ptr.vmem [resolvable:$true] %s200_s26 }
  0x4b   : > { %s5275_s10 = scalar_lea.sflag [#allocation3], %s189_s30  ;;  %s4958_s11 = scalar_lea.hbm %s5265_s8, 2048 }
  0x4c   : > { %p4959_p11 = scmp.ne.s32.totalorder %s5265_s8, %s4958_s11  ;;  %p4960_p12 = pneg %p5269_p2 }
  0x4d   : > { %s4963_s27 = scalar_lea.hbm %s6791_s0, 4096  ;;  %p4964_p4 = scmp.lt.u32.totalorder %s5265_s8, %s6791_s0 }
  0x4e   : > { %p4961_p0 = pnand %p4960_p12, %p4959_p11  ;;  %p4965_p13 = scmp.lt.u32.totalorder %s4963_s27, %s4958_s11 }
  0x4f   : > { %p4967_p10 = scmp.lt.u32.totalorder %s4958_s11, %s5265_s8 }
  0x50   : > { %p4962_p1 = pneg %p4961_p0  ;;  %p4966_p6 = por %p4965_p13, %p4964_p4 }
  0x52   : > { %p4968_p3 = por %p4967_p10, %p4966_p6 }
  0x54   : > { %p4969_p5 = pnand %p4968_p3, %p4962_p1 }
  0x56   : > { %4972 = shalt.err (!%p4969_p5)
}
  0x57   : > { %s4973_s30 = scalar_lea.vmem %s5273_s26, 2048  ;;  %s5082_s6 = smov [#allocation2]  }
  0x58   : > { %p4974_p9 = scmp.ne.s32.totalorder %s5273_s26, %s4973_s30  ;;  %s4978_s7 = sshll.u32 %s5082_s6, 4  ;;  %s4979_s7 = int_to_ptr.vmem [resolvable:$false] %s4978_s7 }
  0x59   : > { %s4980_s21 = scalar_lea.vmem %s4979_s7, 4096  ;;  %p4981_p7 = scmp.lt.s32.totalorder %s5273_s26, %s4979_s7 }
  0x5a   : > { %p4976_p11 = pnand %p4974_p9, %p4960_p12  ;;  %p4982_p4 = scmp.lt.s32.totalorder %s4980_s21, %s4973_s30 }
  0x5c   : > { %p4977_p0 = pneg %p4976_p11  ;;  %p4983_p13 = por %p4982_p4, %p4981_p7 }
  0x5e   : > { %p4984_p6 = pnand %p4983_p13, %p4977_p0 }
  0x60   : > { %4987 = shalt.err (!%p4984_p6)
}
  0x61   : > { %s5083_s11 = smov 64   ;;  %s5084_s18 = smov 4  }
  0x62   : > { %4517 = dma.hbm_to_vmem [thread:$0]  (!%p5269_p2), %s5265_s8, 2048, %s5273_s26, %s5275_s10, %s5083_s11, %s5083_s11, %s5084_s18  }
  0x63   : > { %212 = sbr.rel (%p5172_p8) target bundleno = 1351 (0x547), region = 32 }
  0x6a   : > { %s5306_s25 = sand.u32 1, %s5058_s13   ;;  %p6814_p7 = scmp.ne.s32.totalorder %s6808_s22, 0 }
  0x6b   : > { %s3653_s27 = sshll.u32 %s5306_s25, 7  ;;  %s215_s29 = scalar_lea.sflag [#allocation3], %s5306_s25 }
  0x6c   : > { %s5310_s4 = scalar_lea.vmem [#allocation2], %s3653_s27 }
  0x6d   : > { %5041 = dma.done.wait (%p6814_p7), %s215_s29, 2048  }
  0x6e   : > { %5043 = vsyncadd (%p6814_p7), %s215_s29, 4294965248  ;;  %p6815_p2 = scmp.ne.s32.totalorder %s6806_s20, 0 }
  0x70   : > { %5045 = dma.done.wait (%p6815_p2), [#allocation6], 20480  }
  0x71   : > { %5047 = vsyncadd (%p6815_p2), [#allocation6], 4294946816  ;;  %v4602_v0 = vld [vmem:[%s5310_s4] sm:$0xff]   ;;  %v4603_v1 = vld [vmem:[%s5310_s4 + $0x10] sm:$0xff]   ;;  %s5085_s24 = smov 4   ;;  %vm397_vm0 = vcmask 31744  }
  0x72   : > { %365 = vrot.lane.b32.xlu0 %v4602_v0, %s5085_s24  ;;  %v4604_v2 = vld [vmem:[%s5310_s4 + $0x8] sm:$0xff]   ;;  %369 = vrot.lane.b32.xlu1 %v4603_v1, %s5085_s24  ;;  %v4605_v3 = vld [vmem:[%s5310_s4 + $0x18] sm:$0xff]   ;;  %s5086_s20 = smov 127   ;;  %vm5399_vm1 = vmneg %vm397_vm0  ;;  %s5087_s22 = smov 126   ;;  %vm559_vm2 = vcmask 1039360   ;;  %vm656_vm3 = vcmask 1031168  }
  0x73   : > { %v4606_v4 = vld [vmem:[%s5310_s4 + $0x20] sm:$0xff]   ;;  %v4607_v5 = vld [vmem:[%s5310_s4 + $0x28] sm:$0xff]   ;;  %v4608_v6 = vld [vmem:[%s5310_s4 + $0x30] sm:$0xff]   ;;  %s5088_s8 = smov 125   ;;  %s5089_s26 = smov 124   ;;  %vm753_vm4 = vcmask 1022976  }
  0x74   : > { %v4609_v7 = vld [vmem:[%s5310_s4 + $0x38] sm:$0xff]   ;;  %v4610_v8 = vld [vmem:[%s5310_s4 + $0x40] sm:$0xff]   ;;  %v4611_v9 = vld [vmem:[%s5310_s4 + $0x48] sm:$0xff]   ;;  %vm850_vm5 = vcmask 1014784   ;;  %s5090_s9 = smov 123   ;;  %s5091_s10 = smov 122  }
  0x75   : > { %v4612_v10 = vld [vmem:[%s5310_s4 + $0x50] sm:$0xff]   ;;  %v4613_v11 = vld [vmem:[%s5310_s4 + $0x58] sm:$0xff]   ;;  %v4614_v12 = vld [vmem:[%s5310_s4 + $0x60] sm:$0xff]   ;;  %vm947_vm6 = vcmask 1006592   ;;  %vm1044_vm7 = vcmask 998400   ;;  %s5092_s30 = smov 121  }
  0x76   : > { %367 = vrot.lane.b32.xlu0 %v4604_v2, %s5085_s24  ;;  %371 = vrot.lane.b32.xlu1 %v4605_v3, %s5085_s24  ;;  %v4615_v13 = vld [vmem:[%s5310_s4 + $0x68] sm:$0xff]   ;;  %v4616_v14 = vld [vmem:[%s5310_s4 + $0x70] sm:$0xff]   ;;  %s5093_s6 = smov 120   ;;  %vm1141_vm8 = vcmask 990208   ;;  %vm1238_vm9 = vcmask 982016   ;;  %s3656_s7 = sshll.u32 %s5306_s25, 5 }
  0x77   : > { %v4617_v15 = vld [vmem:[%s5310_s4 + $0x78] sm:$0xff]   ;;  %v4620_v40 = vld [vmem:[#allocation5 + $0x244] ss:$72 sps:$4 sm:$0xff]   ;;  %v4618_v59 = vld [vmem:[#allocation5 + $0x240] ss:$72 sps:$4 sm:$0xff]   ;;  %s6714_s21 = scalar_lea.vmem [#allocation8], %s3656_s7 }
  0x78   : > { %2199 = vmatprep.mubr.bf16.mxu1 %v4620_v40  ;;  %v4623_v56 = vld [vmem:[#allocation5 + $0x4] ss:$72 sps:$4 sm:$0xff]   ;;  %v4621_v60 = vld [vmem:[#allocation5] ss:$72 sps:$4 sm:$0xff]   ;;  %v4624_v1 = vld [vmem:[#allocation5 + $0x2d4] ss:$72 sps:$4 sm:$0xff]  }
  0x79   : > { %2167 = vmatprep.mubr.bf16.mxu0 %v4623_v56  ;;  %v4626_v2 = vld [vmem:[#allocation5 + $0x2d0] ss:$72 sps:$4 sm:$0xff]   ;;  %s3536_s11 = sshll.u32 %s6714_s21, 4  ;;  %s3879_s18 = sshll.u32 %s5066_s15, 9  ;;  %s6735_s11 = int_to_ptr.vmem [resolvable:$true] %s3536_s11 }
  0x7a   : > { %373 = vrot.lane.b32.xlu0 %v4606_v4, %s5085_s24  ;;  %375 = vrot.lane.b32.xlu1 %v4607_v5, %s5085_s24  ;;  %v4627_v5 = vld [vmem:[#allocation5 + $0x94] ss:$72 sps:$4 sm:$0xff]   ;;  %s6740_s4 = scalar_lea.hbm %s6794_s3, %s3879_s18  ;;  %p6844_p12 = scmp.ne.s32.totalorder %s6812_s28, 0 }
  0x7b   : > { %s5096_s15 = smov [#allocation8]  }
  0x7e   : > { %377 = vrot.lane.b32.xlu0 %v4608_v6, %s5085_s24  ;;  %379 = vrot.lane.b32.xlu1 %v4609_v7, %s5085_s24  ;;  %v4629_v6 = vld [vmem:[#allocation5 + $0x364] ss:$72 sps:$4 sm:$0xff]   ;;  %v4631_v7 = vld [vmem:[#allocation5 + $0x90] ss:$72 sps:$4 sm:$0xff]  }
  0x82   : > { %381 = vrot.lane.b32.xlu0 %v4610_v8, %s5085_s24  ;;  %383 = vrot.lane.b32.xlu1 %v4611_v9, %s5085_s24  ;;  %v4632_v8 = vld [vmem:[#allocation5 + $0x360] ss:$72 sps:$4 sm:$0xff]   ;;  %v4633_v9 = vld [vmem:[#allocation5 + $0x124] ss:$72 sps:$4 sm:$0xff]  }
  0x86   : > { %385 = vrot.lane.b32.xlu0 %v4612_v10, %s5085_s24  ;;  %387 = vrot.lane.b32.xlu1 %v4613_v11, %s5085_s24  ;;  %v4635_v10 = vld [vmem:[#allocation5 + $0x3f4] ss:$72 sps:$4 sm:$0xff]   ;;  %v4637_v11 = vld [vmem:[#allocation5 + $0x120] ss:$72 sps:$4 sm:$0xff]  }
  0x8a   : > { %389 = vrot.lane.b32.xlu0 %v4614_v12, %s5085_s24  ;;  %391 = vrot.lane.b32.xlu1 %v4615_v13, %s5085_s24  ;;  %v4638_v12 = vld [vmem:[#allocation5 + $0x3f0] ss:$72 sps:$4 sm:$0xff]  }
  0x8e   : > { %393 = vrot.lane.b32.xlu0 %v4616_v14, %s5085_s24  ;;  %395 = vrot.lane.b32.xlu1 %v4617_v15, %s5085_s24 }
  0xe4   : > { %v366_v16 = vpop.permute.xlu0 %365  ;;  %v370_v19 = vpop.permute.xlu1 %369 }
  0xe5   : > { %v5353_v17 = vsel %vm397_vm0, 0, %v366_v16  ;;  %v5356_v18 = vsel %vm397_vm0, %v366_v16, 0  ;;  %v5373_v24 = vsel %vm397_vm0, 0, %v370_v19  ;;  %v5376_v25 = vsel %vm397_vm0, %v370_v19, 0 }
  0xe6   : > { %497 = vrot.lane.b32.xlu1 %v5356_v18, %s5086_s20  ;;  %495 = vrot.lane.b32.xlu0 %v5353_v17, %s5086_s20 }
  0xe8   : > { %v368_v20 = vpop.permute.xlu0 %367  ;;  %v372_v23 = vpop.permute.xlu1 %371 }
  0xe9   : > { %v5363_v21 = vsel %vm397_vm0, 0, %v368_v20  ;;  %v5366_v22 = vsel %vm397_vm0, %v368_v20, 0  ;;  %v5385_v28 = vsel %vm397_vm0, 0, %v372_v23  ;;  %v5388_v29 = vsel %vm397_vm0, %v372_v23, 0 }
  0xea   : > { %501 = vrot.lane.b32.xlu1 %v5366_v22, %s5086_s20  ;;  %499 = vrot.lane.b32.xlu0 %v5363_v21, %s5086_s20 }
  0xec   : > { %v374_v26 = vpop.permute.xlu0 %373  ;;  %v5378_v27 = vpop.permute.xlu1 %375 }
  0xed   : > { %v5404_v33 = vsel %vm397_vm0, 0, %v374_v26  ;;  %v5407_v34 = vsel %vm397_vm0, %v374_v26, 0  ;;  %v5419_v37 = vsel %vm397_vm0, 0, %v5378_v27  ;;  %v5423_v38 = vsel %vm397_vm0, %v5378_v27, 0 }
  0xee   : > { %505 = vrot.lane.b32.xlu1 %v5376_v25, %s5086_s20  ;;  %503 = vrot.lane.b32.xlu0 %v5373_v24, %s5086_s20 }
  0xf0   : > { %v5390_v30 = vpop.permute.xlu0 %377  ;;  %v5392_v31 = vpop.permute.xlu1 %379 }
  0xf1   : > { %v5439_v41 = vsel %vm397_vm0, 0, %v5390_v30  ;;  %v5443_v42 = vsel %vm397_vm0, %v5390_v30, 0  ;;  %v5459_v44 = vsel %vm397_vm0, 0, %v5392_v31  ;;  %v5463_v45 = vsel %vm397_vm0, %v5392_v31, 0 }
  0xf2   : > { %509 = vrot.lane.b32.xlu1 %v5388_v29, %s5086_s20  ;;  %507 = vrot.lane.b32.xlu0 %v5385_v28, %s5086_s20 }
  0xf4   : > { %v382_v35 = vpop.permute.xlu0 %381  ;;  %v384_v36 = vpop.permute.xlu1 %383 }
  0xf5   : > { %3903 = vmatprep.subr.msk.bf16.mxu0 %vm5399_vm1, %v382_v35  ;;  %4479 = vmatprep.subr.msk.bf16.mxu1 %vm5399_vm1, %v382_v35  ;;  %v5480_v47 = vsel %vm397_vm0, 0, %v382_v35  ;;  %v5483_v48 = vsel %vm397_vm0, %v382_v35, 0  ;;  %v5502_v50 = vsel %vm397_vm0, 0, %v384_v36  ;;  %v5505_v51 = vsel %vm397_vm0, %v384_v36, 0 }
  0xf6   : > { %513 = vrot.lane.b32.xlu1 %v5407_v34, %s5086_s20  ;;  %511 = vrot.lane.b32.xlu0 %v5404_v33, %s5086_s20 }
  0xf7   : > { %3904 = vmatpush3.bf16.msk.msra.mxu0 %vm5399_vm1, %v366_v16  ;;  %4487 = vmatpush3.bf16.msk.msra.mxu1 %vm5399_vm1, %v366_v16 }
  0xf8   : > { %3905 = vmatprep.subr.msk.bf16.mxu0 %vm5399_vm1, %v384_v36  ;;  %4480 = vmatprep.subr.msk.bf16.mxu1 %vm5399_vm1, %v384_v36  ;;  %v386_v39 = vpop.permute.xlu0 %385  ;;  %v388_v43 = vpop.permute.xlu1 %387  ;;  %v4647_v36 = vld [vmem:[#allocation5 + $0x14] ss:$72 sps:$4 sm:$0xff]  }
  0xf9   : > { %v5524_v53 = vsel %vm397_vm0, 0, %v386_v39  ;;  %v5527_v54 = vsel %vm397_vm0, %v386_v39, 0  ;;  %v5548_v57 = vsel %vm397_vm0, 0, %v388_v43  ;;  %v5551_v58 = vsel %vm397_vm0, %v388_v43, 0 }
  0xfa   : > { %517 = vrot.lane.b32.xlu1 %v5423_v38, %s5086_s20  ;;  %515 = vrot.lane.b32.xlu0 %v5419_v37, %s5086_s20 }
  0xfb   : > { %3906 = vmatpush3.bf16.msk.msra.mxu0 %vm5399_vm1, %v368_v20  ;;  %4488 = vmatpush3.bf16.msk.msra.mxu1 %vm5399_vm1, %v368_v20 }
  0xfc   : > { %3907 = vmatprep.subr.msk.bf16.mxu0 %vm5399_vm1, %v386_v39  ;;  %4481 = vmatprep.subr.msk.bf16.mxu1 %vm5399_vm1, %v386_v39  ;;  %v5473_v46 = vpop.permute.xlu0 %389  ;;  %v5495_v49 = vpop.permute.xlu1 %391 }
  0xfd   : > { %v5609_v61 = vsel %vm397_vm0, 0, %v5473_v46  ;;  %v5613_v62 = vsel %vm397_vm0, %v5473_v46, 0  ;;  %v5629_v63 = vsel %vm397_vm0, 0, %v5495_v49  ;;  %v5633_v0 = vsel %vm397_vm0, %v5495_v49, 0 }
  0xfe   : > { %521 = vrot.lane.b32.xlu1 %v5443_v42, %s5086_s20  ;;  %519 = vrot.lane.b32.xlu0 %v5439_v41, %s5086_s20 }
  0xff   : > { %3908 = vmatpush3.bf16.msk.msra.mxu0 %vm5399_vm1, %v370_v19  ;;  %4489 = vmatpush3.bf16.msk.msra.mxu1 %vm5399_vm1, %v370_v19 }
 0x100   : > { %3909 = vmatprep.subr.msk.bf16.mxu0 %vm5399_vm1, %v388_v43  ;;  %4482 = vmatprep.subr.msk.bf16.mxu1 %vm5399_vm1, %v388_v43  ;;  %v5517_v52 = vpop.permute.xlu0 %393  ;;  %v5541_v55 = vpop.permute.xlu1 %395 }
 0x101   : > { %v5649_v3 = vsel %vm397_vm0, 0, %v5517_v52  ;;  %v5653_v4 = vsel %vm397_vm0, %v5517_v52, 0  ;;  %v5669_v15 = vsel %vm397_vm0, 0, %v5541_v55  ;;  %v5673_v16 = vsel %vm397_vm0, %v5541_v55, 0 }
 0x102   : > { %525 = vrot.lane.b32.xlu1 %v5463_v45, %s5086_s20  ;;  %523 = vrot.lane.b32.xlu0 %v5459_v44, %s5086_s20 }
 0x103   : > { %3910 = vmatpush3.bf16.msk.msra.mxu0 %vm5399_vm1, %v372_v23  ;;  %4490 = vmatpush3.bf16.msk.msra.mxu1 %vm5399_vm1, %v372_v23  ;;  %v4639_v23 = vld [vmem:[#allocation5 + $0x1b4] ss:$72 sps:$4 sm:$0xff]  }
 0x104   : > { %3911 = vmatprep.subr.msk.bf16.mxu0 %vm5399_vm1, %v5473_v46  ;;  %4483 = vmatprep.subr.msk.bf16.mxu1 %vm5399_vm1, %v5473_v46 }
 0x106   : > { %529 = vrot.lane.b32.xlu1 %v5483_v48, %s5086_s20  ;;  %527 = vrot.lane.b32.xlu0 %v5480_v47, %s5086_s20 }
 0x107   : > { %3912 = vmatpush3.bf16.msk.msra.mxu0 %vm5399_vm1, %v374_v26  ;;  %4491 = vmatpush3.bf16.msk.msra.mxu1 %vm5399_vm1, %v374_v26  ;;  %v4643_v26 = vld [vmem:[#allocation5 + $0xc] ss:$72 sps:$4 sm:$0xff]  }
 0x108   : > { %3913 = vmatprep.subr.msk.bf16.mxu0 %vm5399_vm1, %v5495_v49  ;;  %4484 = vmatprep.subr.msk.bf16.mxu1 %vm5399_vm1, %v5495_v49 }
 0x10a   : > { %533 = vrot.lane.b32.xlu1 %v5505_v51, %s5086_s20  ;;  %531 = vrot.lane.b32.xlu0 %v5502_v50, %s5086_s20 }
 0x10b   : > { %3914 = vmatpush3.bf16.msk.msra.mxu0 %vm5399_vm1, %v5378_v27  ;;  %4492 = vmatpush3.bf16.msk.msra.mxu1 %vm5399_vm1, %v5378_v27  ;;  %v4644_v27 = vld [vmem:[#allocation5 + $0x1b0] ss:$72 sps:$4 sm:$0xff]  }
 0x10c   : > { %3915 = vmatprep.subr.msk.bf16.mxu0 %vm5399_vm1, %v5517_v52  ;;  %4485 = vmatprep.subr.msk.bf16.mxu1 %vm5399_vm1, %v5517_v52 }
 0x10e   : > { %537 = vrot.lane.b32.xlu1 %v5527_v54, %s5086_s20  ;;  %535 = vrot.lane.b32.xlu0 %v5524_v53, %s5086_s20 }
 0x10f   : > { %3916 = vmatpush3.bf16.msk.msra.mxu0 %vm5399_vm1, %v5390_v30  ;;  %4493 = vmatpush3.bf16.msk.msra.mxu1 %vm5399_vm1, %v5390_v30 }
 0x110   : > { %3917 = vmatprep.subr.msk.bf16.mxu0 %vm5399_vm1, %v5541_v55  ;;  %4486 = vmatprep.subr.msk.bf16.mxu1 %vm5399_vm1, %v5541_v55 }
 0x112   : > { %541 = vrot.lane.b32.xlu1 %v5551_v58, %s5086_s20  ;;  %539 = vrot.lane.b32.xlu0 %v5548_v57, %s5086_s20 }
 0x113   : > { %3918 = vmatpush3.bf16.msk.msra.mxu0 %vm5399_vm1, %v5392_v31  ;;  %4494 = vmatpush3.bf16.msk.msra.mxu1 %vm5399_vm1, %v5392_v31 }
 0x116   : > { %626 = vrot.lane.b32.xlu1 %v5483_v48, %s5087_s22  ;;  %624 = vrot.lane.b32.xlu0 %v5480_v47, %s5087_s22 }
 0x117   : > { %2200 = vmatmul.mubr.bf16.vlgmr.msra.gmra.mrb[0].mxu1 %v4618_v59  ;;  %2168 = vmatmul.mubr.bf16.vlgmr.msra.gmra.mrb[0].mxu0 %v4621_v60 }
 0x118   : > { %2207 = vmatprep.mubr.bf16.mxu1 %v4624_v1  ;;  %2175 = vmatprep.mubr.bf16.mxu0 %v4627_v5 }
 0x11a   : > { %594 = vrot.lane.b32.xlu1 %v5356_v18, %s5087_s22  ;;  %592 = vrot.lane.b32.xlu0 %v5353_v17, %s5087_s22 }
 0x11e   : > { %630 = vrot.lane.b32.xlu1 %v5505_v51, %s5087_s22  ;;  %628 = vrot.lane.b32.xlu0 %v5502_v50, %s5087_s22 }
 0x11f   : > { %2208 = vmatmul.mubr.bf16.gmra.mrb[4].mxu1 %v4626_v2  ;;  %2176 = vmatmul.mubr.bf16.gmra.mrb[4].mxu0 %v4631_v7 }
 0x120   : > { %2215 = vmatprep.mubr.bf16.mxu1 %v4629_v6  ;;  %2183 = vmatprep.mubr.bf16.mxu0 %v4633_v9 }
 0x122   : > { %598 = vrot.lane.b32.xlu1 %v5366_v22, %s5087_s22  ;;  %596 = vrot.lane.b32.xlu0 %v5363_v21, %s5087_s22 }
 0x126   : > { %634 = vrot.lane.b32.xlu1 %v5527_v54, %s5087_s22  ;;  %632 = vrot.lane.b32.xlu0 %v5524_v53, %s5087_s22 }
 0x127   : > { %2216 = vmatmul.mubr.bf16.gmra.mrb[8].mxu1 %v4632_v8  ;;  %2184 = vmatmul.mubr.bf16.gmra.mrb[8].mxu0 %v4637_v11 }
 0x128   : > { %2223 = vmatprep.mubr.bf16.mxu1 %v4635_v10  ;;  %2191 = vmatprep.mubr.bf16.mxu0 %v4639_v23 }
 0x12a   : > { %602 = vrot.lane.b32.xlu1 %v5376_v25, %s5087_s22  ;;  %600 = vrot.lane.b32.xlu0 %v5373_v24, %s5087_s22 }
 0x12e   : > { %638 = vrot.lane.b32.xlu1 %v5551_v58, %s5087_s22  ;;  %636 = vrot.lane.b32.xlu0 %v5548_v57, %s5087_s22 }
 0x12f   : > { %2224 = vmatmul.mubr.bf16.gmra.mrb[12].mxu1 %v4638_v12  ;;  %2192 = vmatmul.mubr.bf16.gmra.mrb[12].mxu0 %v4644_v27 }
 0x130   : > { %2264 = vmatprep.mubr.bf16.mxu1 %v4643_v26  ;;  %2361 = vmatprep.mubr.bf16.mxu0 %v4647_v36 }
 0x132   : > { %606 = vrot.lane.b32.xlu1 %v5388_v29, %s5087_s22  ;;  %604 = vrot.lane.b32.xlu0 %v5385_v28, %s5087_s22 }
 0x136   : > { %545 = vrot.lane.b32.xlu1 %v5613_v62, %s5086_s20  ;;  %543 = vrot.lane.b32.xlu0 %v5609_v61, %s5086_s20 }
 0x13a   : > { %642 = vrot.lane.b32.xlu1 %v5613_v62, %s5087_s22  ;;  %640 = vrot.lane.b32.xlu0 %v5609_v61, %s5087_s22 }
 0x13e   : > { %610 = vrot.lane.b32.xlu1 %v5407_v34, %s5087_s22  ;;  %608 = vrot.lane.b32.xlu0 %v5404_v33, %s5087_s22 }
 0x142   : > { %549 = vrot.lane.b32.xlu1 %v5633_v0, %s5086_s20  ;;  %547 = vrot.lane.b32.xlu0 %v5629_v63, %s5086_s20 }
 0x146   : > { %646 = vrot.lane.b32.xlu1 %v5633_v0, %s5087_s22  ;;  %644 = vrot.lane.b32.xlu0 %v5629_v63, %s5087_s22 }
 0x14a   : > { %614 = vrot.lane.b32.xlu1 %v5423_v38, %s5087_s22  ;;  %612 = vrot.lane.b32.xlu0 %v5419_v37, %s5087_s22 }
 0x14e   : > { %553 = vrot.lane.b32.xlu1 %v5653_v4, %s5086_s20  ;;  %551 = vrot.lane.b32.xlu0 %v5649_v3, %s5086_s20 }
 0x152   : > { %650 = vrot.lane.b32.xlu1 %v5653_v4, %s5087_s22  ;;  %648 = vrot.lane.b32.xlu0 %v5649_v3, %s5087_s22 }
 0x156   : > { %618 = vrot.lane.b32.xlu1 %v5443_v42, %s5087_s22  ;;  %616 = vrot.lane.b32.xlu0 %v5439_v41, %s5087_s22 }
 0x158   : > { %v498_v13 = vpop.permute.xlu1 %497  ;;  %v496_v14 = vpop.permute.xlu0 %495 }
 0x159   : > { %v560_v2 = vsel %vm559_vm2, %v496_v14, %v498_v13 }
 0x15a   : > { %557 = vrot.lane.b32.xlu1 %v5673_v16, %s5086_s20  ;;  %555 = vrot.lane.b32.xlu0 %v5669_v15, %s5086_s20  ;;  %s3521_s20 = scalar_lea.sflag [#allocation4], %s5306_s25 }
 0x15c   : > { %v502_v19 = vpop.permute.xlu1 %501  ;;  %v500_v20 = vpop.permute.xlu0 %499 }
 0x15d   : > { %v561_v8 = vsel %vm559_vm2, %v500_v20, %v502_v19 }
 0x15e   : > { %654 = vrot.lane.b32.xlu1 %v5673_v16, %s5087_s22  ;;  %652 = vrot.lane.b32.xlu0 %v5669_v15, %s5087_s22 }
 0x160   : > { %v506_v30 = vpop.permute.xlu1 %505  ;;  %v504_v31 = vpop.permute.xlu0 %503 }
 0x161   : > { %v562_v12 = vsel %vm559_vm2, %v504_v31, %v506_v30 }
 0x162   : > { %622 = vrot.lane.b32.xlu1 %v5463_v45, %s5087_s22  ;;  %620 = vrot.lane.b32.xlu0 %v5459_v44, %s5087_s22  ;;  %s4988_s22 = scalar_lea.vmem %s6735_s11, 512 }
 0x163   : > { %p4989_p8 = scmp.ne.s32.totalorder %s6735_s11, %s4988_s22 }
 0x164   : > { %v510_v32 = vpop.permute.xlu1 %509  ;;  %v508_v35 = vpop.permute.xlu0 %507 }
 0x165   : > { %v563_v20 = vsel %vm559_vm2, %v508_v35, %v510_v32  ;;  %p4990_p1 = pnand %p4989_p8, %p6844_p12 }
 0x166   : > { %723 = vrot.lane.b32.xlu1 %v5483_v48, %s5088_s8  ;;  %721 = vrot.lane.b32.xlu0 %v5480_v47, %s5088_s8 }
 0x167   : > { %p4991_p10 = pneg %p4990_p1 }
 0x168   : > { %v5691_v39 = vpop.permute.xlu1 %513  ;;  %v5693_v40 = vpop.permute.xlu0 %511 }
 0x16a   : > { %691 = vrot.lane.b32.xlu1 %v5356_v18, %s5088_s8  ;;  %689 = vrot.lane.b32.xlu0 %v5353_v17, %s5088_s8 }
 0x16c   : > { %v5699_v43 = vpop.permute.xlu1 %517  ;;  %v5701_v46 = vpop.permute.xlu0 %515 }
 0x16e   : > { %820 = vrot.lane.b32.xlu1 %v5483_v48, %s5089_s26  ;;  %818 = vrot.lane.b32.xlu0 %v5480_v47, %s5089_s26 }
 0x170   : > { %v5707_v49 = vpop.permute.xlu1 %521  ;;  %v5709_v52 = vpop.permute.xlu0 %519 }
 0x172   : > { %788 = vrot.lane.b32.xlu1 %v5356_v18, %s5089_s26  ;;  %786 = vrot.lane.b32.xlu0 %v5353_v17, %s5089_s26 }
 0x174   : > { %v5715_v55 = vpop.permute.xlu1 %525  ;;  %v5717_v56 = vpop.permute.xlu0 %523 }
 0x176   : > { %727 = vrot.lane.b32.xlu1 %v5505_v51, %s5088_s8  ;;  %725 = vrot.lane.b32.xlu0 %v5502_v50, %s5088_s8 }
 0x178   : > { %v530_v59 = vpop.permute.xlu1 %529  ;;  %v528_v60 = vpop.permute.xlu0 %527 }
 0x179   : > { %v568_v1 = vsel %vm559_vm2, %v528_v60, %v530_v59 }
 0x17a   : > { %695 = vrot.lane.b32.xlu1 %v5366_v22, %s5088_s8  ;;  %693 = vrot.lane.b32.xlu0 %v5363_v21, %s5088_s8 }
 0x17b   : > { %3967 = vmatprep.subr.bf16.mxu1 %v568_v1 }
 0x17c   : > { %3968 = vmatpush3.bf16.msra.mxu1 %v560_v2  ;;  %v534_v5 = vpop.permute.xlu1 %533  ;;  %v532_v6 = vpop.permute.xlu0 %531 }
 0x17d   : > { %v569_v7 = vsel %vm559_vm2, %v532_v6, %v534_v5 }
 0x17e   : > { %824 = vrot.lane.b32.xlu1 %v5505_v51, %s5089_s26  ;;  %822 = vrot.lane.b32.xlu0 %v5502_v50, %s5089_s26 }
 0x17f   : > { %3969 = vmatprep.subr.bf16.mxu1 %v569_v7 }
 0x180   : > { %3970 = vmatpush3.bf16.msra.mxu1 %v561_v8  ;;  %v538_v9 = vpop.permute.xlu1 %537  ;;  %v536_v10 = vpop.permute.xlu0 %535 }
 0x181   : > { %v570_v11 = vsel %vm559_vm2, %v536_v10, %v538_v9 }
 0x182   : > { %792 = vrot.lane.b32.xlu1 %v5366_v22, %s5089_s26  ;;  %790 = vrot.lane.b32.xlu0 %v5363_v21, %s5089_s26 }
 0x183   : > { %3971 = vmatprep.subr.bf16.mxu1 %v570_v11 }
 0x184   : > { %3972 = vmatpush3.bf16.msra.mxu1 %v562_v12  ;;  %v542_v13 = vpop.permute.xlu1 %541  ;;  %v540_v14 = vpop.permute.xlu0 %539 }
 0x185   : > { %v571_v19 = vsel %vm559_vm2, %v540_v14, %v542_v13 }
 0x186   : > { %731 = vrot.lane.b32.xlu1 %v5527_v54, %s5088_s8  ;;  %729 = vrot.lane.b32.xlu0 %v5524_v53, %s5088_s8 }
 0x187   : > { %3973 = vmatprep.subr.bf16.mxu1 %v571_v19 }
 0x188   : > { %3974 = vmatpush3.bf16.msra.mxu1 %v563_v20  ;;  %v627_v23 = vpop.permute.xlu1 %626  ;;  %v625_v26 = vpop.permute.xlu0 %624 }
 0x189   : > { %v665_v27 = vsel %vm656_vm3, %v625_v26, %v627_v23 }
 0x18a   : > { %699 = vrot.lane.b32.xlu1 %v5376_v25, %s5088_s8  ;;  %697 = vrot.lane.b32.xlu0 %v5373_v24, %s5088_s8 }
 0x18b   : > { %4031 = vmatprep.subr.bf16.mxu0 %v665_v27 }
 0x18c   : > { %v595_v30 = vpop.permute.xlu1 %594  ;;  %v593_v31 = vpop.permute.xlu0 %592 }
 0x18d   : > { %v657_v36 = vsel %vm656_vm3, %v593_v31, %v595_v30  ;;  %v564_v30 = vsel %vm559_vm2, %v5693_v40, %v5691_v39 }
 0x18e   : > { %828 = vrot.lane.b32.xlu1 %v5527_v54, %s5089_s26  ;;  %826 = vrot.lane.b32.xlu0 %v5524_v53, %s5089_s26 }
 0x18f   : > { %4032 = vmatpush3.bf16.msra.mxu0 %v657_v36 }
 0x190   : > { %v631_v32 = vpop.permute.xlu1 %630  ;;  %v629_v35 = vpop.permute.xlu0 %628 }
 0x191   : > { %v666_v59 = vsel %vm656_vm3, %v629_v35, %v631_v32 }
 0x192   : > { %796 = vrot.lane.b32.xlu1 %v5376_v25, %s5089_s26  ;;  %794 = vrot.lane.b32.xlu0 %v5373_v24, %s5089_s26 }
 0x193   : > { %4033 = vmatprep.subr.bf16.mxu0 %v666_v59 }
 0x194   : > { %v599_v60 = vpop.permute.xlu1 %598  ;;  %v597_v1 = vpop.permute.xlu0 %596 }
 0x195   : > { %v658_v2 = vsel %vm656_vm3, %v597_v1, %v599_v60 }
 0x196   : > { %735 = vrot.lane.b32.xlu1 %v5551_v58, %s5088_s8  ;;  %733 = vrot.lane.b32.xlu0 %v5548_v57, %s5088_s8 }
 0x197   : > { %4034 = vmatpush3.bf16.msra.mxu0 %v658_v2  ;;  %v565_v2 = vsel %vm559_vm2, %v5701_v46, %v5699_v43 }
 0x198   : > { %v635_v5 = vpop.permute.xlu1 %634  ;;  %v633_v6 = vpop.permute.xlu0 %632 }
 0x199   : > { %v667_v7 = vsel %vm656_vm3, %v633_v6, %v635_v5 }
 0x19a   : > { %703 = vrot.lane.b32.xlu1 %v5388_v29, %s5088_s8  ;;  %701 = vrot.lane.b32.xlu0 %v5385_v28, %s5088_s8 }
 0x19b   : > { %4035 = vmatprep.subr.bf16.mxu0 %v667_v7 }
 0x19c   : > { %v603_v8 = vpop.permute.xlu1 %602  ;;  %v601_v9 = vpop.permute.xlu0 %600 }
 0x19d   : > { %v659_v10 = vsel %vm656_vm3, %v601_v9, %v603_v8 }
 0x19e   : > { %832 = vrot.lane.b32.xlu1 %v5551_v58, %s5089_s26  ;;  %830 = vrot.lane.b32.xlu0 %v5548_v57, %s5089_s26 }
 0x19f   : > { %4036 = vmatpush3.bf16.msra.mxu0 %v659_v10 }
 0x1a0   : > { %v639_v11 = vpop.permute.xlu1 %638  ;;  %v637_v12 = vpop.permute.xlu0 %636 }
 0x1a1   : > { %v668_v13 = vsel %vm656_vm3, %v637_v12, %v639_v11  ;;  %v566_v12 = vsel %vm559_vm2, %v5709_v52, %v5707_v49 }
 0x1a2   : > { %800 = vrot.lane.b32.xlu1 %v5388_v29, %s5089_s26  ;;  %798 = vrot.lane.b32.xlu0 %v5385_v28, %s5089_s26 }
 0x1a3   : > { %4037 = vmatprep.subr.bf16.mxu0 %v668_v13 }
 0x1a4   : > { %v607_v14 = vpop.permute.xlu1 %606  ;;  %v605_v19 = vpop.permute.xlu0 %604 }
 0x1a5   : > { %v660_v20 = vsel %vm656_vm3, %v605_v19, %v607_v14 }
 0x1a6   : > { %739 = vrot.lane.b32.xlu1 %v5613_v62, %s5088_s8  ;;  %737 = vrot.lane.b32.xlu0 %v5609_v61, %s5088_s8 }
 0x1a7   : > { %4038 = vmatpush3.bf16.msra.mxu0 %v660_v20 }
 0x1a8   : > { %v546_v23 = vpop.permute.xlu1 %545  ;;  %v544_v26 = vpop.permute.xlu0 %543 }
 0x1a9   : > { %v572_v27 = vsel %vm559_vm2, %v544_v26, %v546_v23 }
 0x1aa   : > { %707 = vrot.lane.b32.xlu1 %v5407_v34, %s5088_s8  ;;  %705 = vrot.lane.b32.xlu0 %v5404_v33, %s5088_s8 }
 0x1ab   : > { %3975 = vmatprep.subr.bf16.mxu1 %v572_v27 }
 0x1ac   : > { %3976 = vmatpush3.bf16.msra.mxu1 %v564_v30  ;;  %v643_v31 = vpop.permute.xlu1 %642  ;;  %v641_v36 = vpop.permute.xlu0 %640  ;;  %v567_v30 = vsel %vm559_vm2, %v5717_v56, %v5715_v55  ;;  %v4645_v56 = vld [vmem:[#allocation5 + $0x10] ss:$72 sps:$4 sm:$0xff]  }
 0x1ad   : > { %v669_v32 = vsel %vm656_vm3, %v641_v36, %v643_v31  ;;  %v4641_v31 = vld [vmem:[#allocation5 + $0x8] ss:$72 sps:$4 sm:$0xff]  }
 0x1ae   : > { %836 = vrot.lane.b32.xlu1 %v5613_v62, %s5089_s26  ;;  %834 = vrot.lane.b32.xlu0 %v5609_v61, %s5089_s26 }
 0x1af   : > { %4039 = vmatprep.subr.bf16.mxu0 %v669_v32 }
 0x1b0   : > { %v611_v35 = vpop.permute.xlu1 %610  ;;  %v609_v59 = vpop.permute.xlu0 %608 }
 0x1b1   : > { %v661_v60 = vsel %vm656_vm3, %v609_v59, %v611_v35  ;;  %v4648_v35 = vld [vmem:[#allocation5 + $0x9c] ss:$72 sps:$4 sm:$0xff]  }
 0x1b2   : > { %804 = vrot.lane.b32.xlu1 %v5407_v34, %s5089_s26  ;;  %802 = vrot.lane.b32.xlu0 %v5404_v33, %s5089_s26 }
 0x1b3   : > { %4040 = vmatpush3.bf16.msra.mxu0 %v661_v60 }
 0x1b4   : > { %v550_v39 = vpop.permute.xlu1 %549  ;;  %v548_v40 = vpop.permute.xlu0 %547 }
 0x1b5   : > { %v573_v1 = vsel %vm559_vm2, %v548_v40, %v550_v39 }
 0x1b6   : > { %743 = vrot.lane.b32.xlu1 %v5633_v0, %s5088_s8  ;;  %741 = vrot.lane.b32.xlu0 %v5629_v63, %s5088_s8 }
 0x1b7   : > { %3977 = vmatprep.subr.bf16.mxu1 %v573_v1 }
 0x1b8   : > { %3978 = vmatpush3.bf16.msra.mxu1 %v565_v2  ;;  %v647_v5 = vpop.permute.xlu1 %646  ;;  %v645_v6 = vpop.permute.xlu0 %644  ;;  %v4650_v2 = vld [vmem:[#allocation5 + $0x98] ss:$72 sps:$4 sm:$0xff]  }
 0x1b9   : > { %v670_v7 = vsel %vm656_vm3, %v645_v6, %v647_v5  ;;  %v4651_v5 = vld [vmem:[#allocation5 + $0xa4] ss:$72 sps:$4 sm:$0xff]  }
 0x1ba   : > { %711 = vrot.lane.b32.xlu1 %v5423_v38, %s5088_s8  ;;  %709 = vrot.lane.b32.xlu0 %v5419_v37, %s5088_s8 }
 0x1bb   : > { %4041 = vmatprep.subr.bf16.mxu0 %v670_v7  ;;  %v4654_v7 = vld [vmem:[#allocation5 + $0x12c] ss:$72 sps:$4 sm:$0xff]  }
 0x1bc   : > { %v615_v8 = vpop.permute.xlu1 %614  ;;  %v613_v9 = vpop.permute.xlu0 %612 }
 0x1bd   : > { %v662_v10 = vsel %vm656_vm3, %v613_v9, %v615_v8 }
 0x1be   : > { %840 = vrot.lane.b32.xlu1 %v5633_v0, %s5089_s26  ;;  %838 = vrot.lane.b32.xlu0 %v5629_v63, %s5089_s26 }
 0x1bf   : > { %4042 = vmatpush3.bf16.msra.mxu0 %v662_v10 }
 0x1c0   : > { %v554_v43 = vpop.permute.xlu1 %553  ;;  %v552_v46 = vpop.permute.xlu0 %551 }
 0x1c1   : > { %v574_v11 = vsel %vm559_vm2, %v552_v46, %v554_v43  ;;  %v4653_v43 = vld [vmem:[#allocation5 + $0xa0] ss:$72 sps:$4 sm:$0xff]  }
 0x1c2   : > { %808 = vrot.lane.b32.xlu1 %v5423_v38, %s5089_s26  ;;  %806 = vrot.lane.b32.xlu0 %v5419_v37, %s5089_s26 }
 0x1c3   : > { %3979 = vmatprep.subr.bf16.mxu1 %v574_v11 }
 0x1c4   : > { %3980 = vmatpush3.bf16.msra.mxu1 %v566_v12  ;;  %v651_v13 = vpop.permute.xlu1 %650  ;;  %v649_v14 = vpop.permute.xlu0 %648  ;;  %v4656_v12 = vld [vmem:[#allocation5 + $0x128] ss:$72 sps:$4 sm:$0xff]  }
 0x1c5   : > { %v671_v19 = vsel %vm656_vm3, %v649_v14, %v651_v13  ;;  %v4657_v13 = vld [vmem:[#allocation5 + $0x134] ss:$72 sps:$4 sm:$0xff]  }
 0x1c6   : > { %747 = vrot.lane.b32.xlu1 %v5653_v4, %s5088_s8  ;;  %745 = vrot.lane.b32.xlu0 %v5649_v3, %s5088_s8 }
 0x1c7   : > { %4043 = vmatprep.subr.bf16.mxu0 %v671_v19  ;;  %v4660_v19 = vld [vmem:[#allocation5 + $0x1bc] ss:$72 sps:$4 sm:$0xff]  }
 0x1c8   : > { %v619_v20 = vpop.permute.xlu1 %618  ;;  %v617_v23 = vpop.permute.xlu0 %616 }
 0x1c9   : > { %v663_v26 = vsel %vm656_vm3, %v617_v23, %v619_v20 }
 0x1ca   : > { %715 = vrot.lane.b32.xlu1 %v5443_v42, %s5088_s8  ;;  %713 = vrot.lane.b32.xlu0 %v5439_v41, %s5088_s8 }
 0x1cb   : > { %4044 = vmatpush3.bf16.msra.mxu0 %v663_v26 }
 0x1cc   : > { %v558_v49 = vpop.permute.xlu1 %557  ;;  %v556_v52 = vpop.permute.xlu0 %555 }
 0x1cd   : > { %v575_v27 = vsel %vm559_vm2, %v556_v52, %v558_v49  ;;  %v4659_v49 = vld [vmem:[#allocation5 + $0x130] ss:$72 sps:$4 sm:$0xff]  }
 0x1ce   : > { %844 = vrot.lane.b32.xlu1 %v5653_v4, %s5089_s26  ;;  %842 = vrot.lane.b32.xlu0 %v5649_v3, %s5089_s26 }
 0x1cf   : > { %3981 = vmatprep.subr.bf16.mxu1 %v575_v27 }
 0x1d0   : > { %3982 = vmatpush3.bf16.msra.mxu1 %v567_v30  ;;  %v655_v36 = vpop.permute.xlu1 %654  ;;  %v653_v32 = vpop.permute.xlu0 %652  ;;  %v4662_v30 = vld [vmem:[#allocation5 + $0x1b8] ss:$72 sps:$4 sm:$0xff]  }
 0x1d1   : > { %v672_v59 = vsel %vm656_vm3, %v653_v32, %v655_v36  ;;  %v4666_v32 = vld [vmem:[#allocation5 + $0x24c] ss:$72 sps:$4 sm:$0xff]  }
 0x1d2   : > { %812 = vrot.lane.b32.xlu1 %v5443_v42, %s5089_s26  ;;  %810 = vrot.lane.b32.xlu0 %v5439_v41, %s5089_s26 }
 0x1d3   : > { %4045 = vmatprep.subr.bf16.mxu0 %v672_v59  ;;  %2265 = vmatmul.mubr.bf16.vlgmr.msra.gmra.mrb[16].mxu1 %v4641_v31  ;;  %v4663_v31 = vld [vmem:[#allocation5 + $0x1c4] ss:$72 sps:$4 sm:$0xff]  }
 0x1d4   : > { %v623_v60 = vpop.permute.xlu1 %622  ;;  %v621_v39 = vpop.permute.xlu0 %620  ;;  %2272 = vmatprep.mubr.bf16.mxu1 %v4648_v35 }
 0x1d5   : > { %v664_v55 = vsel %vm656_vm3, %v621_v39, %v623_v60  ;;  %v4665_v39 = vld [vmem:[#allocation5 + $0x1c0] ss:$72 sps:$4 sm:$0xff]  }
 0x1d6   : > { %751 = vrot.lane.b32.xlu1 %v5673_v16, %s5088_s8  ;;  %749 = vrot.lane.b32.xlu0 %v5669_v15, %s5088_s8 }
 0x1d7   : > { %4046 = vmatpush3.bf16.msra.mxu0 %v664_v55 }
 0x1d8   : > { %v724_v40 = vpop.permute.xlu1 %723  ;;  %v722_v1 = vpop.permute.xlu0 %721 }
 0x1d9   : > { %v762_v6 = vsel %vm753_vm4, %v722_v1, %v724_v40  ;;  %v4668_v40 = vld [vmem:[#allocation5 + $0x248] ss:$72 sps:$4 sm:$0xff]   ;;  %v4669_v1 = vld [vmem:[#allocation5 + $0x254] ss:$72 sps:$4 sm:$0xff]  }
 0x1da   : > { %719 = vrot.lane.b32.xlu1 %v5463_v45, %s5088_s8  ;;  %717 = vrot.lane.b32.xlu0 %v5459_v44, %s5088_s8  ;;  %s4992_s8 = sshll.u32 %s5096_s15, 4  ;;  %s4993_s8 = int_to_ptr.vmem [resolvable:$false] %s4992_s8 }
 0x1db   : > { %4095 = vmatprep.subr.bf16.mxu1 %v762_v6  ;;  %2362 = vmatmul.mubr.bf16.vlgmr.msra.gmra.mrb[16].mxu0 %v4645_v56  ;;  %p4995_p3 = scmp.lt.s32.totalorder %s6735_s11, %s4993_s8 }
 0x1dc   : > { %v692_v8 = vpop.permute.xlu1 %691  ;;  %v690_v9 = vpop.permute.xlu0 %689  ;;  %2273 = vmatmul.mubr.bf16.gmra.mrb[20].mxu1 %v4650_v2  ;;  %2369 = vmatprep.mubr.bf16.mxu0 %v4651_v5  ;;  %v4672_v5 = vld [vmem:[#allocation5 + $0x2dc] ss:$72 sps:$4 sm:$0xff]  }
 0x1dd   : > { %v754_v10 = vsel %vm753_vm4, %v690_v9, %v692_v8  ;;  %2280 = vmatprep.mubr.bf16.mxu1 %v4654_v7  ;;  %v4671_v9 = vld [vmem:[#allocation5 + $0x250] ss:$72 sps:$4 sm:$0xff]  }
 0x1de   : > { %848 = vrot.lane.b32.xlu1 %v5673_v16, %s5089_s26  ;;  %846 = vrot.lane.b32.xlu0 %v5669_v15, %s5089_s26 }
 0x1df   : > { %4096 = vmatpush3.bf16.msra.mxu1 %v754_v10 }
 0x1e0   : > { %v821_v46 = vpop.permute.xlu1 %820  ;;  %v819_v11 = vpop.permute.xlu0 %818 }
 0x1e1   : > { %v859_v14 = vsel %vm850_vm5, %v819_v11, %v821_v46  ;;  %v4674_v46 = vld [vmem:[#allocation5 + $0x2d8] ss:$72 sps:$4 sm:$0xff]   ;;  %v4675_v11 = vld [vmem:[#allocation5 + $0x2e4] ss:$72 sps:$4 sm:$0xff]  }
 0x1e2   : > { %816 = vrot.lane.b32.xlu1 %v5463_v45, %s5089_s26  ;;  %814 = vrot.lane.b32.xlu0 %v5459_v44, %s5089_s26  ;;  %s4994_s26 = scalar_lea.vmem %s4993_s8, 1024 }
 0x1e3   : > { %4159 = vmatprep.subr.bf16.mxu0 %v859_v14  ;;  %2370 = vmatmul.mubr.bf16.gmra.mrb[20].mxu0 %v4653_v43  ;;  %p4996_p5 = scmp.lt.s32.totalorder %s4994_s26, %s4988_s22 }
 0x1e4   : > { %v789_v20 = vpop.permute.xlu1 %788  ;;  %v787_v23 = vpop.permute.xlu0 %786  ;;  %2281 = vmatmul.mubr.bf16.gmra.mrb[24].mxu1 %v4656_v12  ;;  %2377 = vmatprep.mubr.bf16.mxu0 %v4657_v13  ;;  %v4678_v13 = vld [vmem:[#allocation5 + $0x36c] ss:$72 sps:$4 sm:$0xff]  }
 0x1e5   : > { %v851_v26 = vsel %vm850_vm5, %v787_v23, %v789_v20  ;;  %2288 = vmatprep.mubr.bf16.mxu1 %v4660_v19  ;;  %v4677_v23 = vld [vmem:[#allocation5 + $0x2e0] ss:$72 sps:$4 sm:$0xff]   ;;  %p4997_p9 = por %p4996_p5, %p4995_p3 }
 0x1e6   : > { %917 = vrot.lane.b32.xlu1 %v5483_v48, %s5090_s9  ;;  %915 = vrot.lane.b32.xlu0 %v5480_v47, %s5090_s9 }
 0x1e7   : > { %4160 = vmatpush3.bf16.msra.mxu0 %v851_v26  ;;  %p4998_p11 = pnand %p4997_p9, %p4991_p10 }
 0x1e8   : > { %v728_v52 = vpop.permute.xlu1 %727  ;;  %v726_v27 = vpop.permute.xlu0 %725 }
 0x1e9   : > { %v763_v36 = vsel %vm753_vm4, %v726_v27, %v728_v52  ;;  %v4680_v52 = vld [vmem:[#allocation5 + $0x368] ss:$72 sps:$4 sm:$0xff]   ;;  %v4681_v27 = vld [vmem:[#allocation5 + $0x374] ss:$72 sps:$4 sm:$0xff]  }
 0x1ea   : > { %885 = vrot.lane.b32.xlu1 %v5356_v18, %s5090_s9  ;;  %883 = vrot.lane.b32.xlu0 %v5353_v17, %s5090_s9 }
 0x1eb   : > { %4097 = vmatprep.subr.bf16.mxu1 %v763_v36  ;;  %2378 = vmatmul.mubr.bf16.gmra.mrb[24].mxu0 %v4659_v49 }
 0x1ec   : > { %v696_v35 = vpop.permute.xlu1 %695  ;;  %v694_v59 = vpop.permute.xlu0 %693  ;;  %2289 = vmatmul.mubr.bf16.gmra.mrb[28].mxu1 %v4662_v30  ;;  %2385 = vmatprep.mubr.bf16.mxu0 %v4663_v31  ;;  %v4684_v31 = vld [vmem:[#allocation5 + $0x3fc] ss:$72 sps:$4 sm:$0xff]  }
 0x1ed   : > { %v755_v60 = vsel %vm753_vm4, %v694_v59, %v696_v35  ;;  %2296 = vmatprep.mubr.bf16.mxu1 %v4666_v32  ;;  %v4683_v59 = vld [vmem:[#allocation5 + $0x370] ss:$72 sps:$4 sm:$0xff]  }
 0x1ee   : > { %1014 = vrot.lane.b32.xlu1 %v5483_v48, %s5091_s10  ;;  %1012 = vrot.lane.b32.xlu0 %v5480_v47, %s5091_s10 }
 0x1ef   : > { %4098 = vmatpush3.bf16.msra.mxu1 %v755_v60 }
 0x1f0   : > { %v825_v55 = vpop.permute.xlu1 %824  ;;  %v823_v56 = vpop.permute.xlu0 %822 }
 0x1f1   : > { %v860_v2 = vsel %vm850_vm5, %v823_v56, %v825_v55  ;;  %v4686_v55 = vld [vmem:[#allocation5 + $0x3f8] ss:$72 sps:$4 sm:$0xff]   ;;  %v4687_v56 = vld [vmem:[#allocation5 + $0x404] ss:$72 sps:$4 sm:$0xff]  }
 0x1f2   : > { %982 = vrot.lane.b32.xlu1 %v5356_v18, %s5091_s10  ;;  %980 = vrot.lane.b32.xlu0 %v5353_v17, %s5091_s10 }
 0x1f3   : > { %4161 = vmatprep.subr.bf16.mxu0 %v860_v2  ;;  %2386 = vmatmul.mubr.bf16.gmra.mrb[28].mxu0 %v4665_v39 }
 0x1f4   : > { %v793_v6 = vpop.permute.xlu1 %792  ;;  %v791_v7 = vpop.permute.xlu0 %790  ;;  %2297 = vmatmul.mubr.bf16.gmra.mrb[32].mxu1 %v4668_v40  ;;  %2393 = vmatprep.mubr.bf16.mxu0 %v4669_v1  ;;  %v4692_v1 = vld [vmem:[#allocation5 + $0x1c] ss:$72 sps:$4 sm:$0xff]  }
 0x1f5   : > { %v852_v8 = vsel %vm850_vm5, %v791_v7, %v793_v6  ;;  %2304 = vmatprep.mubr.bf16.mxu1 %v4672_v5  ;;  %v4689_v7 = vld [vmem:[#allocation5 + $0x400] ss:$72 sps:$4 sm:$0xff]  }
 0x1f6   : > { %921 = vrot.lane.b32.xlu1 %v5505_v51, %s5090_s9  ;;  %919 = vrot.lane.b32.xlu0 %v5502_v50, %s5090_s9 }
 0x1f7   : > { %4162 = vmatpush3.bf16.msra.mxu0 %v852_v8 }
 0x1f8   : > { %v732_v10 = vpop.permute.xlu1 %731  ;;  %v730_v43 = vpop.permute.xlu0 %729 }
 0x1f9   : > { %v764_v12 = vsel %vm753_vm4, %v730_v43, %v732_v10  ;;  %v4695_v10 = vld [vmem:[#allocation5 + $0x24] ss:$72 sps:$4 sm:$0xff]  }
 0x1fa   : > { %889 = vrot.lane.b32.xlu1 %v5366_v22, %s5090_s9  ;;  %887 = vrot.lane.b32.xlu0 %v5363_v21, %s5090_s9 }
 0x1fb   : > { %4099 = vmatprep.subr.bf16.mxu1 %v764_v12  ;;  %2394 = vmatmul.mubr.bf16.gmra.mrb[32].mxu0 %v4671_v9 }
 0x1fc   : > { %v700_v14 = vpop.permute.xlu1 %699  ;;  %v698_v19 = vpop.permute.xlu0 %697  ;;  %2305 = vmatmul.mubr.bf16.gmra.mrb[36].mxu1 %v4674_v46  ;;  %2401 = vmatprep.mubr.bf16.mxu0 %v4675_v11 }
 0x1fd   : > { %v756_v20 = vsel %vm753_vm4, %v698_v19, %v700_v14  ;;  %2312 = vmatprep.mubr.bf16.mxu1 %v4678_v13 }
 0x1fe   : > { %1018 = vrot.lane.b32.xlu1 %v5505_v51, %s5091_s10  ;;  %1016 = vrot.lane.b32.xlu0 %v5502_v50, %s5091_s10 }
 0x1ff   : > { %4100 = vmatpush3.bf16.msra.mxu1 %v756_v20 }
 0x200   : > { %v829_v26 = vpop.permute.xlu1 %828  ;;  %v827_v49 = vpop.permute.xlu0 %826 }
 0x201   : > { %v861_v30 = vsel %vm850_vm5, %v827_v49, %v829_v26 }
 0x202   : > { %986 = vrot.lane.b32.xlu1 %v5366_v22, %s5091_s10  ;;  %984 = vrot.lane.b32.xlu0 %v5363_v21, %s5091_s10 }
 0x203   : > { %4163 = vmatprep.subr.bf16.mxu0 %v861_v30  ;;  %2402 = vmatmul.mubr.bf16.gmra.mrb[36].mxu0 %v4677_v23 }
 0x204   : > { %v797_v36 = vpop.permute.xlu1 %796  ;;  %v795_v32 = vpop.permute.xlu0 %794  ;;  %2313 = vmatmul.mubr.bf16.gmra.mrb[40].mxu1 %v4680_v52  ;;  %2409 = vmatprep.mubr.bf16.mxu0 %v4681_v27 }
 0x205   : > { %v853_v35 = vsel %vm850_vm5, %v795_v32, %v797_v36  ;;  %2320 = vmatprep.mubr.bf16.mxu1 %v4684_v31 }
 0x206   : > { %925 = vrot.lane.b32.xlu1 %v5527_v54, %s5090_s9  ;;  %923 = vrot.lane.b32.xlu0 %v5524_v53, %s5090_s9 }
 0x207   : > { %4164 = vmatpush3.bf16.msra.mxu0 %v853_v35 }
 0x208   : > { %v736_v60 = vpop.permute.xlu1 %735  ;;  %v734_v39 = vpop.permute.xlu0 %733 }
 0x209   : > { %v765_v40 = vsel %vm753_vm4, %v734_v39, %v736_v60 }
 0x20a   : > { %893 = vrot.lane.b32.xlu1 %v5376_v25, %s5090_s9  ;;  %891 = vrot.lane.b32.xlu0 %v5373_v24, %s5090_s9 }
 0x20b   : > { %4101 = vmatprep.subr.bf16.mxu1 %v765_v40  ;;  %2410 = vmatmul.mubr.bf16.gmra.mrb[40].mxu0 %v4683_v59 }
 0x20c   : > { %v704_v2 = vpop.permute.xlu1 %703  ;;  %v702_v5 = vpop.permute.xlu0 %701  ;;  %2321 = vmatmul.mubr.bf16.gmra.mrb[44].mxu1 %v4686_v55  ;;  %2417 = vmatprep.mubr.bf16.mxu0 %v4687_v56 }
 0x20d   : > { %v757_v6 = vsel %vm753_vm4, %v702_v5, %v704_v2  ;;  %2458 = vmatprep.mubr.bf16.mxu1 %v4692_v1 }
 0x20e   : > { %1022 = vrot.lane.b32.xlu1 %v5527_v54, %s5091_s10  ;;  %1020 = vrot.lane.b32.xlu0 %v5524_v53, %s5091_s10 }
 0x20f   : > { %4102 = vmatpush3.bf16.msra.mxu1 %v757_v6 }
 0x210   : > { %v833_v8 = vpop.permute.xlu1 %832  ;;  %v831_v9 = vpop.permute.xlu0 %830 }
 0x211   : > { %v862_v43 = vsel %vm850_vm5, %v831_v9, %v833_v8 }
 0x212   : > { %990 = vrot.lane.b32.xlu1 %v5376_v25, %s5091_s10  ;;  %988 = vrot.lane.b32.xlu0 %v5373_v24, %s5091_s10 }
 0x213   : > { %4165 = vmatprep.subr.bf16.mxu0 %v862_v43  ;;  %2418 = vmatmul.mubr.bf16.gmra.mrb[44].mxu0 %v4689_v7 }
 0x214   : > { %v801_v46 = vpop.permute.xlu1 %800  ;;  %v799_v11 = vpop.permute.xlu0 %798  ;;  %2555 = vmatprep.mubr.bf16.mxu0 %v4695_v10 }
 0x215   : > { %v854_v12 = vsel %vm850_vm5, %v799_v11, %v801_v46 }
 0x216   : > { %929 = vrot.lane.b32.xlu1 %v5551_v58, %s5090_s9  ;;  %927 = vrot.lane.b32.xlu0 %v5548_v57, %s5090_s9 }
 0x217   : > { %4166 = vmatpush3.bf16.msra.mxu0 %v854_v12 }
 0x218   : > { %v740_v13 = vpop.permute.xlu1 %739  ;;  %v738_v14 = vpop.permute.xlu0 %737 }
 0x219   : > { %v766_v19 = vsel %vm753_vm4, %v738_v14, %v740_v13 }
 0x21a   : > { %897 = vrot.lane.b32.xlu1 %v5388_v29, %s5090_s9  ;;  %895 = vrot.lane.b32.xlu0 %v5385_v28, %s5090_s9 }
 0x21b   : > { %4103 = vmatprep.subr.bf16.mxu1 %v766_v19 }
 0x21c   : > { %v708_v20 = vpop.permute.xlu1 %707  ;;  %v706_v23 = vpop.permute.xlu0 %705 }
 0x21d   : > { %v758_v26 = vsel %vm753_vm4, %v706_v23, %v708_v20 }
 0x21e   : > { %1026 = vrot.lane.b32.xlu1 %v5551_v58, %s5091_s10  ;;  %1024 = vrot.lane.b32.xlu0 %v5548_v57, %s5091_s10 }
 0x21f   : > { %4104 = vmatpush3.bf16.msra.mxu1 %v758_v26 }
 0x220   : > { %v837_v49 = vpop.permute.xlu1 %836  ;;  %v835_v52 = vpop.permute.xlu0 %834 }
 0x221   : > { %v863_v27 = vsel %vm850_vm5, %v835_v52, %v837_v49 }
 0x222   : > { %994 = vrot.lane.b32.xlu1 %v5388_v29, %s5091_s10  ;;  %992 = vrot.lane.b32.xlu0 %v5385_v28, %s5091_s10 }
 0x223   : > { %4167 = vmatprep.subr.bf16.mxu0 %v863_v27 }
 0x224   : > { %v805_v30 = vpop.permute.xlu1 %804  ;;  %v803_v31 = vpop.permute.xlu0 %802 }
 0x225   : > { %v855_v36 = vsel %vm850_vm5, %v803_v31, %v805_v30  ;;  %v4690_v31 = vld [vmem:[#allocation5 + $0x18] ss:$72 sps:$4 sm:$0xff]  }
 0x226   : > { %933 = vrot.lane.b32.xlu1 %v5613_v62, %s5090_s9  ;;  %931 = vrot.lane.b32.xlu0 %v5609_v61, %s5090_s9 }
 0x227   : > { %4168 = vmatpush3.bf16.msra.mxu0 %v855_v36 }
 0x228   : > { %v744_v32 = vpop.permute.xlu1 %743  ;;  %v742_v35 = vpop.permute.xlu0 %741 }
 0x229   : > { %v767_v59 = vsel %vm753_vm4, %v742_v35, %v744_v32  ;;  %v4696_v35 = vld [vmem:[#allocation5 + $0xac] ss:$72 sps:$4 sm:$0xff]  }
 0x22a   : > { %901 = vrot.lane.b32.xlu1 %v5407_v34, %s5090_s9  ;;  %899 = vrot.lane.b32.xlu0 %v5404_v33, %s5090_s9 }
 0x22b   : > { %4105 = vmatprep.subr.bf16.mxu1 %v767_v59 }
 0x22c   : > { %v712_v60 = vpop.permute.xlu1 %711  ;;  %v710_v39 = vpop.permute.xlu0 %709 }
 0x22d   : > { %v759_v55 = vsel %vm753_vm4, %v710_v39, %v712_v60 }
 0x22e   : > { %1030 = vrot.lane.b32.xlu1 %v5613_v62, %s5091_s10  ;;  %1028 = vrot.lane.b32.xlu0 %v5609_v61, %s5091_s10 }
 0x22f   : > { %4106 = vmatpush3.bf16.msra.mxu1 %v759_v55 }
 0x230   : > { %v841_v56 = vpop.permute.xlu1 %840  ;;  %v839_v40 = vpop.permute.xlu0 %838 }
 0x231   : > { %v864_v1 = vsel %vm850_vm5, %v839_v40, %v841_v56  ;;  %v4693_v56 = vld [vmem:[#allocation5 + $0x20] ss:$72 sps:$4 sm:$0xff]  }
 0x232   : > { %998 = vrot.lane.b32.xlu1 %v5407_v34, %s5091_s10  ;;  %996 = vrot.lane.b32.xlu0 %v5404_v33, %s5091_s10 }
 0x233   : > { %4169 = vmatprep.subr.bf16.mxu0 %v864_v1 }
 0x234   : > { %v809_v2 = vpop.permute.xlu1 %808  ;;  %v807_v5 = vpop.permute.xlu0 %806 }
 0x235   : > { %v856_v6 = vsel %vm850_vm5, %v807_v5, %v809_v2  ;;  %v4698_v2 = vld [vmem:[#allocation5 + $0xa8] ss:$72 sps:$4 sm:$0xff]   ;;  %v4699_v5 = vld [vmem:[#allocation5 + $0xb4] ss:$72 sps:$4 sm:$0xff]  }
 0x236   : > { %937 = vrot.lane.b32.xlu1 %v5633_v0, %s5090_s9  ;;  %935 = vrot.lane.b32.xlu0 %v5629_v63, %s5090_s9 }
 0x237   : > { %4170 = vmatpush3.bf16.msra.mxu0 %v856_v6 }
 0x238   : > { %v748_v7 = vpop.permute.xlu1 %747  ;;  %v746_v8 = vpop.permute.xlu0 %745 }
 0x239   : > { %v768_v9 = vsel %vm753_vm4, %v746_v8, %v748_v7  ;;  %v4702_v7 = vld [vmem:[#allocation5 + $0x13c] ss:$72 sps:$4 sm:$0xff]  }
 0x23a   : > { %905 = vrot.lane.b32.xlu1 %v5423_v38, %s5090_s9  ;;  %903 = vrot.lane.b32.xlu0 %v5419_v37, %s5090_s9 }
 0x23b   : > { %4107 = vmatprep.subr.bf16.mxu1 %v768_v9 }
 0x23c   : > { %v716_v10 = vpop.permute.xlu1 %715  ;;  %v714_v43 = vpop.permute.xlu0 %713 }
 0x23d   : > { %v760_v46 = vsel %vm753_vm4, %v714_v43, %v716_v10  ;;  %v4701_v43 = vld [vmem:[#allocation5 + $0xb0] ss:$72 sps:$4 sm:$0xff]  }
 0x23e   : > { %1034 = vrot.lane.b32.xlu1 %v5633_v0, %s5091_s10  ;;  %1032 = vrot.lane.b32.xlu0 %v5629_v63, %s5091_s10 }
 0x23f   : > { %4108 = vmatpush3.bf16.msra.mxu1 %v760_v46 }
 0x240   : > { %v845_v11 = vpop.permute.xlu1 %844  ;;  %v843_v12 = vpop.permute.xlu0 %842 }
 0x241   : > { %v865_v13 = vsel %vm850_vm5, %v843_v12, %v845_v11  ;;  %v4704_v12 = vld [vmem:[#allocation5 + $0x138] ss:$72 sps:$4 sm:$0xff]  }
 0x242   : > { %1002 = vrot.lane.b32.xlu1 %v5423_v38, %s5091_s10  ;;  %1000 = vrot.lane.b32.xlu0 %v5419_v37, %s5091_s10 }
 0x243   : > { %4171 = vmatprep.subr.bf16.mxu0 %v865_v13  ;;  %v4705_v13 = vld [vmem:[#allocation5 + $0x144] ss:$72 sps:$4 sm:$0xff]  }
 0x244   : > { %v813_v14 = vpop.permute.xlu1 %812  ;;  %v811_v19 = vpop.permute.xlu0 %810 }
 0x245   : > { %v857_v20 = vsel %vm850_vm5, %v811_v19, %v813_v14  ;;  %v4708_v19 = vld [vmem:[#allocation5 + $0x1cc] ss:$72 sps:$4 sm:$0xff]  }
 0x246   : > { %941 = vrot.lane.b32.xlu1 %v5653_v4, %s5090_s9  ;;  %939 = vrot.lane.b32.xlu0 %v5649_v3, %s5090_s9 }
 0x247   : > { %4172 = vmatpush3.bf16.msra.mxu0 %v857_v20 }
 0x248   : > { %v752_v23 = vpop.permute.xlu1 %751  ;;  %v750_v26 = vpop.permute.xlu0 %749 }
 0x249   : > { %v769_v49 = vsel %vm753_vm4, %v750_v26, %v752_v23 }
 0x24a   : > { %909 = vrot.lane.b32.xlu1 %v5443_v42, %s5090_s9  ;;  %907 = vrot.lane.b32.xlu0 %v5439_v41, %s5090_s9 }
 0x24b   : > { %4109 = vmatprep.subr.bf16.mxu1 %v769_v49  ;;  %v4707_v49 = vld [vmem:[#allocation5 + $0x140] ss:$72 sps:$4 sm:$0xff]  }
 0x24c   : > { %v720_v52 = vpop.permute.xlu1 %719  ;;  %v718_v27 = vpop.permute.xlu0 %717 }
 0x24d   : > { %v761_v30 = vsel %vm753_vm4, %v718_v27, %v720_v52 }
 0x24e   : > { %1038 = vrot.lane.b32.xlu1 %v5653_v4, %s5091_s10  ;;  %1036 = vrot.lane.b32.xlu0 %v5649_v3, %s5091_s10 }
 0x24f   : > { %4110 = vmatpush3.bf16.msra.mxu1 %v761_v30  ;;  %v4710_v30 = vld [vmem:[#allocation5 + $0x1c8] ss:$72 sps:$4 sm:$0xff]  }
 0x250   : > { %v849_v36 = vpop.permute.xlu1 %848  ;;  %v847_v32 = vpop.permute.xlu0 %846 }
 0x251   : > { %v866_v59 = vsel %vm850_vm5, %v847_v32, %v849_v36  ;;  %v4714_v32 = vld [vmem:[#allocation5 + $0x25c] ss:$72 sps:$4 sm:$0xff]  }
 0x252   : > { %1006 = vrot.lane.b32.xlu1 %v5443_v42, %s5091_s10  ;;  %1004 = vrot.lane.b32.xlu0 %v5439_v41, %s5091_s10 }
 0x253   : > { %4173 = vmatprep.subr.bf16.mxu0 %v866_v59  ;;  %2459 = vmatmul.mubr.bf16.vlgmr.msra.gmra.mrb[48].mxu1 %v4690_v31  ;;  %v4711_v31 = vld [vmem:[#allocation5 + $0x1d4] ss:$72 sps:$4 sm:$0xff]  }
 0x254   : > { %v817_v60 = vpop.permute.xlu1 %816  ;;  %v815_v39 = vpop.permute.xlu0 %814  ;;  %2466 = vmatprep.mubr.bf16.mxu1 %v4696_v35 }
 0x255   : > { %v858_v55 = vsel %vm850_vm5, %v815_v39, %v817_v60  ;;  %v4713_v39 = vld [vmem:[#allocation5 + $0x1d0] ss:$72 sps:$4 sm:$0xff]  }
 0x256   : > { %945 = vrot.lane.b32.xlu1 %v5673_v16, %s5090_s9  ;;  %943 = vrot.lane.b32.xlu0 %v5669_v15, %s5090_s9 }
 0x257   : > { %4174 = vmatpush3.bf16.msra.mxu0 %v858_v55 }
 0x258   : > { %v918_v40 = vpop.permute.xlu1 %917  ;;  %v916_v1 = vpop.permute.xlu0 %915 }
 0x259   : > { %v956_v6 = vsel %vm947_vm6, %v916_v1, %v918_v40  ;;  %v4716_v40 = vld [vmem:[#allocation5 + $0x258] ss:$72 sps:$4 sm:$0xff]   ;;  %v4717_v1 = vld [vmem:[#allocation5 + $0x264] ss:$72 sps:$4 sm:$0xff]  }
 0x25a   : > { %913 = vrot.lane.b32.xlu1 %v5463_v45, %s5090_s9  ;;  %911 = vrot.lane.b32.xlu0 %v5459_v44, %s5090_s9 }
 0x25b   : > { %4223 = vmatprep.subr.bf16.mxu1 %v956_v6  ;;  %2556 = vmatmul.mubr.bf16.vlgmr.msra.gmra.mrb[48].mxu0 %v4693_v56 }
 0x25c   : > { %v886_v8 = vpop.permute.xlu1 %885  ;;  %v884_v9 = vpop.permute.xlu0 %883  ;;  %2467 = vmatmul.mubr.bf16.gmra.mrb[52].mxu1 %v4698_v2  ;;  %2563 = vmatprep.mubr.bf16.mxu0 %v4699_v5  ;;  %v4720_v5 = vld [vmem:[#allocation5 + $0x2ec] ss:$72 sps:$4 sm:$0xff]  }
 0x25d   : > { %v948_v10 = vsel %vm947_vm6, %v884_v9, %v886_v8  ;;  %2474 = vmatprep.mubr.bf16.mxu1 %v4702_v7  ;;  %v4723_v9 = vld [vmem:[#allocation5 + $0x2f4] ss:$72 sps:$4 sm:$0xff]  }
 0x25e   : > { %1042 = vrot.lane.b32.xlu1 %v5673_v16, %s5091_s10  ;;  %1040 = vrot.lane.b32.xlu0 %v5669_v15, %s5091_s10 }
 0x25f   : > { %4224 = vmatpush3.bf16.msra.mxu1 %v948_v10 }
 0x260   : > { %v1015_v46 = vpop.permute.xlu1 %1014  ;;  %v1013_v11 = vpop.permute.xlu0 %1012 }
 0x261   : > { %v1053_v14 = vsel %vm1044_vm7, %v1013_v11, %v1015_v46 }
 0x262   : > { %1010 = vrot.lane.b32.xlu1 %v5463_v45, %s5091_s10  ;;  %1008 = vrot.lane.b32.xlu0 %v5459_v44, %s5091_s10 }
 0x263   : > { %4287 = vmatprep.subr.bf16.mxu0 %v1053_v14  ;;  %2564 = vmatmul.mubr.bf16.gmra.mrb[52].mxu0 %v4701_v43  ;;  %v4726_v43 = vld [vmem:[#allocation5 + $0x37c] ss:$72 sps:$4 sm:$0xff]  }
 0x264   : > { %v983_v20 = vpop.permute.xlu1 %982  ;;  %v981_v23 = vpop.permute.xlu0 %980  ;;  %2475 = vmatmul.mubr.bf16.gmra.mrb[56].mxu1 %v4704_v12  ;;  %2571 = vmatprep.mubr.bf16.mxu0 %v4705_v13  ;;  %v4725_v13 = vld [vmem:[#allocation5 + $0x2f0] ss:$72 sps:$4 sm:$0xff]  }
 0x265   : > { %v1045_v26 = vsel %vm1044_vm7, %v981_v23, %v983_v20  ;;  %2482 = vmatprep.mubr.bf16.mxu1 %v4708_v19  ;;  %v4728_v20 = vld [vmem:[#allocation5 + $0x378] ss:$72 sps:$4 sm:$0xff]   ;;  %v4729_v23 = vld [vmem:[#allocation5 + $0x384] ss:$72 sps:$4 sm:$0xff]  }
 0x266   : > { %1111 = vrot.lane.b32.xlu1 %v5483_v48, %s5092_s30  ;;  %1109 = vrot.lane.b32.xlu0 %v5480_v47, %s5092_s30 }
 0x267   : > { %4288 = vmatpush3.bf16.msra.mxu0 %v1045_v26 }
 0x268   : > { %v922_v52 = vpop.permute.xlu1 %921  ;;  %v920_v27 = vpop.permute.xlu0 %919 }
 0x269   : > { %v957_v36 = vsel %vm947_vm6, %v920_v27, %v922_v52 }
 0x26a   : > { %1079 = vrot.lane.b32.xlu1 %v5356_v18, %s5092_s30  ;;  %1077 = vrot.lane.b32.xlu0 %v5353_v17, %s5092_s30 }
 0x26b   : > { %4225 = vmatprep.subr.bf16.mxu1 %v957_v36  ;;  %2572 = vmatmul.mubr.bf16.gmra.mrb[56].mxu0 %v4707_v49  ;;  %v4732_v49 = vld [vmem:[#allocation5 + $0x40c] ss:$72 sps:$4 sm:$0xff]  }
 0x26c   : > { %v890_v35 = vpop.permute.xlu1 %889  ;;  %v888_v59 = vpop.permute.xlu0 %887  ;;  %2483 = vmatmul.mubr.bf16.gmra.mrb[60].mxu1 %v4710_v30  ;;  %2579 = vmatprep.mubr.bf16.mxu0 %v4711_v31  ;;  %v4735_v31 = vld [vmem:[#allocation5 + $0x414] ss:$72 sps:$4 sm:$0xff]  }
 0x26d   : > { %v949_v60 = vsel %vm947_vm6, %v888_v59, %v890_v35  ;;  %2490 = vmatprep.mubr.bf16.mxu1 %v4714_v32  ;;  %v4740_v32 = vld [vmem:[#allocation5 + $0x2c] ss:$72 sps:$4 sm:$0xff]  }
 0x26e   : > { %1208 = vrot.lane.b32.xlu1 %v5483_v48, %s5093_s6  ;;  %1206 = vrot.lane.b32.xlu0 %v5480_v47, %s5093_s6 }
 0x26f   : > { %4226 = vmatpush3.bf16.msra.mxu1 %v949_v60 }
 0x270   : > { %v1019_v55 = vpop.permute.xlu1 %1018  ;;  %v1017_v56 = vpop.permute.xlu0 %1016 }
 0x271   : > { %v1054_v2 = vsel %vm1044_vm7, %v1017_v56, %v1019_v55  ;;  %v3919_v56 = vpop.f32.mrb[0].mxu0 }
 0x272   : > { %1176 = vrot.lane.b32.xlu1 %v5356_v18, %s5093_s6  ;;  %1174 = vrot.lane.b32.xlu0 %v5353_v17, %s5093_s6  ;;  %v4719_v18 = vld [vmem:[#allocation5 + $0x260] ss:$72 sps:$4 sm:$0xff]  }
 0x273   : > { %4289 = vmatprep.subr.bf16.mxu0 %v1054_v2  ;;  %2580 = vmatmul.mubr.bf16.gmra.mrb[60].mxu0 %v4713_v39  ;;  %v4722_v17 = vld [vmem:[#allocation5 + $0x2e8] ss:$72 sps:$4 sm:$0xff]   ;;  %v3943_v39 = vpop.f32.mrb[0].mxu1  ;;  %v3920_v2 = vpop.f32.mrb[1].mxu0 }
 0x274   : > { %v987_v48 = vpop.permute.xlu1 %986  ;;  %v985_v6 = vpop.permute.xlu0 %984  ;;  %2491 = vmatmul.mubr.bf16.gmra.mrb[64].mxu1 %v4716_v40  ;;  %2587 = vmatprep.mubr.bf16.mxu0 %v4717_v1  ;;  %v4737_v40 = vld [vmem:[#allocation5 + $0x410] ss:$72 sps:$4 sm:$0xff]  }
 0x275   : > { %v1046_v47 = vsel %vm1044_vm7, %v985_v6, %v987_v48  ;;  %2498 = vmatprep.mubr.bf16.mxu1 %v4720_v5  ;;  %v3944_v55 = vpop.f32.mrb[1].mxu1  ;;  %v4745_v6 = vld [vmem:[#allocation5 + $0x34] ss:$72 sps:$4 sm:$0xff]  }
 0x276   : > { %1115 = vrot.lane.b32.xlu1 %v5505_v51, %s5092_s30  ;;  %1113 = vrot.lane.b32.xlu0 %v5502_v50, %s5092_s30  ;;  %v3946_v1 = vpop.f32.mrb[2].mxu1 }
 0x277   : > { %4290 = vmatpush3.bf16.msra.mxu0 %v1046_v47  ;;  %v6089_v47 = vadd.f32 %v3944_v55, %v3943_v39 }
 0x278   : > { %v926_v7 = vpop.permute.xlu1 %925  ;;  %v924_v8 = vpop.permute.xlu0 %923 }
 0x279   : > { %v958_v10 = vsel %vm947_vm6, %v924_v8, %v926_v7  ;;  %v3947_v7 = vpop.f32.mrb[3].mxu1  ;;  %v3922_v8 = vpop.f32.mrb[2].mxu0 }
 0x27a   : > { %1083 = vrot.lane.b32.xlu1 %v5366_v22, %s5092_s30  ;;  %1081 = vrot.lane.b32.xlu0 %v5363_v21, %s5092_s30 }
 0x27b   : > { %4227 = vmatprep.subr.bf16.mxu1 %v958_v10  ;;  %2588 = vmatmul.mubr.bf16.gmra.mrb[64].mxu0 %v4719_v18 }
 0x27c   : > { %v894_v46 = vpop.permute.xlu1 %893  ;;  %v892_v11 = vpop.permute.xlu0 %891  ;;  %2499 = vmatmul.mubr.bf16.gmra.mrb[68].mxu1 %v4722_v17  ;;  %2595 = vmatprep.mubr.bf16.mxu0 %v4723_v9 }
 0x27d   : > { %v950_v12 = vsel %vm947_vm6, %v892_v11, %v894_v46  ;;  %2506 = vmatprep.mubr.bf16.mxu1 %v4726_v43  ;;  %v3949_v17 = vpop.f32.mrb[4].mxu1  ;;  %v3923_v9 = vpop.f32.mrb[3].mxu0 }
 0x27e   : > { %1212 = vrot.lane.b32.xlu1 %v5505_v51, %s5093_s6  ;;  %1210 = vrot.lane.b32.xlu0 %v5502_v50, %s5093_s6  ;;  %v3950_v10 = vpop.f32.mrb[5].mxu1  ;;  %v3925_v43 = vpop.f32.mrb[4].mxu0 }
 0x27f   : > { %4228 = vmatpush3.bf16.msra.mxu1 %v950_v12 }
 0x280   : > { %v1023_v14 = vpop.permute.xlu1 %1022  ;;  %v1021_v19 = vpop.permute.xlu0 %1020 }
 0x281   : > { %v1055_v26 = vsel %vm1044_vm7, %v1021_v19, %v1023_v14  ;;  %v3926_v14 = vpop.f32.mrb[5].mxu0 }
 0x282   : > { %1180 = vrot.lane.b32.xlu1 %v5366_v22, %s5093_s6  ;;  %1178 = vrot.lane.b32.xlu0 %v5363_v21, %s5093_s6  ;;  %v4731_v22 = vld [vmem:[#allocation5 + $0x380] ss:$72 sps:$4 sm:$0xff]   ;;  %v6109_v19 = vadd.f32 %v3926_v14, %v3925_v43 }
 0x283   : > { %4291 = vmatprep.subr.bf16.mxu0 %v1055_v26  ;;  %2596 = vmatmul.mubr.bf16.gmra.mrb[68].mxu0 %v4725_v13  ;;  %v4734_v21 = vld [vmem:[#allocation5 + $0x408] ss:$72 sps:$4 sm:$0xff]   ;;  %v6101_v13 = vadd.f32 %v3923_v9, %v3922_v8 }
 0x284   : > { %v991_v51 = vpop.permute.xlu1 %990  ;;  %v989_v52 = vpop.permute.xlu0 %988  ;;  %2507 = vmatmul.mubr.bf16.gmra.mrb[72].mxu1 %v4728_v20  ;;  %2603 = vmatprep.mubr.bf16.mxu0 %v4729_v23 }
 0x285   : > { %v1047_v50 = vsel %vm1044_vm7, %v989_v52, %v991_v51  ;;  %2514 = vmatprep.mubr.bf16.mxu1 %v4732_v49  ;;  %v3928_v23 = vpop.f32.mrb[6].mxu0 }
 0x286   : > { %1119 = vrot.lane.b32.xlu1 %v5527_v54, %s5092_s30  ;;  %1117 = vrot.lane.b32.xlu0 %v5524_v53, %s5092_s30  ;;  %v3929_v51 = vpop.f32.mrb[7].mxu0 }
 0x287   : > { %4292 = vmatpush3.bf16.msra.mxu0 %v1047_v50 }
 0x288   : > { %v930_v27 = vpop.permute.xlu1 %929  ;;  %v928_v30 = vpop.permute.xlu0 %927 }
 0x289   : > { %v959_v36 = vsel %vm947_vm6, %v928_v30, %v930_v27 }
 0x28a   : > { %1087 = vrot.lane.b32.xlu1 %v5376_v25, %s5092_s30  ;;  %1085 = vrot.lane.b32.xlu0 %v5373_v24, %s5092_s30 }
 0x28b   : > { %4229 = vmatprep.subr.bf16.mxu1 %v959_v36  ;;  %2604 = vmatmul.mubr.bf16.gmra.mrb[72].mxu0 %v4731_v22  ;;  %v6113_v22 = vadd.f32 %v3929_v51, %v3928_v23 }
 0x28c   : > { %v898_v35 = vpop.permute.xlu1 %897  ;;  %v896_v59 = vpop.permute.xlu0 %895  ;;  %2515 = vmatmul.mubr.bf16.gmra.mrb[76].mxu1 %v4734_v21  ;;  %2611 = vmatprep.mubr.bf16.mxu0 %v4735_v31 }
 0x28d   : > { %v951_v60 = vsel %vm947_vm6, %v896_v59, %v898_v35  ;;  %2652 = vmatprep.mubr.bf16.mxu1 %v4740_v32  ;;  %v3931_v21 = vpop.f32.mrb[8].mxu0 }
 0x28e   : > { %1216 = vrot.lane.b32.xlu1 %v5527_v54, %s5093_s6  ;;  %1214 = vrot.lane.b32.xlu0 %v5524_v53, %s5093_s6  ;;  %v6096_v53 = vadd.f32 %v3920_v2, %v3919_v56  ;;  %v6098_v54 = vadd.f32 %v3947_v7, %v3946_v1  ;;  %v3932_v32 = vpop.f32.mrb[9].mxu0 }
 0x28f   : > { %4230 = vmatpush3.bf16.msra.mxu1 %v951_v60  ;;  %v6122_v35 = vadd.f32 %v3932_v32, %v3931_v21  ;;  %v3934_v60 = vpop.f32.mrb[10].mxu0 }
 0x290   : > { %v1027_v5 = vpop.permute.xlu1 %1026  ;;  %v1025_v48 = vpop.permute.xlu0 %1024 }
 0x291   : > { %v1056_v18 = vsel %vm1044_vm7, %v1025_v48, %v1027_v5  ;;  %v3935_v2 = vpop.f32.mrb[11].mxu0 }
 0x292   : > { %1184 = vrot.lane.b32.xlu1 %v5376_v25, %s5093_s6  ;;  %1182 = vrot.lane.b32.xlu0 %v5373_v24, %s5093_s6  ;;  %v6103_v25 = vadd.f32 %v3950_v10, %v3949_v17  ;;  %v3952_v24 = vpop.f32.mrb[6].mxu1  ;;  %v6131_v5 = vadd.f32 %v3935_v2, %v3934_v60 }
 0x293   : > { %4293 = vmatprep.subr.bf16.mxu0 %v1056_v18  ;;  %2612 = vmatmul.mubr.bf16.gmra.mrb[76].mxu0 %v4737_v40  ;;  %v3953_v20 = vpop.f32.mrb[7].mxu1 }
 0x294   : > { %v995_v46 = vpop.permute.xlu1 %994  ;;  %v993_v11 = vpop.permute.xlu0 %992  ;;  %2749 = vmatprep.mubr.bf16.mxu0 %v4745_v6  ;;  %v6111_v26 = vadd.f32 %v3953_v20, %v3952_v24 }
 0x295   : > { %v1048_v12 = vsel %vm1044_vm7, %v993_v11, %v995_v46  ;;  %v3955_v49 = vpop.f32.mrb[8].mxu1  ;;  %v3937_v6 = vpop.f32.mrb[12].mxu0 }
 0x296   : > { %1123 = vrot.lane.b32.xlu1 %v5551_v58, %s5092_s30  ;;  %1121 = vrot.lane.b32.xlu0 %v5548_v57, %s5092_s30  ;;  %v3956_v30 = vpop.f32.mrb[9].mxu1  ;;  %v3938_v8 = vpop.f32.mrb[13].mxu0 }
 0x297   : > { %4294 = vmatpush3.bf16.msra.mxu0 %v1048_v12  ;;  %v6120_v31 = vadd.f32 %v3956_v30, %v3955_v49  ;;  %v3958_v36 = vpop.f32.mrb[10].mxu1  ;;  %v6135_v10 = vadd.f32 %v3938_v8, %v3937_v6 }
 0x298   : > { %v934_v52 = vpop.permute.xlu1 %933  ;;  %v932_v50 = vpop.permute.xlu0 %931 }
 0x299   : > { %v960_v27 = vsel %vm947_vm6, %v932_v50, %v934_v52  ;;  %v3959_v59 = vpop.f32.mrb[11].mxu1 }
 0x29a   : > { %1091 = vrot.lane.b32.xlu1 %v5388_v29, %s5092_s30  ;;  %1089 = vrot.lane.b32.xlu0 %v5385_v28, %s5092_s30  ;;  %v6124_v56 = vadd.f32 %v3959_v59, %v3958_v36  ;;  %v3961_v1 = vpop.f32.mrb[12].mxu1 }
 0x29b   : > { %4231 = vmatprep.subr.bf16.mxu1 %v960_v27  ;;  %v3962_v48 = vpop.f32.mrb[13].mxu1 }
 0x29c   : > { %v902_v39 = vpop.permute.xlu1 %901  ;;  %v900_v55 = vpop.permute.xlu0 %899  ;;  %v6133_v18 = vadd.f32 %v3962_v48, %v3961_v1 }
 0x29d   : > { %v952_v40 = vsel %vm947_vm6, %v900_v55, %v902_v39  ;;  %v3964_v7 = vpop.f32.mrb[14].mxu1 }
 0x29e   : > { %1220 = vrot.lane.b32.xlu1 %v5551_v58, %s5093_s6  ;;  %1218 = vrot.lane.b32.xlu0 %v5548_v57, %s5093_s6  ;;  %v3965_v46 = vpop.f32.mrb[15].mxu1  ;;  %v3940_v58 = vpop.f32.mrb[14].mxu0 }
 0x29f   : > { %4232 = vmatpush3.bf16.msra.mxu1 %v952_v40  ;;  %v6142_v57 = vadd.f32 %v3965_v46, %v3964_v7  ;;  %v3941_v11 = vpop.f32.mrb[15].mxu0 }
 0x2a0   : > { %v1031_v17 = vpop.permute.xlu1 %1030  ;;  %v1029_v9 = vpop.permute.xlu0 %1028  ;;  %v6144_v12 = vadd.f32 %v3941_v11, %v3940_v58 }
 0x2a1   : > { %v1057_v43 = vsel %vm1044_vm7, %v1029_v9, %v1031_v17 }
 0x2a2   : > { %1188 = vrot.lane.b32.xlu1 %v5388_v29, %s5093_s6  ;;  %1186 = vrot.lane.b32.xlu0 %v5385_v28, %s5093_s6 }
 0x2a3   : > { %4295 = vmatprep.subr.bf16.mxu0 %v1057_v43 }
 0x2a4   : > { %v999_v24 = vpop.permute.xlu1 %998  ;;  %v997_v14 = vpop.permute.xlu0 %996 }
 0x2a5   : > { %v1049_v20 = vsel %vm1044_vm7, %v997_v14, %v999_v24 }
 0x2a6   : > { %1127 = vrot.lane.b32.xlu1 %v5613_v62, %s5092_s30  ;;  %1125 = vrot.lane.b32.xlu0 %v5609_v61, %s5092_s30  ;;  %v3983_v29 = vpop.f32.mrb[16].mxu1 }
 0x2a7   : > { %4296 = vmatpush3.bf16.msra.mxu0 %v1049_v20  ;;  %v3984_v23 = vpop.f32.mrb[17].mxu1 }
 0x2a8   : > { %v938_v28 = vpop.permute.xlu1 %937  ;;  %v936_v49 = vpop.permute.xlu0 %935  ;;  %v3985_v51 = vadd.f32 %v3984_v23, %v3983_v29 }
 0x2a9   : > { %v961_v52 = vsel %vm947_vm6, %v936_v49, %v938_v28  ;;  %v3986_v50 = vpop.f32.mrb[18].mxu1 }
 0x2aa   : > { %1095 = vrot.lane.b32.xlu1 %v5407_v34, %s5092_s30  ;;  %1093 = vrot.lane.b32.xlu0 %v5404_v33, %s5092_s30  ;;  %v2267_v27 = vadd.f32 %v3985_v51, %v6096_v53  ;;  %v3987_v30 = vpop.f32.mrb[19].mxu1 }
 0x2ab   : > { %4233 = vmatprep.subr.bf16.mxu1 %v961_v52  ;;  %v3988_v21 = vadd.f32 %v3987_v30, %v3986_v50 }
 0x2ac   : > { %v906_v36 = vpop.permute.xlu1 %905  ;;  %v904_v32 = vpop.permute.xlu0 %903 }
 0x2ad   : > { %v953_v59 = vsel %vm947_vm6, %v904_v32, %v906_v36  ;;  %v2270_v60 = vadd.f32 %v3988_v21, %v6101_v13 }
 0x2ae   : > { %1224 = vrot.lane.b32.xlu1 %v5613_v62, %s5093_s6  ;;  %1222 = vrot.lane.b32.xlu0 %v5609_v61, %s5093_s6  ;;  %v4047_v39 = vpop.f32.mrb[16].mxu0 }
 0x2af   : > { %4234 = vmatpush3.bf16.msra.mxu1 %v953_v59  ;;  %v4048_v55 = vpop.f32.mrb[17].mxu0  ;;  %v3989_v40 = vpop.f32.mrb[20].mxu1 }
 0x2b0   : > { %v1035_v53 = vpop.permute.xlu1 %1034  ;;  %v1033_v1 = vpop.permute.xlu0 %1032  ;;  %v4049_v2 = vadd.f32 %v4048_v55, %v4047_v39 }
 0x2b1   : > { %v1058_v48 = vsel %vm1044_vm7, %v1033_v1, %v1035_v53  ;;  %v4050_v6 = vpop.f32.mrb[18].mxu0  ;;  %v3990_v7 = vpop.f32.mrb[21].mxu1 }
 0x2b2   : > { %1192 = vrot.lane.b32.xlu1 %v5407_v34, %s5093_s6  ;;  %1190 = vrot.lane.b32.xlu0 %v5404_v33, %s5093_s6  ;;  %v6168_v62 = vadd.f32 %v4049_v2, %v2267_v27  ;;  %v3991_v61 = vadd.f32 %v3990_v7, %v3989_v40  ;;  %v4051_v13 = vpop.f32.mrb[19].mxu0  ;;  %v3992_v8 = vpop.f32.mrb[22].mxu1 }
 0x2b3   : > { %4297 = vmatprep.subr.bf16.mxu0 %v1058_v48  ;;  %v4052_v17 = vadd.f32 %v4051_v13, %v4050_v6  ;;  %v3993_v9 = vpop.f32.mrb[23].mxu1 }
 0x2b4   : > { %v1003_v43 = vpop.permute.xlu1 %1002  ;;  %v1001_v46 = vpop.permute.xlu0 %1000  ;;  %v2275_v58 = vadd.f32 %v3991_v61, %v6109_v19  ;;  %v3994_v11 = vadd.f32 %v3993_v9, %v3992_v8 }
 0x2b5   : > { %v1050_v24 = vsel %vm1044_vm7, %v1001_v46, %v1003_v43  ;;  %v6172_v14 = vadd.f32 %v4052_v17, %v2270_v60 }
 0x2b6   : > { %1131 = vrot.lane.b32.xlu1 %v5633_v0, %s5092_s30  ;;  %1129 = vrot.lane.b32.xlu0 %v5629_v63, %s5092_s30  ;;  %v4053_v33 = vpop.f32.mrb[20].mxu0  ;;  %v2278_v34 = vadd.f32 %v3994_v11, %v6113_v22 }
 0x2b7   : > { %4298 = vmatpush3.bf16.msra.mxu0 %v1050_v24  ;;  %v4054_v20 = vpop.f32.mrb[21].mxu0  ;;  %v3995_v29 = vpop.f32.mrb[24].mxu1 }
 0x2b8   : > { %v942_v23 = vpop.permute.xlu1 %941  ;;  %v940_v28 = vpop.permute.xlu0 %939  ;;  %v4055_v19 = vadd.f32 %v4054_v20, %v4053_v33 }
 0x2b9   : > { %v962_v49 = vsel %vm947_vm6, %v940_v28, %v942_v23  ;;  %v4056_v51 = vpop.f32.mrb[22].mxu0  ;;  %v3996_v52 = vpop.f32.mrb[25].mxu1 }
 0x2ba   : > { %1099 = vrot.lane.b32.xlu1 %v5423_v38, %s5092_s30  ;;  %1097 = vrot.lane.b32.xlu0 %v5419_v37, %s5092_s30  ;;  %v6184_v50 = vadd.f32 %v4055_v19, %v2275_v58  ;;  %v3997_v27 = vadd.f32 %v3996_v52, %v3995_v29  ;;  %v4057_v22 = vpop.f32.mrb[23].mxu0  ;;  %v3998_v30 = vpop.f32.mrb[26].mxu1 }
 0x2bb   : > { %4235 = vmatprep.subr.bf16.mxu1 %v962_v49  ;;  %v4058_v21 = vadd.f32 %v4057_v22, %v4056_v51  ;;  %v3999_v36 = vpop.f32.mrb[27].mxu1 }
 0x2bc   : > { %v910_v32 = vpop.permute.xlu1 %909  ;;  %v908_v59 = vpop.permute.xlu0 %907  ;;  %v2283_v60 = vadd.f32 %v3997_v27, %v6122_v35  ;;  %v4000_v39 = vadd.f32 %v3999_v36, %v3998_v30 }
 0x2bd   : > { %v954_v55 = vsel %vm947_vm6, %v908_v59, %v910_v32  ;;  %v6188_v40 = vadd.f32 %v4058_v21, %v2278_v34 }
 0x2be   : > { %1228 = vrot.lane.b32.xlu1 %v5633_v0, %s5093_s6  ;;  %1226 = vrot.lane.b32.xlu0 %v5629_v63, %s5093_s6  ;;  %v4059_v53 = vpop.f32.mrb[24].mxu0  ;;  %v2286_v1 = vadd.f32 %v4000_v39, %v6131_v5 }
 0x2bf   : > { %4236 = vmatpush3.bf16.msra.mxu1 %v954_v55  ;;  %v4060_v2 = vpop.f32.mrb[25].mxu0  ;;  %v4001_v48 = vpop.f32.mrb[28].mxu1 }
 0x2c0   : > { %v1039_v6 = vpop.permute.xlu1 %1038  ;;  %v1037_v7 = vpop.permute.xlu0 %1036  ;;  %v4061_v35 = vadd.f32 %v4060_v2, %v4059_v53  ;;  %v4738_v53 = vld [vmem:[#allocation5 + $0x28] ss:$72 sps:$4 sm:$0xff]  }
 0x2c1   : > { %v1059_v61 = vsel %vm1044_vm7, %v1037_v7, %v1039_v6  ;;  %v4062_v13 = vpop.f32.mrb[26].mxu0  ;;  %v4002_v8 = vpop.f32.mrb[29].mxu1 }
 0x2c2   : > { %1196 = vrot.lane.b32.xlu1 %v5423_v38, %s5093_s6  ;;  %1194 = vrot.lane.b32.xlu0 %v5419_v37, %s5093_s6  ;;  %v6200_v63 = vadd.f32 %v4061_v35, %v2283_v60  ;;  %v4003_v0 = vadd.f32 %v4002_v8, %v4001_v48  ;;  %v4063_v5 = vpop.f32.mrb[27].mxu0  ;;  %v4004_v17 = vpop.f32.mrb[30].mxu1  ;;  %v4741_v35 = vld [vmem:[#allocation5 + $0xbc] ss:$72 sps:$4 sm:$0xff]  }
 0x2c3   : > { %4299 = vmatprep.subr.bf16.mxu0 %v1059_v61  ;;  %v4064_v9 = vadd.f32 %v4063_v5, %v4062_v13  ;;  %v4005_v43 = vpop.f32.mrb[31].mxu1 }
 0x2c4   : > { %v1007_v46 = vpop.permute.xlu1 %1006  ;;  %v1005_v58 = vpop.permute.xlu0 %1004  ;;  %v2291_v11 = vadd.f32 %v4003_v0, %v6135_v10  ;;  %v4006_v24 = vadd.f32 %v4005_v43, %v4004_v17 }
 0x2c5   : > { %v1051_v33 = vsel %vm1044_vm7, %v1005_v58, %v1007_v46  ;;  %v6204_v34 = vadd.f32 %v4064_v9, %v2286_v1 }
 0x2c6   : > { %1135 = vrot.lane.b32.xlu1 %v5653_v4, %s5092_s30  ;;  %1133 = vrot.lane.b32.xlu0 %v5649_v3, %s5092_s30  ;;  %v4065_v37 = vpop.f32.mrb[28].mxu0  ;;  %v2294_v38 = vadd.f32 %v4006_v24, %v6144_v12 }
 0x2c7   : > { %4300 = vmatpush3.bf16.msra.mxu0 %v1051_v33  ;;  %v4066_v20 = vpop.f32.mrb[29].mxu0  ;;  %v4007_v29 = vpop.f32.mrb[32].mxu1 }
 0x2c8   : > { %v946_v23 = vpop.permute.xlu1 %945  ;;  %v944_v28 = vpop.permute.xlu0 %943  ;;  %v4067_v10 = vadd.f32 %v4066_v20, %v4065_v37  ;;  %v4746_v37 = vld [vmem:[#allocation5 + $0xb8] ss:$72 sps:$4 sm:$0xff]  }
 0x2c9   : > { %v963_v19 = vsel %vm947_vm6, %v944_v28, %v946_v23  ;;  %v4068_v49 = vpop.f32.mrb[30].mxu0  ;;  %v4008_v51 = vpop.f32.mrb[33].mxu1  ;;  %v4747_v28 = vld [vmem:[#allocation5 + $0x14c] ss:$72 sps:$4 sm:$0xff]  }
 0x2ca   : > { %1103 = vrot.lane.b32.xlu1 %v5443_v42, %s5092_s30  ;;  %1101 = vrot.lane.b32.xlu0 %v5439_v41, %s5092_s30  ;;  %v6216_v52 = vadd.f32 %v4067_v10, %v2291_v11  ;;  %v4009_v27 = vadd.f32 %v4008_v51, %v4007_v29  ;;  %v4069_v12 = vpop.f32.mrb[31].mxu0  ;;  %v4010_v22 = vpop.f32.mrb[34].mxu1  ;;  %v4749_v10 = vld [vmem:[#allocation5 + $0xc4] ss:$72 sps:$4 sm:$0xff]  }
 0x2cb   : > { %4237 = vmatprep.subr.bf16.mxu1 %v963_v19  ;;  %v4070_v30 = vadd.f32 %v4069_v12, %v4068_v49  ;;  %v4011_v21 = vpop.f32.mrb[35].mxu1 }
 0x2cc   : > { %v914_v36 = vpop.permute.xlu1 %913  ;;  %v912_v32 = vpop.permute.xlu0 %911  ;;  %v2299_v59 = vadd.f32 %v4009_v27, %v6089_v47  ;;  %v4012_v60 = vadd.f32 %v4011_v21, %v4010_v22 }
 0x2cd   : > { %v955_v39 = vsel %vm947_vm6, %v912_v32, %v914_v36  ;;  %v6220_v55 = vadd.f32 %v4070_v30, %v2294_v38 }
 0x2ce   : > { %1232 = vrot.lane.b32.xlu1 %v5653_v4, %s5093_s6  ;;  %1230 = vrot.lane.b32.xlu0 %v5649_v3, %s5093_s6  ;;  %v4071_v1 = vpop.f32.mrb[32].mxu0  ;;  %v2302_v2 = vadd.f32 %v4012_v60, %v6098_v54 }
 0x2cf   : > { %4238 = vmatpush3.bf16.msra.mxu1 %v955_v39  ;;  %v4072_v48 = vpop.f32.mrb[33].mxu0  ;;  %v4013_v6 = vpop.f32.mrb[36].mxu1 }
 0x2d0   : > { %v1043_v7 = vpop.permute.xlu1 %1042  ;;  %v1041_v47 = vpop.permute.xlu0 %1040  ;;  %v4073_v61 = vadd.f32 %v4072_v48, %v4071_v1  ;;  %v4752_v1 = vld [vmem:[#allocation5 + $0xc0] ss:$72 sps:$4 sm:$0xff]  }
 0x2d1   : > { %v1060_v13 = vsel %vm1044_vm7, %v1041_v47, %v1043_v7  ;;  %v4074_v8 = vpop.f32.mrb[34].mxu0  ;;  %v4014_v0 = vpop.f32.mrb[37].mxu1  ;;  %v4751_v48 = vld [vmem:[#allocation5 + $0x148] ss:$72 sps:$4 sm:$0xff]  }
 0x2d2   : > { %2653 = vmatmul.mubr.bf16.vlgmr.msra.gmra.mrb[80].mxu1 %v4738_v53  ;;  %1200 = vrot.lane.b32.xlu1 %v5443_v42, %s5093_s6  ;;  %v6230_v3 = vadd.f32 %v4073_v61, %v2299_v59  ;;  %v4015_v4 = vadd.f32 %v4014_v0, %v4013_v6  ;;  %v4075_v5 = vpop.f32.mrb[35].mxu0  ;;  %v4016_v54 = vpop.f32.mrb[38].mxu1  ;;  %v4743_v42 = vld [vmem:[#allocation5 + $0x30] ss:$72 sps:$4 sm:$0xff]  }
 0x2d3   : > { %1198 = vrot.lane.b32.xlu0 %v5439_v41, %s5093_s6  ;;  %4301 = vmatprep.subr.bf16.mxu0 %v1060_v13  ;;  %v4076_v17 = vadd.f32 %v4075_v5, %v4074_v8  ;;  %v4017_v9 = vpop.f32.mrb[39].mxu1  ;;  %v4753_v13 = vld [vmem:[#allocation5 + $0x1dc] ss:$72 sps:$4 sm:$0xff]  }
 0x2d4   : > { %v1011_v43 = vpop.permute.xlu1 %1010  ;;  %v1009_v46 = vpop.permute.xlu0 %1008  ;;  %2660 = vmatprep.mubr.bf16.mxu1 %v4741_v35  ;;  %v2307_v58 = vadd.f32 %v4015_v4, %v6103_v25  ;;  %v4018_v11 = vadd.f32 %v4017_v9, %v4016_v54  ;;  %v4755_v8 = vld [vmem:[#allocation5 + $0x154] ss:$72 sps:$4 sm:$0xff]  }
 0x2d5   : > { %v1052_v24 = vsel %vm1044_vm7, %v1009_v46, %v1011_v43  ;;  %v6236_v33 = vadd.f32 %v4076_v17, %v2302_v2 }
 0x2d6   : > { %1139 = vrot.lane.b32.xlu1 %v5673_v16, %s5092_s30  ;;  %4302 = vmatpush3.bf16.msra.mxu0 %v1052_v24  ;;  %v4077_v41 = vpop.f32.mrb[36].mxu0  ;;  %v2310_v38 = vadd.f32 %v4018_v11, %v6111_v26 }
 0x2d7   : > { %1137 = vrot.lane.b32.xlu0 %v5669_v15, %s5092_s30  ;;  %v4078_v20 = vpop.f32.mrb[37].mxu0  ;;  %v4019_v25 = vpop.f32.mrb[40].mxu1 }
 0x2d8   : > { %v1112_v29 = vpop.permute.xlu1 %1111  ;;  %v1110_v23 = vpop.permute.xlu0 %1109  ;;  %v4079_v19 = vadd.f32 %v4078_v20, %v4077_v41  ;;  %v4757_v41 = vld [vmem:[#allocation5 + $0x1d8] ss:$72 sps:$4 sm:$0xff]   ;;  %v4759_v20 = vld [vmem:[#allocation5 + $0x26c] ss:$72 sps:$4 sm:$0xff]  }
 0x2d9   : > { %2750 = vmatmul.mubr.bf16.vlgmr.msra.gmra.mrb[80].mxu0 %v4743_v42  ;;  %v1150_v49 = vsel %vm1141_vm8, %v1110_v23, %v1112_v29  ;;  %v4080_v51 = vpop.f32.mrb[38].mxu0  ;;  %v4020_v27 = vpop.f32.mrb[41].mxu1  ;;  %v4758_v42 = vld [vmem:[#allocation5 + $0x150] ss:$72 sps:$4 sm:$0xff]  }
 0x2da   : > { %2661 = vmatmul.mubr.bf16.gmra.mrb[84].mxu1 %v4746_v37  ;;  %1107 = vrot.lane.b32.xlu1 %v5463_v45, %s5092_s30  ;;  %v6246_v26 = vadd.f32 %v4079_v19, %v2307_v58  ;;  %v4021_v12 = vadd.f32 %v4020_v27, %v4019_v25  ;;  %v4081_v22 = vpop.f32.mrb[39].mxu0  ;;  %v4022_v30 = vpop.f32.mrb[42].mxu1  ;;  %v4761_v25 = vld [vmem:[#allocation5 + $0x1e4] ss:$72 sps:$4 sm:$0xff]  }
 0x2db   : > { %1105 = vrot.lane.b32.xlu0 %v5459_v44, %s5092_s30  ;;  %4351 = vmatprep.subr.bf16.mxu1 %v1150_v49  ;;  %v4082_v21 = vadd.f32 %v4081_v22, %v4080_v51  ;;  %v4023_v36 = vpop.f32.mrb[43].mxu1 }
 0x2dc   : > { %v1080_v32 = vpop.permute.xlu1 %1079  ;;  %v1078_v59 = vpop.permute.xlu0 %1077  ;;  %2668 = vmatprep.mubr.bf16.mxu1 %v4747_v28  ;;  %2757 = vmatprep.mubr.bf16.mxu0 %v4749_v10  ;;  %v2315_v60 = vadd.f32 %v4021_v12, %v6120_v31  ;;  %v4024_v39 = vadd.f32 %v4023_v36, %v4022_v30  ;;  %v4764_v30 = vld [vmem:[#allocation5 + $0x1e0] ss:$72 sps:$4 sm:$0xff]  }
 0x2dd   : > { %v1142_v53 = vsel %vm1141_vm8, %v1078_v59, %v1080_v32  ;;  %v6252_v2 = vadd.f32 %v4082_v21, %v2310_v38  ;;  %v4763_v36 = vld [vmem:[#allocation5 + $0x268] ss:$72 sps:$4 sm:$0xff]   ;;  %v4765_v32 = vld [vmem:[#allocation5 + $0x2fc] ss:$72 sps:$4 sm:$0xff]  }
 0x2de   : > { %1236 = vrot.lane.b32.xlu1 %v5673_v16, %s5093_s6  ;;  %4352 = vmatpush3.bf16.msra.mxu1 %v1142_v53  ;;  %v4083_v6 = vpop.f32.mrb[40].mxu0  ;;  %v2318_v7 = vadd.f32 %v4024_v39, %v6124_v56  ;;  %v4767_v59 = vld [vmem:[#allocation5 + $0x274] ss:$72 sps:$4 sm:$0xff]  }
 0x2df   : > { %1234 = vrot.lane.b32.xlu0 %v5669_v15, %s5093_s6  ;;  %v4084_v47 = vpop.f32.mrb[41].mxu0  ;;  %v4025_v31 = vpop.f32.mrb[44].mxu1 }
 0x2e0   : > { %v1209_v35 = vpop.permute.xlu1 %1208  ;;  %v1207_v61 = vpop.permute.xlu0 %1206  ;;  %v4085_v0 = vadd.f32 %v4084_v47, %v4083_v6  ;;  %v4769_v47 = vld [vmem:[#allocation5 + $0x2f8] ss:$72 sps:$4 sm:$0xff]  }
 0x2e1   : > { %2758 = vmatmul.mubr.bf16.gmra.mrb[84].mxu0 %v4752_v1  ;;  %v1247_v4 = vsel %vm1238_vm9, %v1207_v61, %v1209_v35  ;;  %v4086_v16 = vpop.f32.mrb[42].mxu0  ;;  %v4026_v5 = vpop.f32.mrb[45].mxu1  ;;  %v4773_v35 = vld [vmem:[#allocation5 + $0x304] ss:$72 sps:$4 sm:$0xff]  }
 0x2e2   : > { %2669 = vmatmul.mubr.bf16.gmra.mrb[88].mxu1 %v4751_v48  ;;  %1204 = vrot.lane.b32.xlu1 %v5463_v45, %s5093_s6  ;;  %v6262_v56 = vadd.f32 %v4085_v0, %v2315_v60  ;;  %v4027_v54 = vadd.f32 %v4026_v5, %v4025_v31  ;;  %v4087_v15 = vpop.f32.mrb[43].mxu0  ;;  %v4028_v17 = vpop.f32.mrb[46].mxu1  ;;  %v4771_v31 = vld [vmem:[#allocation5 + $0x38c] ss:$72 sps:$4 sm:$0xff]   ;;  %v4776_v5 = vld [vmem:[#allocation5 + $0x300] ss:$72 sps:$4 sm:$0xff]  }
 0x2e3   : > { %1202 = vrot.lane.b32.xlu0 %v5459_v44, %s5093_s6  ;;  %4415 = vmatprep.subr.bf16.mxu0 %v1247_v4  ;;  %v4088_v9 = vadd.f32 %v4087_v15, %v4086_v16  ;;  %v4029_v43 = vpop.f32.mrb[47].mxu1  ;;  %v4777_v15 = vld [vmem:[#allocation5 + $0x41c] ss:$72 sps:$4 sm:$0xff]  }
 0x2e4   : > { %v1177_v46 = vpop.permute.xlu1 %1176  ;;  %v1175_v58 = vpop.permute.xlu0 %1174  ;;  %2676 = vmatprep.mubr.bf16.mxu1 %v4753_v13  ;;  %2765 = vmatprep.mubr.bf16.mxu0 %v4755_v8  ;;  %v2323_v11 = vadd.f32 %v4027_v54, %v6133_v18  ;;  %v4030_v24 = vadd.f32 %v4029_v43, %v4028_v17  ;;  %v4775_v54 = vld [vmem:[#allocation5 + $0x388] ss:$72 sps:$4 sm:$0xff]   ;;  %v4779_v17 = vld [vmem:[#allocation5 + $0x394] ss:$72 sps:$4 sm:$0xff]  }
 0x2e5   : > { %v1239_v45 = vsel %vm1238_vm9, %v1175_v58, %v1177_v46  ;;  %v6268_v37 = vadd.f32 %v4088_v9, %v2318_v7  ;;  %v4770_v7 = vld [vmem:[#allocation5 + $0x270] ss:$72 sps:$4 sm:$0xff]  }
 0x2e6   : > { %4416 = vmatpush3.bf16.msra.mxu0 %v1239_v45  ;;  %v4089_v38 = vpop.f32.mrb[44].mxu0  ;;  %v2326_v44 = vadd.f32 %v4030_v24, %v6142_v57  ;;  %v4782_v45 = vld [vmem:[#allocation5 + $0x390] ss:$72 sps:$4 sm:$0xff]  }
 0x2e7   : > { %v4090_v29 = vpop.f32.mrb[45].mxu0 }
 0x2e8   : > { %v1116_v23 = vpop.permute.xlu1 %1115  ;;  %v1114_v28 = vpop.permute.xlu0 %1113  ;;  %v4091_v10 = vadd.f32 %v4090_v29, %v4089_v38  ;;  %v4788_v38 = vld [vmem:[#allocation5 + $0x3c] ss:$72 sps:$4 sm:$0xff]  }
 0x2e9   : > { %2766 = vmatmul.mubr.bf16.gmra.mrb[88].mxu0 %v4758_v42  ;;  %v1151_v18 = vsel %vm1141_vm8, %v1114_v28, %v1116_v23  ;;  %v4092_v19 = vpop.f32.mrb[46].mxu0  ;;  %v4781_v42 = vld [vmem:[#allocation5 + $0x418] ss:$72 sps:$4 sm:$0xff]  }
 0x2ea   : > { %2677 = vmatmul.mubr.bf16.gmra.mrb[92].mxu1 %v4757_v41  ;;  %4353 = vmatprep.subr.bf16.mxu1 %v1151_v18  ;;  %v6272_v49 = vadd.f32 %v4091_v10, %v2323_v11  ;;  %v4093_v51 = vpop.f32.mrb[47].mxu0  ;;  %v4783_v41 = vld [vmem:[#allocation5 + $0x424] ss:$72 sps:$4 sm:$0xff]   ;;  %v4785_v10 = vld [vmem:[#allocation5 + $0x420] ss:$72 sps:$4 sm:$0xff]  }
 0x2eb   : > { %2684 = vmatprep.mubr.bf16.mxu1 %v4759_v20  ;;  %2773 = vmatprep.mubr.bf16.mxu0 %v4761_v25  ;;  %v4094_v27 = vadd.f32 %v4093_v51, %v4092_v19  ;;  %v4793_v18 = vld [vmem:[#allocation5 + $0x44] ss:$72 sps:$4 sm:$0xff]  }
 0x2ec   : > { %v1084_v12 = vpop.permute.xlu1 %1083  ;;  %v1082_v57 = vpop.permute.xlu0 %1081 }
 0x2ed   : > { %v1143_v22 = vsel %vm1141_vm8, %v1082_v57, %v1084_v12  ;;  %v6275_v21 = vadd.f32 %v4094_v27, %v2326_v44 }
 0x2ee   : > { %4354 = vmatpush3.bf16.msra.mxu1 %v1143_v22 }
 0x2f0   : > { %v1213_v60 = vpop.permute.xlu1 %1212  ;;  %v1211_v39 = vpop.permute.xlu0 %1210 }
 0x2f1   : > { %2774 = vmatmul.mubr.bf16.gmra.mrb[92].mxu0 %v4764_v30  ;;  %v1248_v53 = vsel %vm1238_vm9, %v1211_v39, %v1213_v60 }
 0x2f2   : > { %2685 = vmatmul.mubr.bf16.gmra.mrb[96].mxu1 %v4763_v36  ;;  %4417 = vmatprep.subr.bf16.mxu0 %v1248_v53 }
 0x2f3   : > { %2692 = vmatprep.mubr.bf16.mxu1 %v4765_v32  ;;  %2781 = vmatprep.mubr.bf16.mxu0 %v4767_v59 }
 0x2f4   : > { %v1181_v1 = vpop.permute.xlu1 %1180  ;;  %v1179_v48 = vpop.permute.xlu0 %1178 }
 0x2f5   : > { %v1240_v6 = vsel %vm1238_vm9, %v1179_v48, %v1181_v1 }
 0x2f6   : > { %4418 = vmatpush3.bf16.msra.mxu0 %v1240_v6 }
 0x2f8   : > { %v1120_v61 = vpop.permute.xlu1 %1119  ;;  %v1118_v13 = vpop.permute.xlu0 %1117 }
 0x2f9   : > { %2782 = vmatmul.mubr.bf16.gmra.mrb[96].mxu0 %v4770_v7  ;;  %v1152_v8 = vsel %vm1141_vm8, %v1118_v13, %v1120_v61 }
 0x2fa   : > { %2693 = vmatmul.mubr.bf16.gmra.mrb[100].mxu1 %v4769_v47  ;;  %4355 = vmatprep.subr.bf16.mxu1 %v1152_v8 }
 0x2fb   : > { %2700 = vmatprep.mubr.bf16.mxu1 %v4771_v31  ;;  %2789 = vmatprep.mubr.bf16.mxu0 %v4773_v35 }
 0x2fc   : > { %v1088_v0 = vpop.permute.xlu1 %1087  ;;  %v1086_v4 = vpop.permute.xlu0 %1085 }
 0x2fd   : > { %v1144_v16 = vsel %vm1141_vm8, %v1086_v4, %v1088_v0 }
 0x2fe   : > { %4356 = vmatpush3.bf16.msra.mxu1 %v1144_v16 }
 0x300   : > { %v1217_v9 = vpop.permute.xlu1 %1216  ;;  %v1215_v43 = vpop.permute.xlu0 %1214 }
 0x301   : > { %2790 = vmatmul.mubr.bf16.gmra.mrb[100].mxu0 %v4776_v5  ;;  %v1249_v46 = vsel %vm1238_vm9, %v1215_v43, %v1217_v9 }
 0x302   : > { %2701 = vmatmul.mubr.bf16.gmra.mrb[104].mxu1 %v4775_v54  ;;  %4419 = vmatprep.subr.bf16.mxu0 %v1249_v46 }
 0x303   : > { %2708 = vmatprep.mubr.bf16.mxu1 %v4777_v15  ;;  %2797 = vmatprep.mubr.bf16.mxu0 %v4779_v17 }
 0x304   : > { %v1185_v58 = vpop.permute.xlu1 %1184  ;;  %v1183_v11 = vpop.permute.xlu0 %1182 }
 0x305   : > { %v1241_v24 = vsel %vm1238_vm9, %v1183_v11, %v1185_v58 }
 0x306   : > { %4420 = vmatpush3.bf16.msra.mxu0 %v1241_v24 }
 0x308   : > { %v1124_v44 = vpop.permute.xlu1 %1123  ;;  %v1122_v20 = vpop.permute.xlu0 %1121 }
 0x309   : > { %2798 = vmatmul.mubr.bf16.gmra.mrb[104].mxu0 %v4782_v45  ;;  %v1153_v25 = vsel %vm1141_vm8, %v1122_v20, %v1124_v44 }
 0x30a   : > { %2709 = vmatmul.mubr.bf16.gmra.mrb[108].mxu1 %v4781_v42  ;;  %4357 = vmatprep.subr.bf16.mxu1 %v1153_v25 }
 0x30b   : > { %2805 = vmatprep.mubr.bf16.mxu0 %v4783_v41  ;;  %2846 = vmatprep.mubr.bf16.mxu1 %v4788_v38 }
 0x30c   : > { %v1092_v29 = vpop.permute.xlu1 %1091  ;;  %v1090_v23 = vpop.permute.xlu0 %1089 }
 0x30d   : > { %v1145_v28 = vsel %vm1141_vm8, %v1090_v23, %v1092_v29 }
 0x30e   : > { %4358 = vmatpush3.bf16.msra.mxu1 %v1145_v28 }
 0x310   : > { %v1221_v19 = vpop.permute.xlu1 %1220  ;;  %v1219_v51 = vpop.permute.xlu0 %1218 }
 0x311   : > { %2806 = vmatmul.mubr.bf16.gmra.mrb[108].mxu0 %v4785_v10  ;;  %v1250_v27 = vsel %vm1238_vm9, %v1219_v51, %v1221_v19 }
 0x312   : > { %4421 = vmatprep.subr.bf16.mxu0 %v1250_v27  ;;  %2943 = vmatprep.mubr.bf16.mxu0 %v4793_v18 }
 0x314   : > { %v1189_v12 = vpop.permute.xlu1 %1188  ;;  %v1187_v57 = vpop.permute.xlu0 %1186 }
 0x315   : > { %v1242_v22 = vsel %vm1238_vm9, %v1187_v57, %v1189_v12  ;;  %v5094_v12 = vmov 0   ;;  %v3168_v57 = vld [vmem:[#allocation7] sm:$0xff] }
 0x316   : > { %4422 = vmatpush3.bf16.msra.mxu0 %v1242_v22  ;;  %4596 = vset.pattern.permute.xlu1 %v5094_v12 }
 0x317   : > { %4597 = vset.pattern.permute.xlu0 %v5094_v12  ;;  %3250 = vperm.xlu1 %4596, %v3168_v57  }
 0x318   : > { %v1128_v30 = vpop.permute.xlu1 %1127  ;;  %v1126_v36 = vpop.permute.xlu0 %1125 }
 0x319   : > { %v1154_v32 = vsel %vm1141_vm8, %v1126_v36, %v1128_v30 }
 0x31a   : > { %4359 = vmatprep.subr.bf16.mxu1 %v1154_v32 }
 0x31c   : > { %v1096_v59 = vpop.permute.xlu1 %1095  ;;  %v1094_v60 = vpop.permute.xlu0 %1093 }
 0x31d   : > { %v1146_v39 = vsel %vm1141_vm8, %v1094_v60, %v1096_v59 }
 0x31e   : > { %4360 = vmatpush3.bf16.msra.mxu1 %v1146_v39 }
 0x320   : > { %v1225_v53 = vpop.permute.xlu1 %1224  ;;  %v1223_v1 = vpop.permute.xlu0 %1222 }
 0x321   : > { %v1251_v48 = vsel %vm1238_vm9, %v1223_v1, %v1225_v53 }
 0x322   : > { %4423 = vmatprep.subr.bf16.mxu0 %v1251_v48  ;;  %v3170_v48 = vld [vmem:[#allocation7 + $0x10] sm:$0xff] }
 0x323   : > { %3260 = vperm.xlu1 %4596, %v3170_v48  }
 0x324   : > { %v1193_v6 = vpop.permute.xlu1 %1192  ;;  %v1191_v7 = vpop.permute.xlu0 %1190 }
 0x325   : > { %v1243_v47 = vsel %vm1238_vm9, %v1191_v7, %v1193_v6 }
 0x326   : > { %4424 = vmatpush3.bf16.msra.mxu0 %v1243_v47  ;;  %v4111_v31 = vpop.f32.mrb[48].mxu1 }
 0x327   : > { %v4112_v35 = vpop.f32.mrb[49].mxu1 }
 0x328   : > { %v1132_v61 = vpop.permute.xlu1 %1131  ;;  %v1130_v13 = vpop.permute.xlu0 %1129  ;;  %v4113_v8 = vadd.f32 %v4112_v35, %v4111_v31 }
 0x329   : > { %v1155_v0 = vsel %vm1141_vm8, %v1130_v13, %v1132_v61  ;;  %v4114_v4 = vpop.f32.mrb[50].mxu1 }
 0x32a   : > { %4361 = vmatprep.subr.bf16.mxu1 %v1155_v0  ;;  %v2461_v16 = vadd.f32 %v4113_v8, %v6168_v62  ;;  %v4115_v5 = vpop.f32.mrb[51].mxu1 }
 0x32b   : > { %v4116_v54 = vadd.f32 %v4115_v5, %v4114_v4  ;;  %v3171_v5 = vld [vmem:[#allocation7 + $0x18] sm:$0xff] }
 0x32c   : > { %v1100_v15 = vpop.permute.xlu1 %1099  ;;  %v1098_v17 = vpop.permute.xlu0 %1097  ;;  %3265 = vperm.xlu1 %4596, %v3171_v5  }
 0x32d   : > { %v1147_v9 = vsel %vm1141_vm8, %v1098_v17, %v1100_v15  ;;  %v2464_v43 = vadd.f32 %v4116_v54, %v6172_v14 }
 0x32e   : > { %4362 = vmatpush3.bf16.msra.mxu1 %v1147_v9  ;;  %v4175_v46 = vpop.f32.mrb[48].mxu0 }
 0x32f   : > { %v4176_v58 = vpop.f32.mrb[49].mxu0  ;;  %v4117_v11 = vpop.f32.mrb[52].mxu1 }
 0x330   : > { %v1229_v24 = vpop.permute.xlu1 %1228  ;;  %v1227_v45 = vpop.permute.xlu0 %1226  ;;  %v4177_v42 = vadd.f32 %v4176_v58, %v4175_v46 }
 0x331   : > { %v1252_v41 = vsel %vm1238_vm9, %v1227_v45, %v1229_v24  ;;  %v4178_v38 = vpop.f32.mrb[50].mxu0  ;;  %v4118_v44 = vpop.f32.mrb[53].mxu1  ;;  %v3172_v45 = vld [vmem:[#allocation7 + $0x20] sm:$0xff] }
 0x332   : > { %4425 = vmatprep.subr.bf16.mxu0 %v1252_v41  ;;  %v6296_v62 = vadd.f32 %v4177_v42, %v2461_v16  ;;  %v4119_v20 = vadd.f32 %v4118_v44, %v4117_v11  ;;  %v4179_v25 = vpop.f32.mrb[51].mxu0  ;;  %v4120_v29 = vpop.f32.mrb[54].mxu1  ;;  %3270 = vperm.xlu1 %4596, %v3172_v45  }
 0x333   : > { %v4180_v23 = vadd.f32 %v4179_v25, %v4178_v38  ;;  %v4121_v28 = vpop.f32.mrb[55].mxu1 }
 0x334   : > { %v1197_v14 = vpop.permute.xlu1 %1196  ;;  %v1195_v10 = vpop.permute.xlu0 %1194  ;;  %v2469_v18 = vadd.f32 %v4119_v20, %v6184_v50  ;;  %v4122_v19 = vadd.f32 %v4121_v28, %v4120_v29 }
 0x335   : > { %v1244_v51 = vsel %vm1238_vm9, %v1195_v10, %v1197_v14  ;;  %v6300_v27 = vadd.f32 %v4180_v23, %v2464_v43  ;;  %v6319_v10 = vld [vmem:[#allocation7 + $0x28] sm:$0xff] }
 0x336   : > { %4426 = vmatpush3.bf16.msra.mxu0 %v1244_v51  ;;  %v4181_v22 = vpop.f32.mrb[52].mxu0  ;;  %v2472_v30 = vadd.f32 %v4122_v19, %v6188_v40  ;;  %3275 = vperm.xlu1 %4596, %v6319_v10  }
 0x337   : > { %v4182_v36 = vpop.f32.mrb[53].mxu0  ;;  %v4123_v32 = vpop.f32.mrb[56].mxu1 }
 0x338   : > { %v1136_v59 = vpop.permute.xlu1 %1135  ;;  %v1134_v50 = vpop.permute.xlu0 %1133  ;;  %v4183_v60 = vadd.f32 %v4182_v36, %v4181_v22 }
 0x339   : > { %v1156_v39 = vsel %vm1141_vm8, %v1134_v50, %v1136_v59  ;;  %v4184_v53 = vpop.f32.mrb[54].mxu0  ;;  %v4124_v1 = vpop.f32.mrb[57].mxu1  ;;  %v6324_v50 = vld [vmem:[#allocation7 + $0x30] sm:$0xff] }
 0x33a   : > { %4363 = vmatprep.subr.bf16.mxu1 %v1156_v39  ;;  %v6306_v6 = vadd.f32 %v4183_v60, %v2469_v18  ;;  %v4125_v7 = vadd.f32 %v4124_v1, %v4123_v32  ;;  %v4185_v47 = vpop.f32.mrb[55].mxu0  ;;  %v4126_v31 = vpop.f32.mrb[58].mxu1  ;;  %3280 = vperm.xlu1 %4596, %v6324_v50  }
 0x33b   : > { %v4186_v35 = vadd.f32 %v4185_v47, %v4184_v53  ;;  %v4127_v40 = vpop.f32.mrb[59].mxu1 }
 0x33c   : > { %v1104_v61 = vpop.permute.xlu1 %1103  ;;  %v1102_v13 = vpop.permute.xlu0 %1101  ;;  %v2477_v8 = vadd.f32 %v4125_v7, %v6200_v63  ;;  %v4128_v0 = vadd.f32 %v4127_v40, %v4126_v31 }
 0x33d   : > { %v1148_v4 = vsel %vm1141_vm8, %v1102_v13, %v1104_v61  ;;  %v6310_v16 = vadd.f32 %v4186_v35, %v2472_v30  ;;  %v6333_v13 = vld [vmem:[#allocation7 + $0x40] sm:$0xff] }
 0x33e   : > { %4364 = vmatpush3.bf16.msra.mxu1 %v1148_v4  ;;  %v4187_v54 = vpop.f32.mrb[56].mxu0  ;;  %v2480_v15 = vadd.f32 %v4128_v0, %v6204_v34  ;;  %v4786_v0 = vld [vmem:[#allocation5 + $0x38] ss:$72 sps:$4 sm:$0xff]   ;;  %3290 = vperm.xlu1 %4596, %v6333_v13  }
 0x33f   : > { %v4188_v17 = vpop.f32.mrb[57].mxu0  ;;  %v4129_v9 = vpop.f32.mrb[60].mxu1 }
 0x340   : > { %v1233_v43 = vpop.permute.xlu1 %1232  ;;  %v1231_v46 = vpop.permute.xlu0 %1230  ;;  %v4189_v58 = vadd.f32 %v4188_v17, %v4187_v54  ;;  %v4789_v17 = vld [vmem:[#allocation5 + $0xcc] ss:$72 sps:$4 sm:$0xff]  }
 0x341   : > { %v1253_v11 = vsel %vm1238_vm9, %v1231_v46, %v1233_v43  ;;  %v4190_v24 = vpop.f32.mrb[58].mxu0  ;;  %v4130_v63 = vpop.f32.mrb[61].mxu1 }
 0x342   : > { %4427 = vmatprep.subr.bf16.mxu0 %v1253_v11  ;;  %v6314_v42 = vadd.f32 %v4189_v58, %v2477_v8  ;;  %v4131_v41 = vadd.f32 %v4130_v63, %v4129_v9  ;;  %v4191_v38 = vpop.f32.mrb[59].mxu0  ;;  %v4132_v44 = vpop.f32.mrb[62].mxu1  ;;  %v6338_v11 = vld [vmem:[#allocation7 + $0x48] sm:$0xff] }
 0x343   : > { %v4192_v20 = vadd.f32 %v4191_v38, %v4190_v24  ;;  %v4133_v34 = vpop.f32.mrb[63].mxu1  ;;  %3295 = vperm.xlu1 %4596, %v6338_v11  }
 0x344   : > { %v1201_v25 = vpop.permute.xlu1 %1200  ;;  %v2485_v29 = vadd.f32 %v4131_v41, %v6216_v52  ;;  %v4134_v23 = vadd.f32 %v4133_v34, %v4132_v44 }
 0x345   : > { %v1199_v28 = vpop.permute.xlu0 %1198  ;;  %v6317_v14 = vadd.f32 %v4192_v20, %v2480_v15 }
 0x346   : > { %v1245_v18 = vsel %vm1238_vm9, %v1199_v28, %v1201_v25  ;;  %v4193_v19 = vpop.f32.mrb[60].mxu0  ;;  %v2488_v51 = vadd.f32 %v4134_v23, %v6220_v55  ;;  %v6347_v28 = vld [vmem:[#allocation7 + $0x50] sm:$0xff] }
 0x347   : > { %4428 = vmatpush3.bf16.msra.mxu0 %v1245_v18  ;;  %v4194_v57 = vpop.f32.mrb[61].mxu0  ;;  %v4135_v22 = vpop.f32.mrb[64].mxu1  ;;  %3300 = vperm.xlu1 %4596, %v6347_v28  }
 0x348   : > { %v1140_v30 = vpop.permute.xlu1 %1139  ;;  %v4195_v36 = vadd.f32 %v4194_v57, %v4193_v19  ;;  %v4196_v32 = vpop.f32.mrb[62].mxu0  ;;  %v4791_v19 = vld [vmem:[#allocation5 + $0x40] ss:$72 sps:$4 sm:$0xff]  }
 0x349   : > { %v1138_v52 = vpop.permute.xlu0 %1137  ;;  %v4136_v59 = vpop.f32.mrb[65].mxu1 }
 0x34a   : > { %v1157_v60 = vsel %vm1141_vm8, %v1138_v52, %v1140_v30  ;;  %v6327_v39 = vadd.f32 %v4195_v36, %v2485_v29  ;;  %v4137_v53 = vadd.f32 %v4136_v59, %v4135_v22  ;;  %v4197_v1 = vpop.f32.mrb[63].mxu0  ;;  %v4138_v48 = vpop.f32.mrb[66].mxu1  ;;  %v4797_v52 = vld [vmem:[#allocation5 + $0xd4] ss:$72 sps:$4 sm:$0xff]  }
 0x34b   : > { %4365 = vmatprep.subr.bf16.mxu1 %v1157_v60  ;;  %v4198_v55 = vadd.f32 %v4197_v1, %v4196_v32  ;;  %v4139_v7 = vpop.f32.mrb[67].mxu1  ;;  %v4795_v32 = vld [vmem:[#allocation5 + $0x15c] ss:$72 sps:$4 sm:$0xff]  }
 0x34c   : > { %v1108_v47 = vpop.permute.xlu1 %1107  ;;  %v2493_v31 = vadd.f32 %v4137_v53, %v6230_v3  ;;  %v4140_v35 = vadd.f32 %v4139_v7, %v4138_v48 }
 0x34d   : > { %v1106_v40 = vpop.permute.xlu0 %1105  ;;  %v6331_v61 = vadd.f32 %v4198_v55, %v2488_v51  ;;  %v4794_v51 = vld [vmem:[#allocation5 + $0xc8] ss:$72 sps:$4 sm:$0xff]   ;;  %v6352_v55 = vld [vmem:[#allocation7 + $0x60] sm:$0xff] }
 0x34e   : > { %v1149_v8 = vsel %vm1141_vm8, %v1106_v40, %v1108_v47  ;;  %v4199_v4 = vpop.f32.mrb[64].mxu0  ;;  %v2496_v5 = vadd.f32 %v4140_v35, %v6236_v33  ;;  %3310 = vperm.xlu1 %4596, %v6352_v55  }
 0x34f   : > { %4366 = vmatpush3.bf16.msra.mxu1 %v1149_v8  ;;  %v4200_v54 = vpop.f32.mrb[65].mxu0  ;;  %v4141_v15 = vpop.f32.mrb[68].mxu1 }
 0x350   : > { %v1237_v9 = vpop.permute.xlu1 %1236  ;;  %v4201_v3 = vadd.f32 %v4200_v54, %v4199_v4  ;;  %v4202_v43 = vpop.f32.mrb[66].mxu0  ;;  %v4799_v4 = vld [vmem:[#allocation5 + $0x158] ss:$72 sps:$4 sm:$0xff]  }
 0x351   : > { %v1235_v46 = vpop.permute.xlu0 %1234  ;;  %v4203_v58 = vpop.f32.mrb[67].mxu0 }
 0x352   : > { %2847 = vmatmul.mubr.bf16.vlgmr.msra.gmra.mrb[112].mxu1 %v4786_v0  ;;  %v1254_v24 = vsel %vm1238_vm9, %v1235_v46, %v1237_v9  ;;  %v6341_v63 = vadd.f32 %v4201_v3, %v2493_v31  ;;  %v4204_v45 = vadd.f32 %v4203_v58, %v4202_v43  ;;  %v4142_v33 = vpop.f32.mrb[69].mxu1  ;;  %v6361_v0 = vld [vmem:[#allocation7 + $0x70] sm:$0xff]  ;;  %v4803_v3 = vld [vmem:[#allocation5 + $0x164] ss:$72 sps:$4 sm:$0xff]  }
 0x353   : > { %4429 = vmatprep.subr.bf16.mxu0 %v1254_v24  ;;  %2854 = vmatprep.mubr.bf16.mxu1 %v4789_v17  ;;  %v4143_v41 = vadd.f32 %v4142_v33, %v4141_v15  ;;  %v4144_v38 = vpop.f32.mrb[70].mxu1  ;;  %v4801_v9 = vld [vmem:[#allocation5 + $0x1ec] ss:$72 sps:$4 sm:$0xff]  }
 0x354   : > { %v1205_v44 = vpop.permute.xlu1 %1204  ;;  %v6344_v20 = vadd.f32 %v4204_v45, %v2496_v5  ;;  %v4145_v34 = vpop.f32.mrb[71].mxu1  ;;  %v4800_v5 = vld [vmem:[#allocation5 + $0xd0] ss:$72 sps:$4 sm:$0xff]   ;;  %3320 = vperm.xlu1 %4596, %v6361_v0  }
 0x355   : > { %v1203_v25 = vpop.permute.xlu0 %1202  ;;  %v2501_v29 = vadd.f32 %v4143_v41, %v6246_v26  ;;  %v4146_v23 = vadd.f32 %v4145_v34, %v4144_v38 }
 0x356   : > { %v1246_v18 = vsel %vm1238_vm9, %v1203_v25, %v1205_v44  ;;  %v4205_v57 = vpop.f32.mrb[68].mxu0 }
 0x357   : > { %4430 = vmatpush3.bf16.msra.mxu0 %v1246_v18  ;;  %v2504_v22 = vadd.f32 %v4146_v23, %v6252_v2  ;;  %v4206_v30 = vpop.f32.mrb[69].mxu0  ;;  %v4147_v36 = vpop.f32.mrb[72].mxu1  ;;  %v4806_v23 = vld [vmem:[#allocation5 + $0x160] ss:$72 sps:$4 sm:$0xff]  }
 0x358   : > { %v4207_v59 = vadd.f32 %v4206_v30, %v4205_v57  ;;  %v4208_v60 = vpop.f32.mrb[70].mxu0  ;;  %v4148_v26 = vpop.f32.mrb[73].mxu1  ;;  %v4809_v57 = vld [vmem:[#allocation5 + $0x1f4] ss:$72 sps:$4 sm:$0xff]  }
 0x359   : > { %v4209_v53 = vpop.f32.mrb[71].mxu0  ;;  %v4149_v1 = vadd.f32 %v4148_v26, %v4147_v36  ;;  %v4150_v48 = vpop.f32.mrb[74].mxu1  ;;  %v4811_v26 = vld [vmem:[#allocation5 + $0x278] ss:$72 sps:$4 sm:$0xff]  }
 0x35a   : > { %2855 = vmatmul.mubr.bf16.gmra.mrb[116].mxu1 %v4794_v51  ;;  %2944 = vmatmul.mubr.bf16.vlgmr.msra.gmra.mrb[112].mxu0 %v4791_v19  ;;  %v6354_v7 = vadd.f32 %v4207_v59, %v2501_v29  ;;  %v4210_v47 = vadd.f32 %v4209_v53, %v4208_v60  ;;  %v4151_v31 = vpop.f32.mrb[75].mxu1  ;;  %v4805_v29 = vld [vmem:[#allocation5 + $0x1e8] ss:$72 sps:$4 sm:$0xff]   ;;  %v4807_v51 = vld [vmem:[#allocation5 + $0x27c] ss:$72 sps:$4 sm:$0xff]  }
 0x35b   : > { %2862 = vmatprep.mubr.bf16.mxu1 %v4795_v32  ;;  %2951 = vmatprep.mubr.bf16.mxu0 %v4797_v52  ;;  %v2509_v2 = vadd.f32 %v4149_v1, %v6262_v56  ;;  %v4152_v35 = vadd.f32 %v4151_v31, %v4150_v48  ;;  %v3179_v60 = vld [vmem:[#allocation7 + $0x58] sm:$0xff]  ;;  %v4813_v1 = vld [vmem:[#allocation5 + $0x30c] ss:$72 sps:$4 sm:$0xff]  }
 0x35c   : > { %v6357_v40 = vadd.f32 %v4210_v47, %v2504_v22  ;;  %v4812_v53 = vld [vmem:[#allocation5 + $0x1f0] ss:$72 sps:$4 sm:$0xff]   ;;  %v4815_v48 = vld [vmem:[#allocation5 + $0x284] ss:$72 sps:$4 sm:$0xff]  }
 0x35d   : > { %v2512_v8 = vadd.f32 %v4152_v35, %v6268_v37  ;;  %v3181_v47 = vld [vmem:[#allocation7 + $0x68] sm:$0xff]  ;;  %v6380_v31 = vld [vmem:[#allocation7 + $0x78] sm:$0xff] }
 0x35e   : > { %v4211_v54 = vpop.f32.mrb[72].mxu0  ;;  %v4818_v35 = vld [vmem:[#allocation5 + $0x280] ss:$72 sps:$4 sm:$0xff]  }
 0x35f   : > { %v4212_v15 = vpop.f32.mrb[73].mxu0  ;;  %v4153_v17 = vpop.f32.mrb[76].mxu1 }
 0x360   : > { %v4213_v43 = vadd.f32 %v4212_v15, %v4211_v54  ;;  %v4214_v46 = vpop.f32.mrb[74].mxu0  ;;  %v4154_v58 = vpop.f32.mrb[77].mxu1  ;;  %v4827_v54 = vld [vmem:[#allocation5 + $0x3a4] ss:$72 sps:$4 sm:$0xff]   ;;  %v4829_v15 = vld [vmem:[#allocation5 + $0x428] ss:$72 sps:$4 sm:$0xff]  }
 0x361   : > { %v4215_v56 = vpop.f32.mrb[75].mxu0  ;;  %v4155_v24 = vadd.f32 %v4154_v58, %v4153_v17  ;;  %v4156_v45 = vpop.f32.mrb[78].mxu1  ;;  %v4830_v17 = vld [vmem:[#allocation5 + $0x3a0] ss:$72 sps:$4 sm:$0xff]  }
 0x362   : > { %2863 = vmatmul.mubr.bf16.gmra.mrb[120].mxu1 %v4799_v4  ;;  %2952 = vmatmul.mubr.bf16.gmra.mrb[116].mxu0 %v4800_v5  ;;  %v6364_v37 = vadd.f32 %v4213_v43, %v2509_v2  ;;  %v4216_v33 = vadd.f32 %v4215_v56, %v4214_v46  ;;  %v4157_v41 = vpop.f32.mrb[79].mxu1  ;;  %v4817_v2 = vld [vmem:[#allocation5 + $0x308] ss:$72 sps:$4 sm:$0xff]   ;;  %v4825_v5 = vld [vmem:[#allocation5 + $0x42c] ss:$72 sps:$4 sm:$0xff]  }
 0x363   : > { %2870 = vmatprep.mubr.bf16.mxu1 %v4801_v9  ;;  %2959 = vmatprep.mubr.bf16.mxu0 %v4803_v3  ;;  %v2517_v38 = vadd.f32 %v4155_v24, %v6272_v49  ;;  %v4158_v44 = vadd.f32 %v4157_v41, %v4156_v45  ;;  %v6372_v49 = vld [vmem:[#allocation7 + $0x8] sm:$0xff]  ;;  %v4824_v4 = vld [vmem:[#allocation5 + $0x310] ss:$72 sps:$4 sm:$0xff]   ;;  %v4831_v9 = vld [vmem:[#allocation5 + $0x434] ss:$72 sps:$4 sm:$0xff]  }
 0x364   : > { %v6367_v34 = vadd.f32 %v4216_v33, %v2512_v8  ;;  %3255 = vperm.xlu0 %4597, %v6372_v49   ;;  %v4819_v8 = vld [vmem:[#allocation5 + $0x39c] ss:$72 sps:$4 sm:$0xff]   ;;  %v4833_v3 = vld [vmem:[#allocation5 + $0x430] ss:$72 sps:$4 sm:$0xff]  }
 0x365   : > { %v2520_v25 = vadd.f32 %v4158_v44, %v6275_v21  ;;  %v5095_v21 = vmov 1  }
 0x366   : > { %v4217_v18 = vpop.f32.mrb[76].mxu0  ;;  %4598 = vset.pattern.permute.xlu1 %v5095_v21 }
 0x367   : > { %v4218_v19 = vpop.f32.mrb[77].mxu0  ;;  %3377 = vperm.xlu1 %4598, %v6333_v13   ;;  %v4821_v13 = vld [vmem:[#allocation5 + $0x314] ss:$72 sps:$4 sm:$0xff]  }
 0x368   : > { %v4219_v22 = vadd.f32 %v4218_v19, %v4217_v18  ;;  %v4220_v30 = vpop.f32.mrb[78].mxu0  ;;  %3305 = vperm.xlu0 %4597, %v3179_v60  }
 0x369   : > { %v4221_v36 = vpop.f32.mrb[79].mxu0 }
 0x36a   : > { %2871 = vmatmul.mubr.bf16.gmra.mrb[124].mxu1 %v4805_v29  ;;  %2960 = vmatmul.mubr.bf16.gmra.mrb[120].mxu0 %v4806_v23  ;;  %v6370_v32 = vadd.f32 %v4219_v22, %v2517_v38  ;;  %v4222_v52 = vadd.f32 %v4221_v36, %v4220_v30 }
 0x36b   : > { %2878 = vmatprep.mubr.bf16.mxu1 %v4807_v51  ;;  %2967 = vmatprep.mubr.bf16.mxu0 %v4809_v57 }
 0x36c   : > { %v6374_v59 = vadd.f32 %v4222_v52, %v2520_v25  ;;  %3385 = vperm.xlu1 %4598, %v6347_v28   ;;  %3315 = vperm.xlu0 %4597, %v3181_v47   ;;  %v4823_v28 = vld [vmem:[#allocation5 + $0x398] ss:$72 sps:$4 sm:$0xff]  }
 0x370   : > { %3389 = vperm.xlu1 %4598, %v3179_v60   ;;  %3325 = vperm.xlu0 %4597, %v6380_v31  }
 0x372   : > { %2879 = vmatmul.mubr.bf16.gmra.mrb[128].mxu1 %v4811_v26  ;;  %2968 = vmatmul.mubr.bf16.gmra.mrb[124].mxu0 %v4812_v53 }
 0x373   : > { %2886 = vmatprep.mubr.bf16.mxu1 %v4813_v1  ;;  %2975 = vmatprep.mubr.bf16.mxu0 %v4815_v48 }
 0x374   : > { %3397 = vperm.xlu1 %4598, %v3181_v47   ;;  %4599 = vset.pattern.permute.xlu0 %v5095_v21 }
 0x375   : > { %3381 = vperm.xlu0 %4599, %v6338_v11  }
 0x379   : > { %3393 = vperm.xlu0 %4599, %v6352_v55  }
 0x37a   : > { %2887 = vmatmul.mubr.bf16.gmra.mrb[132].mxu1 %v4817_v2  ;;  %2976 = vmatmul.mubr.bf16.gmra.mrb[128].mxu0 %v4818_v35 }
 0x37b   : > { %2894 = vmatprep.mubr.bf16.mxu1 %v4819_v8  ;;  %2983 = vmatprep.mubr.bf16.mxu0 %v4821_v13 }
 0x382   : > { %2895 = vmatmul.mubr.bf16.gmra.mrb[136].mxu1 %v4823_v28  ;;  %2984 = vmatmul.mubr.bf16.gmra.mrb[132].mxu0 %v4824_v4 }
 0x383   : > { %2902 = vmatprep.mubr.bf16.mxu1 %v4825_v5  ;;  %2991 = vmatprep.mubr.bf16.mxu0 %v4827_v54 }
 0x38a   : > { %2903 = vmatmul.mubr.bf16.gmra.mrb[140].mxu1 %v4829_v15  ;;  %2992 = vmatmul.mubr.bf16.gmra.mrb[136].mxu0 %v4830_v17 }
 0x38b   : > { %2999 = vmatprep.mubr.bf16.mxu0 %v4831_v9 }
 0x392   : > { %3000 = vmatmul.mubr.bf16.gmra.mrb[140].mxu0 %v4833_v3 }
 0x3a5   : > { %v4239_v43 = vpop.f32.mrb[80].mxu1 }
 0x3a6   : > { %v4240_v11 = vpop.f32.mrb[81].mxu1 }
 0x3a7   : > { %v4241_v46 = vadd.f32 %v4240_v11, %v4239_v43  ;;  %v4242_v58 = vpop.f32.mrb[82].mxu1 }
 0x3a8   : > { %v4243_v56 = vpop.f32.mrb[83].mxu1 }
 0x3a9   : > { %v2655_v24 = vadd.f32 %v4241_v46, %v6296_v62  ;;  %v4244_v55 = vadd.f32 %v4243_v56, %v4242_v58 }
 0x3ab   : > { %v2658_v45 = vadd.f32 %v4244_v55, %v6300_v27 }
 0x3ac   : > { %v4303_v33 = vpop.f32.mrb[80].mxu0 }
 0x3ad   : > { %v4245_v41 = vpop.f32.mrb[84].mxu1  ;;  %v4304_v38 = vpop.f32.mrb[81].mxu0 }
 0x3ae   : > { %v4246_v44 = vpop.f32.mrb[85].mxu1  ;;  %v4305_v25 = vadd.f32 %v4304_v38, %v4303_v33  ;;  %v4306_v29 = vpop.f32.mrb[82].mxu0 }
 0x3af   : > { %v4247_v23 = vadd.f32 %v4246_v44, %v4245_v41  ;;  %v4248_v18 = vpop.f32.mrb[86].mxu1  ;;  %v4307_v19 = vpop.f32.mrb[83].mxu0 }
 0x3b0   : > { %v6388_v51 = vadd.f32 %v4305_v25, %v2655_v24  ;;  %v4249_v57 = vpop.f32.mrb[87].mxu1  ;;  %v4308_v22 = vadd.f32 %v4307_v19, %v4306_v29 }
 0x3b1   : > { %v2663_v30 = vadd.f32 %v4247_v23, %v6306_v6  ;;  %v4250_v36 = vadd.f32 %v4249_v57, %v4248_v18 }
 0x3b2   : > { %v6391_v62 = vadd.f32 %v4308_v22, %v2658_v45 }
 0x3b3   : > { %v2666_v27 = vadd.f32 %v4250_v36, %v6310_v16 }
 0x3b4   : > { %v4309_v52 = vpop.f32.mrb[84].mxu0 }
 0x3b5   : > { %v4251_v60 = vpop.f32.mrb[88].mxu1  ;;  %v4310_v26 = vpop.f32.mrb[85].mxu0 }
 0x3b6   : > { %v4252_v53 = vpop.f32.mrb[89].mxu1  ;;  %v4311_v1 = vadd.f32 %v4310_v26, %v4309_v52  ;;  %v4312_v48 = vpop.f32.mrb[86].mxu0 }
 0x3b7   : > { %v4253_v47 = vadd.f32 %v4252_v53, %v4251_v60  ;;  %v4254_v2 = vpop.f32.mrb[90].mxu1  ;;  %v4313_v35 = vpop.f32.mrb[87].mxu0 }
 0x3b8   : > { %v6394_v8 = vadd.f32 %v4311_v1, %v2663_v30  ;;  %v4255_v13 = vpop.f32.mrb[91].mxu1  ;;  %v4314_v28 = vadd.f32 %v4313_v35, %v4312_v48 }
 0x3b9   : > { %v2671_v6 = vadd.f32 %v4253_v47, %v6314_v42  ;;  %v4256_v4 = vadd.f32 %v4255_v13, %v4254_v2 }
 0x3ba   : > { %v6397_v5 = vadd.f32 %v4314_v28, %v2666_v27 }
 0x3bb   : > { %v2674_v16 = vadd.f32 %v4256_v4, %v6317_v14 }
 0x3bc   : > { %v4315_v54 = vpop.f32.mrb[88].mxu0 }
 0x3bd   : > { %v4257_v15 = vpop.f32.mrb[92].mxu1  ;;  %v4316_v17 = vpop.f32.mrb[89].mxu0 }
 0x3be   : > { %v4258_v9 = vpop.f32.mrb[93].mxu1  ;;  %v4317_v3 = vadd.f32 %v4316_v17, %v4315_v54  ;;  %v4318_v43 = vpop.f32.mrb[90].mxu0 }
 0x3bf   : > { %v4259_v11 = vadd.f32 %v4258_v9, %v4257_v15  ;;  %v4260_v46 = vpop.f32.mrb[94].mxu1  ;;  %v4319_v58 = vpop.f32.mrb[91].mxu0 }
 0x3c0   : > { %v6400_v56 = vadd.f32 %v4317_v3, %v2671_v6  ;;  %v4261_v24 = vpop.f32.mrb[95].mxu1  ;;  %v4320_v55 = vadd.f32 %v4319_v58, %v4318_v43 }
 0x3c1   : > { %v2679_v42 = vadd.f32 %v4259_v11, %v6327_v39  ;;  %v4262_v45 = vadd.f32 %v4261_v24, %v4260_v46 }
 0x3c2   : > { %v6403_v33 = vadd.f32 %v4320_v55, %v2674_v16 }
 0x3c3   : > { %v2682_v14 = vadd.f32 %v4262_v45, %v6331_v61 }
 0x3c4   : > { %v4321_v41 = vpop.f32.mrb[92].mxu0 }
 0x3c5   : > { %v4263_v38 = vpop.f32.mrb[96].mxu1  ;;  %v4322_v44 = vpop.f32.mrb[93].mxu0 }
 0x3c6   : > { %v4264_v25 = vpop.f32.mrb[97].mxu1  ;;  %v4323_v29 = vadd.f32 %v4322_v44, %v4321_v41  ;;  %v4324_v23 = vpop.f32.mrb[94].mxu0 }
 0x3c7   : > { %v4265_v18 = vadd.f32 %v4264_v25, %v4263_v38  ;;  %v4266_v19 = vpop.f32.mrb[98].mxu1  ;;  %v4325_v57 = vpop.f32.mrb[95].mxu0 }
 0x3c8   : > { %v6406_v22 = vadd.f32 %v4323_v29, %v2679_v42  ;;  %v4267_v30 = vpop.f32.mrb[99].mxu1  ;;  %v4326_v36 = vadd.f32 %v4325_v57, %v4324_v23 }
 0x3c9   : > { %v2687_v39 = vadd.f32 %v4265_v18, %v6341_v63  ;;  %v4268_v27 = vadd.f32 %v4267_v30, %v4266_v19 }
 0x3ca   : > { %v6409_v52 = vadd.f32 %v4326_v36, %v2682_v14 }
 0x3cb   : > { %v2690_v61 = vadd.f32 %v4268_v27, %v6344_v20 }
 0x3cc   : > { %v4327_v60 = vpop.f32.mrb[96].mxu0 }
 0x3cd   : > { %v4269_v26 = vpop.f32.mrb[100].mxu1  ;;  %v4328_v53 = vpop.f32.mrb[97].mxu0 }
 0x3ce   : > { %v4270_v1 = vpop.f32.mrb[101].mxu1  ;;  %v4329_v48 = vadd.f32 %v4328_v53, %v4327_v60  ;;  %v4330_v47 = vpop.f32.mrb[98].mxu0 }
 0x3cf   : > { %v4271_v2 = vadd.f32 %v4270_v1, %v4269_v26  ;;  %v4272_v35 = vpop.f32.mrb[102].mxu1  ;;  %v4331_v13 = vpop.f32.mrb[99].mxu0 }
 0x3d0   : > { %v6412_v28 = vadd.f32 %v4329_v48, %v2687_v39  ;;  %v4273_v6 = vpop.f32.mrb[103].mxu1  ;;  %v4332_v4 = vadd.f32 %v4331_v13, %v4330_v47 }
 0x3d1   : > { %v2695_v63 = vadd.f32 %v4271_v2, %v6354_v7  ;;  %v4274_v16 = vadd.f32 %v4273_v6, %v4272_v35 }
 0x3d2   : > { %v6415_v54 = vadd.f32 %v4332_v4, %v2690_v61 }
 0x3d3   : > { %v2698_v20 = vadd.f32 %v4274_v16, %v6357_v40 }
 0x3d4   : > { %v4333_v15 = vpop.f32.mrb[100].mxu0 }
 0x3d5   : > { %v4275_v17 = vpop.f32.mrb[104].mxu1  ;;  %v4334_v9 = vpop.f32.mrb[101].mxu0 }
 0x3d6   : > { %v4276_v3 = vpop.f32.mrb[105].mxu1  ;;  %v4335_v43 = vadd.f32 %v4334_v9, %v4333_v15  ;;  %v4336_v11 = vpop.f32.mrb[102].mxu0 }
 0x3d7   : > { %v4277_v46 = vadd.f32 %v4276_v3, %v4275_v17  ;;  %v4278_v58 = vpop.f32.mrb[106].mxu1  ;;  %v4337_v24 = vpop.f32.mrb[103].mxu0 }
 0x3d8   : > { %v6418_v55 = vadd.f32 %v4335_v43, %v2695_v63  ;;  %v4279_v42 = vpop.f32.mrb[107].mxu1  ;;  %v4338_v45 = vadd.f32 %v4337_v24, %v4336_v11 }
 0x3d9   : > { %v2703_v7 = vadd.f32 %v4277_v46, %v6364_v37  ;;  %v4280_v14 = vadd.f32 %v4279_v42, %v4278_v58 }
 0x3da   : > { %v6421_v41 = vadd.f32 %v4338_v45, %v2698_v20 }
 0x3db   : > { %v2706_v40 = vadd.f32 %v4280_v14, %v6367_v34 }
 0x3dc   : > { %v4339_v38 = vpop.f32.mrb[104].mxu0 }
 0x3dd   : > { %v4281_v44 = vpop.f32.mrb[108].mxu1  ;;  %v4340_v25 = vpop.f32.mrb[105].mxu0 }
 0x3de   : > { %v4282_v29 = vpop.f32.mrb[109].mxu1  ;;  %v4341_v23 = vadd.f32 %v4340_v25, %v4339_v38  ;;  %v4342_v18 = vpop.f32.mrb[106].mxu0 }
 0x3df   : > { %v4283_v19 = vadd.f32 %v4282_v29, %v4281_v44  ;;  %v4284_v57 = vpop.f32.mrb[110].mxu1  ;;  %v4343_v30 = vpop.f32.mrb[107].mxu0 }
 0x3e0   : > { %v6424_v36 = vadd.f32 %v4341_v23, %v2703_v7  ;;  %v4285_v39 = vpop.f32.mrb[111].mxu1  ;;  %v4344_v27 = vadd.f32 %v4343_v30, %v4342_v18 }
 0x3e1   : > { %v2711_v37 = vadd.f32 %v4283_v19, %v6370_v32  ;;  %v4286_v61 = vadd.f32 %v4285_v39, %v4284_v57 }
 0x3e2   : > { %v6427_v60 = vadd.f32 %v4344_v27, %v2706_v40 }
 0x3e3   : > { %v2714_v34 = vadd.f32 %v4286_v61, %v6374_v59 }
 0x3e4   : > { %v4345_v26 = vpop.f32.mrb[108].mxu0 }
 0x3e5   : > { %v4346_v53 = vpop.f32.mrb[109].mxu0 }
 0x3e6   : > { %v4347_v1 = vadd.f32 %v4346_v53, %v4345_v26  ;;  %v4348_v48 = vpop.f32.mrb[110].mxu0 }
 0x3e7   : > { %v4349_v47 = vpop.f32.mrb[111].mxu0 }
 0x3e8   : > { %v6430_v2 = vadd.f32 %v4347_v1, %v2711_v37  ;;  %v4350_v35 = vadd.f32 %v4349_v47, %v4348_v48 }
 0x3ea   : > { %v6432_v13 = vadd.f32 %v4350_v35, %v2714_v34 }
 0x425   : > { %v4367_v6 = vpop.f32.mrb[112].mxu1 }
 0x426   : > { %v4368_v4 = vpop.f32.mrb[113].mxu1 }
 0x427   : > { %v4369_v63 = vadd.f32 %v4368_v4, %v4367_v6  ;;  %v4370_v16 = vpop.f32.mrb[114].mxu1 }
 0x428   : > { %v4371_v32 = vpop.f32.mrb[115].mxu1 }
 0x429   : > { %v2849_v20 = vadd.f32 %v4369_v63, %v6388_v51  ;;  %v4372_v15 = vadd.f32 %v4371_v32, %v4370_v16 }
 0x42b   : > { %v2852_v59 = vadd.f32 %v4372_v15, %v6391_v62 }
 0x42d   : > { %v4373_v17 = vpop.f32.mrb[116].mxu1  ;;  %v4431_v9 = vpop.f32.mrb[112].mxu0 }
 0x42e   : > { %v4374_v3 = vpop.f32.mrb[117].mxu1  ;;  %v4432_v43 = vpop.f32.mrb[113].mxu0 }
 0x42f   : > { %v4375_v11 = vadd.f32 %v4374_v3, %v4373_v17  ;;  %v4433_v46 = vadd.f32 %v4432_v43, %v4431_v9  ;;  %v4376_v58 = vpop.f32.mrb[118].mxu1  ;;  %v4434_v24 = vpop.f32.mrb[114].mxu0 }
 0x430   : > { %v4377_v42 = vpop.f32.mrb[119].mxu1  ;;  %v4435_v45 = vpop.f32.mrb[115].mxu0 }
 0x431   : > { %v2857_v7 = vadd.f32 %v4375_v11, %v6394_v8  ;;  %v6437_v14 = vadd.f32 %v4433_v46, %v2849_v20  ;;  %v4378_v40 = vadd.f32 %v4377_v42, %v4376_v58  ;;  %v4436_v38 = vadd.f32 %v4435_v45, %v4434_v24 }
 0x433   : > { %v2860_v51 = vadd.f32 %v4378_v40, %v6397_v5  ;;  %v6440_v44 = vadd.f32 %v4436_v38, %v2852_v59  ;;  %3008 = vadd.xlane.f32.xlu0 %v6437_v14  ;;  %v3040_v5 = vmul.f32 %v6437_v14, %v6437_v14 }
 0x435   : > { %v4379_v62 = vpop.f32.mrb[120].mxu1  ;;  %v4437_v25 = vpop.f32.mrb[116].mxu0  ;;  %3010 = vadd.xlane.f32.xlu1 %v6440_v44  ;;  %v3041_v29 = vmul.f32 %v6440_v44, %v6440_v44 }
 0x436   : > { %v4380_v23 = vpop.f32.mrb[121].mxu1  ;;  %v4438_v18 = vpop.f32.mrb[117].mxu0 }
 0x437   : > { %v4381_v8 = vadd.f32 %v4380_v23, %v4379_v62  ;;  %v4439_v19 = vadd.f32 %v4438_v18, %v4437_v25  ;;  %v4382_v57 = vpop.f32.mrb[122].mxu1  ;;  %v4440_v30 = vpop.f32.mrb[118].mxu0  ;;  %3058 = vadd.xlane.f32.xlu0 %v3041_v29 }
 0x438   : > { %v4383_v39 = vpop.f32.mrb[123].mxu1  ;;  %v4441_v27 = vpop.f32.mrb[119].mxu0 }
 0x439   : > { %v2865_v37 = vadd.f32 %v4381_v8, %v6400_v56  ;;  %v6449_v61 = vadd.f32 %v4439_v19, %v2857_v7  ;;  %v4384_v34 = vadd.f32 %v4383_v39, %v4382_v57  ;;  %v4442_v26 = vadd.f32 %v4441_v27, %v4440_v30  ;;  %3056 = vadd.xlane.f32.xlu1 %v3040_v5 }
 0x43b   : > { %6818 = vst [vmem:[#allocation12_spill] sm:$0xff] %v6449_v61  ;;  %v2868_v53 = vadd.f32 %v4384_v34, %v6403_v33  ;;  %v6452_v1 = vadd.f32 %v4442_v26, %v2860_v51  ;;  %3012 = vadd.xlane.f32.xlu0 %v6449_v61  ;;  %v3042_v48 = vmul.f32 %v6449_v61, %v6449_v61 }
 0x43d   : > { %6819 = vst [vmem:[#allocation13_spill] sm:$0xff] %v6452_v1  ;;  %v4385_v47 = vpop.f32.mrb[124].mxu1  ;;  %v4443_v35 = vpop.f32.mrb[120].mxu0  ;;  %3060 = vadd.xlane.f32.xlu1 %v3042_v48  ;;  %v3043_v15 = vmul.f32 %v6452_v1, %v6452_v1 }
 0x43e   : > { %v4386_v6 = vpop.f32.mrb[125].mxu1  ;;  %v4444_v4 = vpop.f32.mrb[121].mxu0 }
 0x43f   : > { %v4387_v56 = vadd.f32 %v4386_v6, %v4385_v47  ;;  %v4445_v63 = vadd.f32 %v4444_v4, %v4443_v35  ;;  %v4388_v16 = vpop.f32.mrb[126].mxu1  ;;  %v4446_v32 = vpop.f32.mrb[122].mxu0  ;;  %3014 = vadd.xlane.f32.xlu0 %v6452_v1 }
 0x440   : > { %v4389_v20 = vpop.f32.mrb[127].mxu1  ;;  %v4447_v33 = vpop.f32.mrb[123].mxu0 }
 0x441   : > { %v2873_v59 = vadd.f32 %v4387_v56, %v6406_v22  ;;  %v6461_v17 = vadd.f32 %v4445_v63, %v2865_v37  ;;  %v4390_v9 = vadd.f32 %v4389_v20, %v4388_v16  ;;  %v4448_v3 = vadd.f32 %v4447_v33, %v4446_v32 }
 0x443   : > { %6820 = vst [vmem:[#allocation14_spill] sm:$0xff] %v6461_v17  ;;  %v2876_v43 = vadd.f32 %v4390_v9, %v6409_v52  ;;  %v6464_v11 = vadd.f32 %v4448_v3, %v2868_v53  ;;  %3062 = vadd.xlane.f32.xlu0 %v3043_v15  ;;  %3016 = vadd.xlane.f32.xlu1 %v6461_v17 }
 0x444   : > { %v3044_v24 = vmul.f32 %v6461_v17, %v6461_v17 }
 0x445   : > { %6821 = vst [vmem:[#allocation15_spill] sm:$0xff] %v6464_v11  ;;  %v4391_v46 = vpop.f32.mrb[128].mxu1  ;;  %v4449_v58 = vpop.f32.mrb[124].mxu0  ;;  %v3045_v62 = vmul.f32 %v6464_v11, %v6464_v11 }
 0x446   : > { %v4392_v42 = vpop.f32.mrb[129].mxu1  ;;  %v4450_v45 = vpop.f32.mrb[125].mxu0 }
 0x447   : > { %v4393_v7 = vadd.f32 %v4392_v42, %v4391_v46  ;;  %v4451_v22 = vadd.f32 %v4450_v45, %v4449_v58  ;;  %v4394_v40 = vpop.f32.mrb[130].mxu1  ;;  %v4452_v38 = vpop.f32.mrb[126].mxu0  ;;  %3018 = vadd.xlane.f32.xlu0 %v6464_v11  ;;  %3064 = vadd.xlane.f32.xlu1 %v3044_v24 }
 0x448   : > { %v4395_v52 = vpop.f32.mrb[131].mxu1  ;;  %v4453_v51 = vpop.f32.mrb[127].mxu0 }
 0x449   : > { %v2881_v25 = vadd.f32 %v4393_v7, %v6412_v28  ;;  %v6473_v29 = vadd.f32 %v4451_v22, %v2873_v59  ;;  %v4396_v23 = vadd.f32 %v4395_v52, %v4394_v40  ;;  %v4454_v18 = vadd.f32 %v4453_v51, %v4452_v38 }
 0x44b   : > { %6822 = vst [vmem:[#allocation16_spill] sm:$0xff] %v6473_v29  ;;  %v2884_v8 = vadd.f32 %v4396_v23, %v6415_v54  ;;  %v6476_v19 = vadd.f32 %v4454_v18, %v2876_v43  ;;  %3066 = vadd.xlane.f32.xlu0 %v3045_v62  ;;  %3020 = vadd.xlane.f32.xlu1 %v6473_v29 }
 0x44c   : > { %v3046_v5 = vmul.f32 %v6473_v29, %v6473_v29 }
 0x44d   : > { %6823 = vst [vmem:[#allocation17_spill] sm:$0xff] %v6476_v19  ;;  %v4397_v57 = vpop.f32.mrb[132].mxu1  ;;  %v4455_v30 = vpop.f32.mrb[128].mxu0  ;;  %v3047_v48 = vmul.f32 %v6476_v19, %v6476_v19 }
 0x44e   : > { %v4398_v39 = vpop.f32.mrb[133].mxu1  ;;  %v4456_v27 = vpop.f32.mrb[129].mxu0 }
 0x44f   : > { %v4399_v37 = vadd.f32 %v4398_v39, %v4397_v57  ;;  %v4457_v28 = vadd.f32 %v4456_v27, %v4455_v30  ;;  %v4400_v34 = vpop.f32.mrb[134].mxu1  ;;  %v4458_v26 = vpop.f32.mrb[130].mxu0  ;;  %3022 = vadd.xlane.f32.xlu0 %v6476_v19  ;;  %3068 = vadd.xlane.f32.xlu1 %v3046_v5 }
 0x450   : > { %v4401_v54 = vpop.f32.mrb[135].mxu1  ;;  %v4459_v53 = vpop.f32.mrb[131].mxu0 }
 0x451   : > { %v2889_v47 = vadd.f32 %v4399_v37, %v6418_v55  ;;  %v6485_v35 = vadd.f32 %v4457_v28, %v2881_v25  ;;  %v4402_v6 = vadd.f32 %v4401_v54, %v4400_v34  ;;  %v4460_v4 = vadd.f32 %v4459_v53, %v4458_v26 }
 0x453   : > { %v2892_v56 = vadd.f32 %v4402_v6, %v6421_v41  ;;  %v6488_v63 = vadd.f32 %v4460_v4, %v2884_v8  ;;  %3070 = vadd.xlane.f32.xlu0 %v3047_v48  ;;  %3024 = vadd.xlane.f32.xlu1 %v6485_v35  ;;  %v3048_v20 = vmul.f32 %v6485_v35, %v6485_v35 }
 0x455   : > { %v4403_v16 = vpop.f32.mrb[136].mxu1  ;;  %v4461_v32 = vpop.f32.mrb[132].mxu0  ;;  %v3049_v46 = vmul.f32 %v6488_v63, %v6488_v63 }
 0x456   : > { %v4404_v33 = vpop.f32.mrb[137].mxu1  ;;  %v4462_v15 = vpop.f32.mrb[133].mxu0 }
 0x457   : > { %v4405_v59 = vadd.f32 %v4404_v33, %v4403_v16  ;;  %v4463_v55 = vadd.f32 %v4462_v15, %v4461_v32  ;;  %v4406_v9 = vpop.f32.mrb[138].mxu1  ;;  %v4464_v3 = vpop.f32.mrb[134].mxu0  ;;  %3026 = vadd.xlane.f32.xlu0 %v6488_v63  ;;  %3072 = vadd.xlane.f32.xlu1 %v3048_v20 }
 0x458   : > { %v4407_v41 = vpop.f32.mrb[139].mxu1  ;;  %v4465_v43 = vpop.f32.mrb[135].mxu0 }
 0x459   : > { %v2897_v58 = vadd.f32 %v4405_v59, %v6424_v36  ;;  %v6497_v24 = vadd.f32 %v4463_v55, %v2889_v47  ;;  %v4408_v42 = vadd.f32 %v4407_v41, %v4406_v9  ;;  %v4466_v45 = vadd.f32 %v4465_v43, %v4464_v3  ;;  %v4898_v55 = vld [vmem:[#allocation7] sm:$0xff]  ;;  %v3175_v3 = vld [vmem:[#allocation7 + $0x38] sm:$0xff] }
 0x45a   : > { %v4899_v41 = vld [vmem:[#allocation7 + $0x18] sm:$0xff] }
 0x45b   : > { %v2900_v7 = vadd.f32 %v4408_v42, %v6427_v60  ;;  %v6500_v22 = vadd.f32 %v4466_v45, %v2892_v56  ;;  %3074 = vadd.xlane.f32.xlu0 %v3049_v46  ;;  %3028 = vadd.xlane.f32.xlu1 %v6497_v24  ;;  %v3050_v52 = vmul.f32 %v6497_v24, %v6497_v24  ;;  %v6525_v56 = vpop.permute.xlu1 %3250  ;;  %v4900_v46 = vld [vmem:[#allocation7 + $0x20] sm:$0xff] }
 0x45c   : > { %6824 = vst [vmem:[#allocation18_spill] sm:$0xff] %v6525_v56 }
 0x45d   : > { %v4409_v40 = vpop.f32.mrb[140].mxu1  ;;  %v4467_v38 = vpop.f32.mrb[136].mxu0  ;;  %v3051_v57 = vmul.f32 %v6500_v22, %v6500_v22 }
 0x45e   : > { %v4410_v51 = vpop.f32.mrb[141].mxu1  ;;  %v4468_v62 = vpop.f32.mrb[137].mxu0 }
 0x45f   : > { %v4411_v25 = vadd.f32 %v4410_v51, %v4409_v40  ;;  %v4469_v36 = vadd.f32 %v4468_v62, %v4467_v38  ;;  %v4412_v23 = vpop.f32.mrb[142].mxu1  ;;  %v4470_v18 = vpop.f32.mrb[138].mxu0  ;;  %3030 = vadd.xlane.f32.xlu0 %v6500_v22  ;;  %3076 = vadd.xlane.f32.xlu1 %v3050_v52 }
 0x460   : > { %v4413_v60 = vpop.f32.mrb[143].mxu1  ;;  %v4471_v8 = vpop.f32.mrb[139].mxu0 }
 0x461   : > { %v2905_v30 = vadd.f32 %v4411_v25, %v6430_v2  ;;  %v6509_v5 = vadd.f32 %v4469_v36, %v2897_v58  ;;  %v4414_v39 = vadd.f32 %v4413_v60, %v4412_v23  ;;  %v4472_v27 = vadd.f32 %v4471_v8, %v4470_v18  ;;  %v6532_v20 = vpop.permute.xlu1 %3260  ;;  %v6555_v58 = vpop.permute.xlu0 %3255 }
 0x462   : > { %6825 = vst [vmem:[#allocation19_spill] sm:$0xff] %v6532_v20 }
 0x463   : > { %v2908_v37 = vadd.f32 %v4414_v39, %v6432_v13  ;;  %v6512_v28 = vadd.f32 %v4472_v27, %v2900_v7  ;;  %3078 = vadd.xlane.f32.xlu0 %v3051_v57  ;;  %3032 = vadd.xlane.f32.xlu1 %v6509_v5  ;;  %v3052_v26 = vmul.f32 %v6509_v5, %v6509_v5 }
 0x465   : > { %v4473_v34 = vpop.f32.mrb[140].mxu0  ;;  %v3053_v13 = vmul.f32 %v6512_v28, %v6512_v28  ;;  %v6534_v33 = vpop.permute.xlu1 %3265 }
 0x466   : > { %v4474_v54 = vpop.f32.mrb[141].mxu0  ;;  %6826 = vst [vmem:[#allocation20_spill] sm:$0xff] %v6534_v33  ;;  %v6559_v42 = vpop.permute.xlu0 %3305 }
 0x467   : > { %v4475_v53 = vadd.f32 %v4474_v54, %v4473_v34  ;;  %v4476_v48 = vpop.f32.mrb[142].mxu0  ;;  %3034 = vadd.xlane.f32.xlu0 %v6512_v28  ;;  %3080 = vadd.xlane.f32.xlu1 %v3052_v26 }
 0x468   : > { %v4477_v2 = vpop.f32.mrb[143].mxu0 }
 0x469   : > { %v6518_v47 = vadd.f32 %v4475_v53, %v2905_v30  ;;  %v4478_v6 = vadd.f32 %v4477_v2, %v4476_v48  ;;  %v6536_v15 = vpop.permute.xlu1 %3270 }
 0x46a   : > { %6827 = vst [vmem:[#allocation21_spill] sm:$0xff] %v6536_v15 }
 0x46b   : > { %v6522_v4 = vadd.f32 %v4478_v6, %v2908_v37  ;;  %3082 = vadd.xlane.f32.xlu0 %v3053_v13  ;;  %3036 = vadd.xlane.f32.xlu1 %v6518_v47  ;;  %v3054_v16 = vmul.f32 %v6518_v47, %v6518_v47 }
 0x46d   : > { %v3055_v32 = vmul.f32 %v6522_v4, %v6522_v4  ;;  %v6539_v59 = vpop.permute.xlu1 %3275 }
 0x46e   : > { %6828 = vst [vmem:[#allocation22_spill] sm:$0xff] %v6539_v59 }
 0x46f   : > { %3038 = vadd.xlane.f32.xlu0 %v6522_v4  ;;  %3084 = vadd.xlane.f32.xlu1 %v3054_v16 }
 0x471   : > { %v6543_v9 = vpop.permute.xlu1 %3280 }
 0x472   : > { %6829 = vst [vmem:[#allocation23_spill] sm:$0xff] %v6543_v9 }
 0x473   : > { %3086 = vadd.xlane.f32.xlu0 %v3055_v32 }
 0x475   : > { %v6546_v43 = vpop.permute.xlu1 %3290 }
 0x480   : > { %3405 = vperm.xlu1 %4598, %v6380_v31   ;;  %v4901_v31 = vld [vmem:[#allocation7 + $0x10] sm:$0xff] }
 0x484   : > { %3345 = vperm.xlu1 %4598, %v4898_v55  }
 0x488   : > { %3349 = vperm.xlu1 %4598, %v6372_v49   ;;  %v6550_v49 = vpop.permute.xlu1 %3295 }
 0x489   : > { %3401 = vperm.xlu0 %4599, %v6361_v0  }
 0x48c   : > { %3357 = vperm.xlu1 %4598, %v4899_v41   ;;  %v6553_v0 = vpop.permute.xlu1 %3300 }
 0x48d   : > { %4600 = vset.pattern.permute.xlu0 %v5094_v12 }
 0x48e   : > { %3285 = vperm.xlu0 %4600, %v3175_v3  }
 0x490   : > { %3361 = vperm.xlu1 %4598, %v4900_v46   ;;  %v6557_v12 = vpop.permute.xlu1 %3310 }
 0x492   : > { %4601 = vset.pattern.permute.xlu0 %v5095_v21  ;;  %v6563_v21 = vpop.permute.xlu0 %3315 }
 0x493   : > { %3353 = vperm.xlu0 %4601, %v4901_v31  }
 0x494   : > { %3369 = vperm.xlu1 %4598, %v6324_v50   ;;  %v6561_v45 = vpop.permute.xlu1 %3320 }
 0x496   : > { %v6567_v50 = vpop.permute.xlu0 %3325 }
 0x497   : > { %3365 = vperm.xlu0 %4601, %v6319_v10  }
 0x498   : > { %v6565_v7 = vpop.permute.xlu1 %3377 }
 0x49a   : > { %v6571_v10 = vpop.permute.xlu0 %3381 }
 0x49b   : > { %3373 = vperm.xlu0 %4601, %v3175_v3  }
 0x49c   : > { %v6569_v40 = vpop.permute.xlu1 %3385 }
 0x49e   : > { %v6575_v52 = vpop.permute.xlu0 %3393 }
 0x4a0   : > { %v6573_v38 = vpop.permute.xlu1 %3389 }
 0x4a4   : > { %v6577_v51 = vpop.permute.xlu1 %3397 }
 0x4c0   : > { %v3009_v62 = vpop.xlane.xlu0 %3008 }
 0x4c2   : > { %v3011_v25 = vpop.xlane.xlu1 %3010 }
 0x4c3   : > { %v6607_v59 = vmul.f32 0.0078125, %v3011_v25  ;;  %v6615_v25 = vmul.f32 0.0078125, %v3009_v62 }
 0x4c4   : > { %v3059_v36 = vpop.xlane.xlu0 %3058 }
 0x4c6   : > { %v3057_v23 = vpop.xlane.xlu1 %3056 }
 0x4c8   : > { %v3013_v18 = vpop.xlane.xlu0 %3012 }
 0x4c9   : > { %v6621_v1 = vmul.f32 0.0078125, %v3013_v18 }
 0x4ca   : > { %v6579_v60 = vpop.xlane.xlu1 %3060 }
 0x4cb   : > { %6830 = vst [vmem:[#allocation24_spill] sm:$0xff] %v6621_v1 }
 0x4cc   : > { %v6581_v8 = vpop.xlane.xlu0 %3014 }
 0x4d0   : > { %v6583_v57 = vpop.xlane.xlu1 %3016  ;;  %v6585_v30 = vpop.xlane.xlu0 %3062 }
 0x4d4   : > { %v6587_v39 = vpop.xlane.xlu1 %3064  ;;  %v6589_v27 = vpop.xlane.xlu0 %3018 }
 0x4d8   : > { %v6591_v37 = vpop.xlane.xlu1 %3020  ;;  %v6593_v34 = vpop.xlane.xlu0 %3066 }
 0x4dc   : > { %v6595_v26 = vpop.xlane.xlu1 %3068  ;;  %v6597_v54 = vpop.xlane.xlu0 %3022 }
 0x4e0   : > { %v3025_v53 = vpop.xlane.xlu1 %3024  ;;  %v6599_v48 = vpop.xlane.xlu0 %3070 }
 0x4e1   : > { %v3096_v2 = vmul.f32 0.0078125, %v3025_v53 }
 0x4e3   : > { %v3128_v16 = vmul.f32 %v3096_v2, %v3096_v2 }
 0x4e4   : > { %v3073_v6 = vpop.xlane.xlu1 %3072  ;;  %v3027_v13 = vpop.xlane.xlu0 %3026 }
 0x4e5   : > { %v3112_v32 = vmul.f32 0.0078125, %v3073_v6  ;;  %v6601_v55 = vmul.f32 0.0078125, %v3027_v13 }
 0x4e7   : > { %v3144_v3 = vsub.f32 %v3112_v32, %v3128_v16  ;;  %v3129_v9 = vmul.f32 %v6601_v55, %v6601_v55 }
 0x4e8   : > { %v3029_v41 = vpop.xlane.xlu1 %3028  ;;  %v3075_v46 = vpop.xlane.xlu0 %3074 }
 0x4e9   : > { %v3160_v31 = vmax.f32 %v3144_v3, 0.0  ;;  %v6605_v19 = vmul.f32 0.0078125, %v3029_v41  ;;  %v3113_v29 = vmul.f32 0.0078125, %v3075_v46  ;;  %v3121_v3 = vmul.f32 %v6607_v59, %v6607_v59 }
 0x4ea   : > { %v3105_v41 = vmul.f32 0.0078125, %v3059_v36 }
 0x4eb   : > { %v3208_v15 = vadd.f32 1e-05, %v3160_v31  ;;  %v3145_v53 = vsub.f32 %v3113_v29, %v3129_v9  ;;  %v3130_v11 = vmul.f32 %v6605_v19, %v6605_v19 }
 0x4ec   : > { %v3077_v6 = vpop.xlane.xlu1 %3076  ;;  %v3031_v13 = vpop.xlane.xlu0 %3030 }
 0x4ed   : > { %4834 = vrsqrt.f32 %v3208_v15  ;;  %v3161_v16 = vmax.f32 %v3145_v53, 0.0  ;;  %v3114_v32 = vmul.f32 0.0078125, %v3077_v6  ;;  %v6611_v17 = vmul.f32 0.0078125, %v3031_v13 }
 0x4ee   : > { %v3137_v6 = vsub.f32 %v3105_v41, %v3121_v3  ;;  %v3104_v13 = vmul.f32 0.0078125, %v3057_v23  ;;  %v3192_v23 = vsub.f32 %v6485_v35, %v3096_v2  ;;  %v3106_v41 = vmul.f32 0.0078125, %v6579_v60 }
 0x4ef   : > { %v3209_v20 = vadd.f32 1e-05, %v3161_v16  ;;  %v3146_v46 = vsub.f32 %v3114_v32, %v3130_v11  ;;  %v3131_v29 = vmul.f32 %v6611_v17, %v6611_v17  ;;  %v3120_v11 = vmul.f32 %v6615_v25, %v6615_v25 }
 0x4f0   : > { %v3033_v9 = vpop.xlane.xlu1 %3032  ;;  %v3079_v31 = vpop.xlane.xlu0 %3078  ;;  %v6638_v2 = vmul.f32 0.0078125, %v6581_v8  ;;  %v3193_v60 = vsub.f32 %v6488_v63, %v6601_v55  ;;  %v3194_v55 = vsub.f32 %v6497_v24, %v6605_v19 }
 0x4f1   : > { %4836 = vrsqrt.f32 %v3209_v20  ;;  %v3162_v33 = vmax.f32 %v3146_v46, 0.0  ;;  %v6619_v15 = vmul.f32 0.0078125, %v3033_v9  ;;  %v3115_v53 = vmul.f32 0.0078125, %v3079_v31 }
 0x4f2   : > { %v3153_v31 = vmax.f32 %v3137_v6, 0.0  ;;  %v3136_v3 = vsub.f32 %v3104_v13, %v3120_v11  ;;  %v3123_v63 = vmul.f32 %v6638_v2, %v6638_v2 }
 0x4f3   : > { %v3210_v61 = vadd.f32 1e-05, %v3162_v33  ;;  %v3147_v36 = vsub.f32 %v3115_v53, %v3131_v29  ;;  %v3132_v62 = vmul.f32 %v6619_v15, %v6619_v15  ;;  %v3122_v33 = vmul.f32 %v6621_v1, %v6621_v1 }
 0x4f4   : > { %v3081_v16 = vpop.xlane.xlu1 %3080  ;;  %v3035_v32 = vpop.xlane.xlu0 %3034  ;;  %v3201_v35 = vadd.f32 1e-05, %v3153_v31 }
 0x4f5   : > { %4838 = vrsqrt.f32 %v3210_v61  ;;  %v3163_v20 = vmax.f32 %v3147_v36, 0.0  ;;  %v3116_v46 = vmul.f32 0.0078125, %v3081_v16  ;;  %v6627_v9 = vmul.f32 0.0078125, %v3035_v32 }
 0x4f7   : > { %v4835_v18 = vpop.eup %4834  ;;  %v3211_v29 = vadd.f32 1e-05, %v3163_v20  ;;  %v3148_v53 = vsub.f32 %v3116_v46, %v3132_v62  ;;  %v3133_v61 = vmul.f32 %v6627_v9, %v6627_v9  ;;  %v3152_v20 = vmax.f32 %v3136_v3, 0.0 }
 0x4f8   : > { %v3240_v56 = vmul.f32 %v4835_v18, %v3192_v23  ;;  %v3037_v36 = vpop.xlane.xlu1 %3036  ;;  %v3083_v16 = vpop.xlane.xlu0 %3082  ;;  %v3138_v46 = vsub.f32 %v3106_v41, %v3122_v33 }
 0x4f9   : > { %4840 = vrsqrt.f32 %v3211_v29  ;;  %v3164_v32 = vmax.f32 %v3148_v53, 0.0  ;;  %v6635_v6 = vmul.f32 0.0078125, %v3037_v36  ;;  %v3117_v13 = vmul.f32 0.0078125, %v3083_v16 }
 0x4fa   : > { %v3336_v11 = vmul.f32 %v6546_v43, %v3240_v56  ;;  %v3107_v29 = vmul.f32 0.0078125, %v6585_v30  ;;  %v3200_v41 = vadd.f32 1e-05, %v3152_v20  ;;  %v3154_v24 = vmax.f32 %v3138_v46, 0.0 }
 0x4fb   : > { %v4837_v62 = vpop.eup %4836  ;;  %v3212_v23 = vadd.f32 1e-05, %v3164_v32  ;;  %v3149_v18 = vsub.f32 %v3117_v13, %v3133_v61  ;;  %v3134_v36 = vmul.f32 %v6635_v6, %v6635_v6 }
 0x4fc   : > { %v3241_v53 = vmul.f32 %v4837_v62, %v3193_v60  ;;  %v3085_v31 = vpop.xlane.xlu1 %3084  ;;  %v3039_v16 = vpop.xlane.xlu0 %3038  ;;  %v3416_v8 = vadd.f32 %v6565_v7, %v3336_v11  ;;  %v3139_v7 = vsub.f32 %v3107_v29, %v3123_v63  ;;  %v6661_v29 = vmul.f32 0.0078125, %v6583_v57 }
 0x4fd   : > { %4842 = vrsqrt.f32 %v3212_v23  ;;  %v3165_v56 = vmax.f32 %v3149_v18, 0.0  ;;  %v3118_v43 = vmul.f32 0.0078125, %v3085_v31  ;;  %v6647_v1 = vmul.f32 0.0078125, %v3039_v16 }
 0x4fe   : > { %v3337_v30 = vmul.f32 %v6550_v49, %v3241_v53  ;;  %v3849_v3 = vmul.f32 -1.442695, %v3416_v8  ;;  %4844 = vrsqrt.f32 %v3201_v35  ;;  %v3195_v35 = vsub.f32 %v6500_v22, %v6611_v17 }
 0x4ff   : > { %v4839_v33 = vpop.eup %4838  ;;  %v3213_v61 = vadd.f32 1e-05, %v3165_v56  ;;  %v3150_v32 = vsub.f32 %v3118_v43, %v3134_v36  ;;  %v3135_v23 = vmul.f32 %v6647_v1, %v6647_v1  ;;  %v6664_v53 = vmul.f32 0.0078125, %v6589_v27 }
 0x500   : > { %v3242_v13 = vmul.f32 %v4839_v33, %v3194_v55  ;;  %v3087_v11 = vpop.xlane.xlu0 %3086  ;;  %4846 = vpow2.f32 %v3849_v3  ;;  %v3417_v60 = vadd.f32 %v6571_v10, %v3337_v30  ;;  %v3155_v31 = vmax.f32 %v3139_v7, 0.0 }
 0x501   : > { %4848 = vrsqrt.f32 %v3213_v61  ;;  %v3166_v62 = vmax.f32 %v3150_v32, 0.0  ;;  %v3119_v19 = vmul.f32 0.0078125, %v3087_v11  ;;  %v3109_v8 = vmul.f32 0.0078125, %v6593_v34 }
 0x502   : > { %v3338_v49 = vmul.f32 %v6553_v0, %v3242_v13  ;;  %v3850_v20 = vmul.f32 -1.442695, %v3417_v60  ;;  %v3108_v0 = vmul.f32 0.0078125, %v6587_v39  ;;  %v3196_v22 = vsub.f32 %v6509_v5, %v6619_v15  ;;  %v3406_v13 = vpop.permute.xlu1 %3405 }
 0x503   : > { %v4841_v18 = vpop.eup %4840  ;;  %v3214_v10 = vadd.f32 1e-05, %v3166_v62  ;;  %v3151_v36 = vsub.f32 %v3119_v19, %v3135_v23  ;;  %v3202_v43 = vadd.f32 1e-05, %v3154_v24  ;;  %v3124_v63 = vmul.f32 %v6661_v29, %v6661_v29 }
 0x504   : > { %v3243_v16 = vmul.f32 %v4841_v18, %v3195_v35  ;;  %4850 = vpow2.f32 %v3850_v20  ;;  %v3418_v46 = vadd.f32 %v6569_v40, %v3338_v49  ;;  %v3125_v40 = vmul.f32 %v6664_v53, %v6664_v53 }
 0x505   : > { %4852 = vrsqrt.f32 %v3214_v10  ;;  %v3167_v17 = vmax.f32 %v3151_v36, 0.0  ;;  %v3203_v3 = vadd.f32 1e-05, %v3155_v31  ;;  %v3140_v33 = vsub.f32 %v3108_v0, %v3124_v63 }
 0x506   : > { %4854 = vrsqrt.f32 %v3200_v41  ;;  %v3339_v57 = vmul.f32 %v6559_v42, %v3243_v16  ;;  %v3851_v27 = vmul.f32 -1.442695, %v3418_v46  ;;  %v3141_v5 = vsub.f32 %v3109_v8, %v3125_v40  ;;  %v3346_v10 = vpop.permute.xlu1 %3345 }
 0x507   : > { %v4843_v56 = vpop.eup %4842  ;;  %v3215_v39 = vadd.f32 1e-05, %v3167_v17  ;;  %v3197_v41 = vsub.f32 %v6512_v28, %v6627_v9  ;;  %v6681_v7 = vmul.f32 0.0078125, %v6591_v37  ;;  %v3184_v11 = vsub.f32 %v6437_v14, %v6615_v25 }
 0x508   : > { %v3244_v55 = vmul.f32 %v4843_v56, %v3196_v22  ;;  %v3419_v34 = vadd.f32 %v6573_v38, %v3339_v57  ;;  %4856 = vpow2.f32 %v3851_v27  ;;  %v4845_v30 = vpop.eup %4844  ;;  %v3157_v23 = vmax.f32 %v3141_v5, 0.0  ;;  %v3402_v8 = vpop.permute.xlu0 %3401  ;;  %v6832_v5 = vld [vmem:[#allocation24_spill] sm:$0xff] }
 0x509   : > { %4858 = vrsqrt.f32 %v3215_v39  ;;  %v3110_v28 = vmul.f32 0.0078125, %v6595_v26  ;;  %v6688_v19 = vmul.f32 0.0078125, %v6597_v54  ;;  %v3198_v37 = vsub.f32 %v6518_v47, %v6635_v6 }
 0x50a   : > { %v4847_v42 = vpop.eup %4846  ;;  %v3340_v15 = vmul.f32 %v6557_v12, %v3244_v55  ;;  %v3852_v61 = vmul.f32 -1.442695, %v3419_v34  ;;  %4860 = vrsqrt.f32 %v3202_v43  ;;  %v3156_v12 = vmax.f32 %v3140_v33, 0.0  ;;  %v6831_v34 = vld [vmem:[#allocation18_spill] sm:$0xff] }
 0x50b   : > { %v4849_v32 = vpop.eup %4848  ;;  %v3448_v38 = vadd.f32 1.0, %v4847_v42  ;;  %v3185_v25 = vsub.f32 %v6440_v44, %v6607_v59  ;;  %v3111_v20 = vmul.f32 0.0078125, %v6599_v48  ;;  %v3205_v6 = vadd.f32 1e-05, %v3157_v23  ;;  %v6833_v42 = vld [vmem:[#allocation12_spill] sm:$0xff] }
 0x50c   : > { %v3245_v60 = vmul.f32 %v4849_v32, %v3197_v41  ;;  %4862 = vpow2.f32 %v3852_v61  ;;  %v3420_v62 = vadd.f32 %v6575_v52, %v3340_v15  ;;  %v3126_v52 = vmul.f32 %v6681_v7, %v6681_v7  ;;  %v6834_v41 = vld [vmem:[#allocation13_spill] sm:$0xff] }
 0x50d   : > { %4864 = vrsqrt.f32 %v3203_v3  ;;  %v3204_v47 = vadd.f32 1e-05, %v3156_v12  ;;  %v3127_v44 = vmul.f32 %v6688_v19, %v6688_v19  ;;  %v3199_v59 = vsub.f32 %v6522_v4, %v6647_v1  ;;  %v6711_v61 = vpop.permute.xlu0 %3285 }
 0x50e   : > { %v4851_v9 = vpop.eup %4850  ;;  %v3341_v24 = vmul.f32 %v6563_v21, %v3245_v60  ;;  %v3853_v49 = vmul.f32 -1.442695, %v3420_v62  ;;  %4866 = vrcp.f32 %v3448_v38  ;;  %v3142_v21 = vsub.f32 %v3110_v28, %v3126_v52 }
 0x50f   : > { %v4853_v14 = vpop.eup %4852  ;;  %v3449_v35 = vadd.f32 1.0, %v4851_v9  ;;  %v3233_v0 = vmul.f32 %v4845_v30, %v3185_v25  ;;  %v3143_v17 = vsub.f32 %v3111_v20, %v3127_v44  ;;  %v3186_v15 = vsub.f32 %v6833_v42, %v6832_v5 }
 0x510   : > { %v4855_v26 = vpop.eup %4854  ;;  %v3246_v54 = vmul.f32 %v4853_v14, %v3198_v37  ;;  %4868 = vpow2.f32 %v3853_v49  ;;  %v3421_v18 = vadd.f32 %v6577_v51, %v3341_v24  ;;  %v3158_v43 = vmax.f32 %v3142_v21, 0.0  ;;  %v6837_v21 = vld [vmem:[#allocation14_spill] sm:$0xff] }
 0x511   : > { %4870 = vrcp.f32 %v3449_v35  ;;  %v3232_v46 = vmul.f32 %v4855_v26, %v3184_v11  ;;  %v3329_v40 = vmul.f32 %v6555_v58, %v3233_v0  ;;  %v3159_v55 = vmax.f32 %v3143_v17, 0.0  ;;  %v6835_v26 = vld [vmem:[#allocation20_spill] sm:$0xff] }
 0x512   : > { %v4857_v36 = vpop.eup %4856  ;;  %v3342_v31 = vmul.f32 %v6561_v45, %v3246_v54  ;;  %v3854_v16 = vmul.f32 -1.442695, %v3421_v18  ;;  %v3350_v45 = vpop.permute.xlu1 %3349  ;;  %v3206_v38 = vadd.f32 1e-05, %v3158_v43  ;;  %v6836_v54 = vld [vmem:[#allocation19_spill] sm:$0xff] }
 0x513   : > { %v4859_v48 = vpop.eup %4858  ;;  %v3450_v51 = vadd.f32 1.0, %v4857_v36  ;;  %v3328_v30 = vmul.f32 %v6831_v34, %v3232_v46  ;;  %v3409_v11 = vadd.f32 %v3350_v45, %v3329_v40  ;;  %v3207_v28 = vadd.f32 1e-05, %v3159_v55  ;;  %v3354_v25 = vpop.permute.xlu0 %3353  ;;  %v6838_v36 = vld [vmem:[#allocation15_spill] sm:$0xff]  ;;  %v6841_v40 = vld [vmem:[#allocation16_spill] sm:$0xff] }
 0x514   : > { %v3247_v22 = vmul.f32 %v4859_v48, %v3199_v59  ;;  %v3422_v57 = vadd.f32 %v3402_v8, %v3342_v31  ;;  %4872 = vpow2.f32 %v3854_v16  ;;  %v4861_v27 = vpop.eup %4860  ;;  %v3189_v44 = vsub.f32 %v6838_v36, %v6664_v53  ;;  %v6840_v53 = vld [vmem:[#allocation22_spill] sm:$0xff] }
 0x515   : > { %4874 = vrsqrt.f32 %v3204_v47  ;;  %v3408_v58 = vadd.f32 %v3346_v10, %v3328_v30  ;;  %v3188_v10 = vsub.f32 %v6837_v21, %v6661_v29  ;;  %v6839_v29 = vld [vmem:[#allocation21_spill] sm:$0xff] }
 0x516   : > { %v4863_v56 = vpop.eup %4862  ;;  %4876 = vrsqrt.f32 %v3205_v6  ;;  %v3343_v63 = vmul.f32 %v6567_v50, %v3247_v22  ;;  %v3855_v1 = vmul.f32 -1.442695, %v3422_v57  ;;  %v3187_v50 = vsub.f32 %v6834_v41, %v6638_v2  ;;  %v3358_v14 = vpop.permute.xlu1 %3357 }
 0x517   : > { %v4865_v4 = vpop.eup %4864  ;;  %v3451_v39 = vadd.f32 1.0, %v4863_v56  ;;  %4878 = vrcp.f32 %v3450_v51 }
 0x518   : > { %4880 = vpow2.f32 %v3855_v1  ;;  %v3423_v3 = vadd.f32 %v3406_v13, %v3343_v63  ;;  %v4867_v33 = vpop.eup %4866  ;;  %v3235_v12 = vmul.f32 %v4865_v4, %v3187_v50  ;;  %v3234_v13 = vmul.f32 %v4861_v27, %v3186_v15  ;;  %v3366_v27 = vpop.permute.xlu0 %3365 }
 0x519   : > { %4882 = vrcp.f32 %v3451_v39  ;;  %v3472_v9 = vmul.f32 %v4867_v33, %v3408_v58  ;;  %v3190_v39 = vsub.f32 %v6841_v40, %v6681_v7  ;;  %v6843_v7 = vld [vmem:[#allocation23_spill] sm:$0xff] }
 0x51a   : > { %v4869_v32 = vpop.eup %4868  ;;  %v3856_v60 = vmul.f32 -1.442695, %v3423_v3  ;;  %v3331_v20 = vmul.f32 %v6835_v26, %v3235_v12  ;;  %v3330_v18 = vmul.f32 %v6836_v54, %v3234_v13  ;;  %v3362_v57 = vpop.permute.xlu1 %3361  ;;  %v6842_v3 = vld [vmem:[#allocation17_spill] sm:$0xff] }
 0x51b   : > { %v4871_v62 = vpop.eup %4870  ;;  %v3452_v23 = vadd.f32 1.0, %v4869_v32  ;;  %v3191_v33 = vsub.f32 %v6842_v3, %v6688_v19 }
 0x51c   : > { %v3473_v37 = vmul.f32 %v4871_v62, %v3409_v11  ;;  %4884 = vpow2.f32 %v3856_v60  ;;  %v3411_v59 = vadd.f32 %v3358_v14, %v3331_v20  ;;  %v3410_v31 = vadd.f32 %v3354_v25, %v3330_v18 }
 0x51d   : > { %4886 = vrsqrt.f32 %v3206_v38  ;;  %v3374_v38 = vpop.permute.xlu0 %3373 }
 0x51e   : > { %v4873_v24 = vpop.eup %4872  ;;  %v3883_v2 = vpack.c.bf16 %v3473_v37, %v3472_v9  ;;  %4888 = vrcp.f32 %v3452_v23  ;;  %v3370_v32 = vpop.permute.xlu1 %3369 }
 0x51f   : > { %v4875_v49 = vpop.eup %4874  ;;  %v3453_v52 = vadd.f32 1.0, %v4873_v24  ;;  %4890 = vrsqrt.f32 %v3207_v28 }
 0x520   : > { %v4877_v35 = vpop.eup %4876  ;;  %3884 = vst [vmem:[%s6714_s21] sm:$0xff] %v3883_v2   ;;  %v3236_v0 = vmul.f32 %v4875_v49, %v3188_v10 }
 0x521   : > { %v4879_v47 = vpop.eup %4878  ;;  %4892 = vrcp.f32 %v3453_v52  ;;  %v3237_v51 = vmul.f32 %v4877_v35, %v3189_v44 }
 0x522   : > { %v4881_v6 = vpop.eup %4880  ;;  %v3474_v8 = vmul.f32 %v4879_v47, %v3410_v31  ;;  %v3332_v63 = vmul.f32 %v6839_v29, %v3236_v0 }
 0x523   : > { %v4883_v16 = vpop.eup %4882  ;;  %v3454_v48 = vadd.f32 1.0, %v4881_v6  ;;  %v3333_v1 = vmul.f32 %v6840_v53, %v3237_v51 }
 0x524   : > { %v3475_v46 = vmul.f32 %v4883_v16, %v3411_v59  ;;  %v3412_v55 = vadd.f32 %v3362_v57, %v3332_v63 }
 0x525   : > { %4894 = vrcp.f32 %v3454_v48  ;;  %v3413_v34 = vadd.f32 %v3366_v27, %v3333_v1 }
 0x526   : > { %v4885_v17 = vpop.eup %4884  ;;  %v3888_v22 = vpack.c.bf16 %v3475_v46, %v3474_v8 }
 0x527   : > { %v3455_v56 = vadd.f32 1.0, %v4885_v17  ;;  %v4887_v43 = vpop.eup %4886 }
 0x528   : > { %3900 = vst [vmem:[%s6714_s21 + $0x8] sm:$0xff] %v3888_v22   ;;  %v4889_v4 = vpop.eup %4888  ;;  %v3238_v42 = vmul.f32 %v4887_v43, %v3190_v39 }
 0x529   : > { %4896 = vrcp.f32 %v3455_v56  ;;  %v4891_v45 = vpop.eup %4890  ;;  %v3476_v5 = vmul.f32 %v4889_v4, %v3412_v55 }
 0x52a   : > { %v3239_v41 = vmul.f32 %v4891_v45, %v3191_v33  ;;  %v3334_v11 = vmul.f32 %v6843_v7, %v3238_v42 }
 0x52b   : > { %v4893_v30 = vpop.eup %4892 }
 0x52c   : > { %v3477_v15 = vmul.f32 %v4893_v30, %v3413_v34  ;;  %v3335_v58 = vmul.f32 %v6711_v61, %v3239_v41  ;;  %v3414_v62 = vadd.f32 %v3370_v32, %v3334_v11 }
 0x52e   : > { %v3893_v50 = vpack.c.bf16 %v3477_v15, %v3476_v5  ;;  %v3415_v19 = vadd.f32 %v3374_v38, %v3335_v58 }
 0x52f   : > { %v4895_v60 = vpop.eup %4894 }
 0x530   : > { %3901 = vst [vmem:[%s6714_s21 + $0x10] sm:$0xff] %v3893_v50   ;;  %v3478_v23 = vmul.f32 %v4895_v60, %v3414_v62 }
 0x533   : > { %v4897_v12 = vpop.eup %4896 }
 0x534   : > { %v3479_v13 = vmul.f32 %v4897_v12, %v3415_v19 }
 0x536   : > { %v3898_v28 = vpack.c.bf16 %v3479_v13, %v3478_v23 }
 0x538   : > { %3902 = vst [vmem:[%s6714_s21 + $0x18] sm:$0xff] %v3898_v28  }
 0x539   : > { %5001 = shalt.err (!%p4998_p11)
}
 0x53a   : > { %s5002_s9 = scalar_lea.hbm %s6740_s4, 512  ;;  %s5006_s6 = scalar_lea.hbm %s6794_s3, 1024 }
 0x53b   : > { %p5003_p0 = scmp.ne.s32.totalorder %s6740_s4, %s5002_s9  ;;  %p5007_p6 = scmp.lt.u32.totalorder %s6740_s4, %s6794_s3 }
 0x53c   : > { %p5008_p7 = scmp.lt.u32.totalorder %s5006_s6, %s5002_s9  ;;  %p5010_p8 = scmp.lt.u32.totalorder %s5002_s9, %s6740_s4 }
 0x53d   : > { %p5004_p4 = pnand %p5003_p0, %p6844_p12 }
 0x53e   : > { %p5009_p2 = por %p5008_p7, %p5007_p6 }
 0x53f   : > { %p5005_p13 = pneg %p5004_p4 }
 0x540   : > { %p5011_p1 = por %p5010_p8, %p5009_p2 }
 0x542   : > { %p5012_p10 = pnand %p5011_p1, %p5005_p13 }
 0x544   : > { %5015 = shalt.err (!%p5012_p10)
}
 0x545   : > { %s5097_s18 = smov 64  }
 0x546   : > { %4505 = dma.vmem_to_hbm [thread:$0]  (%p6844_p12), %s6735_s11, 512, %s6740_s4, %s3521_s20, %s5097_s18, %s5097_s18, %s5085_s24  }
 0x547 PF: > { %s3551_s27 = sand.u32 1, %s5054_s12   ;;  %p6845_p3 = scmp.ne.s32.totalorder %s6809_s23, 0 }
 0x548   : > { %p6846_p5 = scmp.ge.s32.totalorder %s5074_s17, 2  ;;  %s3552_s29 = scalar_lea.sflag [#allocation4], %s3551_s27 }
 0x54a   : > { %p4519_p9 = pnand %p6846_p5, %p6845_p3 }
 0x54c   : > { %5049 = dma.done.wait (!%p4519_p9), %s3552_s29, 512  }
 0x54d   : > { %5051 = vsyncadd (!%p4519_p9), %s3552_s29, 4294966784  ;;  %s20_s17 = sadd.s32 1, %s5074_s17   ;;  %s6847_s12 = smov %s5058_s13 }
 0x54e   : > { %p17_p11 = scmp.ge.s32.totalorder %s20_s17, 4   ;;  %s6848_s13 = smov %s5062_s14 }
 0x54f   : > { %s6849_s14 = smov %s5260_s5  ;;  %s6850_s15 = smov %s5070_s16 }
 0x550   : > { %s6851_s16 = smov %s6853_s19  ;;  %19 = sbr.rel (!%p17_p11) target bundleno = 7 (0x7), region = 87 }
 0x557   :  { %3557 = vsyncpa [#allocation3], 1 }
 0x558   :  { %3559 = vsyncpa [#allocation3 + $0x1], 1 }
 0x559   :  { %3560 = vsyncpa [#allocation6], 1 }
 0x55a   :  { %3561 = vsyncpa [#allocation4], 1 }
 0x55b   :  { %3563 = vsyncpa [#allocation4 + $0x1], 1 }

// kernel: generator_forward.8
= control target key start
LH: loop header
LB: loop body
LE: loop exit
PB: predicated region body
PF: predicated region fallthrough
CT: control target
= control target key end

     0   :  { %s3976_s0 = inlined_call_operand.hbm [shape: bf16[2,64,128], index: 0, kind: input, shape index: {}]   ;;  %s3977_s1 = inlined_call_operand.hbm [shape: bf16[128,576], index: 1, kind: input, shape index: {}]   ;;  %s3978_s2 = inlined_call_operand.hbm [shape: f32[128,2], index: 2, kind: input, shape index: {}]   ;;  %s3979_s3 = inlined_call_operand.hbm [shape: bf16[64,64], index: 3, kind: input, shape index: {}]   ;;  %s3980_s4 = inlined_call_operand.hbm [shape: f32[64,2], index: 4, kind: input, shape index: {}]   ;;  %s3981_s5 = inlined_call_operand.hbm [shape: bf16[2,64,128], index: 5, kind: output, shape index: {}]  }
   0x1   :  { %3991 = sst [smem:[#allocation20_spill]] %s3977_s1 }
   0x2   :  { %10 = vsyncpa [#allocation3], 0 }
   0x3   :  { %12 = vsyncpa [#allocation3 + $0x1], 0 }
   0x4   :  { %13 = vsyncpa [#allocation6], 0 }
   0x5   :  { %14 = vsyncpa [#allocation9], 0 }
   0x6   :  { %15 = vsyncpa [#allocation4], 0 }
   0x7   :  { %17 = vsyncpa [#allocation4 + $0x1], 0  ;;  %s3056_s18 = smov 0   ;;  %s3058_s19 = smov 0  }
   0x8   :  { %s3060_s20 = smov 0   ;;  %s3062_s21 = smov 0  }
   0x9   :  { %s3064_s22 = smov 0   ;;  %s3066_s23 = smov 0  }
   0xa LB: > { %s2155_s24 = sadd.s32 4294967295, %s3000_s23   ;;  %s2156_s25 = sadd.s32 4294967294, %s3000_s23   ;;  %s3000_s23 = sphi %s3066_s23, %s23_s23   ;;  %s2996_s22 = sphi %s3064_s22, %s4024_s22   ;;  %s2992_s21 = sphi %s3062_s21, %s4023_s21   ;;  %s2988_s20 = sphi %s3060_s20, %s4022_s20   ;;  %s2984_s19 = sphi %s3058_s19, %s4021_s19   ;;  %s2980_s18 = sphi %s3056_s18, %s4020_s18  }
   0xb   : > { %p55_p0 = scmp.ne.s32.totalorder %s2984_s19, %s2980_s18  ;;  %p3090_p1 = scmp.eq.s32.totalorder %s2155_s24, 0 }
   0xc   : > { %p3094_p2 = scmp.eq.s32.totalorder %s2155_s24, 1  ;;  %p191_p3 = scmp.eq.s32.totalorder %s2156_s25, 1 }
   0xd   : > { %s3992_s26 = scalar_select %p3090_p1, 1, 0 }
   0xe   : > { %s3993_s27 = scalar_select %p3094_p2, 1, 0 }
   0xf   : > { %p3100_p4 = por %p3090_p1, %p55_p0  ;;  %p2157_p5 = scmp.ge.s32.totalorder %s3000_s23, 1 }
  0x10   : > { %p3105_p6 = por %p191_p3, %p55_p0  ;;  %p198_p7 = scmp.lt.s32.totalorder %s3000_s23, 3 }
  0x11   : > { %s3994_s28 = scalar_select %p3100_p4, 1, 0 }
  0x12   : > { %s3995_s29 = scalar_select %p3105_p6, 1, 0 }
  0x13   : > { %p3110_p8 = pnand %p2157_p5, %p198_p7  ;;  %s3002_s6 = smov [#allocation5]  }
  0x14   : > { %3996 = sst [smem:[#allocation16_spill]] %s3995_s29  ;;  %s214_s7 = sshll.u32 %s3002_s6, 4  ;;  %s3114_s7 = int_to_ptr.vmem [resolvable:$true] %s214_s7 }
  0x15   : > { %s3997_s30 = scalar_select %p3110_p8, 1, 0 }
  0x16   : > { %p2503_p9 = pneg %p3110_p8  ;;  %s3003_s9 = smov [#allocation8]  }
  0x17   : > { %s246_s10 = sshll.u32 %s3003_s9, 4  ;;  %s3999_s1 = sld [smem:[#allocation20_spill]]  ;;  %s3125_s10 = int_to_ptr.vmem [resolvable:$true] %s246_s10 }
  0x18   : > { %p3121_p11 = pnand %p2503_p9, %p3090_p1 }
  0x1a   : > { %p3135_p13 = pneg %p3121_p11 }
  0x1d   : > { %s2768_s13 = scalar_lea.hbm %s3999_s1, 5120 }
  0x1e   : > { %p2769_p12 = scmp.ne.s32.totalorder %s3999_s1, %s2768_s13  ;;  %p2775_p5 = scmp.lt.u32.totalorder %s2768_s13, %s3999_s1 }
  0x20   : > { %p2771_p0 = pnand %p3135_p13, %p2769_p12 }
  0x22   : > { %p2772_p3 = pneg %p2771_p0 }
  0x24   : > { %p2777_p7 = pnand %p2775_p5, %p2772_p3 }
  0x26   : > { %2780 = shalt.err (!%p2777_p7)
}
  0x27   : > { %s2781_s25 = scalar_lea.vmem %s3114_s7, 5120  ;;  %p2789_p1 = scmp.lt.s32.totalorder %s3114_s7, %s3114_s7 }
  0x28   : > { %p2782_p9 = scmp.ne.s32.totalorder %s3114_s7, %s2781_s25  ;;  %p2790_p4 = scmp.lt.s32.totalorder %s2781_s25, %s2781_s25 }
  0x2a   : > { %p2784_p10 = pnand %p2782_p9, %p3135_p13  ;;  %p2791_p12 = por %p2790_p4, %p2789_p1 }
  0x2c   : > { %p2785_p6 = pneg %p2784_p10 }
  0x2e   : > { %p2792_p0 = pnand %p2791_p12, %p2785_p6 }
  0x30   : > { %2795 = shalt.err (!%p2792_p0)
}
  0x31   : > { %s3004_s6 = smov 320   ;;  %s3005_s9 = smov 20  }
  0x32   : > { %2506 = dma.hbm_to_vmem [thread:$0]  (!%p3121_p11), %s3999_s1, 5120, %s3114_s7, [#allocation6], %s3004_s6, %s3004_s6, %s3005_s9  }
  0x33   : > { %s2796_s15 = scalar_lea.hbm %s3979_s3, 512 }
  0x34   : > { %p2797_p1 = scmp.ne.s32.totalorder %s3979_s3, %s2796_s15  ;;  %p2803_p10 = scmp.lt.u32.totalorder %s2796_s15, %s3979_s3 }
  0x36   : > { %p2799_p4 = pnand %p2797_p1, %p3135_p13 }
  0x38   : > { %p2800_p6 = pneg %p2799_p4 }
  0x3a   : > { %p2805_p3 = pnand %p2803_p10, %p2800_p6 }
  0x3c   : > { %2808 = shalt.err (!%p2805_p3)
}
  0x3d   : > { %s2809_s7 = scalar_lea.vmem %s3125_s10, 512  ;;  %p2817_p12 = scmp.lt.s32.totalorder %s3125_s10, %s3125_s10 }
  0x3e   : > { %p2810_p5 = scmp.ne.s32.totalorder %s3125_s10, %s2809_s7  ;;  %p2818_p0 = scmp.lt.s32.totalorder %s2809_s7, %s2809_s7 }
  0x40   : > { %p2812_p7 = pnand %p2810_p5, %p3135_p13  ;;  %p2819_p1 = por %p2818_p0, %p2817_p12 }
  0x42   : > { %p2813_p9 = pneg %p2812_p7 }
  0x44   : > { %p2820_p4 = pnand %p2819_p1, %p2813_p9 }
  0x46   : > { %2823 = shalt.err (!%p2820_p4)
}
  0x47   : > { %s3987_s6 = smov 64   ;;  %s3988_s29 = smov 4  }
  0x48   : > { %2512 = dma.hbm_to_vmem [thread:$0]  (!%p3121_p11), %s3979_s3, 512, %s3125_s10, [#allocation9], %s3987_s6, %s3987_s6, %s3988_s29  }
  0x49   : > { %s3008_s12 = smov [#allocation7]   ;;  %s2824_s17 = scalar_lea.hbm %s3978_s2, 2048 }
  0x4a   : > { %s230_s13 = sshll.u32 %s3008_s12, 4  ;;  %p2825_p6 = scmp.ne.s32.totalorder %s3978_s2, %s2824_s17  ;;  %s231_s13 = int_to_ptr.vmem [resolvable:$true] %s230_s13 }
  0x4b   : > { %p2831_p5 = scmp.lt.u32.totalorder %s2824_s17, %s3978_s2 }
  0x4c   : > { %p2827_p10 = pnand %p2825_p6, %p3135_p13 }
  0x4e   : > { %p2828_p3 = pneg %p2827_p10 }
  0x50   : > { %p2833_p7 = pnand %p2831_p5, %p2828_p3 }
  0x52   : > { %2836 = shalt.err (!%p2833_p7)
}
  0x53   : > { %s2837_s10 = scalar_lea.vmem %s231_s13, 2048  ;;  %p2845_p1 = scmp.lt.s32.totalorder %s231_s13, %s231_s13 }
  0x54   : > { %p2838_p9 = scmp.ne.s32.totalorder %s231_s13, %s2837_s10  ;;  %p2846_p4 = scmp.lt.s32.totalorder %s2837_s10, %s2837_s10 }
  0x56   : > { %p2840_p12 = pnand %p2838_p9, %p3135_p13  ;;  %p2847_p8 = por %p2846_p4, %p2845_p1 }
  0x58   : > { %p2841_p0 = pneg %p2840_p12 }
  0x5a   : > { %p2848_p2 = pnand %p2847_p8, %p2841_p0 }
  0x5c   : > { %2851 = shalt.err (!%p2848_p2)
}
  0x5d   : > { %s3009_s9 = smov 128   ;;  %s3010_s11 = smov 8  }
  0x5e   : > { %2509 = dma.hbm_to_vmem [thread:$0]  (!%p3121_p11), %s3978_s2, 2048, %s231_s13, [#allocation6], %s3009_s9, %s3009_s9, %s3010_s11  }
  0x5f   : > { %s3011_s14 = smov [#allocation10]   ;;  %s2852_s25 = scalar_lea.hbm %s3980_s4, 1024 }
  0x60   : > { %s262_s15 = sshll.u32 %s3011_s14, 4  ;;  %p2853_p2 = scmp.ne.s32.totalorder %s3980_s4, %s2852_s25  ;;  %s263_s15 = int_to_ptr.vmem [resolvable:$true] %s262_s15 }
  0x61   : > { %p2859_p10 = scmp.lt.u32.totalorder %s2852_s25, %s3980_s4 }
  0x62   : > { %p2855_p8 = pnand %p2853_p2, %p3135_p13 }
  0x64   : > { %p2856_p6 = pneg %p2855_p8 }
  0x66   : > { %p2861_p3 = pnand %p2859_p10, %p2856_p6 }
  0x68   : > { %2864 = shalt.err (!%p2861_p3)
}
  0x69   : > { %s2865_s13 = scalar_lea.vmem %s263_s15, 1024  ;;  %p2873_p12 = scmp.lt.s32.totalorder %s263_s15, %s263_s15 }
  0x6a   : > { %p2866_p5 = scmp.ne.s32.totalorder %s263_s15, %s2865_s13  ;;  %p2874_p0 = scmp.lt.s32.totalorder %s2865_s13, %s2865_s13 }
  0x6c   : > { %p2868_p7 = pnand %p2866_p5, %p3135_p13  ;;  %p2875_p1 = por %p2874_p0, %p2873_p12 }
  0x6e   : > { %p2869_p9 = pneg %p2868_p7 }
  0x70   : > { %p2876_p4 = pnand %p2875_p1, %p2869_p9 }
  0x72   : > { %2879 = shalt.err (!%p2876_p4)
}
  0x73   : > { %2515 = dma.hbm_to_vmem [thread:$0]  (!%p3121_p11), %s3980_s4, 1024, %s263_s15, [#allocation9], %s3009_s9, %s3009_s9, %s3010_s11  }
  0x74   : > { %s35_s16 = sadd.s32 1, %s2996_s22  ;;  %s42_s6 = sadd.s32 1, %s2988_s20 }
  0x75   : > { %p37_p13 = scmp.ge.s32.totalorder %s35_s16, 2  ;;  %p49_p2 = scmp.ne.s32.totalorder %s2988_s20, %s2984_s19 }
  0x76   : > { %p50_p8 = scmp.eq.s32.totalorder %s3000_s23, 0  ;;  %p2528_p6 = scmp.lt.s32.totalorder %s3000_s23, 2 }
  0x77   : > { %s4026_s16 = smov (%p37_p13, %s35_s16), 0  ;;  %p4001_p3 = scmp.ne.s32.totalorder %s3993_s27, 0 }
  0x78   : > { %p51_p10 = por %p50_p8, %p49_p2  ;;  %s39_s29 = ssub.s32 %s2996_s22, %s4026_s16 }
  0x79   : > { %p3228_p5 = por %p4001_p3, %p49_p2  ;;  %s276_s14 = sand.u32 1, %s2988_s20  }
  0x7a   : > { %p40_p7 = scmp.eq.s32.totalorder %s39_s29, 0  ;;  %s2163_s9 = sshll.u32 %s276_s14, 5 }
  0x7b   : > { %s2262_s11 = sshll.u32 %s2996_s22, 9  ;;  %s280_s27 = scalar_lea.vmem [#allocation2], %s2163_s9 }
  0x7c   : > { %s3237_s15 = scalar_select %p40_p7, %s2988_s20, %s42_s6  }
  0x7d   : > { %s3242_s25 = scalar_lea.hbm %s3976_s0, %s2262_s11  ;;  %s287_s7 = sshll.u32 %s280_s27, 4  ;;  %s3250_s7 = int_to_ptr.vmem [resolvable:$true] %s287_s7 }
  0x7e   : > { %p3246_p11 = pnand %p2528_p6, %p51_p10  ;;  %s3252_s13 = scalar_lea.sflag [#allocation3], %s276_s14 }
  0x7f   : > { %s2880_s1 = scalar_lea.hbm %s3242_s25, 512  ;;  %s2885_s29 = scalar_lea.hbm %s3976_s0, 1024 }
  0x80   : > { %p2881_p9 = scmp.ne.s32.totalorder %s3242_s25, %s2880_s1  ;;  %p2882_p12 = pneg %p3246_p11 }
  0x81   : > { %p2886_p4 = scmp.lt.u32.totalorder %s3242_s25, %s3976_s0  ;;  %p2887_p13 = scmp.lt.u32.totalorder %s2885_s29, %s2880_s1 }
  0x82   : > { %p2883_p0 = pnand %p2882_p12, %p2881_p9  ;;  %p2889_p8 = scmp.lt.u32.totalorder %s2880_s1, %s3242_s25 }
  0x83   : > { %p2888_p2 = por %p2887_p13, %p2886_p4 }
  0x84   : > { %p2884_p1 = pneg %p2883_p0 }
  0x85   : > { %p2890_p6 = por %p2889_p8, %p2888_p2 }
  0x87   : > { %p2891_p10 = pnand %p2890_p6, %p2884_p1 }
  0x89   : > { %2894 = shalt.err (!%p2891_p10)
}
  0x8a   : > { %s2895_s14 = scalar_lea.vmem %s3250_s7, 512  ;;  %s3012_s17 = smov [#allocation2]  }
  0x8b   : > { %p2896_p3 = scmp.ne.s32.totalorder %s3250_s7, %s2895_s14  ;;  %s2900_s24 = sshll.u32 %s3012_s17, 4  ;;  %s2901_s24 = int_to_ptr.vmem [resolvable:$false] %s2900_s24 }
  0x8c   : > { %s2902_s27 = scalar_lea.vmem %s2901_s24, 1024  ;;  %p2903_p0 = scmp.lt.s32.totalorder %s3250_s7, %s2901_s24 }
  0x8d   : > { %p2898_p7 = pnand %p2896_p3, %p2882_p12  ;;  %p2904_p4 = scmp.lt.s32.totalorder %s2902_s27, %s2895_s14 }
  0x8f   : > { %p2899_p9 = pneg %p2898_p7  ;;  %p2905_p13 = por %p2904_p4, %p2903_p0 }
  0x91   : > { %p2906_p2 = pnand %p2905_p13, %p2899_p9 }
  0x93   : > { %2909 = shalt.err (!%p2906_p2)
}
  0x94   : > { %s4004_s1 = smov 4   ;;  %s4005_s12 = smov 64  }
  0x95   : > { %2519 = dma.hbm_to_vmem [thread:$0]  (!%p3246_p11), %s3242_s25, 512, %s3250_s7, %s3252_s13, %s4005_s12, %s4005_s12, %s4004_s1  }
  0x96   : > { %p4006_p12 = scmp.ne.s32.totalorder %s3997_s30, 0 }
  0x98   : > { %299 = sbr.rel (%p4006_p12) target bundleno = 1439 (0x59f), region = 40 }
  0x9f   : > { %s3286_s6 = sand.u32 1, %s2984_s19   ;;  %p4007_p1 = scmp.ne.s32.totalorder %s3994_s28, 0 }
  0xa0   : > { %s2167_s29 = sshll.u32 %s3286_s6, 5  ;;  %s302_s9 = scalar_lea.sflag [#allocation3], %s3286_s6 }
  0xa1   : > { %s305_s10 = scalar_lea.vmem [#allocation2], %s2167_s29 }
  0xa2   : > { %2963 = dma.done.wait (%p4007_p1), %s302_s9, 512  }
  0xa3   : > { %2965 = vsyncadd (%p4007_p1), %s302_s9, 4294966784  ;;  %p4008_p11 = scmp.ne.s32.totalorder %s3992_s26, 0 }
  0xa5   : > { %2967 = dma.done.wait (%p4008_p11), [#allocation6], 7168  }
  0xa6   : > { %2969 = vsyncadd (%p4008_p11), [#allocation6], 4294960128 }
  0xa7   : > { %2971 = dma.done.wait (%p4008_p11), [#allocation9], 1536  }
  0xa8   : > { %2973 = vsyncadd (%p4008_p11), [#allocation9], 4294965760  ;;  %v2624_v0 = vld [vmem:[%s305_s10] sm:$0xff]   ;;  %v2625_v1 = vld [vmem:[%s305_s10 + $0x8] sm:$0xff]   ;;  %s3013_s30 = smov 4   ;;  %vm390_vm0 = vcmask 31744  }
  0xa9   : > { %382 = vrot.lane.b32.xlu0 %v2624_v0, %s3013_s30  ;;  %v2626_v2 = vld [vmem:[%s305_s10 + $0x10] sm:$0xff]   ;;  %v2627_v3 = vld [vmem:[%s305_s10 + $0x18] sm:$0xff]   ;;  %s3014_s26 = smov 126   ;;  %s3015_s28 = smov 125   ;;  %v2648_v17 = vld [vmem:[#allocation5 + $0xc] ss:$20 sps:$4 sm:$0xff]  }
  0xaa   : > { %386 = vrot.lane.b32.xlu1 %v2626_v2, %s3013_s30  ;;  %s3016_s25 = smov 127   ;;  %v2630_v16 = vld [vmem:[#allocation5 + $0x4] ss:$20 sps:$4 sm:$0xff]   ;;  %s3017_s7 = smov 122   ;;  %1018 = vmatprep.mubr.bf16.mxu1 %v2648_v17  ;;  %vm457_vm1 = vcmask 1031168   ;;  %vm3408_vm2 = vmneg %vm390_vm0  ;;  %vm482_vm3 = vcmask 1022976  }
  0xab   : > { %921 = vmatprep.mubr.bf16.mxu0 %v2630_v16  ;;  %s3018_s13 = smov 124   ;;  %s3019_s11 = smov 121   ;;  %vm432_vm4 = vcmask 1039360   ;;  %v1348_v52 = vld [vmem:[#allocation7 + $0x40] sm:$0xff]  ;;  %v3022_v53 = vmov 0   ;;  %vm557_vm5 = vcmask 998400  }
  0xac   : > { %s3020_s14 = smov 123   ;;  %s3021_s17 = smov 120   ;;  %2604 = vset.pattern.permute.xlu1 %v3022_v53  ;;  %2605 = vset.pattern.permute.xlu0 %v3022_v53  ;;  %v2628_v57 = vld [vmem:[#allocation5] ss:$20 sps:$4 sm:$0xff]   ;;  %v3023_v59 = vmov 1   ;;  %vm507_vm6 = vcmask 1014784  }
  0xad   : > { %384 = vrot.lane.b32.xlu0 %v2625_v1, %s3013_s30  ;;  %v2631_v58 = vld [vmem:[#allocation5 + $0x2c] ss:$20 sps:$4 sm:$0xff]   ;;  %v2633_v2 = vld [vmem:[#allocation5 + $0x28] ss:$20 sps:$4 sm:$0xff]   ;;  %vm582_vm7 = vcmask 990208   ;;  %vm532_vm8 = vcmask 1006592  }
  0xae   : > { %388 = vrot.lane.b32.xlu1 %v2627_v3, %s3013_s30  ;;  %v2634_v3 = vld [vmem:[#allocation5 + $0x54] ss:$20 sps:$4 sm:$0xff]   ;;  %vm864_vm9 = vcmask 523264   ;;  %vm607_vm10 = vcmask 982016   ;;  %s3901_s24 = scalar_lea.vmem [#allocation11], %s2167_s29  ;;  %s2271_s1 = sshll.u32 %s2992_s21, 9 }
  0xaf   : > { %s2025_s27 = sshll.u32 %s3901_s24, 4  ;;  %s3925_s9 = scalar_lea.hbm %s3981_s5, %s2271_s1  ;;  %s3920_s27 = int_to_ptr.vmem [resolvable:$true] %s2025_s27 }
  0xb0   : > { %s2010_s10 = scalar_lea.sflag [#allocation4], %s3286_s6  ;;  %s3024_s21 = smov [#allocation11]  }
 0x11b   : > { %v3308_v4 = vpop.permute.xlu0 %382 }
 0x11c   : > { %v3312_v5 = vsel %vm390_vm0, 0, %v3308_v4  ;;  %v3316_v6 = vsel %vm390_vm0, %v3308_v4, 0  ;;  %v3320_v7 = vpop.permute.xlu1 %386 }
 0x11d   : > { %443 = vrot.lane.b32.xlu1 %v3316_v6, %s3014_s26  ;;  %441 = vrot.lane.b32.xlu0 %v3312_v5, %s3014_s26  ;;  %v3336_v11 = vsel %vm390_vm0, 0, %v3320_v7  ;;  %v3340_v12 = vsel %vm390_vm0, %v3320_v7, 0 }
 0x11f   : > { %v3322_v8 = vpop.permute.xlu0 %384 }
 0x120   : > { %v3326_v9 = vsel %vm390_vm0, 0, %v3322_v8  ;;  %v3330_v10 = vsel %vm390_vm0, %v3322_v8, 0  ;;  %v3342_v13 = vpop.permute.xlu1 %388 }
 0x121   : > { %447 = vrot.lane.b32.xlu1 %v3330_v10, %s3014_s26  ;;  %445 = vrot.lane.b32.xlu0 %v3326_v9, %s3014_s26  ;;  %v3348_v14 = vsel %vm390_vm0, 0, %v3342_v13  ;;  %v3352_v15 = vsel %vm390_vm0, %v3342_v13, 0 }
 0x125   : > { %451 = vrot.lane.b32.xlu1 %v3340_v12, %s3014_s26  ;;  %449 = vrot.lane.b32.xlu0 %v3336_v11, %s3014_s26 }
 0x129   : > { %455 = vrot.lane.b32.xlu1 %v3352_v15, %s3014_s26  ;;  %453 = vrot.lane.b32.xlu0 %v3348_v14, %s3014_s26  ;;  %s2910_s26 = scalar_lea.vmem %s3920_s27, 512 }
 0x12a   : > { %p2911_p8 = scmp.ne.s32.totalorder %s3920_s27, %s2910_s26 }
 0x12c   : > { %p2912_p6 = pnand %p2911_p8, %p3228_p5 }
 0x12d   : > { %468 = vrot.lane.b32.xlu1 %v3316_v6, %s3015_s28  ;;  %466 = vrot.lane.b32.xlu0 %v3312_v5, %s3015_s28 }
 0x12e   : > { %p2913_p10 = pneg %p2912_p6 }
 0x131   : > { %418 = vrot.lane.b32.xlu1 %v3316_v6, %s3016_s25  ;;  %416 = vrot.lane.b32.xlu0 %v3312_v5, %s3016_s25 }
 0x135   : > { %472 = vrot.lane.b32.xlu1 %v3330_v10, %s3015_s28  ;;  %470 = vrot.lane.b32.xlu0 %v3326_v9, %s3015_s28 }
 0x139   : > { %422 = vrot.lane.b32.xlu1 %v3330_v10, %s3016_s25  ;;  %420 = vrot.lane.b32.xlu0 %v3326_v9, %s3016_s25 }
 0x13d   : > { %476 = vrot.lane.b32.xlu1 %v3340_v12, %s3015_s28  ;;  %474 = vrot.lane.b32.xlu0 %v3336_v11, %s3015_s28 }
 0x141   : > { %426 = vrot.lane.b32.xlu1 %v3340_v12, %s3016_s25  ;;  %424 = vrot.lane.b32.xlu0 %v3336_v11, %s3016_s25 }
 0x145   : > { %480 = vrot.lane.b32.xlu1 %v3352_v15, %s3015_s28  ;;  %478 = vrot.lane.b32.xlu0 %v3348_v14, %s3015_s28  ;;  %s2914_s28 = sshll.u32 %s3024_s21, 4  ;;  %s2915_s28 = int_to_ptr.vmem [resolvable:$false] %s2914_s28 }
 0x146   : > { %p2917_p3 = scmp.lt.s32.totalorder %s3920_s27, %s2915_s28 }
 0x149   : > { %430 = vrot.lane.b32.xlu1 %v3352_v15, %s3016_s25  ;;  %428 = vrot.lane.b32.xlu0 %v3348_v14, %s3016_s25  ;;  %s2916_s25 = scalar_lea.vmem %s2915_s28, 1024 }
 0x14a   : > { %p2918_p7 = scmp.lt.s32.totalorder %s2916_s25, %s2910_s26 }
 0x14c   : > { %p2919_p9 = por %p2918_p7, %p2917_p3 }
 0x14d   : > { %543 = vrot.lane.b32.xlu1 %v3316_v6, %s3017_s7  ;;  %541 = vrot.lane.b32.xlu0 %v3312_v5, %s3017_s7 }
 0x14e   : > { %p2920_p0 = pnand %p2919_p9, %p2913_p10 }
 0x151   : > { %493 = vrot.lane.b32.xlu1 %v3316_v6, %s3018_s13  ;;  %491 = vrot.lane.b32.xlu0 %v3312_v5, %s3018_s13 }
 0x155   : > { %547 = vrot.lane.b32.xlu1 %v3330_v10, %s3017_s7  ;;  %545 = vrot.lane.b32.xlu0 %v3326_v9, %s3017_s7 }
 0x159   : > { %497 = vrot.lane.b32.xlu1 %v3330_v10, %s3018_s13  ;;  %495 = vrot.lane.b32.xlu0 %v3326_v9, %s3018_s13 }
 0x15d   : > { %551 = vrot.lane.b32.xlu1 %v3340_v12, %s3017_s7  ;;  %549 = vrot.lane.b32.xlu0 %v3336_v11, %s3017_s7 }
 0x161   : > { %501 = vrot.lane.b32.xlu1 %v3340_v12, %s3018_s13  ;;  %499 = vrot.lane.b32.xlu0 %v3336_v11, %s3018_s13 }
 0x165   : > { %555 = vrot.lane.b32.xlu1 %v3352_v15, %s3017_s7  ;;  %553 = vrot.lane.b32.xlu0 %v3348_v14, %s3017_s7 }
 0x169   : > { %505 = vrot.lane.b32.xlu1 %v3352_v15, %s3018_s13  ;;  %503 = vrot.lane.b32.xlu0 %v3348_v14, %s3018_s13 }
 0x16d   : > { %568 = vrot.lane.b32.xlu1 %v3316_v6, %s3019_s11  ;;  %566 = vrot.lane.b32.xlu0 %v3312_v5, %s3019_s11 }
 0x171   : > { %518 = vrot.lane.b32.xlu1 %v3316_v6, %s3020_s14  ;;  %516 = vrot.lane.b32.xlu0 %v3312_v5, %s3020_s14 }
 0x175   : > { %572 = vrot.lane.b32.xlu1 %v3330_v10, %s3019_s11  ;;  %570 = vrot.lane.b32.xlu0 %v3326_v9, %s3019_s11 }
 0x179   : > { %522 = vrot.lane.b32.xlu1 %v3330_v10, %s3020_s14  ;;  %520 = vrot.lane.b32.xlu0 %v3326_v9, %s3020_s14 }
 0x17d   : > { %576 = vrot.lane.b32.xlu1 %v3340_v12, %s3019_s11  ;;  %574 = vrot.lane.b32.xlu0 %v3336_v11, %s3019_s11 }
 0x181   : > { %526 = vrot.lane.b32.xlu1 %v3340_v12, %s3020_s14  ;;  %524 = vrot.lane.b32.xlu0 %v3336_v11, %s3020_s14 }
 0x185   : > { %580 = vrot.lane.b32.xlu1 %v3352_v15, %s3019_s11  ;;  %578 = vrot.lane.b32.xlu0 %v3348_v14, %s3019_s11 }
 0x189   : > { %530 = vrot.lane.b32.xlu1 %v3352_v15, %s3020_s14  ;;  %528 = vrot.lane.b32.xlu0 %v3348_v14, %s3020_s14 }
 0x18d   : > { %593 = vrot.lane.b32.xlu1 %v3316_v6, %s3021_s17  ;;  %591 = vrot.lane.b32.xlu0 %v3312_v5, %s3021_s17 }
 0x18f   : > { %v444_v18 = vpop.permute.xlu1 %443  ;;  %v442_v19 = vpop.permute.xlu0 %441 }
 0x190   : > { %v458_v20 = vsel %vm457_vm1, %v442_v19, %v444_v18  ;;  %v2639_v18 = vld [vmem:[#allocation5 + $0x78] ss:$20 sps:$4 sm:$0xff]  }
 0x191   : > { %597 = vrot.lane.b32.xlu1 %v3330_v10, %s3021_s17  ;;  %595 = vrot.lane.b32.xlu0 %v3326_v9, %s3021_s17  ;;  %v2636_v10 = vld [vmem:[#allocation5 + $0x50] ss:$20 sps:$4 sm:$0xff]  }
 0x192   : > { %2295 = vmatprep.subr.bf16.mxu0 %v458_v20  ;;  %v2640_v19 = vld [vmem:[#allocation5 + $0xa4] ss:$20 sps:$4 sm:$0xff]  }
 0x193   : > { %2296 = vmatpush3.bf16.msk.msra.mxu0 %vm3408_vm2, %v3308_v4  ;;  %v448_v22 = vpop.permute.xlu1 %447  ;;  %v446_v23 = vpop.permute.xlu0 %445 }
 0x194   : > { %v459_v24 = vsel %vm457_vm1, %v446_v23, %v448_v22 }
 0x195   : > { %601 = vrot.lane.b32.xlu1 %v3340_v12, %s3021_s17  ;;  %599 = vrot.lane.b32.xlu0 %v3336_v11, %s3021_s17  ;;  %v2637_v11 = vld [vmem:[#allocation5 + $0x7c] ss:$20 sps:$4 sm:$0xff]  }
 0x196   : > { %2297 = vmatprep.subr.bf16.mxu0 %v459_v24 }
 0x197   : > { %2298 = vmatpush3.bf16.msk.msra.mxu0 %vm3408_vm2, %v3322_v8  ;;  %v452_v25 = vpop.permute.xlu1 %451  ;;  %v450_v26 = vpop.permute.xlu0 %449 }
 0x198   : > { %v460_v27 = vsel %vm457_vm1, %v450_v26, %v452_v25  ;;  %v2642_v26 = vld [vmem:[#allocation5 + $0xa0] ss:$20 sps:$4 sm:$0xff]  }
 0x199   : > { %605 = vrot.lane.b32.xlu1 %v3352_v15, %s3021_s17  ;;  %603 = vrot.lane.b32.xlu0 %v3348_v14, %s3021_s17 }
 0x19a   : > { %2299 = vmatprep.subr.bf16.mxu0 %v460_v27  ;;  %v2643_v27 = vld [vmem:[#allocation5 + $0xcc] ss:$20 sps:$4 sm:$0xff]  }
 0x19b   : > { %2300 = vmatpush3.bf16.msk.msra.mxu0 %vm3408_vm2, %v3320_v7  ;;  %v456_v28 = vpop.permute.xlu1 %455  ;;  %v454_v29 = vpop.permute.xlu0 %453 }
 0x19c   : > { %v461_v30 = vsel %vm457_vm1, %v454_v29, %v456_v28 }
 0x19d   : > { %2301 = vmatprep.subr.bf16.mxu0 %v461_v30  ;;  %1462 = vperm.xlu1 %2604, %v1348_v52  }
 0x19f   : > { %2302 = vmatpush3.bf16.msk.msra.mxu0 %vm3408_vm2, %v3342_v13  ;;  %v469_v31 = vpop.permute.xlu1 %468  ;;  %v467_v32 = vpop.permute.xlu0 %466 }
 0x1a0   : > { %v483_v33 = vsel %vm482_vm3, %v467_v32, %v469_v31 }
 0x1a1   : > { %2303 = vmatprep.subr.bf16.mxu0 %v483_v33  ;;  %2606 = vset.pattern.permute.xlu1 %v3023_v59 }
 0x1a2   : > { %1549 = vperm.xlu1 %2606, %v1348_v52  }
 0x1a3   : > { %v419_v34 = vpop.permute.xlu1 %418  ;;  %v417_v35 = vpop.permute.xlu0 %416 }
 0x1a4   : > { %v433_v36 = vsel %vm432_vm4, %v417_v35, %v419_v34  ;;  %v2645_v34 = vld [vmem:[#allocation5 + $0xc8] ss:$20 sps:$4 sm:$0xff]  }
 0x1a5   : > { %2304 = vmatpush3.bf16.msra.mxu0 %v433_v36  ;;  %v2649_v35 = vld [vmem:[#allocation5 + $0xf4] ss:$20 sps:$4 sm:$0xff]  }
 0x1a7   : > { %v473_v37 = vpop.permute.xlu1 %472  ;;  %v471_v38 = vpop.permute.xlu0 %470 }
 0x1a8   : > { %v484_v39 = vsel %vm482_vm3, %v471_v38, %v473_v37 }
 0x1a9   : > { %2305 = vmatprep.subr.bf16.mxu0 %v484_v39 }
 0x1ab   : > { %v423_v40 = vpop.permute.xlu1 %422  ;;  %v421_v41 = vpop.permute.xlu0 %420 }
 0x1ac   : > { %v434_v42 = vsel %vm432_vm4, %v421_v41, %v423_v40 }
 0x1ad   : > { %2306 = vmatpush3.bf16.msra.mxu0 %v434_v42  ;;  %v2651_v42 = vld [vmem:[#allocation5 + $0xf0] ss:$20 sps:$4 sm:$0xff]  }
 0x1af   : > { %v477_v43 = vpop.permute.xlu1 %476  ;;  %v475_v44 = vpop.permute.xlu0 %474 }
 0x1b0   : > { %v485_v45 = vsel %vm482_vm3, %v475_v44, %v477_v43  ;;  %v2654_v43 = vld [vmem:[#allocation5 + $0x11c] ss:$20 sps:$4 sm:$0xff]  }
 0x1b1   : > { %2307 = vmatprep.subr.bf16.mxu0 %v485_v45 }
 0x1b3   : > { %v427_v46 = vpop.permute.xlu1 %426  ;;  %v425_v47 = vpop.permute.xlu0 %424 }
 0x1b4   : > { %v435_v48 = vsel %vm432_vm4, %v425_v47, %v427_v46 }
 0x1b5   : > { %2308 = vmatpush3.bf16.msra.mxu0 %v435_v48 }
 0x1b7   : > { %v481_v49 = vpop.permute.xlu1 %480  ;;  %v479_v50 = vpop.permute.xlu0 %478 }
 0x1b8   : > { %v486_v51 = vsel %vm482_vm3, %v479_v50, %v481_v49  ;;  %v2657_v50 = vld [vmem:[#allocation5 + $0x118] ss:$20 sps:$4 sm:$0xff]  }
 0x1b9   : > { %2309 = vmatprep.subr.bf16.mxu0 %v486_v51  ;;  %v2661_v51 = vld [vmem:[#allocation5 + $0x10] ss:$20 sps:$4 sm:$0xff]  }
 0x1bb   : > { %v431_v54 = vpop.permute.xlu1 %430  ;;  %v429_v55 = vpop.permute.xlu0 %428 }
 0x1bc   : > { %v436_v56 = vsel %vm432_vm4, %v429_v55, %v431_v54 }
 0x1bd   : > { %2310 = vmatpush3.bf16.msra.mxu0 %v436_v56 }
 0x1bf   : > { %v544_v60 = vpop.permute.xlu1 %543  ;;  %v542_v61 = vpop.permute.xlu0 %541 }
 0x1c0   : > { %v558_v62 = vsel %vm557_vm5, %v542_v61, %v544_v60  ;;  %922 = vmatmul.mubr.bf16.vlgmr.msra.gmra.mrb[0].mxu0 %v2628_v57  ;;  %v2646_v60 = vld [vmem:[#allocation5 + $0x8] ss:$20 sps:$4 sm:$0xff]  }
 0x1c1   : > { %2359 = vmatprep.subr.bf16.mxu1 %v558_v62  ;;  %929 = vmatprep.mubr.bf16.mxu0 %v2631_v58  ;;  %v2652_v61 = vld [vmem:[#allocation5 + $0x34] ss:$20 sps:$4 sm:$0xff]  }
 0x1c3   : > { %v494_v63 = vpop.permute.xlu1 %493  ;;  %v492_v0 = vpop.permute.xlu0 %491 }
 0x1c4   : > { %v508_v1 = vsel %vm507_vm6, %v492_v0, %v494_v63 }
 0x1c5   : > { %2360 = vmatpush3.bf16.msra.mxu1 %v508_v1 }
 0x1c7   : > { %v548_v4 = vpop.permute.xlu1 %547  ;;  %v546_v5 = vpop.permute.xlu0 %545 }
 0x1c8   : > { %v559_v6 = vsel %vm557_vm5, %v546_v5, %v548_v4  ;;  %930 = vmatmul.mubr.bf16.gmra.mrb[4].mxu0 %v2633_v2  ;;  %v2656_v4 = vld [vmem:[#allocation5 + $0x30] ss:$20 sps:$4 sm:$0xff]  }
 0x1c9   : > { %2361 = vmatprep.subr.bf16.mxu1 %v559_v6  ;;  %937 = vmatprep.mubr.bf16.mxu0 %v2634_v3  ;;  %v2658_v5 = vld [vmem:[#allocation5 + $0x5c] ss:$20 sps:$4 sm:$0xff]  }
 0x1cb   : > { %v498_v7 = vpop.permute.xlu1 %497  ;;  %v496_v8 = vpop.permute.xlu0 %495 }
 0x1cc   : > { %v509_v9 = vsel %vm507_vm6, %v496_v8, %v498_v7 }
 0x1cd   : > { %2362 = vmatpush3.bf16.msra.mxu1 %v509_v9 }
 0x1cf   : > { %v552_v12 = vpop.permute.xlu1 %551  ;;  %v550_v13 = vpop.permute.xlu0 %549 }
 0x1d0   : > { %v560_v14 = vsel %vm557_vm5, %v550_v13, %v552_v12  ;;  %938 = vmatmul.mubr.bf16.gmra.mrb[8].mxu0 %v2636_v10  ;;  %v2660_v12 = vld [vmem:[#allocation5 + $0x58] ss:$20 sps:$4 sm:$0xff]  }
 0x1d1   : > { %2363 = vmatprep.subr.bf16.mxu1 %v560_v14  ;;  %945 = vmatprep.mubr.bf16.mxu0 %v2637_v11  ;;  %v2662_v13 = vld [vmem:[#allocation5 + $0x38] ss:$20 sps:$4 sm:$0xff]  }
 0x1d2   : > { %v2663_v14 = vld [vmem:[#allocation5 + $0x84] ss:$20 sps:$4 sm:$0xff]  }
 0x1d3   : > { %v502_v15 = vpop.permute.xlu1 %501  ;;  %v500_v16 = vpop.permute.xlu0 %499 }
 0x1d4   : > { %v510_v17 = vsel %vm507_vm6, %v500_v16, %v502_v15  ;;  %v2666_v15 = vld [vmem:[#allocation5 + $0x60] ss:$20 sps:$4 sm:$0xff]   ;;  %v1349_v16 = vld [vmem:[#allocation7 + $0x48] sm:$0xff] }
 0x1d5   : > { %2364 = vmatpush3.bf16.msra.mxu1 %v510_v17  ;;  %v2665_v17 = vld [vmem:[#allocation5 + $0x80] ss:$20 sps:$4 sm:$0xff]   ;;  %1553 = vperm.xlu1 %2606, %v1349_v16  }
 0x1d6   : > { %1467 = vperm.xlu0 %2605, %v1349_v16  }
 0x1d7   : > { %v556_v20 = vpop.permute.xlu1 %555  ;;  %v554_v21 = vpop.permute.xlu0 %553 }
 0x1d8   : > { %v561_v22 = vsel %vm557_vm5, %v554_v21, %v556_v20  ;;  %946 = vmatmul.mubr.bf16.gmra.mrb[12].mxu0 %v2639_v18  ;;  %v2667_v18 = vld [vmem:[#allocation5 + $0x88] ss:$20 sps:$4 sm:$0xff]   ;;  %v2671_v20 = vld [vmem:[#allocation5 + $0xb0] ss:$20 sps:$4 sm:$0xff]  }
 0x1d9   : > { %2365 = vmatprep.subr.bf16.mxu1 %v561_v22  ;;  %953 = vmatprep.mubr.bf16.mxu0 %v2640_v19  ;;  %v2668_v19 = vld [vmem:[#allocation5 + $0xac] ss:$20 sps:$4 sm:$0xff]   ;;  %v1350_v21 = vld [vmem:[#allocation7 + $0x50] sm:$0xff]  ;;  %v1351_v22 = vld [vmem:[#allocation7 + $0x58] sm:$0xff] }
 0x1da   : > { %1557 = vperm.xlu1 %2606, %v1350_v21   ;;  %1472 = vperm.xlu0 %2605, %v1350_v21  }
 0x1db   : > { %v506_v23 = vpop.permute.xlu1 %505  ;;  %v504_v24 = vpop.permute.xlu0 %503 }
 0x1dc   : > { %v511_v25 = vsel %vm507_vm6, %v504_v24, %v506_v23  ;;  %v2670_v23 = vld [vmem:[#allocation5 + $0xa8] ss:$20 sps:$4 sm:$0xff]   ;;  %v2672_v24 = vld [vmem:[#allocation5 + $0xd8] ss:$20 sps:$4 sm:$0xff]  }
 0x1dd   : > { %2366 = vmatpush3.bf16.msra.mxu1 %v511_v25  ;;  %v2673_v25 = vld [vmem:[#allocation5 + $0xd4] ss:$20 sps:$4 sm:$0xff]  }
 0x1de   : > { %1561 = vperm.xlu1 %2606, %v1351_v22   ;;  %1477 = vperm.xlu0 %2605, %v1351_v22  }
 0x1df   : > { %v569_v28 = vpop.permute.xlu1 %568  ;;  %v567_v29 = vpop.permute.xlu0 %566 }
 0x1e0   : > { %v583_v30 = vsel %vm582_vm7, %v567_v29, %v569_v28  ;;  %954 = vmatmul.mubr.bf16.gmra.mrb[16].mxu0 %v2642_v26  ;;  %v2679_v26 = vld [vmem:[#allocation5 + $0x100] ss:$20 sps:$4 sm:$0xff]   ;;  %v1353_v28 = vld [vmem:[#allocation7 + $0x68] sm:$0xff]  ;;  %v2675_v29 = vld [vmem:[#allocation5 + $0xd0] ss:$20 sps:$4 sm:$0xff]  }
 0x1e1   : > { %2367 = vmatprep.subr.bf16.mxu1 %v583_v30  ;;  %961 = vmatprep.mubr.bf16.mxu0 %v2643_v27  ;;  %v1352_v27 = vld [vmem:[#allocation7 + $0x60] sm:$0xff]  ;;  %v2676_v30 = vld [vmem:[#allocation5 + $0xfc] ss:$20 sps:$4 sm:$0xff]  }
 0x1e2   : > { %1565 = vperm.xlu1 %2606, %v1352_v27   ;;  %1482 = vperm.xlu0 %2605, %v1352_v27  }
 0x1e3   : > { %v519_v31 = vpop.permute.xlu1 %518  ;;  %v517_v32 = vpop.permute.xlu0 %516 }
 0x1e4   : > { %v533_v33 = vsel %vm532_vm8, %v517_v32, %v519_v31  ;;  %v2680_v31 = vld [vmem:[#allocation5 + $0x128] ss:$20 sps:$4 sm:$0xff]   ;;  %v2678_v32 = vld [vmem:[#allocation5 + $0xf8] ss:$20 sps:$4 sm:$0xff]  }
 0x1e5   : > { %2368 = vmatpush3.bf16.msra.mxu1 %v533_v33  ;;  %v2681_v33 = vld [vmem:[#allocation5 + $0x124] ss:$20 sps:$4 sm:$0xff]  }
 0x1e6   : > { %1569 = vperm.xlu1 %2606, %v1353_v28   ;;  %1487 = vperm.xlu0 %2605, %v1353_v28  }
 0x1e7   : > { %v573_v36 = vpop.permute.xlu1 %572  ;;  %v571_v37 = vpop.permute.xlu0 %570 }
 0x1e8   : > { %v584_v38 = vsel %vm582_vm7, %v571_v37, %v573_v36  ;;  %962 = vmatmul.mubr.bf16.gmra.mrb[20].mxu0 %v2645_v34  ;;  %v3473_v34 = vld [vmem:[#allocation7 + $0x70] sm:$0xff] }
 0x1e9   : > { %2369 = vmatprep.subr.bf16.mxu1 %v584_v38  ;;  %969 = vmatprep.mubr.bf16.mxu0 %v2649_v35  ;;  %v2683_v35 = vld [vmem:[#allocation5 + $0x120] ss:$20 sps:$4 sm:$0xff]  }
 0x1ea   : > { %2607 = vset.pattern.permute.xlu1 %v3022_v53 }
 0x1eb   : > { %v523_v39 = vpop.permute.xlu1 %522  ;;  %v521_v40 = vpop.permute.xlu0 %520  ;;  %1492 = vperm.xlu1 %2607, %v3473_v34  }
 0x1ec   : > { %v534_v41 = vsel %vm532_vm8, %v521_v40, %v523_v39 }
 0x1ed   : > { %2370 = vmatpush3.bf16.msra.mxu1 %v534_v41 }
 0x1ef   : > { %v577_v44 = vpop.permute.xlu1 %576  ;;  %v575_v45 = vpop.permute.xlu0 %574  ;;  %2608 = vset.pattern.permute.xlu1 %v3023_v59 }
 0x1f0   : > { %v585_v46 = vsel %vm582_vm7, %v575_v45, %v577_v44  ;;  %970 = vmatmul.mubr.bf16.gmra.mrb[24].mxu0 %v2651_v42 }
 0x1f1   : > { %2371 = vmatprep.subr.bf16.mxu1 %v585_v46  ;;  %977 = vmatprep.mubr.bf16.mxu0 %v2654_v43 }
 0x1f3   : > { %v527_v47 = vpop.permute.xlu1 %526  ;;  %v525_v48 = vpop.permute.xlu0 %524 }
 0x1f4   : > { %v535_v49 = vsel %vm532_vm8, %v525_v48, %v527_v47 }
 0x1f5   : > { %2372 = vmatpush3.bf16.msra.mxu1 %v535_v49 }
 0x1f7   : > { %v581_v52 = vpop.permute.xlu1 %580  ;;  %v579_v54 = vpop.permute.xlu0 %578 }
 0x1f8   : > { %v586_v55 = vsel %vm582_vm7, %v579_v54, %v581_v52  ;;  %978 = vmatmul.mubr.bf16.gmra.mrb[28].mxu0 %v2657_v50 }
 0x1f9   : > { %2373 = vmatprep.subr.bf16.mxu1 %v586_v55  ;;  %2451 = vmatprep.mubr.msk.bf16.mxu0 %vm864_vm9, %v2661_v51 }
 0x1fb   : > { %v531_v56 = vpop.permute.xlu1 %530  ;;  %v529_v57 = vpop.permute.xlu0 %528 }
 0x1fc   : > { %v536_v58 = vsel %vm532_vm8, %v529_v57, %v531_v56 }
 0x1fd   : > { %2374 = vmatpush3.bf16.msra.mxu1 %v536_v58 }
 0x1ff   : > { %v594_v62 = vpop.permute.xlu1 %593  ;;  %v592_v63 = vpop.permute.xlu0 %591 }
 0x200   : > { %1019 = vmatmul.mubr.bf16.vlgmr.msra.gmra.mrb[0].mxu1 %v2646_v60  ;;  %v608_v0 = vsel %vm607_vm10, %v592_v63, %v594_v62 }
 0x201   : > { %2443 = vmatprep.subr.bf16.mxu0 %v608_v0  ;;  %1026 = vmatprep.mubr.bf16.mxu1 %v2652_v61 }
 0x202   : > { %2444 = vmatpush3.bf16.msra.mxu0 %v608_v0 }
 0x203   : > { %v598_v1 = vpop.permute.xlu1 %597  ;;  %v596_v2 = vpop.permute.xlu0 %595 }
 0x204   : > { %v609_v3 = vsel %vm607_vm10, %v596_v2, %v598_v1 }
 0x205   : > { %2445 = vmatprep.subr.bf16.mxu0 %v609_v3 }
 0x206   : > { %2446 = vmatpush3.bf16.msra.mxu0 %v609_v3 }
 0x207   : > { %v602_v6 = vpop.permute.xlu1 %601  ;;  %v600_v7 = vpop.permute.xlu0 %599 }
 0x208   : > { %1027 = vmatmul.mubr.bf16.gmra.mrb[4].mxu1 %v2656_v4  ;;  %v610_v8 = vsel %vm607_vm10, %v600_v7, %v602_v6 }
 0x209   : > { %2447 = vmatprep.subr.bf16.mxu0 %v610_v8  ;;  %1034 = vmatprep.mubr.bf16.mxu1 %v2658_v5 }
 0x20a   : > { %2448 = vmatpush3.bf16.msra.mxu0 %v610_v8 }
 0x20b   : > { %v606_v9 = vpop.permute.xlu1 %605  ;;  %v604_v10 = vpop.permute.xlu0 %603 }
 0x20c   : > { %v611_v11 = vsel %vm607_vm10, %v604_v10, %v606_v9 }
 0x20d   : > { %2449 = vmatprep.subr.bf16.mxu0 %v611_v11 }
 0x20e   : > { %2450 = vmatpush3.bf16.msra.mxu0 %v611_v11 }
 0x210   : > { %1035 = vmatmul.mubr.bf16.gmra.mrb[8].mxu1 %v2660_v12 }
 0x211   : > { %2452 = vmatmul.mubr.msk.bf16.vlgmr.msra.gmra.mrb[32].mxu0 %vm864_vm9, %v2662_v13  ;;  %1042 = vmatprep.mubr.bf16.mxu1 %v2663_v14 }
 0x212   : > { %2455 = vmatprep.mubr.msk.bf16.mxu0 %vm864_vm9, %v2666_v15 }
 0x218   : > { %1043 = vmatmul.mubr.bf16.gmra.mrb[12].mxu1 %v2665_v17 }
 0x219   : > { %2456 = vmatmul.mubr.msk.bf16.gmra.mrb[36].mxu0 %vm864_vm9, %v2667_v18  ;;  %1050 = vmatprep.mubr.bf16.mxu1 %v2668_v19 }
 0x21a   : > { %2459 = vmatprep.mubr.msk.bf16.mxu0 %vm864_vm9, %v2671_v20 }
 0x220   : > { %1051 = vmatmul.mubr.bf16.gmra.mrb[16].mxu1 %v2670_v23 }
 0x221   : > { %2460 = vmatmul.mubr.msk.bf16.gmra.mrb[40].mxu0 %vm864_vm9, %v2672_v24  ;;  %1058 = vmatprep.mubr.bf16.mxu1 %v2673_v25 }
 0x222   : > { %2463 = vmatprep.mubr.msk.bf16.mxu0 %vm864_vm9, %v2679_v26 }
 0x228   : > { %1059 = vmatmul.mubr.bf16.gmra.mrb[20].mxu1 %v2675_v29 }
 0x229   : > { %1066 = vmatprep.mubr.bf16.mxu1 %v2676_v30  ;;  %2464 = vmatmul.mubr.msk.bf16.gmra.mrb[44].mxu0 %vm864_vm9, %v2680_v31 }
 0x230   : > { %1067 = vmatmul.mubr.bf16.gmra.mrb[24].mxu1 %v2678_v32 }
 0x231   : > { %1074 = vmatprep.mubr.bf16.mxu1 %v2681_v33 }
 0x238   : > { %1075 = vmatmul.mubr.bf16.gmra.mrb[28].mxu1 %v2683_v35 }
 0x293   : > { %v2311_v36 = vpop.f32.mrb[0].mxu0 }
 0x294   : > { %v2312_v37 = vpop.f32.mrb[1].mxu0 }
 0x295   : > { %v2313_v38 = vadd.f32 %v2312_v37, %v2311_v36  ;;  %v2314_v39 = vpop.f32.mrb[2].mxu0 }
 0x296   : > { %v2315_v40 = vpop.f32.mrb[3].mxu0 }
 0x297   : > { %v2316_v41 = vadd.f32 %v2315_v40, %v2314_v39 }
 0x29b   : > { %v2317_v42 = vpop.f32.mrb[4].mxu0 }
 0x29c   : > { %v2318_v43 = vpop.f32.mrb[5].mxu0 }
 0x29d   : > { %v2319_v44 = vadd.f32 %v2318_v43, %v2317_v42  ;;  %v2320_v45 = vpop.f32.mrb[6].mxu0 }
 0x29e   : > { %v2321_v46 = vpop.f32.mrb[7].mxu0 }
 0x29f   : > { %v2322_v47 = vadd.f32 %v2321_v46, %v2320_v45 }
 0x2a3   : > { %v2323_v48 = vpop.f32.mrb[8].mxu0 }
 0x2a4   : > { %v2324_v49 = vpop.f32.mrb[9].mxu0 }
 0x2a5   : > { %v3477_v50 = vadd.f32 %v2324_v49, %v2323_v48  ;;  %v2326_v51 = vpop.f32.mrb[10].mxu0 }
 0x2a6   : > { %v2327_v52 = vpop.f32.mrb[11].mxu0 }
 0x2a7   : > { %v3479_v54 = vadd.f32 %v2327_v52, %v2326_v51 }
 0x2ab   : > { %v2329_v55 = vpop.f32.mrb[12].mxu0 }
 0x2ac   : > { %v2330_v56 = vpop.f32.mrb[13].mxu0 }
 0x2ad   : > { %v3481_v57 = vadd.f32 %v2330_v56, %v2329_v55  ;;  %v2332_v58 = vpop.f32.mrb[14].mxu0 }
 0x2ae   : > { %v2333_v60 = vpop.f32.mrb[15].mxu0 }
 0x2af   : > { %v3483_v61 = vadd.f32 %v2333_v60, %v2332_v58 }
 0x2b3   : > { %v2335_v62 = vpop.f32.mrb[16].mxu0 }
 0x2b4   : > { %v2336_v63 = vpop.f32.mrb[17].mxu0 }
 0x2b5   : > { %v3485_v0 = vadd.f32 %v2336_v63, %v2335_v62  ;;  %v2338_v1 = vpop.f32.mrb[18].mxu0 }
 0x2b6   : > { %v2339_v2 = vpop.f32.mrb[19].mxu0 }
 0x2b7   : > { %v3487_v3 = vadd.f32 %v2339_v2, %v2338_v1 }
 0x2bb   : > { %v2341_v4 = vpop.f32.mrb[20].mxu0 }
 0x2bc   : > { %v2342_v5 = vpop.f32.mrb[21].mxu0 }
 0x2bd   : > { %v3489_v6 = vadd.f32 %v2342_v5, %v2341_v4  ;;  %v2344_v7 = vpop.f32.mrb[22].mxu0 }
 0x2be   : > { %v2345_v8 = vpop.f32.mrb[23].mxu0 }
 0x2bf   : > { %v3491_v9 = vadd.f32 %v2345_v8, %v2344_v7 }
 0x2c3   : > { %v2347_v10 = vpop.f32.mrb[24].mxu0 }
 0x2c4   : > { %v2348_v11 = vpop.f32.mrb[25].mxu0 }
 0x2c5   : > { %v3493_v12 = vadd.f32 %v2348_v11, %v2347_v10  ;;  %v2350_v13 = vpop.f32.mrb[26].mxu0 }
 0x2c6   : > { %v2351_v14 = vpop.f32.mrb[27].mxu0 }
 0x2c7   : > { %v3495_v15 = vadd.f32 %v2351_v14, %v2350_v13 }
 0x2cb   : > { %v2353_v16 = vpop.f32.mrb[28].mxu0 }
 0x2cc   : > { %v2354_v17 = vpop.f32.mrb[29].mxu0 }
 0x2cd   : > { %v3497_v18 = vadd.f32 %v2354_v17, %v2353_v16  ;;  %v2356_v19 = vpop.f32.mrb[30].mxu0 }
 0x2ce   : > { %v2357_v20 = vpop.f32.mrb[31].mxu0 }
 0x2cf   : > { %v3499_v21 = vadd.f32 %v2357_v20, %v2356_v19 }
 0x2d3   : > { %v2375_v22 = vpop.f32.mrb[0].mxu1 }
 0x2d4   : > { %v2376_v23 = vpop.f32.mrb[1].mxu1 }
 0x2d5   : > { %v2377_v24 = vadd.f32 %v2376_v23, %v2375_v22  ;;  %v2378_v25 = vpop.f32.mrb[2].mxu1 }
 0x2d6   : > { %v2379_v26 = vpop.f32.mrb[3].mxu1 }
 0x2d7   : > { %v2380_v27 = vadd.f32 %v2379_v26, %v2378_v25  ;;  %v1021_v28 = vadd.f32 %v2377_v24, %v2313_v38 }
 0x2d9   : > { %v1024_v29 = vadd.f32 %v2380_v27, %v2316_v41 }
 0x2db   : > { %v2381_v30 = vpop.f32.mrb[4].mxu1 }
 0x2dc   : > { %v2382_v31 = vpop.f32.mrb[5].mxu1 }
 0x2dd   : > { %v2383_v32 = vadd.f32 %v2382_v31, %v2381_v30  ;;  %v2384_v33 = vpop.f32.mrb[6].mxu1 }
 0x2de   : > { %v2385_v35 = vpop.f32.mrb[7].mxu1 }
 0x2df   : > { %v2386_v36 = vadd.f32 %v2385_v35, %v2384_v33  ;;  %v1029_v37 = vadd.f32 %v2383_v32, %v2319_v44 }
 0x2e1   : > { %v1032_v39 = vadd.f32 %v2386_v36, %v2322_v47 }
 0x2e3   : > { %v2387_v40 = vpop.f32.mrb[8].mxu1 }
 0x2e4   : > { %v2388_v42 = vpop.f32.mrb[9].mxu1  ;;  %v2453_v43 = vpop.f32.mrb[32].mxu0 }
 0x2e5   : > { %v2389_v45 = vadd.f32 %v2388_v42, %v2387_v40  ;;  %v3501_v46 = vadd.f32 %v2453_v43, %v1029_v37  ;;  %v2390_v48 = vpop.f32.mrb[10].mxu1  ;;  %v1117_v49 = vpop.f32.mrb[33].mxu0 }
 0x2e6   : > { %v3503_v51 = vadd.f32 %v1117_v49, %v1021_v28  ;;  %v2391_v38 = vpop.f32.mrb[11].mxu1  ;;  %v2454_v41 = vpop.f32.mrb[34].mxu0 }
 0x2e7   : > { %v2392_v52 = vadd.f32 %v2391_v38, %v2390_v48  ;;  %v3505_v55 = vadd.f32 %v2454_v41, %v1032_v39  ;;  %1184 = vadd.xlane.f32.xlu1 %v3501_v46  ;;  %v1120_v56 = vpop.f32.mrb[35].mxu0  ;;  %v1037_v44 = vadd.f32 %v2389_v45, %v3477_v50  ;;  %v1214_v5 = vmul.f32 %v3501_v46, %v3501_v46 }
 0x2e8   : > { %v3509_v47 = vadd.f32 %v1120_v56, %v1024_v29  ;;  %v1212_v19 = vmul.f32 %v3503_v51, %v3503_v51 }
 0x2e9   : > { %1186 = vadd.xlane.f32.xlu0 %v3505_v55  ;;  %v1040_v58 = vadd.f32 %v2392_v52, %v3479_v54  ;;  %v1215_v13 = vmul.f32 %v3505_v55, %v3505_v55 }
 0x2eb   : > { %v2393_v60 = vpop.f32.mrb[12].mxu1  ;;  %1180 = vadd.xlane.f32.xlu1 %v3503_v51 }
 0x2ec   : > { %v2394_v62 = vpop.f32.mrb[13].mxu1  ;;  %v2457_v63 = vpop.f32.mrb[36].mxu0 }
 0x2ed   : > { %v2395_v1 = vadd.f32 %v2394_v62, %v2393_v60  ;;  %v2396_v2 = vpop.f32.mrb[14].mxu1  ;;  %v1133_v4 = vpop.f32.mrb[37].mxu0  ;;  %1182 = vadd.xlane.f32.xlu0 %v3509_v47 }
 0x2ee   : > { %v3517_v50 = vadd.f32 %v1133_v4, %v1037_v44  ;;  %v2397_v7 = vpop.f32.mrb[15].mxu1  ;;  %v2458_v8 = vpop.f32.mrb[38].mxu0 }
 0x2ef   : > { %v1045_v10 = vadd.f32 %v2395_v1, %v3481_v57  ;;  %v2398_v54 = vadd.f32 %v2397_v7, %v2396_v2  ;;  %v1136_v11 = vpop.f32.mrb[39].mxu0  ;;  %1232 = vadd.xlane.f32.xlu1 %v1214_v5  ;;  %v1213_v57 = vmul.f32 %v3509_v47, %v3509_v47 }
 0x2f0   : > { %v3522_v14 = vadd.f32 %v1136_v11, %v1040_v58  ;;  %v1216_v60 = vmul.f32 %v3517_v50, %v3517_v50 }
 0x2f1   : > { %v3524_v16 = vadd.f32 %v2457_v63, %v1045_v10  ;;  %v1048_v17 = vadd.f32 %v2398_v54, %v3483_v61  ;;  %1234 = vadd.xlane.f32.xlu0 %v1215_v13 }
 0x2f2   : > { %v1217_v56 = vmul.f32 %v3522_v14, %v3522_v14 }
 0x2f3   : > { %v3529_v20 = vadd.f32 %v2458_v8, %v1048_v17  ;;  %v2399_v22 = vpop.f32.mrb[16].mxu1  ;;  %1228 = vadd.xlane.f32.xlu1 %v1212_v19  ;;  %v1218_v37 = vmul.f32 %v3524_v16, %v3524_v16 }
 0x2f4   : > { %v2400_v23 = vpop.f32.mrb[17].mxu1  ;;  %v2461_v24 = vpop.f32.mrb[40].mxu0 }
 0x2f5   : > { %v2401_v25 = vadd.f32 %v2400_v23, %v2399_v22  ;;  %v2402_v26 = vpop.f32.mrb[18].mxu1  ;;  %1230 = vadd.xlane.f32.xlu0 %v1213_v57  ;;  %v1149_v27 = vpop.f32.mrb[41].mxu0 }
 0x2f6   : > { %v2403_v28 = vpop.f32.mrb[19].mxu1  ;;  %v2462_v29 = vpop.f32.mrb[42].mxu0 }
 0x2f7   : > { %v2404_v61 = vadd.f32 %v2403_v28, %v2402_v26  ;;  %1192 = vadd.xlane.f32.xlu1 %v3524_v16  ;;  %v1053_v30 = vadd.f32 %v2401_v25, %v3485_v0  ;;  %v1152_v31 = vpop.f32.mrb[43].mxu0  ;;  %v1219_v0 = vmul.f32 %v3529_v20, %v3529_v20 }
 0x2f9   : > { %v3535_v32 = vadd.f32 %v1149_v27, %v1053_v30  ;;  %1194 = vadd.xlane.f32.xlu0 %v3529_v20  ;;  %v1056_v33 = vadd.f32 %v2404_v61, %v3487_v3  ;;  %v1340_v61 = vld [vmem:[#allocation7] sm:$0xff]  ;;  %v1341_v30 = vld [vmem:[#allocation7 + $0x8] sm:$0xff] }
 0x2fb   : > { %v3539_v35 = vadd.f32 %v1152_v31, %v1056_v33  ;;  %v2405_v36 = vpop.f32.mrb[20].mxu1  ;;  %1188 = vadd.xlane.f32.xlu1 %v3517_v50  ;;  %v1342_v31 = vld [vmem:[#allocation7 + $0x10] sm:$0xff]  ;;  %v3597_v33 = vpop.permute.xlu1 %1462 }
 0x2fc   : > { %v2406_v39 = vpop.f32.mrb[21].mxu1  ;;  %v2465_v40 = vpop.f32.mrb[44].mxu0 }
 0x2fd   : > { %v2407_v42 = vadd.f32 %v2406_v39, %v2405_v36  ;;  %v2408_v43 = vpop.f32.mrb[22].mxu1  ;;  %1240 = vadd.xlane.f32.xlu0 %v1218_v37  ;;  %v1165_v45 = vpop.f32.mrb[45].mxu0  ;;  %v1345_v36 = vld [vmem:[#allocation7 + $0x28] sm:$0xff]  ;;  %v1346_v39 = vld [vmem:[#allocation7 + $0x30] sm:$0xff] }
 0x2fe   : > { %v2409_v48 = vpop.f32.mrb[23].mxu1  ;;  %v2466_v49 = vpop.f32.mrb[46].mxu0 }
 0x2ff   : > { %v1061_v3 = vadd.f32 %v2407_v42, %v3489_v6  ;;  %v2410_v38 = vadd.f32 %v2409_v48, %v2408_v43  ;;  %1242 = vadd.xlane.f32.xlu1 %v1219_v0  ;;  %v1168_v41 = vpop.f32.mrb[47].mxu0  ;;  %v3601_v37 = vpop.permute.xlu1 %1549 }
 0x300   : > { %v3611_v0 = vpop.permute.xlu0 %1467 }
 0x301   : > { %v1064_v52 = vadd.f32 %v2410_v38, %v3491_v9  ;;  %1190 = vadd.xlane.f32.xlu0 %v3522_v14  ;;  %v3551_v44 = vadd.f32 %v2461_v24, %v1061_v3 }
 0x303   : > { %v2411_v58 = vpop.f32.mrb[24].mxu1  ;;  %1238 = vadd.xlane.f32.xlu1 %v1217_v56  ;;  %v3555_v62 = vadd.f32 %v2462_v29, %v1064_v52  ;;  %v1222_v8 = vmul.f32 %v3551_v44, %v3551_v44  ;;  %v1355_v29 = vld [vmem:[#allocation7 + $0x78] sm:$0xff]  ;;  %v3604_v42 = vpop.permute.xlu1 %1553 }
 0x304   : > { %v2412_v6 = vpop.f32.mrb[25].mxu1  ;;  %v3616_v48 = vpop.permute.xlu0 %1472 }
 0x305   : > { %v2413_v63 = vadd.f32 %v2412_v6, %v2411_v58  ;;  %v2414_v1 = vpop.f32.mrb[26].mxu1  ;;  %1236 = vadd.xlane.f32.xlu0 %v1216_v60  ;;  %v1223_v24 = vmul.f32 %v3555_v62, %v3555_v62  ;;  %v2684_v60 = vld [vmem:[#allocation8] sm:$0xff]  }
 0x306   : > { %v2415_v2 = vpop.f32.mrb[27].mxu1  ;;  %2475 = vmatprep.mubr.msk.bf16.mxu1 %vm864_vm9, %v2684_v60  ;;  %v3658_v60 = vld [vmem:[#allocation10 + $0x30] sm:$0xff] }
 0x307   : > { %v2416_v9 = vadd.f32 %v2415_v2, %v2414_v1  ;;  %1200 = vadd.xlane.f32.xlu1 %v3551_v44  ;;  %v1069_v4 = vadd.f32 %v2413_v63, %v3493_v12  ;;  %v3609_v43 = vpop.permute.xlu1 %1557  ;;  %4011 = vst [vmem:[#allocation17_spill] sm:$0xff] %v3658_v60 }
 0x308   : > { %v3621_v38 = vpop.permute.xlu0 %1477 }
 0x309   : > { %v3559_v5 = vadd.f32 %v1165_v45, %v1069_v4  ;;  %1196 = vadd.xlane.f32.xlu0 %v3535_v32  ;;  %v1072_v7 = vadd.f32 %v2416_v9, %v3495_v15  ;;  %v1220_v15 = vmul.f32 %v3535_v32, %v3535_v32 }
 0x30b   : > { %v3565_v10 = vadd.f32 %v1168_v41, %v1072_v7  ;;  %v2417_v54 = vpop.f32.mrb[28].mxu1  ;;  %1248 = vadd.xlane.f32.xlu1 %v1222_v8  ;;  %v1224_v26 = vmul.f32 %v3559_v5, %v3559_v5  ;;  %v3614_v45 = vpop.permute.xlu1 %1561  ;;  %v1842_v8 = vld [vmem:[#allocation10 + $0x8] sm:$0xff] }
 0x30c   : > { %v2418_v11 = vpop.f32.mrb[29].mxu1  ;;  %v3626_v52 = vpop.permute.xlu0 %1482 }
 0x30d   : > { %v2419_v13 = vadd.f32 %v2418_v11, %v2417_v54  ;;  %v2420_v17 = vpop.f32.mrb[30].mxu1  ;;  %1202 = vadd.xlane.f32.xlu0 %v3555_v62  ;;  %v1225_v28 = vmul.f32 %v3565_v10, %v3565_v10 }
 0x30e   : > { %v2421_v19 = vpop.f32.mrb[31].mxu1 }
 0x30f   : > { %v1077_v12 = vadd.f32 %v2419_v13, %v3497_v18  ;;  %v2422_v22 = vadd.f32 %v2421_v19, %v2420_v17  ;;  %1198 = vadd.xlane.f32.xlu1 %v3539_v35  ;;  %v1221_v18 = vmul.f32 %v3539_v35, %v3539_v35  ;;  %v3619_v3 = vpop.permute.xlu1 %1565  ;;  %v1843_v13 = vld [vmem:[#allocation10 + $0x10] sm:$0xff]  ;;  %v1841_v17 = vld [vmem:[#allocation10] sm:$0xff] }
 0x310   : > { %v3631_v58 = vpop.permute.xlu0 %1487 }
 0x311   : > { %v1080_v57 = vadd.f32 %v2422_v22, %v3499_v21  ;;  %1244 = vadd.xlane.f32.xlu0 %v1220_v15  ;;  %v3573_v23 = vadd.f32 %v2465_v40, %v1077_v12  ;;  %v1344_v40 = vld [vmem:[#allocation7 + $0x20] sm:$0xff] }
 0x313   : > { %1208 = vadd.xlane.f32.xlu1 %v3573_v23  ;;  %v3578_v25 = vadd.f32 %v2466_v49, %v1080_v57  ;;  %v1226_v21 = vmul.f32 %v3573_v23, %v3573_v23  ;;  %v1347_v49 = vld [vmem:[#allocation7 + $0x38] sm:$0xff]  ;;  %v3624_v41 = vpop.permute.xlu1 %1569 }
 0x314   : > { %v1844_v57 = vld [vmem:[#allocation10 + $0x18] sm:$0xff] }
 0x315   : > { %1250 = vadd.xlane.f32.xlu0 %v1223_v24  ;;  %v1227_v27 = vmul.f32 %v3578_v25, %v3578_v25 }
 0x317   : > { %1204 = vadd.xlane.f32.xlu1 %v3559_v5  ;;  %v3629_v56 = vpop.permute.xlu1 %1492 }
 0x319   : > { %1246 = vadd.xlane.f32.xlu0 %v1221_v18 }
 0x31b   : > { %1256 = vadd.xlane.f32.xlu1 %v1226_v21 }
 0x31d   : > { %1210 = vadd.xlane.f32.xlu0 %v3578_v25 }
 0x31f   : > { %1252 = vadd.xlane.f32.xlu1 %v1224_v26 }
 0x321   : > { %1206 = vadd.xlane.f32.xlu0 %v3565_v10 }
 0x325   : > { %1258 = vadd.xlane.f32.xlu0 %v1227_v27  ;;  %v1845_v27 = vld [vmem:[#allocation10 + $0x20] sm:$0xff] }
 0x329   : > { %1254 = vadd.xlane.f32.xlu0 %v1225_v28 }
 0x330   : > { %1573 = vperm.xlu1 %2608, %v3473_v34   ;;  %v1343_v34 = vld [vmem:[#allocation7 + $0x18] sm:$0xff] }
 0x334   : > { %1577 = vperm.xlu1 %2608, %v1355_v29  }
 0x338   : > { %2609 = vset.pattern.permute.xlu1 %v3022_v53 }
 0x339   : > { %1422 = vperm.xlu1 %2609, %v1340_v61  }
 0x33d   : > { %1427 = vperm.xlu1 %2609, %v1341_v30  }
 0x33f   : > { %1497 = vperm.xlu0 %2605, %v1355_v29  }
 0x341   : > { %2610 = vset.pattern.permute.xlu1 %v3023_v59 }
 0x342   : > { %1517 = vperm.xlu1 %2610, %v1340_v61  }
 0x343   : > { %2612 = vset.pattern.permute.xlu0 %v3023_v59 }
 0x344   : > { %1525 = vperm.xlu0 %2612, %v1342_v31  }
 0x346   : > { %1521 = vperm.xlu1 %2610, %v1341_v30  }
 0x348   : > { %2613 = vset.pattern.permute.xlu0 %v3022_v53 }
 0x349   : > { %1432 = vperm.xlu0 %2613, %v1342_v31   ;;  %v1846_v31 = vld [vmem:[#allocation10 + $0x28] sm:$0xff] }
 0x34a   : > { %2611 = vset.pattern.permute.xlu1 %v3022_v53 }
 0x34b   : > { %1437 = vperm.xlu1 %2611, %v1343_v34  }
 0x34d   : > { %1447 = vperm.xlu0 %2613, %v1345_v36  }
 0x34f   : > { %2614 = vset.pattern.permute.xlu1 %v3023_v59 }
 0x350   : > { %1529 = vperm.xlu1 %2614, %v1343_v34  }
 0x351   : > { %1452 = vperm.xlu0 %2613, %v1346_v39  }
 0x354   : > { %2615 = vset.pattern.permute.xlu1 %v3022_v53 }
 0x355   : > { %2618 = vset.pattern.permute.xlu0 %v3023_v59  ;;  %1442 = vperm.xlu1 %2615, %v1344_v40  }
 0x356   : > { %1541 = vperm.xlu0 %2618, %v1346_v39  }
 0x359   : > { %2616 = vset.pattern.permute.xlu1 %v3023_v59 }
 0x35a   : > { %1533 = vperm.xlu1 %2616, %v1344_v40   ;;  %2620 = vset.pattern.permute.xlu0 %v3022_v53 }
 0x35b   : > { %1883 = vperm.xlu0 %2620, %v1841_v17  }
 0x35e   : > { %1537 = vperm.xlu1 %2616, %v1345_v36  }
 0x35f   : > { %2622 = vset.pattern.permute.xlu0 %v3023_v59 }
 0x360   : > { %1930 = vperm.xlu0 %2622, %v1841_v17  }
 0x362   : > { %2617 = vset.pattern.permute.xlu1 %v3022_v53 }
 0x363   : > { %1457 = vperm.xlu1 %2617, %v1347_v49  }
 0x364   : > { %1942 = vperm.xlu0 %2622, %v1844_v57  }
 0x367   : > { %2619 = vset.pattern.permute.xlu1 %v3023_v59 }
 0x368   : > { %1545 = vperm.xlu1 %2619, %v1347_v49   ;;  %1950 = vperm.xlu0 %2622, %v1846_v31  }
 0x36c   : > { %2621 = vset.pattern.permute.xlu1 %v3022_v53 }
 0x36d   : > { %1888 = vperm.xlu1 %2621, %v1842_v8  }
 0x371   : > { %1893 = vperm.xlu1 %2621, %v1843_v13  }
 0x374   : > { %v3633_v6 = vpop.xlane.xlu1 %1184 }
 0x375   : > { %1898 = vperm.xlu1 %2621, %v1844_v57  }
 0x376   : > { %v1187_v63 = vpop.xlane.xlu0 %1186 }
 0x377   : > { %v1263_v9 = vmul.f32 0.0078125, %v1187_v63 }
 0x378   : > { %v3636_v1 = vpop.xlane.xlu1 %1180 }
 0x379   : > { %v1295_v53 = vmul.f32 %v1263_v9, %v1263_v9  ;;  %1903 = vperm.xlu1 %2621, %v1845_v27   ;;  %v1359_v40 = vsub.f32 %v3505_v55, %v1263_v9 }
 0x37a   : > { %v3638_v2 = vpop.xlane.xlu0 %1182 }
 0x37c   : > { %v3640_v4 = vpop.xlane.xlu1 %1232 }
 0x37d   : > { %1908 = vperm.xlu1 %2621, %v1846_v31  }
 0x37e   : > { %v1235_v7 = vpop.xlane.xlu0 %1234 }
 0x37f   : > { %v1279_v54 = vmul.f32 0.0078125, %v1235_v7 }
 0x380   : > { %v3642_v11 = vpop.xlane.xlu1 %1228 }
 0x381   : > { %v1311_v19 = vsub.f32 %v1279_v54, %v1295_v53  ;;  %1913 = vperm.xlu1 %2621, %v3658_v60  }
 0x382   : > { %v3644_v12 = vpop.xlane.xlu0 %1230 }
 0x383   : > { %v1327_v22 = vmax.f32 %v1311_v19, 0.0  ;;  %v3665_v19 = vld [vmem:[#allocation10 + $0x38] sm:$0xff] }
 0x384   : > { %v1193_v15 = vpop.xlane.xlu1 %1192  ;;  %4012 = vst [vmem:[#allocation18_spill] sm:$0xff] %v3665_v19 }
 0x385   : > { %v1375_v24 = vadd.f32 1e-05, %v1327_v22  ;;  %v1266_v21 = vmul.f32 0.0078125, %v1193_v15  ;;  %1918 = vperm.xlu1 %2621, %v3665_v19  }
 0x386   : > { %v3647_v18 = vpop.xlane.xlu0 %1194 }
 0x387   : > { %2688 = vrsqrt.f32 %v1375_v24  ;;  %v1298_v29 = vmul.f32 %v1266_v21, %v1266_v21 }
 0x388   : > { %v3649_v26 = vpop.xlane.xlu1 %1188 }
 0x389   : > { %2623 = vset.pattern.permute.xlu1 %v3023_v59 }
 0x38a   : > { %v1241_v28 = vpop.xlane.xlu0 %1240  ;;  %1934 = vperm.xlu1 %2623, %v1842_v8  }
 0x38b   : > { %v1282_v61 = vmul.f32 0.0078125, %v1241_v28 }
 0x38c   : > { %v3651_v30 = vpop.xlane.xlu1 %1242 }
 0x38d   : > { %v1314_v34 = vsub.f32 %v1282_v61, %v1298_v29  ;;  %v1362_v61 = vsub.f32 %v3524_v16, %v1266_v21 }
 0x38e   : > { %v3653_v36 = vpop.xlane.xlu0 %1190  ;;  %1938 = vperm.xlu1 %2623, %v1843_v13  }
 0x38f   : > { %v1330_v39 = vmax.f32 %v1314_v34, 0.0 }
 0x390   : > { %v3656_v49 = vpop.xlane.xlu1 %1238 }
 0x391   : > { %v2689_v63 = vpop.eup %2688  ;;  %v1378_v7 = vadd.f32 1e-05, %v1330_v39 }
 0x392   : > { %v3660_v53 = vpop.xlane.xlu0 %1236  ;;  %v3662_v54 = vmul.f32 %v2689_v63, %v1359_v40  ;;  %1946 = vperm.xlu1 %2623, %v1845_v27  }
 0x393   : > { %2690 = vrsqrt.f32 %v1378_v7 }
 0x394   : > { %v1201_v17 = vpop.xlane.xlu1 %1200 }
 0x395   : > { %v1270_v22 = vmul.f32 0.0078125, %v1201_v17 }
 0x396   : > { %v1197_v15 = vpop.xlane.xlu0 %1196 }
 0x397   : > { %v1302_v9 = vmul.f32 %v1270_v22, %v1270_v22  ;;  %v3668_v28 = vmul.f32 0.0078125, %v1197_v15  ;;  %v1366_v27 = vsub.f32 %v3551_v44, %v1270_v22 }
 0x398   : > { %v1249_v55 = vpop.xlane.xlu1 %1248 }
 0x399   : > { %v1286_v57 = vmul.f32 0.0078125, %v1249_v55  ;;  %v1300_v7 = vmul.f32 %v3668_v28, %v3668_v28 }
 0x39a   : > { %v1203_v24 = vpop.xlane.xlu0 %1202 }
 0x39b   : > { %v1318_v29 = vsub.f32 %v1286_v57, %v1302_v9  ;;  %v3676_v55 = vmul.f32 0.0078125, %v1203_v24 }
 0x39c   : > { %v1199_v31 = vpop.xlane.xlu1 %1198 }
 0x39d   : > { %v2691_v34 = vpop.eup %2690  ;;  %v1334_v39 = vmax.f32 %v1318_v29, 0.0  ;;  %v1303_v16 = vmul.f32 %v3676_v55, %v3676_v55  ;;  %v3680_v57 = vmul.f32 0.0078125, %v1199_v31 }
 0x39e   : > { %v1245_v40 = vpop.xlane.xlu0 %1244  ;;  %v3672_v63 = vmul.f32 %v2691_v34, %v1362_v61 }
 0x39f   : > { %v1382_v17 = vadd.f32 1e-05, %v1334_v39  ;;  %v1284_v15 = vmul.f32 0.0078125, %v1245_v40  ;;  %v1301_v13 = vmul.f32 %v3680_v57, %v3680_v57 }
 0x3a0   : > { %4013 = vst [vmem:[#allocation19_spill] sm:$0xff] %v3672_v63  ;;  %v1209_v19 = vpop.xlane.xlu1 %1208  ;;  %v1278_v63 = vmul.f32 0.0078125, %v3640_v4 }
 0x3a1   : > { %2692 = vrsqrt.f32 %v1382_v17  ;;  %v1316_v59 = vsub.f32 %v1284_v15, %v1300_v7  ;;  %v3682_v34 = vmul.f32 0.0078125, %v1209_v19 }
 0x3a2   : > { %v1251_v9 = vpop.xlane.xlu0 %1250 }
 0x3a3   : > { %v1332_v8 = vmax.f32 %v1316_v59, 0.0  ;;  %v1287_v21 = vmul.f32 0.0078125, %v1251_v9  ;;  %v1306_v15 = vmul.f32 %v3682_v34, %v3682_v34 }
 0x3a4   : > { %v1205_v29 = vpop.xlane.xlu1 %1204 }
 0x3a5   : > { %v1380_v61 = vadd.f32 1e-05, %v1332_v8  ;;  %v1319_v24 = vsub.f32 %v1287_v21, %v1303_v16  ;;  %v3688_v31 = vmul.f32 0.0078125, %v1205_v29  ;;  %v3692_v21 = vmul.f32 0.0078125, %v3633_v6 }
 0x3a6   : > { %v1247_v39 = vpop.xlane.xlu0 %1246 }
 0x3a7   : > { %2694 = vrsqrt.f32 %v1380_v61  ;;  %v1335_v40 = vmax.f32 %v1319_v24, 0.0  ;;  %v1285_v7 = vmul.f32 0.0078125, %v1247_v39  ;;  %v1304_v29 = vmul.f32 %v3688_v31, %v3688_v31 }
 0x3a8   : > { %v1257_v17 = vpop.xlane.xlu1 %1256  ;;  %v1294_v6 = vmul.f32 %v3692_v21, %v3692_v21 }
 0x3a9   : > { %v1383_v59 = vadd.f32 1e-05, %v1335_v40  ;;  %v1290_v9 = vmul.f32 0.0078125, %v1257_v17  ;;  %v1317_v19 = vsub.f32 %v1285_v7, %v1301_v13 }
 0x3aa   : > { %v1211_v8 = vpop.xlane.xlu0 %1210 }
 0x3ab   : > { %v2693_v16 = vpop.eup %2692  ;;  %2696 = vrsqrt.f32 %v1383_v59  ;;  %v1322_v61 = vsub.f32 %v1290_v9, %v1306_v15  ;;  %v1333_v39 = vmax.f32 %v1317_v19, 0.0  ;;  %v3700_v59 = vmul.f32 0.0078125, %v1211_v8 }
 0x3ac   : > { %v1414_v24 = vmul.f32 %v2693_v16, %v1366_v27  ;;  %v1253_v60 = vpop.xlane.xlu1 %1252  ;;  %v1364_v9 = vsub.f32 %v3535_v32, %v3668_v28  ;;  %v1310_v19 = vsub.f32 %v1278_v63, %v1294_v6  ;;  %v3708_v16 = vmul.f32 0.0078125, %v3636_v1 }
 0x3ad   : > { %v1338_v40 = vmax.f32 %v1322_v61, 0.0  ;;  %v1288_v17 = vmul.f32 0.0078125, %v1253_v60  ;;  %v1381_v22 = vadd.f32 1e-05, %v1333_v39  ;;  %v1307_v8 = vmul.f32 %v3700_v59, %v3700_v59 }
 0x3ae   : > { %v1510_v44 = vmul.f32 %v3616_v48, %v1414_v24  ;;  %v1207_v13 = vpop.xlane.xlu0 %1206  ;;  %v1367_v28 = vsub.f32 %v3555_v62, %v3676_v55  ;;  %v1276_v6 = vmul.f32 0.0078125, %v3642_v11  ;;  %v1277_v62 = vmul.f32 0.0078125, %v3644_v12 }
 0x3af   : > { %v1386_v7 = vadd.f32 1e-05, %v1338_v40  ;;  %v1320_v15 = vsub.f32 %v1288_v17, %v1304_v29  ;;  %2698 = vrsqrt.f32 %v1381_v22  ;;  %v3712_v29 = vmul.f32 0.0078125, %v1207_v13 }
 0x3b0   : > { %v1590_v4 = vadd.f32 %v3609_v43, %v1510_v44  ;;  %v3705_v27 = vpop.permute.xlu1 %1573  ;;  %v3715_v43 = vmul.f32 0.0078125, %v3638_v2  ;;  %v1326_v44 = vmax.f32 %v1310_v19, 0.0  ;;  %v1292_v13 = vmul.f32 %v3708_v16, %v3708_v16 }
 0x3b1   : > { %v2695_v60 = vpop.eup %2694  ;;  %2700 = vrsqrt.f32 %v1386_v7  ;;  %v1336_v48 = vmax.f32 %v1320_v15, 0.0 }
 0x3b2   : > { %v1412_v61 = vmul.f32 %v2695_v60, %v1364_v9  ;;  %v1259_v24 = vpop.xlane.xlu0 %1258  ;;  %v2235_v1 = vmul.f32 -1.442695, %v1590_v4  ;;  %v1293_v4 = vmul.f32 %v3715_v43, %v3715_v43  ;;  %v1374_v11 = vadd.f32 1e-05, %v1326_v44 }
 0x3b3   : > { %v1384_v39 = vadd.f32 1e-05, %v1336_v48  ;;  %v1291_v32 = vmul.f32 0.0078125, %v1259_v24 }
 0x3b4   : > { %v1508_v63 = vmul.f32 %v3597_v33, %v1412_v61  ;;  %v3720_v40 = vpop.permute.xlu1 %1577  ;;  %v1305_v33 = vmul.f32 %v3712_v29, %v3712_v29 }
 0x3b5   : > { %v2697_v17 = vpop.eup %2696  ;;  %2702 = vrsqrt.f32 %v1384_v39  ;;  %v1323_v22 = vsub.f32 %v1291_v32, %v1307_v8  ;;  %v1308_v8 = vsub.f32 %v1276_v6, %v1292_v13  ;;  %v1370_v39 = vsub.f32 %v3573_v23, %v3682_v34 }
 0x3b6   : > { %v1415_v7 = vmul.f32 %v2697_v17, %v1367_v28  ;;  %v1255_v2 = vpop.xlane.xlu0 %1254  ;;  %v1588_v15 = vadd.f32 %v3601_v37, %v1508_v63  ;;  %2704 = vpow2.f32 %v2235_v1  ;;  %v1365_v37 = vsub.f32 %v3539_v35, %v3680_v57 }
 0x3b7   : > { %v1339_v55 = vmax.f32 %v1323_v22, 0.0  ;;  %v1289_v9 = vmul.f32 0.0078125, %v1255_v2  ;;  %v1309_v63 = vsub.f32 %v1277_v62, %v1293_v4  ;;  %v1324_v13 = vmax.f32 %v1308_v8, 0.0 }
 0x3b8   : > { %v1511_v60 = vmul.f32 %v3621_v38, %v1415_v7  ;;  %v3732_v19 = vpop.permute.xlu1 %1422  ;;  %v2233_v48 = vmul.f32 -1.442695, %v1588_v15  ;;  %v1368_v23 = vsub.f32 %v3559_v5, %v3688_v31  ;;  %v3747_v15 = vmul.f32 0.0078125, %v3653_v36 }
 0x3b9   : > { %v1387_v61 = vadd.f32 1e-05, %v1339_v55  ;;  %v1321_v12 = vsub.f32 %v1289_v9, %v1305_v33  ;;  %v2699_v24 = vpop.eup %2698  ;;  %v1325_v6 = vmax.f32 %v1309_v63, 0.0  ;;  %v1372_v9 = vadd.f32 1e-05, %v1324_v13 }
 0x3ba   : > { %v1591_v32 = vadd.f32 %v3614_v45, %v1511_v60  ;;  %v1413_v38 = vmul.f32 %v2699_v24, %v1365_v37  ;;  %v3752_v5 = vmul.f32 0.0078125, %v3647_v18  ;;  %v1283_v36 = vmul.f32 0.0078125, %v3651_v30 }
 0x3bb   : > { %v2701_v28 = vpop.eup %2700  ;;  %2706 = vrsqrt.f32 %v1387_v61  ;;  %v1337_v17 = vmax.f32 %v1321_v12, 0.0  ;;  %v1373_v4 = vadd.f32 1e-05, %v1325_v6  ;;  %v1371_v60 = vsub.f32 %v3578_v25, %v3700_v59 }
 0x3bc   : > { %v1418_v22 = vmul.f32 %v2701_v28, %v1370_v39  ;;  %v3739_v1 = vpop.permute.xlu1 %1427  ;;  %2708 = vpow2.f32 %v2233_v48  ;;  %v2236_v44 = vmul.f32 -1.442695, %v1591_v32  ;;  %v1509_v35 = vmul.f32 %v3611_v0, %v1413_v38 }
 0x3bd   : > { %2710 = vrsqrt.f32 %v1374_v11  ;;  %v1385_v57 = vadd.f32 1e-05, %v1337_v17  ;;  %v1297_v18 = vmul.f32 %v3747_v15, %v3747_v15  ;;  %v1299_v30 = vmul.f32 %v3752_v5, %v3752_v5 }
 0x3be   : > { %v1514_v45 = vmul.f32 %v3629_v56, %v1418_v22  ;;  %2712 = vpow2.f32 %v2236_v44  ;;  %v1589_v7 = vadd.f32 %v3604_v42, %v1509_v35  ;;  %v1498_v62 = vpop.permute.xlu0 %1497  ;;  %v3757_v42 = vmul.f32 0.0078125, %v3649_v26 }
 0x3bf   : > { %v2703_v34 = vpop.eup %2702  ;;  %2714 = vrsqrt.f32 %v1385_v57  ;;  %v1280_v59 = vmul.f32 0.0078125, %v3660_v53  ;;  %v1369_v39 = vsub.f32 %v3565_v10, %v3712_v29  ;;  %v1358_v44 = vsub.f32 %v3501_v46, %v3692_v21 }
 0x3c0   : > { %v1416_v2 = vmul.f32 %v2703_v34, %v1368_v23  ;;  %v2234_v0 = vmul.f32 -1.442695, %v1589_v7  ;;  %v2705_v55 = vpop.eup %2704  ;;  %v1594_v31 = vadd.f32 %v3705_v27, %v1514_v45 }
 0x3c1   : > { %v3749_v33 = vpop.permute.xlu1 %1517  ;;  %v1622_v61 = vadd.f32 1.0, %v2705_v55 }
 0x3c2   : > { %v1512_v56 = vmul.f32 %v3626_v52, %v1416_v2  ;;  %2716 = vpow2.f32 %v2234_v0  ;;  %v1281_v52 = vmul.f32 0.0078125, %v3656_v49  ;;  %v2239_v12 = vmul.f32 -1.442695, %v1594_v31 }
 0x3c3   : > { %v1526_v37 = vpop.permute.xlu0 %1525  ;;  %2718 = vrsqrt.f32 %v1372_v9  ;;  %v1315_v49 = vsub.f32 %v1283_v36, %v1299_v30 }
 0x3c4   : > { %v1592_v48 = vadd.f32 %v3619_v3, %v1512_v56  ;;  %2720 = vrsqrt.f32 %v1373_v4  ;;  %v1296_v3 = vmul.f32 %v3757_v42, %v3757_v42  ;;  %v1313_v38 = vsub.f32 %v1281_v52, %v1297_v18 }
 0x3c5   : > { %v2707_v11 = vpop.eup %2706  ;;  %v3766_v27 = vpop.permute.xlu1 %1521  ;;  %2722 = vrcp.f32 %v1622_v61  ;;  %v1331_v6 = vmax.f32 %v1315_v49, 0.0 }
 0x3c6   : > { %v2709_v26 = vpop.eup %2708  ;;  %v1419_v24 = vmul.f32 %v2707_v11, %v1371_v60  ;;  %v2237_v28 = vmul.f32 -1.442695, %v1592_v48  ;;  %2724 = vpow2.f32 %v2239_v12  ;;  %v1312_v13 = vsub.f32 %v1280_v59, %v1296_v3 }
 0x3c7   : > { %v2711_v25 = vpop.eup %2710  ;;  %v1620_v17 = vadd.f32 1.0, %v2709_v26  ;;  %v1329_v7 = vmax.f32 %v1313_v38, 0.0  ;;  %v1379_v56 = vadd.f32 1e-05, %v1331_v6  ;;  %v1356_v60 = vsub.f32 %v3503_v51, %v3708_v16 }
 0x3c8   : > { %v2713_v8 = vpop.eup %2712  ;;  %v1515_v32 = vmul.f32 %v1498_v62, %v1419_v24  ;;  %v1433_v23 = vpop.permute.xlu0 %1432  ;;  %v1406_v45 = vmul.f32 %v2711_v25, %v1358_v44  ;;  %v1328_v62 = vmax.f32 %v1312_v13, 0.0  ;;  %v1357_v48 = vsub.f32 %v3509_v47, %v3715_v43 }
 0x3c9   : > { %v2715_v63 = vpop.eup %2714  ;;  %v1623_v22 = vadd.f32 1.0, %v2713_v8  ;;  %v1361_v13 = vsub.f32 %v3522_v14, %v3747_v15 }
 0x3ca   : > { %v1417_v35 = vmul.f32 %v2715_v63, %v1369_v39  ;;  %v1595_v57 = vadd.f32 %v3720_v40, %v1515_v32  ;;  %v1438_v53 = vpop.permute.xlu1 %1437  ;;  %v1502_v46 = vmul.f32 %v1433_v23, %v1406_v45 }
 0x3cb   : > { %2726 = vrcp.f32 %v1623_v22  ;;  %v1503_v4 = vmul.f32 %v1438_v53, %v3662_v54  ;;  %v1360_v53 = vsub.f32 %v3517_v50, %v3757_v42 }
 0x3cc   : > { %v1513_v10 = vmul.f32 %v3631_v58, %v1417_v35  ;;  %v2240_v29 = vmul.f32 -1.442695, %v1595_v57  ;;  %2728 = vpow2.f32 %v2237_v28  ;;  %v2717_v34 = vpop.eup %2716  ;;  %v1377_v58 = vadd.f32 1e-05, %v1329_v7  ;;  %v1448_v8 = vpop.permute.xlu0 %1447 }
 0x3cd   : > { %2730 = vrcp.f32 %v1620_v17  ;;  %v1621_v2 = vadd.f32 1.0, %v2717_v34  ;;  %v2719_v0 = vpop.eup %2718  ;;  %v1582_v31 = vadd.f32 %v1526_v37, %v1502_v46  ;;  %v1363_v57 = vsub.f32 %v3529_v20, %v3752_v5 }
 0x3ce   : > { %2732 = vpow2.f32 %v2240_v29  ;;  %v1593_v21 = vadd.f32 %v3624_v41, %v1513_v10  ;;  %v2721_v9 = vpop.eup %2720  ;;  %v1376_v41 = vadd.f32 1e-05, %v1328_v62  ;;  %v1404_v26 = vmul.f32 %v2719_v0, %v1356_v60  ;;  %v2686_v60 = vld [vmem:[#allocation8 + $0x10] sm:$0xff]  }
 0x3cf   : > { %v1530_v40 = vpop.permute.xlu1 %1529  ;;  %2734 = vrcp.f32 %v1621_v2  ;;  %v2723_v36 = vpop.eup %2722  ;;  %v1405_v30 = vmul.f32 %v2721_v9, %v1357_v48  ;;  %v4014_v2 = vld [vmem:[#allocation19_spill] sm:$0xff]  ;;  %v2687_v48 = vld [vmem:[#allocation8 + $0x18] sm:$0xff]  }
 0x3d0   : > { %v2238_v55 = vmul.f32 -1.442695, %v1593_v21  ;;  %v2725_v11 = vpop.eup %2724  ;;  %v1583_v18 = vadd.f32 %v1530_v40, %v1503_v4  ;;  %v1646_v37 = vmul.f32 %v2723_v36, %v1582_v31  ;;  %v1500_v25 = vmul.f32 %v3732_v19, %v1404_v26  ;;  %v1453_v35 = vpop.permute.xlu0 %1452  ;;  %v2685_v36 = vld [vmem:[#allocation8 + $0x8] sm:$0xff]  }
 0x3d1   : > { %v1501_v51 = vmul.f32 %v3739_v1, %v1405_v30  ;;  %v1626_v47 = vadd.f32 1.0, %v2725_v11  ;;  %v1506_v46 = vmul.f32 %v1453_v35, %v4014_v2 }
 0x3d2   : > { %2736 = vpow2.f32 %v2238_v55  ;;  %v1580_v3 = vadd.f32 %v3749_v33, %v1500_v25 }
 0x3d3   : > { %2738 = vrsqrt.f32 %v1379_v56  ;;  %v1581_v59 = vadd.f32 %v3766_v27, %v1501_v51 }
 0x3d4   : > { %v1443_v52 = vpop.permute.xlu1 %1442  ;;  %2740 = vrsqrt.f32 %v1377_v58 }
 0x3d5   : > { %v2727_v61 = vpop.eup %2726  ;;  %2742 = vrsqrt.f32 %v1376_v41  ;;  %v1542_v34 = vpop.permute.xlu0 %1541 }
 0x3d6   : > { %v2729_v12 = vpop.eup %2728  ;;  %v1647_v54 = vmul.f32 %v2727_v61, %v1583_v18  ;;  %2744 = vrcp.f32 %v1626_v47  ;;  %v1586_v0 = vadd.f32 %v1542_v34, %v1506_v46 }
 0x3d7   : > { %v2731_v24 = vpop.eup %2730  ;;  %v1624_v39 = vadd.f32 1.0, %v2729_v12 }
 0x3d8   : > { %v2733_v16 = vpop.eup %2732  ;;  %v1653_v43 = vpack.c.bf16 %v1647_v54, %v1646_v37  ;;  %v1644_v63 = vmul.f32 %v2731_v24, %v1580_v3  ;;  %v4015_v3 = vld [vmem:[#allocation17_spill] sm:$0xff] }
 0x3d9   : > { %v1534_v49 = vpop.permute.xlu1 %1533  ;;  %v2735_v32 = vpop.eup %2734  ;;  %v1627_v28 = vadd.f32 1.0, %v2733_v16  ;;  %2746 = vrcp.f32 %v1624_v39 }
 0x3da   : > { %v1645_v38 = vmul.f32 %v2735_v32, %v1581_v59  ;;  %v4016_v59 = vld [vmem:[#allocation18_spill] sm:$0xff] }
 0x3db   : > { %2748 = vrcp.f32 %v1627_v28 }
 0x3dc   : > { %v2737_v17 = vpop.eup %2736  ;;  %v1652_v1 = vpack.c.bf16 %v1645_v38, %v1644_v63  ;;  %v3853_v38 = vpop.permute.xlu0 %1883 }
 0x3dd   : > { %v1538_v19 = vpop.permute.xlu1 %1537  ;;  %v1625_v22 = vadd.f32 1.0, %v2737_v17  ;;  %v2739_v44 = vpop.eup %2738 }
 0x3de   : > { %2467 = vmatprep.subr.bf16.mxu1 %v1652_v1  ;;  %v2741_v33 = vpop.eup %2740  ;;  %v1411_v45 = vmul.f32 %v2739_v44, %v1363_v57 }
 0x3df   : > { %2750 = vrcp.f32 %v1625_v22  ;;  %2468 = vmatpush3.bf16.msra.mxu1 %v1652_v1  ;;  %v2743_v27 = vpop.eup %2742  ;;  %v1409_v10 = vmul.f32 %v2741_v33, %v1361_v13 }
 0x3e0   : > { %2469 = vmatprep.subr.bf16.mxu1 %v1653_v43  ;;  %v1408_v29 = vmul.f32 %v2743_v27, %v1360_v53  ;;  %v2745_v6 = vpop.eup %2744 }
 0x3e1   : > { %v1505_v7 = vmul.f32 %v1448_v8, %v1409_v10  ;;  %v1650_v15 = vmul.f32 %v2745_v6, %v1586_v0 }
 0x3e2   : > { %v1458_v23 = vpop.permute.xlu1 %1457  ;;  %v1504_v21 = vmul.f32 %v1443_v52, %v1408_v29 }
 0x3e3   : > { %2470 = vmatpush3.bf16.msra.mxu1 %v1653_v43  ;;  %v1507_v62 = vmul.f32 %v1458_v23, %v1411_v45  ;;  %v2747_v40 = vpop.eup %2746  ;;  %v1585_v42 = vadd.f32 %v1538_v19, %v1505_v7  ;;  %v3857_v19 = vpop.permute.xlu0 %1930 }
 0x3e4   : > { %v1584_v50 = vadd.f32 %v1534_v49, %v1504_v21 }
 0x3e5   : > { %v2749_v5 = vpop.eup %2748 }
 0x3e6   : > { %v1648_v9 = vmul.f32 %v2747_v40, %v1584_v50 }
 0x3e7   : > { %v1546_v20 = vpop.permute.xlu1 %1545  ;;  %v3861_v1 = vpop.permute.xlu0 %1942 }
 0x3e8   : > { %v1587_v55 = vadd.f32 %v1546_v20, %v1507_v62 }
 0x3e9   : > { %v2751_v14 = vpop.eup %2750 }
 0x3ea   : > { %v1649_v56 = vmul.f32 %v2751_v14, %v1585_v42  ;;  %v1651_v58 = vmul.f32 %v2749_v5, %v1587_v55 }
 0x3eb   : > { %v3865_v35 = vpop.permute.xlu0 %1950 }
 0x3ec   : > { %v1654_v31 = vpack.c.bf16 %v1649_v56, %v1648_v9  ;;  %v1655_v4 = vpack.c.bf16 %v1651_v58, %v1650_v15  ;;  %v3841_v8 = vpop.permute.xlu1 %1888 }
 0x3ee   : > { %2471 = vmatprep.subr.bf16.mxu1 %v1654_v31 }
 0x3ef   : > { %2472 = vmatpush3.bf16.msra.mxu1 %v1654_v31 }
 0x3f0   : > { %2473 = vmatprep.subr.bf16.mxu1 %v1655_v4  ;;  %v3843_v49 = vpop.permute.xlu1 %1893 }
 0x3f3   : > { %2474 = vmatpush3.bf16.msra.mxu1 %v1655_v4 }
 0x3f4   : > { %v3845_v39 = vpop.permute.xlu1 %1898 }
 0x3f6   : > { %2476 = vmatmul.mubr.msk.bf16.vlgmr.msra.gmra.mrb[32].mxu1 %vm864_vm9, %v2685_v36 }
 0x3f7   : > { %2479 = vmatprep.mubr.msk.bf16.mxu1 %vm864_vm9, %v2686_v60 }
 0x3f8   : > { %v3847_v32 = vpop.permute.xlu1 %1903 }
 0x3fc   : > { %v3849_v28 = vpop.permute.xlu1 %1908 }
 0x3fe   : > { %2480 = vmatmul.mubr.msk.bf16.gmra.mrb[36].mxu1 %vm864_vm9, %v2687_v48 }
 0x400   : > { %v3851_v63 = vpop.permute.xlu1 %1913 }
 0x404   : > { %v3855_v17 = vpop.permute.xlu1 %1918 }
 0x409   : > { %v3859_v22 = vpop.permute.xlu1 %1934 }
 0x40d   : > { %v3863_v44 = vpop.permute.xlu1 %1938 }
 0x411   : > { %v3867_v33 = vpop.permute.xlu1 %1946 }
 0x4c9   : > { %v3799_v41 = vpop.f32.mrb[32].mxu1 }
 0x4ca   : > { %1765 = vadd.xlane.f32.xlu0 %v3799_v41  ;;  %v3802_v11 = vpop.f32.mrb[33].mxu1  ;;  %v1779_v52 = vmul.f32 %v3799_v41, %v3799_v41 }
 0x4cb   : > { %1761 = vadd.xlane.f32.xlu1 %v3802_v11  ;;  %v3805_v18 = vpop.f32.mrb[34].mxu1  ;;  %v1777_v54 = vmul.f32 %v3802_v11, %v3802_v11 }
 0x4cc   : > { %v3809_v61 = vpop.f32.mrb[35].mxu1  ;;  %v1780_v26 = vmul.f32 %v3805_v18, %v3805_v18 }
 0x4cd   : > { %v1778_v25 = vmul.f32 %v3809_v61, %v3809_v61 }
 0x4ce   : > { %1789 = vadd.xlane.f32.xlu0 %v1779_v52 }
 0x4cf   : > { %1767 = vadd.xlane.f32.xlu1 %v3805_v18 }
 0x4d1   : > { %v3814_v30 = vpop.f32.mrb[36].mxu1 }
 0x4d2   : > { %1763 = vadd.xlane.f32.xlu0 %v3809_v61  ;;  %v3817_v12 = vpop.f32.mrb[37].mxu1  ;;  %v1783_v51 = vmul.f32 %v3814_v30, %v3814_v30 }
 0x4d3   : > { %1791 = vadd.xlane.f32.xlu1 %v1780_v26  ;;  %v3819_v37 = vpop.f32.mrb[38].mxu1  ;;  %v1781_v47 = vmul.f32 %v3817_v12, %v3817_v12 }
 0x4d4   : > { %v3823_v24 = vpop.f32.mrb[39].mxu1  ;;  %v1784_v16 = vmul.f32 %v3819_v37, %v3819_v37 }
 0x4d5   : > { %v1782_v43 = vmul.f32 %v3823_v24, %v3823_v24 }
 0x4d6   : > { %1785 = vadd.xlane.f32.xlu0 %v1777_v54 }
 0x4d7   : > { %1787 = vadd.xlane.f32.xlu1 %v1778_v25 }
 0x4da   : > { %1773 = vadd.xlane.f32.xlu0 %v3814_v30 }
 0x4db   : > { %1775 = vadd.xlane.f32.xlu1 %v3819_v37 }
 0x4de   : > { %1769 = vadd.xlane.f32.xlu0 %v3817_v12 }
 0x4df   : > { %1771 = vadd.xlane.f32.xlu1 %v3823_v24 }
 0x4e2   : > { %1797 = vadd.xlane.f32.xlu0 %v1783_v51 }
 0x4e3   : > { %1799 = vadd.xlane.f32.xlu1 %v1784_v16 }
 0x4e6   : > { %1793 = vadd.xlane.f32.xlu0 %v1781_v47 }
 0x4e7   : > { %1795 = vadd.xlane.f32.xlu1 %v1782_v43 }
 0x4f8   : > { %1954 = vperm.xlu1 %2623, %v4015_v3  }
 0x4fc   : > { %1958 = vperm.xlu0 %2622, %v4016_v59  }
 0x557   : > { %v1766_v27 = vpop.xlane.xlu0 %1765 }
 0x558   : > { %v1803_v57 = vmul.f32 0.0078125, %v1766_v27  ;;  %v1762_v53 = vpop.xlane.xlu1 %1761 }
 0x559   : > { %v3869_v7 = vmul.f32 0.0078125, %v1762_v53 }
 0x55a   : > { %v1819_v23 = vmul.f32 %v1803_v57, %v1803_v57  ;;  %v1851_v16 = vsub.f32 %v3799_v41, %v1803_v57 }
 0x55b   : > { %v1790_v13 = vpop.xlane.xlu0 %1789  ;;  %v1817_v50 = vmul.f32 %v3869_v7, %v3869_v7 }
 0x55c   : > { %v1811_v10 = vmul.f32 0.0078125, %v1790_v13  ;;  %v1768_v29 = vpop.xlane.xlu1 %1767 }
 0x55d   : > { %v1804_v45 = vmul.f32 0.0078125, %v1768_v29 }
 0x55e   : > { %v1827_v34 = vsub.f32 %v1811_v10, %v1819_v23 }
 0x55f   : > { %v1764_v6 = vpop.xlane.xlu0 %1763  ;;  %v1820_v21 = vmul.f32 %v1804_v45, %v1804_v45 }
 0x560   : > { %v1835_v2 = vmax.f32 %v1827_v34, 0.0  ;;  %v1792_v46 = vpop.xlane.xlu1 %1791  ;;  %v3871_v62 = vmul.f32 0.0078125, %v1764_v6 }
 0x561   : > { %v1812_v40 = vmul.f32 0.0078125, %v1792_v46 }
 0x562   : > { %v1859_v20 = vadd.f32 1e-05, %v1835_v2  ;;  %v1818_v14 = vmul.f32 %v3871_v62, %v3871_v62  ;;  %v1852_v2 = vsub.f32 %v3805_v18, %v1804_v45  ;;  %v1850_v18 = vsub.f32 %v3809_v61, %v3871_v62 }
 0x563   : > { %v1828_v5 = vsub.f32 %v1812_v40, %v1820_v21  ;;  %v1786_v0 = vpop.xlane.xlu0 %1785 }
 0x564   : > { %2752 = vrsqrt.f32 %v1859_v20  ;;  %v1809_v42 = vmul.f32 0.0078125, %v1786_v0  ;;  %v1788_v55 = vpop.xlane.xlu1 %1787 }
 0x565   : > { %v1836_v15 = vmax.f32 %v1828_v5, 0.0  ;;  %v1810_v9 = vmul.f32 0.0078125, %v1788_v55 }
 0x566   : > { %v1825_v56 = vsub.f32 %v1809_v42, %v1817_v50  ;;  %v1849_v42 = vsub.f32 %v3802_v11, %v3869_v7 }
 0x567   : > { %v1860_v58 = vadd.f32 1e-05, %v1836_v15  ;;  %v1826_v31 = vsub.f32 %v1810_v9, %v1818_v14  ;;  %v1774_v4 = vpop.xlane.xlu0 %1773 }
 0x568   : > { %v1833_v36 = vmax.f32 %v1825_v56, 0.0  ;;  %v1776_v60 = vpop.xlane.xlu1 %1775  ;;  %v3877_v25 = vmul.f32 0.0078125, %v1774_v4 }
 0x569   : > { %2754 = vrsqrt.f32 %v1860_v58  ;;  %v1834_v48 = vmax.f32 %v1826_v31, 0.0  ;;  %v1808_v47 = vmul.f32 0.0078125, %v1776_v60 }
 0x56a   : > { %v1857_v52 = vadd.f32 1e-05, %v1833_v36  ;;  %v1823_v27 = vmul.f32 %v3877_v25, %v3877_v25 }
 0x56b   : > { %v1858_v26 = vadd.f32 1e-05, %v1834_v48  ;;  %v1770_v54 = vpop.xlane.xlu0 %1769  ;;  %v1824_v29 = vmul.f32 %v1808_v47, %v1808_v47 }
 0x56c   : > { %2756 = vrsqrt.f32 %v1857_v52  ;;  %v1772_v51 = vpop.xlane.xlu1 %1771  ;;  %v3882_v53 = vmul.f32 0.0078125, %v1770_v54 }
 0x56d   : > { %2758 = vrsqrt.f32 %v1858_v26  ;;  %v1806_v34 = vmul.f32 0.0078125, %v1772_v51 }
 0x56e   : > { %v2753_v43 = vpop.eup %2752  ;;  %v1821_v20 = vmul.f32 %v3882_v53, %v3882_v53 }
 0x56f   : > { %v1875_v3 = vmul.f32 %v2753_v43, %v1851_v16  ;;  %v1798_v59 = vpop.xlane.xlu0 %1797  ;;  %v1856_v16 = vsub.f32 %v3819_v37, %v1808_v47 }
 0x570   : > { %v1815_v13 = vmul.f32 0.0078125, %v1798_v59  ;;  %v1800_v23 = vpop.xlane.xlu1 %1799 }
 0x571   : > { %v1923_v10 = vmul.f32 %v3843_v49, %v1875_v3  ;;  %v1816_v6 = vmul.f32 0.0078125, %v1800_v23  ;;  %v1822_v49 = vmul.f32 %v1806_v34, %v1806_v34  ;;  %v1853_v3 = vsub.f32 %v3817_v12, %v3882_v53 }
 0x572   : > { %v1831_v41 = vsub.f32 %v1815_v13, %v1823_v27  ;;  %v1854_v13 = vsub.f32 %v3823_v24, %v1806_v34 }
 0x573   : > { %v2755_v57 = vpop.eup %2754  ;;  %v1832_v46 = vsub.f32 %v1816_v6, %v1824_v29  ;;  %v1794_v21 = vpop.xlane.xlu0 %1793  ;;  %v1963_v31 = vadd.f32 %v3863_v44, %v1923_v10 }
 0x574   : > { %v1876_v40 = vmul.f32 %v2755_v57, %v1852_v2  ;;  %v1839_v5 = vmax.f32 %v1831_v41, 0.0  ;;  %v1813_v0 = vmul.f32 0.0078125, %v1794_v21  ;;  %v1796_v50 = vpop.xlane.xlu1 %1795 }
 0x575   : > { %v1840_v55 = vmax.f32 %v1832_v46, 0.0  ;;  %v1814_v14 = vmul.f32 0.0078125, %v1796_v50 }
 0x576   : > { %v2757_v15 = vpop.eup %2756  ;;  %v1924_v45 = vmul.f32 %v3845_v39, %v1876_v40  ;;  %v1863_v9 = vadd.f32 1e-05, %v1839_v5  ;;  %v1829_v56 = vsub.f32 %v1813_v0, %v1821_v20 }
 0x577   : > { %v2759_v58 = vpop.eup %2758  ;;  %v1873_v4 = vmul.f32 %v2757_v15, %v1849_v42  ;;  %v1864_v36 = vadd.f32 1e-05, %v1840_v55  ;;  %v1830_v60 = vsub.f32 %v1814_v14, %v1822_v49 }
 0x578   : > { %v1964_v11 = vadd.f32 %v3861_v1, %v1924_v45  ;;  %v1874_v7 = vmul.f32 %v2759_v58, %v1850_v18  ;;  %2760 = vrsqrt.f32 %v1863_v9  ;;  %v1837_v48 = vmax.f32 %v1829_v56, 0.0  ;;  %v1955_v23 = vpop.permute.xlu1 %1954 }
 0x579   : > { %v1921_v52 = vmul.f32 %v3853_v38, %v1873_v4  ;;  %2762 = vrsqrt.f32 %v1864_v36  ;;  %v1838_v61 = vmax.f32 %v1830_v60, 0.0  ;;  %v1855_v1 = vsub.f32 %v3814_v30, %v3877_v25 }
 0x57a   : > { %v2280_v62 = vpack.c.bf16 %v1964_v11, %v1963_v31  ;;  %v1922_v39 = vmul.f32 %v3841_v8, %v1874_v7  ;;  %v1861_v26 = vadd.f32 1e-05, %v1837_v48 }
 0x57b   : > { %v1961_v54 = vadd.f32 %v3857_v19, %v1921_v52  ;;  %v1862_v44 = vadd.f32 1e-05, %v1838_v61  ;;  %v1959_v47 = vpop.permute.xlu0 %1958 }
 0x57c   : > { %v1962_v51 = vadd.f32 %v3859_v22, %v1922_v39  ;;  %2764 = vrsqrt.f32 %v1861_v26  ;;  %2292 = vst [vmem:[%s3901_s24 + $0x8] sm:$0xff] %v2280_v62  }
 0x57d   : > { %2766 = vrsqrt.f32 %v1862_v44 }
 0x57e   : > { %v2275_v38 = vpack.c.bf16 %v1962_v51, %v1961_v54 }
 0x580   : > { %2276 = vst [vmem:[%s3901_s24] sm:$0xff] %v2275_v38  }
 0x582   : > { %v2761_v8 = vpop.eup %2760 }
 0x583   : > { %v2763_v19 = vpop.eup %2762  ;;  %v1879_v43 = vmul.f32 %v2761_v8, %v1855_v1 }
 0x584   : > { %v1880_v22 = vmul.f32 %v2763_v19, %v1856_v16 }
 0x585   : > { %v1927_v59 = vmul.f32 %v3851_v63, %v1879_v43 }
 0x586   : > { %v2765_v27 = vpop.eup %2764  ;;  %v1928_v30 = vmul.f32 %v3855_v17, %v1880_v22 }
 0x587   : > { %v2767_v25 = vpop.eup %2766  ;;  %v1877_v10 = vmul.f32 %v2765_v27, %v1853_v3  ;;  %v1967_v37 = vadd.f32 %v1955_v23, %v1927_v59 }
 0x588   : > { %v1878_v29 = vmul.f32 %v2767_v25, %v1854_v13  ;;  %v1968_v6 = vadd.f32 %v1959_v47, %v1928_v30 }
 0x589   : > { %v1925_v12 = vmul.f32 %v3847_v32, %v1877_v10 }
 0x58a   : > { %v1926_v63 = vmul.f32 %v3849_v28, %v1878_v29  ;;  %v2290_v53 = vpack.c.bf16 %v1968_v6, %v1967_v37 }
 0x58b   : > { %v1965_v24 = vadd.f32 %v3867_v33, %v1925_v12 }
 0x58c   : > { %v1966_v17 = vadd.f32 %v3865_v35, %v1926_v63  ;;  %2294 = vst [vmem:[%s3901_s24 + $0x18] sm:$0xff] %v2290_v53  }
 0x58e   : > { %v2285_v34 = vpack.c.bf16 %v1966_v17, %v1965_v24 }
 0x590   : > { %2293 = vst [vmem:[%s3901_s24 + $0x10] sm:$0xff] %v2285_v34  }
 0x591   : > { %2923 = shalt.err (!%p2920_p0)
}
 0x592   : > { %s2924_s7 = scalar_lea.hbm %s3925_s9, 512  ;;  %s2928_s14 = scalar_lea.hbm %s3981_s5, 1024 }
 0x593   : > { %p2925_p4 = scmp.ne.s32.totalorder %s3925_s9, %s2924_s7  ;;  %p2929_p12 = scmp.lt.u32.totalorder %s3925_s9, %s3981_s5 }
 0x594   : > { %p2930_p1 = scmp.lt.u32.totalorder %s2928_s14, %s2924_s7  ;;  %p2932_p8 = scmp.lt.u32.totalorder %s2924_s7, %s3925_s9 }
 0x595   : > { %p2926_p13 = pnand %p2925_p4, %p3228_p5 }
 0x596   : > { %p2931_p11 = por %p2930_p1, %p2929_p12 }
 0x597   : > { %p2927_p2 = pneg %p2926_p13 }
 0x598   : > { %p2933_p6 = por %p2932_p8, %p2931_p11 }
 0x59a   : > { %p2934_p10 = pnand %p2933_p6, %p2927_p2 }
 0x59c   : > { %2937 = shalt.err (!%p2934_p10)
}
 0x59d   : > { %s3025_s1 = smov 64  }
 0x59e   : > { %2501 = dma.vmem_to_hbm [thread:$0]  (%p3228_p5), %s3920_s27, 512, %s3925_s9, %s2010_s10, %s3025_s1, %s3025_s1, %s3013_s30  }
 0x59f PF: > { %s4017_s12 = sld [smem:[#allocation16_spill]]  ;;  %s2040_s29 = sand.u32 1, %s2980_s18  }
 0x5a0   : > { %p4019_p7 = scmp.ge.s32.totalorder %s3000_s23, 2  ;;  %s2041_s26 = scalar_lea.sflag [#allocation4], %s2040_s29 }
 0x5a5   : > { %p4018_p3 = scmp.ne.s32.totalorder %s4017_s12, 0 }
 0x5a7   : > { %p2521_p9 = pnand %p4019_p7, %p4018_p3 }
 0x5a9   : > { %2975 = dma.done.wait (!%p2521_p9), %s2041_s26, 512  }
 0x5aa   : > { %2977 = vsyncadd (!%p2521_p9), %s2041_s26, 4294966784  ;;  %s23_s23 = sadd.s32 1, %s3000_s23   ;;  %s4020_s18 = smov %s2984_s19 }
 0x5ab   : > { %p20_p0 = scmp.ge.s32.totalorder %s23_s23, 4   ;;  %s4021_s19 = smov %s2988_s20 }
 0x5ac   : > { %s4022_s20 = smov %s3237_s15  ;;  %s4023_s21 = smov %s2996_s22 }
 0x5ad   : > { %s4024_s22 = smov %s4026_s16  ;;  %22 = sbr.rel (!%p20_p0) target bundleno = 10 (0xa), region = 105 }
 0x5b4   :  { %2046 = vsyncpa [#allocation3], 1 }
 0x5b5   :  { %2048 = vsyncpa [#allocation3 + $0x1], 1 }
 0x5b6   :  { %2049 = vsyncpa [#allocation6], 1 }
 0x5b7   :  { %2050 = vsyncpa [#allocation9], 1 }
 0x5b8   :  { %2051 = vsyncpa [#allocation4], 1 }
 0x5b9   :  { %2053 = vsyncpa [#allocation4 + $0x1], 1 }

// kernel: generator_forward.9
= control target key start
LH: loop header
LB: loop body
LE: loop exit
PB: predicated region body
PF: predicated region fallthrough
CT: control target
= control target key end

     0   :  { %s4038_s0 = inlined_call_operand.hbm [shape: bf16[2,64,128], index: 0, kind: input, shape index: {}]   ;;  %s4039_s1 = inlined_call_operand.hbm [shape: bf16[64,64], index: 1, kind: input, shape index: {}]   ;;  %s4040_s2 = inlined_call_operand.hbm [shape: f32[64,2], index: 2, kind: input, shape index: {}]   ;;  %s4041_s3 = inlined_call_operand.hbm [shape: bf16[128,576], index: 3, kind: input, shape index: {}]   ;;  %s4042_s4 = inlined_call_operand.hbm [shape: f32[128,2], index: 4, kind: input, shape index: {}]   ;;  %s4043_s5 = inlined_call_operand.hbm [shape: bf16[2,64,128], index: 5, kind: output, shape index: {}]  }
   0x1   :  { %4055 = sst [smem:[#allocation29_spill]] %s4039_s1 }
   0x2   :  { %10 = vsyncpa [#allocation3], 0 }
   0x3   :  { %12 = vsyncpa [#allocation3 + $0x1], 0 }
   0x4   :  { %13 = vsyncpa [#allocation6], 0 }
   0x5   :  { %14 = vsyncpa [#allocation9], 0 }
   0x6   :  { %15 = vsyncpa [#allocation4], 0 }
   0x7   :  { %17 = vsyncpa [#allocation4 + $0x1], 0  ;;  %s3068_s18 = smov 0   ;;  %s3070_s19 = smov 0  }
   0x8   :  { %s3072_s20 = smov 0   ;;  %s3074_s21 = smov 0  }
   0x9   :  { %s3076_s22 = smov 0   ;;  %s3078_s23 = smov 0  }
   0xa LB: > { %s2163_s24 = sadd.s32 4294967295, %s3012_s23   ;;  %s2164_s25 = sadd.s32 4294967294, %s3012_s23   ;;  %s3012_s23 = sphi %s3078_s23, %s23_s23   ;;  %s3008_s22 = sphi %s3076_s22, %s4106_s22   ;;  %s3004_s21 = sphi %s3074_s21, %s4105_s21   ;;  %s3000_s20 = sphi %s3072_s20, %s4104_s20   ;;  %s2996_s19 = sphi %s3070_s19, %s4103_s19   ;;  %s2992_s18 = sphi %s3068_s18, %s4102_s18  }
   0xb   : > { %p55_p0 = scmp.ne.s32.totalorder %s2996_s19, %s2992_s18  ;;  %p3102_p1 = scmp.eq.s32.totalorder %s2163_s24, 0 }
   0xc   : > { %p3106_p2 = scmp.eq.s32.totalorder %s2163_s24, 1  ;;  %p191_p3 = scmp.eq.s32.totalorder %s2164_s25, 1 }
   0xd   : > { %s4056_s26 = scalar_select %p3102_p1, 1, 0 }
   0xe   : > { %s4057_s27 = scalar_select %p3106_p2, 1, 0 }
   0xf   : > { %p3112_p4 = por %p3102_p1, %p55_p0  ;;  %p2165_p5 = scmp.ge.s32.totalorder %s3012_s23, 1 }
  0x10   : > { %p3117_p6 = por %p191_p3, %p55_p0  ;;  %p198_p7 = scmp.lt.s32.totalorder %s3012_s23, 3 }
  0x11   : > { %s4058_s28 = scalar_select %p3112_p4, 1, 0 }
  0x12   : > { %s4059_s29 = scalar_select %p3117_p6, 1, 0 }
  0x13   : > { %p3122_p8 = pnand %p2165_p5, %p198_p7  ;;  %s3014_s6 = smov [#allocation5]  }
  0x14   : > { %4060 = sst [smem:[#allocation16_spill]] %s4059_s29  ;;  %s213_s7 = sshll.u32 %s3014_s6, 4  ;;  %s3126_s7 = int_to_ptr.vmem [resolvable:$true] %s213_s7 }
  0x15   : > { %s4061_s30 = scalar_select %p3122_p8, 1, 0 }
  0x16   : > { %p2519_p9 = pneg %p3122_p8  ;;  %s3015_s9 = smov [#allocation8]  }
  0x17   : > { %s246_s10 = sshll.u32 %s3015_s9, 4  ;;  %s4063_s1 = sld [smem:[#allocation29_spill]]  ;;  %s3137_s10 = int_to_ptr.vmem [resolvable:$true] %s246_s10 }
  0x18   : > { %p3133_p11 = pnand %p2519_p9, %p3102_p1 }
  0x1a   : > { %p3147_p13 = pneg %p3133_p11 }
  0x1d   : > { %s2780_s13 = scalar_lea.hbm %s4063_s1, 512 }
  0x1e   : > { %p2781_p12 = scmp.ne.s32.totalorder %s4063_s1, %s2780_s13  ;;  %p2787_p5 = scmp.lt.u32.totalorder %s2780_s13, %s4063_s1 }
  0x20   : > { %p2783_p0 = pnand %p3147_p13, %p2781_p12 }
  0x22   : > { %p2784_p3 = pneg %p2783_p0 }
  0x24   : > { %p2789_p7 = pnand %p2787_p5, %p2784_p3 }
  0x26   : > { %2792 = shalt.err (!%p2789_p7)
}
  0x27   : > { %s2793_s25 = scalar_lea.vmem %s3126_s7, 512  ;;  %p2801_p1 = scmp.lt.s32.totalorder %s3126_s7, %s3126_s7 }
  0x28   : > { %p2794_p9 = scmp.ne.s32.totalorder %s3126_s7, %s2793_s25  ;;  %p2802_p4 = scmp.lt.s32.totalorder %s2793_s25, %s2793_s25 }
  0x2a   : > { %p2796_p10 = pnand %p2794_p9, %p3147_p13  ;;  %p2803_p12 = por %p2802_p4, %p2801_p1 }
  0x2c   : > { %p2797_p6 = pneg %p2796_p10 }
  0x2e   : > { %p2804_p0 = pnand %p2803_p12, %p2797_p6 }
  0x30   : > { %2807 = shalt.err (!%p2804_p0)
}
  0x31   : > { %s4048_s6 = smov 64   ;;  %s4049_s9 = smov 4  }
  0x32   : > { %2522 = dma.hbm_to_vmem [thread:$0]  (!%p3133_p11), %s4063_s1, 512, %s3126_s7, [#allocation6], %s4048_s6, %s4048_s6, %s4049_s9  }
  0x33   : > { %s2808_s15 = scalar_lea.hbm %s4041_s3, 5120 }
  0x34   : > { %p2809_p1 = scmp.ne.s32.totalorder %s4041_s3, %s2808_s15  ;;  %p2815_p10 = scmp.lt.u32.totalorder %s2808_s15, %s4041_s3 }
  0x36   : > { %p2811_p4 = pnand %p2809_p1, %p3147_p13 }
  0x38   : > { %p2812_p6 = pneg %p2811_p4 }
  0x3a   : > { %p2817_p3 = pnand %p2815_p10, %p2812_p6 }
  0x3c   : > { %2820 = shalt.err (!%p2817_p3)
}
  0x3d   : > { %s2821_s7 = scalar_lea.vmem %s3137_s10, 5120  ;;  %p2829_p12 = scmp.lt.s32.totalorder %s3137_s10, %s3137_s10 }
  0x3e   : > { %p2822_p5 = scmp.ne.s32.totalorder %s3137_s10, %s2821_s7  ;;  %p2830_p0 = scmp.lt.s32.totalorder %s2821_s7, %s2821_s7 }
  0x40   : > { %p2824_p7 = pnand %p2822_p5, %p3147_p13  ;;  %p2831_p1 = por %p2830_p0, %p2829_p12 }
  0x42   : > { %p2825_p9 = pneg %p2824_p7 }
  0x44   : > { %p2832_p4 = pnand %p2831_p1, %p2825_p9 }
  0x46   : > { %2835 = shalt.err (!%p2832_p4)
}
  0x47   : > { %s3018_s11 = smov 320   ;;  %s3019_s29 = smov 20  }
  0x48   : > { %2528 = dma.hbm_to_vmem [thread:$0]  (!%p3133_p11), %s4041_s3, 5120, %s3137_s10, [#allocation9], %s3018_s11, %s3018_s11, %s3019_s29  }
  0x49   : > { %s3020_s14 = smov [#allocation7]   ;;  %s2836_s25 = scalar_lea.hbm %s4040_s2, 1024 }
  0x4a   : > { %s229_s15 = sshll.u32 %s3020_s14, 4  ;;  %p2837_p6 = scmp.ne.s32.totalorder %s4040_s2, %s2836_s25  ;;  %s230_s15 = int_to_ptr.vmem [resolvable:$true] %s229_s15 }
  0x4b   : > { %p2843_p5 = scmp.lt.u32.totalorder %s2836_s25, %s4040_s2 }
  0x4c   : > { %p2839_p10 = pnand %p2837_p6, %p3147_p13 }
  0x4e   : > { %p2840_p3 = pneg %p2839_p10 }
  0x50   : > { %p2845_p7 = pnand %p2843_p5, %p2840_p3 }
  0x52   : > { %2848 = shalt.err (!%p2845_p7)
}
  0x53   : > { %s2849_s10 = scalar_lea.vmem %s230_s15, 1024  ;;  %p2857_p1 = scmp.lt.s32.totalorder %s230_s15, %s230_s15 }
  0x54   : > { %p2850_p9 = scmp.ne.s32.totalorder %s230_s15, %s2849_s10  ;;  %p2858_p4 = scmp.lt.s32.totalorder %s2849_s10, %s2849_s10 }
  0x56   : > { %p2852_p12 = pnand %p2850_p9, %p3147_p13  ;;  %p2859_p8 = por %p2858_p4, %p2857_p1 }
  0x58   : > { %p2853_p0 = pneg %p2852_p12 }
  0x5a   : > { %p2860_p2 = pnand %p2859_p8, %p2853_p0 }
  0x5c   : > { %2863 = shalt.err (!%p2860_p2)
}
  0x5d   : > { %s3021_s6 = smov 128   ;;  %s3022_s11 = smov 8  }
  0x5e   : > { %2525 = dma.hbm_to_vmem [thread:$0]  (!%p3133_p11), %s4040_s2, 1024, %s230_s15, [#allocation6], %s3021_s6, %s3021_s6, %s3022_s11  }
  0x5f   : > { %s3023_s29 = smov [#allocation10]   ;;  %s2864_s17 = scalar_lea.hbm %s4042_s4, 2048 }
  0x60   : > { %s262_s12 = sshll.u32 %s3023_s29, 4  ;;  %p2865_p2 = scmp.ne.s32.totalorder %s4042_s4, %s2864_s17  ;;  %s263_s12 = int_to_ptr.vmem [resolvable:$true] %s262_s12 }
  0x61   : > { %p2871_p10 = scmp.lt.u32.totalorder %s2864_s17, %s4042_s4 }
  0x62   : > { %p2867_p8 = pnand %p2865_p2, %p3147_p13 }
  0x64   : > { %p2868_p6 = pneg %p2867_p8 }
  0x66   : > { %p2873_p3 = pnand %p2871_p10, %p2868_p6 }
  0x68   : > { %2876 = shalt.err (!%p2873_p3)
}
  0x69   : > { %s2877_s15 = scalar_lea.vmem %s263_s12, 2048  ;;  %p2885_p12 = scmp.lt.s32.totalorder %s263_s12, %s263_s12 }
  0x6a   : > { %p2878_p5 = scmp.ne.s32.totalorder %s263_s12, %s2877_s15  ;;  %p2886_p0 = scmp.lt.s32.totalorder %s2877_s15, %s2877_s15 }
  0x6c   : > { %p2880_p7 = pnand %p2878_p5, %p3147_p13  ;;  %p2887_p1 = por %p2886_p0, %p2885_p12 }
  0x6e   : > { %p2881_p9 = pneg %p2880_p7 }
  0x70   : > { %p2888_p4 = pnand %p2887_p1, %p2881_p9 }
  0x72   : > { %2891 = shalt.err (!%p2888_p4)
}
  0x73   : > { %2531 = dma.hbm_to_vmem [thread:$0]  (!%p3133_p11), %s4042_s4, 2048, %s263_s12, [#allocation9], %s3021_s6, %s3021_s6, %s3022_s11  }
  0x74   : > { %s35_s16 = sadd.s32 1, %s3008_s22  ;;  %s42_s29 = sadd.s32 1, %s3000_s20 }
  0x75   : > { %p37_p13 = scmp.ge.s32.totalorder %s35_s16, 2  ;;  %p49_p2 = scmp.ne.s32.totalorder %s3000_s20, %s2996_s19 }
  0x76   : > { %p50_p8 = scmp.eq.s32.totalorder %s3012_s23, 0  ;;  %p2544_p6 = scmp.lt.s32.totalorder %s3012_s23, 2 }
  0x77   : > { %s4108_s16 = smov (%p37_p13, %s35_s16), 0  ;;  %p4065_p3 = scmp.ne.s32.totalorder %s4057_s27, 0 }
  0x78   : > { %p51_p10 = por %p50_p8, %p49_p2  ;;  %s39_s13 = ssub.s32 %s3008_s22, %s4108_s16 }
  0x79   : > { %p3240_p5 = por %p4065_p3, %p49_p2  ;;  %s276_s14 = sand.u32 1, %s3000_s20  }
  0x7a   : > { %p40_p7 = scmp.eq.s32.totalorder %s39_s13, 0  ;;  %s2171_s6 = sshll.u32 %s276_s14, 5 }
  0x7b   : > { %s2270_s11 = sshll.u32 %s3008_s22, 9  ;;  %s280_s27 = scalar_lea.vmem [#allocation2], %s2171_s6 }
  0x7c   : > { %s3249_s12 = scalar_select %p40_p7, %s3000_s20, %s42_s29  }
  0x7d   : > { %s3254_s25 = scalar_lea.hbm %s4038_s0, %s2270_s11  ;;  %s287_s7 = sshll.u32 %s280_s27, 4  ;;  %s3262_s7 = int_to_ptr.vmem [resolvable:$true] %s287_s7 }
  0x7e   : > { %p3258_p11 = pnand %p2544_p6, %p51_p10  ;;  %s3264_s15 = scalar_lea.sflag [#allocation3], %s276_s14 }
  0x7f   : > { %s2892_s1 = scalar_lea.hbm %s3254_s25, 512  ;;  %s2897_s13 = scalar_lea.hbm %s4038_s0, 1024 }
  0x80   : > { %p2893_p9 = scmp.ne.s32.totalorder %s3254_s25, %s2892_s1  ;;  %p2894_p12 = pneg %p3258_p11 }
  0x81   : > { %p2898_p4 = scmp.lt.u32.totalorder %s3254_s25, %s4038_s0  ;;  %p2899_p13 = scmp.lt.u32.totalorder %s2897_s13, %s2892_s1 }
  0x82   : > { %p2895_p0 = pnand %p2894_p12, %p2893_p9  ;;  %p2901_p8 = scmp.lt.u32.totalorder %s2892_s1, %s3254_s25 }
  0x83   : > { %p2900_p2 = por %p2899_p13, %p2898_p4 }
  0x84   : > { %p2896_p1 = pneg %p2895_p0 }
  0x85   : > { %p2902_p6 = por %p2901_p8, %p2900_p2 }
  0x87   : > { %p2903_p10 = pnand %p2902_p6, %p2896_p1 }
  0x89   : > { %2906 = shalt.err (!%p2903_p10)
}
  0x8a   : > { %s2907_s14 = scalar_lea.vmem %s3262_s7, 512  ;;  %s3024_s17 = smov [#allocation2]  }
  0x8b   : > { %p2908_p3 = scmp.ne.s32.totalorder %s3262_s7, %s2907_s14  ;;  %s2912_s24 = sshll.u32 %s3024_s17, 4  ;;  %s2913_s24 = int_to_ptr.vmem [resolvable:$false] %s2912_s24 }
  0x8c   : > { %s2914_s27 = scalar_lea.vmem %s2913_s24, 1024  ;;  %p2915_p0 = scmp.lt.s32.totalorder %s3262_s7, %s2913_s24 }
  0x8d   : > { %p2910_p7 = pnand %p2908_p3, %p2894_p12  ;;  %p2916_p4 = scmp.lt.s32.totalorder %s2914_s27, %s2907_s14 }
  0x8f   : > { %p2911_p9 = pneg %p2910_p7  ;;  %p2917_p13 = por %p2916_p4, %p2915_p0 }
  0x91   : > { %p2918_p2 = pnand %p2917_p13, %p2911_p9 }
  0x93   : > { %2921 = shalt.err (!%p2918_p2)
}
  0x94   : > { %s4068_s1 = smov 4   ;;  %s4069_s9 = smov 64  }
  0x95   : > { %2535 = dma.hbm_to_vmem [thread:$0]  (!%p3258_p11), %s3254_s25, 512, %s3262_s7, %s3264_s15, %s4069_s9, %s4069_s9, %s4068_s1  }
  0x96   : > { %p4070_p12 = scmp.ne.s32.totalorder %s4061_s30, 0 }
  0x98   : > { %299 = sbr.rel (%p4070_p12) target bundleno = 1499 (0x5db), region = 40 }
  0x9f   : > { %s3298_s29 = sand.u32 1, %s2996_s19   ;;  %p4071_p1 = scmp.ne.s32.totalorder %s4058_s28, 0 }
  0xa0   : > { %s2175_s13 = sshll.u32 %s3298_s29, 5  ;;  %s302_s6 = scalar_lea.sflag [#allocation3], %s3298_s29 }
  0xa1   : > { %s305_s10 = scalar_lea.vmem [#allocation2], %s2175_s13 }
  0xa2   : > { %2975 = dma.done.wait (%p4071_p1), %s302_s6, 512  }
  0xa3   : > { %2977 = vsyncadd (%p4071_p1), %s302_s6, 4294966784  ;;  %p4072_p11 = scmp.ne.s32.totalorder %s4056_s26, 0 }
  0xa5   : > { %2979 = dma.done.wait (%p4072_p11), [#allocation6], 1536  }
  0xa6   : > { %2981 = vsyncadd (%p4072_p11), [#allocation6], 4294965760 }
  0xa7   : > { %2983 = dma.done.wait (%p4072_p11), [#allocation9], 7168  }
  0xa8   : > { %2985 = vsyncadd (%p4072_p11), [#allocation9], 4294960128  ;;  %v3025_v0 = vmov 0   ;;  %v2636_v1 = vld [vmem:[%s305_s10] sm:$0xff]   ;;  %v2637_v2 = vld [vmem:[%s305_s10 + $0x8] sm:$0xff]   ;;  %vm414_vm0 = vcmask 523264  }
  0xa9   : > { %2621 = vset.pattern.permute.xlu1 %v3025_v0  ;;  %2620 = vset.pattern.permute.xlu0 %v3025_v0  ;;  %v2638_v3 = vld [vmem:[%s305_s10 + $0x10] sm:$0xff]   ;;  %v2640_v4 = vld [vmem:[#allocation5] sm:$0xff]   ;;  %v2639_v5 = vld [vmem:[%s305_s10 + $0x18] sm:$0xff]   ;;  %v3026_v11 = vmov 1   ;;  %s3027_s26 = smov 4   ;;  %vm716_vm1 = vcmask 31744  }
  0xaa   : > { %2451 = vmatprep.subr.bf16.mxu0 %v2636_v1  ;;  %2459 = vmatprep.mubr.msk.bf16.mxu0 %vm414_vm0, %v2640_v4  ;;  %v573_v6 = vld [vmem:[#allocation7 + $0x8] sm:$0xff]  ;;  %v572_v7 = vld [vmem:[#allocation7] sm:$0xff]  ;;  %v2642_v10 = vld [vmem:[#allocation5 + $0x10] sm:$0xff]   ;;  %s3028_s28 = smov 126   ;;  %s3029_s30 = smov 125   ;;  %vm783_vm2 = vcmask 1031168  }
  0xab   : > { %2452 = vmatpush3.bf16.msra.mxu0 %v2636_v1  ;;  %619 = vperm.xlu1 %2621, %v573_v6   ;;  %v577_v8 = vld [vmem:[#allocation7 + $0x28] sm:$0xff]  ;;  %v574_v12 = vld [vmem:[#allocation7 + $0x10] sm:$0xff]  ;;  %v2643_v13 = vld [vmem:[#allocation5 + $0x18] sm:$0xff]   ;;  %s3030_s25 = smov 127   ;;  %s3031_s7 = smov 122   ;;  %vm883_vm4 = vcmask 998400  }
  0xac   : > { %2453 = vmatprep.subr.bf16.mxu0 %v2637_v2  ;;  %614 = vperm.xlu0 %2620, %v572_v7   ;;  %v2641_v9 = vld [vmem:[#allocation5 + $0x8] sm:$0xff]   ;;  %v575_v14 = vld [vmem:[#allocation7 + $0x18] sm:$0xff]  ;;  %v576_v15 = vld [vmem:[#allocation7 + $0x20] sm:$0xff]  ;;  %s3032_s15 = smov 124   ;;  %s3033_s11 = smov 121   ;;  %vm833_vm5 = vcmask 1014784  }
  0xad   : > { %v578_v30 = vld [vmem:[#allocation7 + $0x30] sm:$0xff]  ;;  %v579_v31 = vld [vmem:[#allocation7 + $0x38] sm:$0xff]  ;;  %s3034_s14 = smov 123   ;;  %vm3546_vm3 = vmneg %vm716_vm1  ;;  %s3035_s17 = smov 120   ;;  %vm808_vm6 = vcmask 1022976   ;;  %vm758_vm7 = vcmask 1039360  }
  0xae   : > { %vm908_vm8 = vcmask 990208   ;;  %vm858_vm9 = vcmask 1006592   ;;  %vm933_vm10 = vcmask 982016   ;;  %s3964_s24 = scalar_lea.vmem [#allocation11], %s2175_s13  ;;  %s2279_s1 = sshll.u32 %s3004_s21, 9 }
  0xaf   : > { %2454 = vmatpush3.bf16.msra.mxu0 %v2637_v2  ;;  %2622 = vset.pattern.permute.xlu1 %v3026_v11  ;;  %s2033_s27 = sshll.u32 %s3964_s24, 4  ;;  %s3987_s6 = scalar_lea.hbm %s4043_s5, %s2279_s1  ;;  %s3982_s27 = int_to_ptr.vmem [resolvable:$true] %s2033_s27 }
  0xb0   : > { %2455 = vmatprep.subr.bf16.mxu0 %v2638_v3  ;;  %639 = vperm.xlu0 %2620, %v577_v8   ;;  %s2018_s10 = scalar_lea.sflag [#allocation4], %s3298_s29  ;;  %s3036_s21 = smov [#allocation11]  }
  0xb1   : > { %661 = vperm.xlu1 %2622, %v572_v7  }
  0xb3   : > { %2456 = vmatpush3.bf16.msra.mxu0 %v2638_v3 }
  0xb4   : > { %2457 = vmatprep.subr.bf16.mxu0 %v2639_v5  ;;  %2627 = vset.pattern.permute.xlu0 %v3026_v11 }
  0xb5   : > { %665 = vperm.xlu1 %2622, %v573_v6  }
  0xb7   : > { %2458 = vmatpush3.bf16.msra.mxu0 %v2639_v5 }
  0xb9   : > { %2623 = vset.pattern.permute.xlu1 %v3025_v0 }
  0xba   : > { %2460 = vmatmul.mubr.msk.bf16.vlgmr.msra.gmra.mrb[0].mxu0 %vm414_vm0, %v2641_v9  ;;  %624 = vperm.xlu1 %2623, %v574_v12  }
  0xbb   : > { %2463 = vmatprep.mubr.msk.bf16.mxu0 %vm414_vm0, %v2642_v10 }
  0xbe   : > { %629 = vperm.xlu1 %2623, %v575_v14  }
  0xc2   : > { %2464 = vmatmul.mubr.msk.bf16.gmra.mrb[4].mxu0 %vm414_vm0, %v2643_v13  ;;  %2624 = vset.pattern.permute.xlu1 %v3026_v11 }
  0xc3   : > { %669 = vperm.xlu1 %2624, %v574_v12  }
  0xc7   : > { %673 = vperm.xlu1 %2624, %v575_v14  }
  0xcb   : > { %2625 = vset.pattern.permute.xlu1 %v3025_v0 }
  0xcc   : > { %634 = vperm.xlu1 %2625, %v576_v15  }
  0xd0   : > { %2626 = vset.pattern.permute.xlu1 %v3026_v11 }
  0xd1   : > { %677 = vperm.xlu1 %2626, %v576_v15  }
  0xd5   : > { %2628 = vset.pattern.permute.xlu1 %v3025_v0 }
 0x12a   : > { %v3371_v34 = vpop.permute.xlu1 %619 }
 0x12b   : > { %v615_v41 = vpop.permute.xlu0 %614 }
 0x12f   : > { %v3380_v43 = vpop.permute.xlu0 %639 }
 0x130   : > { %v3373_v35 = vpop.permute.xlu1 %661 }
 0x134   : > { %v3376_v36 = vpop.permute.xlu1 %665 }
 0x139   : > { %v625_v37 = vpop.permute.xlu1 %624 }
 0x13d   : > { %v630_v38 = vpop.permute.xlu1 %629 }
 0x142   : > { %v670_v39 = vpop.permute.xlu1 %669 }
 0x146   : > { %v674_v40 = vpop.permute.xlu1 %673 }
 0x14b   : > { %v3378_v42 = vpop.permute.xlu1 %634 }
 0x150   : > { %v3382_v44 = vpop.permute.xlu1 %677 }
 0x18d   : > { %v3329_v16 = vpop.f32.mrb[0].mxu0 }
 0x18e   : > { %496 = vadd.xlane.f32.xlu0 %v3329_v16  ;;  %v3332_v17 = vpop.f32.mrb[1].mxu0  ;;  %v510_v21 = vmul.f32 %v3329_v16, %v3329_v16 }
 0x18f   : > { %v3334_v18 = vpop.f32.mrb[2].mxu0  ;;  %v508_v20 = vmul.f32 %v3332_v17, %v3332_v17 }
 0x190   : > { %498 = vadd.xlane.f32.xlu1 %v3334_v18  ;;  %v3337_v19 = vpop.f32.mrb[3].mxu0  ;;  %v511_v23 = vmul.f32 %v3334_v18, %v3334_v18 }
 0x191   : > { %v509_v27 = vmul.f32 %v3337_v19, %v3337_v19 }
 0x192   : > { %492 = vadd.xlane.f32.xlu0 %v3332_v17 }
 0x194   : > { %516 = vadd.xlane.f32.xlu1 %v508_v20 }
 0x195   : > { %v3344_v22 = vpop.f32.mrb[4].mxu0 }
 0x196   : > { %520 = vadd.xlane.f32.xlu0 %v510_v21  ;;  %v3348_v24 = vpop.f32.mrb[5].mxu0  ;;  %v514_v28 = vmul.f32 %v3344_v22, %v3344_v22 }
 0x197   : > { %v3350_v25 = vpop.f32.mrb[6].mxu0  ;;  %v512_v29 = vmul.f32 %v3348_v24, %v3348_v24 }
 0x198   : > { %522 = vadd.xlane.f32.xlu1 %v511_v23  ;;  %v3352_v26 = vpop.f32.mrb[7].mxu0  ;;  %v515_v32 = vmul.f32 %v3350_v25, %v3350_v25 }
 0x199   : > { %v513_v33 = vmul.f32 %v3352_v26, %v3352_v26 }
 0x19a   : > { %494 = vadd.xlane.f32.xlu0 %v3337_v19 }
 0x19c   : > { %518 = vadd.xlane.f32.xlu1 %v509_v27 }
 0x19e   : > { %504 = vadd.xlane.f32.xlu0 %v3344_v22 }
 0x1a0   : > { %506 = vadd.xlane.f32.xlu1 %v3350_v25 }
 0x1a2   : > { %500 = vadd.xlane.f32.xlu0 %v3348_v24 }
 0x1a4   : > { %502 = vadd.xlane.f32.xlu1 %v3352_v26 }
 0x1a6   : > { %528 = vadd.xlane.f32.xlu0 %v514_v28 }
 0x1aa   : > { %524 = vadd.xlane.f32.xlu0 %v512_v29 }
 0x1b5   : > { %644 = vperm.xlu1 %2628, %v578_v30  }
 0x1b9   : > { %649 = vperm.xlu1 %2628, %v579_v31  }
 0x1bd   : > { %2629 = vset.pattern.permute.xlu1 %v3026_v11 }
 0x1c0   : > { %681 = vperm.xlu0 %2627, %v577_v8  }
 0x1c4   : > { %685 = vperm.xlu0 %2627, %v578_v30  }
 0x1c8   : > { %2631 = vset.pattern.permute.xlu0 %v3025_v0 }
 0x1dd   : > { %530 = vadd.xlane.f32.xlu1 %v515_v32 }
 0x1e1   : > { %526 = vadd.xlane.f32.xlu1 %v513_v33 }
 0x1f2   : > { %689 = vperm.xlu1 %2629, %v579_v31  }
 0x1f6   : > { %2630 = vset.pattern.permute.xlu1 %v3025_v0 }
 0x21b   : > { %v497_v45 = vpop.xlane.xlu0 %496 }
 0x21c   : > { %v534_v48 = vmul.f32 0.0078125, %v497_v45 }
 0x21d   : > { %v499_v46 = vpop.xlane.xlu1 %498 }
 0x21e   : > { %v535_v51 = vmul.f32 0.0078125, %v499_v46  ;;  %v550_v55 = vmul.f32 %v534_v48, %v534_v48  ;;  %v582_v15 = vsub.f32 %v3329_v16, %v534_v48 }
 0x21f   : > { %v493_v47 = vpop.xlane.xlu0 %492 }
 0x220   : > { %v532_v49 = vmul.f32 0.0078125, %v493_v47  ;;  %v551_v59 = vmul.f32 %v535_v51, %v535_v51  ;;  %v583_v23 = vsub.f32 %v3334_v18, %v535_v51 }
 0x221   : > { %v517_v50 = vpop.xlane.xlu1 %516 }
 0x222   : > { %v548_v52 = vmul.f32 %v532_v49, %v532_v49  ;;  %v540_v53 = vmul.f32 0.0078125, %v517_v50  ;;  %v580_v29 = vsub.f32 %v3332_v17, %v532_v49 }
 0x223   : > { %v521_v54 = vpop.xlane.xlu0 %520 }
 0x224   : > { %v556_v56 = vsub.f32 %v540_v53, %v548_v52  ;;  %v542_v57 = vmul.f32 0.0078125, %v521_v54 }
 0x225   : > { %v523_v58 = vpop.xlane.xlu1 %522 }
 0x226   : > { %v564_v60 = vmax.f32 %v556_v56, 0.0  ;;  %v558_v61 = vsub.f32 %v542_v57, %v550_v55  ;;  %v543_v62 = vmul.f32 0.0078125, %v523_v58 }
 0x227   : > { %v495_v63 = vpop.xlane.xlu0 %494 }
 0x228   : > { %v566_v1 = vmax.f32 %v558_v61, 0.0  ;;  %v559_v2 = vsub.f32 %v543_v62, %v551_v59  ;;  %v533_v3 = vmul.f32 0.0078125, %v495_v63  ;;  %v588_v4 = vadd.f32 1e-05, %v564_v60 }
 0x229   : > { %v519_v5 = vpop.xlane.xlu1 %518 }
 0x22a   : > { %v590_v6 = vadd.f32 1e-05, %v566_v1  ;;  %v567_v7 = vmax.f32 %v559_v2, 0.0  ;;  %v549_v8 = vmul.f32 %v533_v3, %v533_v3  ;;  %v541_v9 = vmul.f32 0.0078125, %v519_v5 }
 0x22b   : > { %v581_v45 = vsub.f32 %v3337_v19, %v533_v3 }
 0x22c   : > { %2700 = vrsqrt.f32 %v590_v6  ;;  %v591_v10 = vadd.f32 1e-05, %v567_v7  ;;  %v557_v12 = vsub.f32 %v541_v9, %v549_v8 }
 0x22d   : > { %2702 = vrsqrt.f32 %v588_v4  ;;  %v507_v49 = vpop.xlane.xlu1 %506 }
 0x22e   : > { %2704 = vrsqrt.f32 %v591_v10  ;;  %v565_v13 = vmax.f32 %v557_v12, 0.0  ;;  %v539_v61 = vmul.f32 0.0078125, %v507_v49 }
 0x230   : > { %v589_v14 = vadd.f32 1e-05, %v565_v13  ;;  %v555_v2 = vmul.f32 %v539_v61, %v539_v61 }
 0x232   : > { %2706 = vrsqrt.f32 %v589_v14 }
 0x236   : > { %v2701_v20 = vpop.eup %2700 }
 0x237   : > { %v2703_v21 = vpop.eup %2702  ;;  %v606_v27 = vmul.f32 %v2701_v20, %v582_v15 }
 0x238   : > { %v2705_v28 = vpop.eup %2704  ;;  %v604_v32 = vmul.f32 %v2703_v21, %v580_v29  ;;  %v587_v29 = vsub.f32 %v3350_v25, %v539_v61 }
 0x239   : > { %v607_v30 = vmul.f32 %v2705_v28, %v583_v23  ;;  %v654_v31 = vmul.f32 %v625_v37, %v606_v27 }
 0x23a   : > { %v652_v53 = vmul.f32 %v615_v41, %v604_v32 }
 0x23b   : > { %v655_v33 = vmul.f32 %v630_v38, %v607_v30  ;;  %v694_v47 = vadd.f32 %v670_v39, %v654_v31  ;;  %v505_v38 = vpop.xlane.xlu0 %504 }
 0x23c   : > { %v2707_v46 = vpop.eup %2706  ;;  %v692_v18 = vadd.f32 %v3373_v35, %v652_v53  ;;  %v538_v51 = vmul.f32 0.0078125, %v505_v38 }
 0x23d   : > { %v695_v50 = vadd.f32 %v674_v40, %v655_v33  ;;  %v605_v52 = vmul.f32 %v2707_v46, %v581_v45  ;;  %v503_v40 = vpop.xlane.xlu1 %502 }
 0x23e   : > { %v554_v55 = vmul.f32 %v538_v51, %v538_v51  ;;  %v537_v3 = vmul.f32 0.0078125, %v503_v40  ;;  %v586_v21 = vsub.f32 %v3344_v22, %v538_v51 }
 0x23f   : > { %v701_v16 = vpack.c.bf16 %v695_v50, %v694_v47  ;;  %v653_v48 = vmul.f32 %v3371_v34, %v605_v52  ;;  %v501_v19 = vpop.xlane.xlu0 %500 }
 0x240   : > { %v536_v34 = vmul.f32 0.0078125, %v501_v19  ;;  %v553_v8 = vmul.f32 %v537_v3, %v537_v3  ;;  %v585_v50 = vsub.f32 %v3352_v26, %v537_v3 }
 0x241   : > { %710 = vrot.lane.b32.xlu1 %v701_v16, %s3027_s26  ;;  %v693_v17 = vadd.f32 %v3376_v36, %v653_v48  ;;  %v645_v56 = vpop.permute.xlu1 %644 }
 0x242   : > { %v552_v59 = vmul.f32 %v536_v34, %v536_v34  ;;  %v584_v30 = vsub.f32 %v3348_v24, %v536_v34  ;;  %v2646_v34 = vld [vmem:[#allocation8 + $0x4] ss:$20 sps:$4 sm:$0xff]  }
 0x243   : > { %v700_v37 = vpack.c.bf16 %v693_v17, %v692_v18  ;;  %v529_v39 = vpop.xlane.xlu0 %528  ;;  %1246 = vmatprep.mubr.bf16.mxu1 %v2646_v34 }
 0x244   : > { %v546_v41 = vmul.f32 0.0078125, %v529_v39 }
 0x245   : > { %708 = vrot.lane.b32.xlu0 %v700_v37, %s3027_s26  ;;  %v650_v36 = vpop.permute.xlu1 %649 }
 0x246   : > { %v562_v57 = vsub.f32 %v546_v41, %v554_v55 }
 0x247   : > { %v525_v54 = vpop.xlane.xlu0 %524 }
 0x248   : > { %v544_v58 = vmul.f32 0.0078125, %v525_v54  ;;  %v570_v35 = vmax.f32 %v562_v57, 0.0 }
 0x24a   : > { %v560_v60 = vsub.f32 %v544_v58, %v552_v59  ;;  %v594_v62 = vadd.f32 1e-05, %v570_v35  ;;  %v2655_v35 = vld [vmem:[#allocation8 + $0xc] ss:$20 sps:$4 sm:$0xff]  }
 0x24b   : > { %v682_v23 = vpop.permute.xlu0 %681  ;;  %1343 = vmatprep.mubr.bf16.mxu0 %v2655_v35 }
 0x24c   : > { %v568_v63 = vmax.f32 %v560_v60, 0.0  ;;  %2708 = vrsqrt.f32 %v594_v62 }
 0x24e   : > { %v592_v5 = vadd.f32 1e-05, %v568_v63 }
 0x24f   : > { %v686_v46 = vpop.permute.xlu0 %685 }
 0x250   : > { %2710 = vrsqrt.f32 %v592_v5 }
 0x256   : > { %v2709_v20 = vpop.eup %2708 }
 0x257   : > { %v610_v27 = vmul.f32 %v2709_v20, %v586_v21 }
 0x259   : > { %v658_v32 = vmul.f32 %v645_v56, %v610_v27 }
 0x25a   : > { %v2711_v28 = vpop.eup %2710 }
 0x25b   : > { %v608_v45 = vmul.f32 %v2711_v28, %v584_v30  ;;  %v698_v16 = vadd.f32 %v686_v46, %v658_v32  ;;  %v3576_v46 = vld [vmem:[#allocation10 + $0x10] sm:$0xff] }
 0x25d   : > { %v656_v18 = vmul.f32 %v3378_v42, %v608_v45  ;;  %v3573_v45 = vld [vmem:[#allocation10] sm:$0xff] }
 0x25f   : > { %v696_v24 = vadd.f32 %v3382_v44, %v656_v18 }
 0x26a   : > { %v531_v1 = vpop.xlane.xlu1 %530 }
 0x26b   : > { %v547_v4 = vmul.f32 0.0078125, %v531_v1 }
 0x26d   : > { %v563_v6 = vsub.f32 %v547_v4, %v555_v2 }
 0x26e   : > { %v527_v7 = vpop.xlane.xlu1 %526 }
 0x26f   : > { %v571_v9 = vmax.f32 %v563_v6, 0.0  ;;  %v545_v10 = vmul.f32 0.0078125, %v527_v7 }
 0x271   : > { %v595_v12 = vadd.f32 1e-05, %v571_v9  ;;  %v561_v13 = vsub.f32 %v545_v10, %v553_v8 }
 0x272   : > { %v690_v47 = vpop.permute.xlu1 %689 }
 0x273   : > { %2712 = vrsqrt.f32 %v595_v12  ;;  %v569_v14 = vmax.f32 %v561_v13, 0.0 }
 0x275   : > { %v593_v15 = vadd.f32 1e-05, %v569_v14 }
 0x277   : > { %2714 = vrsqrt.f32 %v593_v15 }
 0x27d   : > { %v2713_v31 = vpop.eup %2712 }
 0x27e   : > { %v611_v33 = vmul.f32 %v2713_v31, %v587_v29 }
 0x280   : > { %v659_v52 = vmul.f32 %v650_v36, %v611_v33 }
 0x281   : > { %v2715_v53 = vpop.eup %2714 }
 0x282   : > { %v699_v48 = vadd.f32 %v690_v47, %v659_v52  ;;  %v609_v22 = vmul.f32 %v2715_v53, %v585_v50  ;;  %v3579_v52 = vld [vmem:[#allocation10 + $0x18] sm:$0xff] }
 0x284   : > { %v703_v17 = vpack.c.bf16 %v699_v48, %v698_v16  ;;  %v657_v25 = vmul.f32 %v3380_v43, %v609_v22  ;;  %v3586_v48 = vld [vmem:[#allocation10 + $0x20] sm:$0xff] }
 0x286   : > { %714 = vrot.lane.b32.xlu1 %v703_v17, %s3027_s26  ;;  %v697_v37 = vadd.f32 %v682_v23, %v657_v25  ;;  %v3593_v17 = vld [vmem:[#allocation10 + $0x28] sm:$0xff] }
 0x288   : > { %v702_v38 = vpack.c.bf16 %v697_v37, %v696_v24 }
 0x28a   : > { %712 = vrot.lane.b32.xlu0 %v702_v38, %s3027_s26 }
 0x2b3   : > { %v3402_v26 = vpop.permute.xlu1 %710 }
 0x2b4   : > { %v3406_v19 = vsel %vm716_vm1, 0, %v3402_v26  ;;  %v3410_v42 = vsel %vm716_vm1, %v3402_v26, 0 }
 0x2b5   : > { %773 = vrot.lane.b32.xlu1 %v3410_v42, %s3028_s28  ;;  %771 = vrot.lane.b32.xlu0 %v3406_v19, %s3028_s28 }
 0x2b7   : > { %v3428_v43 = vpop.permute.xlu0 %708 }
 0x2b8   : > { %v3436_v44 = vsel %vm716_vm1, 0, %v3428_v43  ;;  %v3440_v49 = vsel %vm716_vm1, %v3428_v43, 0 }
 0x2b9   : > { %798 = vrot.lane.b32.xlu1 %v3410_v42, %s3029_s30  ;;  %796 = vrot.lane.b32.xlu0 %v3406_v19, %s3029_s30 }
 0x2bd   : > { %748 = vrot.lane.b32.xlu1 %v3410_v42, %s3030_s25  ;;  %746 = vrot.lane.b32.xlu0 %v3406_v19, %s3030_s25 }
 0x2c1   : > { %873 = vrot.lane.b32.xlu1 %v3410_v42, %s3031_s7  ;;  %871 = vrot.lane.b32.xlu0 %v3406_v19, %s3031_s7 }
 0x2c5   : > { %823 = vrot.lane.b32.xlu1 %v3410_v42, %s3032_s15  ;;  %821 = vrot.lane.b32.xlu0 %v3406_v19, %s3032_s15 }
 0x2c9   : > { %769 = vrot.lane.b32.xlu1 %v3440_v49, %s3028_s28  ;;  %767 = vrot.lane.b32.xlu0 %v3436_v44, %s3028_s28 }
 0x2cd   : > { %794 = vrot.lane.b32.xlu1 %v3440_v49, %s3029_s30  ;;  %792 = vrot.lane.b32.xlu0 %v3436_v44, %s3029_s30 }
 0x2d1   : > { %744 = vrot.lane.b32.xlu1 %v3440_v49, %s3030_s25  ;;  %742 = vrot.lane.b32.xlu0 %v3436_v44, %s3030_s25 }
 0x2d5   : > { %869 = vrot.lane.b32.xlu1 %v3440_v49, %s3031_s7  ;;  %867 = vrot.lane.b32.xlu0 %v3436_v44, %s3031_s7 }
 0x2d9   : > { %819 = vrot.lane.b32.xlu1 %v3440_v49, %s3032_s15  ;;  %817 = vrot.lane.b32.xlu0 %v3436_v44, %s3032_s15 }
 0x2dd   : > { %894 = vrot.lane.b32.xlu1 %v3440_v49, %s3033_s11  ;;  %892 = vrot.lane.b32.xlu0 %v3436_v44, %s3033_s11 }
 0x2f8   : > { %v3466_v39 = vpop.permute.xlu1 %714 }
 0x2f9   : > { %v3470_v40 = vsel %vm716_vm1, 0, %v3466_v39  ;;  %v3474_v51 = vsel %vm716_vm1, %v3466_v39, 0 }
 0x2fa   : > { %781 = vrot.lane.b32.xlu1 %v3474_v51, %s3028_s28  ;;  %779 = vrot.lane.b32.xlu0 %v3470_v40, %s3028_s28 }
 0x2fc   : > { %v3492_v41 = vpop.permute.xlu0 %712 }
 0x2fd   : > { %v725_v54 = vsel %vm716_vm1, 0, %v3492_v41  ;;  %v732_v55 = vsel %vm716_vm1, %v3492_v41, 0 }
 0x2fe   : > { %806 = vrot.lane.b32.xlu1 %v3474_v51, %s3029_s30  ;;  %804 = vrot.lane.b32.xlu0 %v3470_v40, %s3029_s30 }
 0x302   : > { %756 = vrot.lane.b32.xlu1 %v3474_v51, %s3030_s25  ;;  %754 = vrot.lane.b32.xlu0 %v3470_v40, %s3030_s25 }
 0x306   : > { %881 = vrot.lane.b32.xlu1 %v3474_v51, %s3031_s7  ;;  %879 = vrot.lane.b32.xlu0 %v3470_v40, %s3031_s7 }
 0x30a   : > { %831 = vrot.lane.b32.xlu1 %v3474_v51, %s3032_s15  ;;  %829 = vrot.lane.b32.xlu0 %v3470_v40, %s3032_s15 }
 0x30e   : > { %777 = vrot.lane.b32.xlu1 %v732_v55, %s3028_s28  ;;  %775 = vrot.lane.b32.xlu0 %v725_v54, %s3028_s28  ;;  %s2922_s28 = scalar_lea.vmem %s3982_s27, 512 }
 0x30f   : > { %p2923_p8 = scmp.ne.s32.totalorder %s3982_s27, %s2922_s28 }
 0x311   : > { %p2924_p6 = pnand %p2923_p8, %p3240_p5 }
 0x312   : > { %844 = vrot.lane.b32.xlu1 %v3440_v49, %s3034_s14  ;;  %842 = vrot.lane.b32.xlu0 %v3436_v44, %s3034_s14 }
 0x313   : > { %p2925_p10 = pneg %p2924_p6 }
 0x316   : > { %898 = vrot.lane.b32.xlu1 %v3410_v42, %s3033_s11  ;;  %896 = vrot.lane.b32.xlu0 %v3406_v19, %s3033_s11 }
 0x31a   : > { %802 = vrot.lane.b32.xlu1 %v732_v55, %s3029_s30  ;;  %800 = vrot.lane.b32.xlu0 %v725_v54, %s3029_s30  ;;  %s2926_s30 = sshll.u32 %s3036_s21, 4  ;;  %s2927_s30 = int_to_ptr.vmem [resolvable:$false] %s2926_s30 }
 0x31b   : > { %p2929_p3 = scmp.lt.s32.totalorder %s3982_s27, %s2927_s30 }
 0x31e   : > { %752 = vrot.lane.b32.xlu1 %v732_v55, %s3030_s25  ;;  %750 = vrot.lane.b32.xlu0 %v725_v54, %s3030_s25  ;;  %s2928_s25 = scalar_lea.vmem %s2927_s30, 1024 }
 0x31f   : > { %p2930_p7 = scmp.lt.s32.totalorder %s2928_s25, %s2922_s28 }
 0x321   : > { %p2931_p9 = por %p2930_p7, %p2929_p3 }
 0x322   : > { %877 = vrot.lane.b32.xlu1 %v732_v55, %s3031_s7  ;;  %875 = vrot.lane.b32.xlu0 %v725_v54, %s3031_s7 }
 0x323   : > { %p2932_p0 = pnand %p2931_p9, %p2925_p10 }
 0x326   : > { %827 = vrot.lane.b32.xlu1 %v732_v55, %s3032_s15  ;;  %825 = vrot.lane.b32.xlu0 %v725_v54, %s3032_s15 }
 0x327   : > { %v772_v56 = vpop.permute.xlu0 %771  ;;  %v774_v57 = vpop.permute.xlu1 %773 }
 0x328   : > { %v785_v7 = vsel %vm783_vm2, %v772_v56, %v774_v57  ;;  %v1675_v57 = vld [vmem:[#allocation10 + $0x50] sm:$0xff] }
 0x32a   : > { %848 = vrot.lane.b32.xlu1 %v3410_v42, %s3034_s14  ;;  %846 = vrot.lane.b32.xlu0 %v3406_v19, %s3034_s14 }
 0x32b   : > { %v3524_v58 = vpop.permute.xlu0 %796  ;;  %v3526_v59 = vpop.permute.xlu1 %798 }
 0x32e   : > { %906 = vrot.lane.b32.xlu1 %v3474_v51, %s3033_s11  ;;  %904 = vrot.lane.b32.xlu0 %v3470_v40, %s3033_s11 }
 0x32f   : > { %v3532_v60 = vpop.permute.xlu0 %746  ;;  %v3534_v36 = vpop.permute.xlu1 %748 }
 0x330   : > { %v760_v34 = vsel %vm758_vm7, %v3532_v60, %v3534_v36 }
 0x332   : > { %902 = vrot.lane.b32.xlu1 %v732_v55, %s3033_s11  ;;  %900 = vrot.lane.b32.xlu0 %v725_v54, %s3033_s11 }
 0x333   : > { %v872_v61 = vpop.permute.xlu0 %871  ;;  %v874_v62 = vpop.permute.xlu1 %873 }
 0x334   : > { %v885_v23 = vsel %vm883_vm4, %v872_v61, %v874_v62  ;;  %v3628_v62 = vld [vmem:[#allocation10 + $0x60] sm:$0xff] }
 0x336   : > { %852 = vrot.lane.b32.xlu1 %v732_v55, %s3034_s14  ;;  %850 = vrot.lane.b32.xlu0 %v725_v54, %s3034_s14 }
 0x337   : > { %v822_v63 = vpop.permute.xlu0 %821  ;;  %v824_v1 = vpop.permute.xlu1 %823 }
 0x338   : > { %v835_v27 = vsel %vm833_vm5, %v822_v63, %v824_v1 }
 0x33a   : > { %856 = vrot.lane.b32.xlu1 %v3474_v51, %s3034_s14  ;;  %854 = vrot.lane.b32.xlu0 %v3470_v40, %s3034_s14 }
 0x33b   : > { %v768_v2 = vpop.permute.xlu0 %767  ;;  %v770_v3 = vpop.permute.xlu1 %769 }
 0x33c   : > { %v784_v4 = vsel %vm783_vm2, %v768_v2, %v770_v3  ;;  %v2644_v2 = vld [vmem:[#allocation8] ss:$20 sps:$4 sm:$0xff]  }
 0x33d   : > { %2311 = vmatprep.subr.bf16.mxu1 %v784_v4  ;;  %v2647_v3 = vld [vmem:[#allocation8 + $0x2c] ss:$20 sps:$4 sm:$0xff]  }
 0x33e   : > { %919 = vrot.lane.b32.xlu1 %v3440_v49, %s3035_s17  ;;  %917 = vrot.lane.b32.xlu0 %v3436_v44, %s3035_s17  ;;  %v1673_v44 = vld [vmem:[#allocation10 + $0x40] sm:$0xff] }
 0x33f   : > { %2312 = vmatpush3.bf16.msk.msra.mxu1 %vm3546_vm3, %v3428_v43  ;;  %v3555_v6 = vpop.permute.xlu0 %792  ;;  %v795_v8 = vpop.permute.xlu1 %794 }
 0x340   : > { %2313 = vmatprep.subr.bf16.mxu1 %v785_v7  ;;  %v809_v43 = vsel %vm808_vm6, %v3555_v6, %v795_v8  ;;  %v3634_v7 = vld [vmem:[#allocation10 + $0x70] sm:$0xff] }
 0x342   : > { %923 = vrot.lane.b32.xlu1 %v3410_v42, %s3035_s17  ;;  %921 = vrot.lane.b32.xlu0 %v3406_v19, %s3035_s17 }
 0x343   : > { %2314 = vmatpush3.bf16.msk.msra.mxu1 %vm3546_vm3, %v3402_v26  ;;  %v743_v9 = vpop.permute.xlu0 %742  ;;  %v745_v10 = vpop.permute.xlu1 %744  ;;  %v3601_v26 = vld [vmem:[#allocation10 + $0x30] sm:$0xff] }
 0x346   : > { %927 = vrot.lane.b32.xlu1 %v732_v55, %s3035_s17  ;;  %925 = vrot.lane.b32.xlu0 %v725_v54, %s3035_s17  ;;  %v3619_v54 = vld [vmem:[#allocation10 + $0x48] sm:$0xff] }
 0x347   : > { %v868_v12 = vpop.permute.xlu0 %867  ;;  %v870_v13 = vpop.permute.xlu1 %869 }
 0x348   : > { %v884_v14 = vsel %vm883_vm4, %v868_v12, %v870_v13 }
 0x349   : > { %2375 = vmatprep.subr.bf16.mxu0 %v884_v14  ;;  %v2649_v14 = vld [vmem:[#allocation8 + $0x28] ss:$20 sps:$4 sm:$0xff]  }
 0x34a   : > { %931 = vrot.lane.b32.xlu1 %v3474_v51, %s3035_s17  ;;  %929 = vrot.lane.b32.xlu0 %v3470_v40, %s3035_s17  ;;  %v759_v51 = vsel %vm758_vm7, %v743_v9, %v745_v10 }
 0x34b   : > { %v818_v15 = vpop.permute.xlu0 %817  ;;  %v820_v20 = vpop.permute.xlu1 %819 }
 0x34c   : > { %v834_v21 = vsel %vm833_vm5, %v818_v15, %v820_v20  ;;  %v2650_v15 = vld [vmem:[#allocation8 + $0x54] ss:$20 sps:$4 sm:$0xff]  }
 0x34d   : > { %2376 = vmatpush3.bf16.msra.mxu0 %v834_v21 }
 0x34e   : > { %2377 = vmatprep.subr.bf16.mxu0 %v885_v23  ;;  %1747 = vperm.xlu1 %2630, %v3573_v45  }
 0x34f   : > { %v3569_v28 = vpop.permute.xlu0 %892  ;;  %v3571_v29 = vpop.permute.xlu1 %894 }
 0x350   : > { %v909_v13 = vsel %vm908_vm8, %v3569_v28, %v3571_v29 }
 0x351   : > { %2378 = vmatpush3.bf16.msra.mxu0 %v835_v27 }
 0x352   : > { %1757 = vperm.xlu1 %2630, %v3576_v46  }
 0x356   : > { %1762 = vperm.xlu1 %2630, %v3579_v52  }
 0x35a   : > { %1767 = vperm.xlu1 %2630, %v3586_v48  }
 0x35e   : > { %1772 = vperm.xlu1 %2630, %v3593_v17  }
 0x362   : > { %1777 = vperm.xlu1 %2630, %v3601_v26  }
 0x366   : > { %1787 = vperm.xlu1 %2630, %v1673_v44  }
 0x36a   : > { %1792 = vperm.xlu1 %2630, %v3619_v54  }
 0x36c   : > { %v780_v30 = vpop.permute.xlu0 %779  ;;  %v782_v31 = vpop.permute.xlu1 %781 }
 0x36d   : > { %v787_v38 = vsel %vm783_vm2, %v780_v30, %v782_v31 }
 0x36e   : > { %1797 = vperm.xlu1 %2630, %v1675_v57  }
 0x370   : > { %v805_v32 = vpop.permute.xlu0 %804  ;;  %v807_v33 = vpop.permute.xlu1 %806 }
 0x372   : > { %1807 = vperm.xlu1 %2630, %v3628_v62  }
 0x374   : > { %v755_v47 = vpop.permute.xlu0 %754  ;;  %v757_v50 = vpop.permute.xlu1 %756 }
 0x375   : > { %v762_v1 = vsel %vm758_vm7, %v755_v47, %v757_v50 }
 0x376   : > { %1817 = vperm.xlu1 %2630, %v3634_v7  }
 0x378   : > { %v3581_v53 = vpop.permute.xlu0 %879  ;;  %v3583_v16 = vpop.permute.xlu1 %881 }
 0x379   : > { %v887_v8 = vsel %vm883_vm4, %v3581_v53, %v3583_v16 }
 0x37a   : > { %2632 = vset.pattern.permute.xlu1 %v3026_v11 }
 0x37b   : > { %1874 = vperm.xlu1 %2632, %v1673_v44   ;;  %v2661_v44 = vld [vmem:[#allocation8 + $0xa4] ss:$20 sps:$4 sm:$0xff]  }
 0x37c   : > { %v3588_v22 = vpop.permute.xlu0 %829  ;;  %v3590_v18 = vpop.permute.xlu1 %831 }
 0x37d   : > { %v837_v12 = vsel %vm833_vm5, %v3588_v22, %v3590_v18 }
 0x37f   : > { %1882 = vperm.xlu1 %2632, %v1675_v57  }
 0x380   : > { %v776_v25 = vpop.permute.xlu0 %775  ;;  %v778_v24 = vpop.permute.xlu1 %777 }
 0x381   : > { %v786_v37 = vsel %vm783_vm2, %v776_v25, %v778_v24  ;;  %v2653_v24 = vld [vmem:[#allocation8 + $0x8] ss:$20 sps:$4 sm:$0xff]  }
 0x382   : > { %2315 = vmatprep.subr.bf16.mxu1 %v786_v37  ;;  %v2658_v37 = vld [vmem:[#allocation8 + $0x78] ss:$20 sps:$4 sm:$0xff]  }
 0x383   : > { %2316 = vmatpush3.bf16.msk.msra.mxu1 %vm3546_vm3, %v3492_v41  ;;  %v810_v41 = vsel %vm808_vm6, %v3524_v58, %v3526_v59  ;;  %v812_v59 = vsel %vm808_vm6, %v805_v32, %v807_v33  ;;  %v2652_v32 = vld [vmem:[#allocation8 + $0x50] ss:$20 sps:$4 sm:$0xff]  }
 0x384   : > { %v3603_v19 = vpop.permute.xlu0 %842  ;;  %2317 = vmatprep.subr.bf16.mxu1 %v787_v38  ;;  %v3605_v42 = vpop.permute.xlu1 %844  ;;  %v2656_v33 = vld [vmem:[#allocation8 + $0x7c] ss:$20 sps:$4 sm:$0xff]  }
 0x385   : > { %v859_v23 = vsel %vm858_vm9, %v3603_v19, %v3605_v42  ;;  %v2659_v42 = vld [vmem:[#allocation8 + $0x34] ss:$20 sps:$4 sm:$0xff]  }
 0x387   : > { %2318 = vmatpush3.bf16.msk.msra.mxu1 %vm3546_vm3, %v3466_v39 }
 0x388   : > { %v3613_v49 = vpop.permute.xlu0 %896  ;;  %2319 = vmatprep.subr.bf16.mxu1 %v809_v43  ;;  %v899_v40 = vpop.permute.xlu1 %898 }
 0x389   : > { %v910_v27 = vsel %vm908_vm8, %v3613_v49, %v899_v40 }
 0x38b   : > { %2320 = vmatpush3.bf16.msra.mxu1 %v759_v51 }
 0x38c   : > { %v801_v39 = vpop.permute.xlu0 %800  ;;  %2321 = vmatprep.subr.bf16.mxu1 %v810_v41  ;;  %v803_v55 = vpop.permute.xlu1 %802  ;;  %v2663_v41 = vld [vmem:[#allocation8 + $0x30] ss:$20 sps:$4 sm:$0xff]  }
 0x38d   : > { %v811_v56 = vsel %vm808_vm6, %v801_v39, %v803_v55  ;;  %v2664_v39 = vld [vmem:[#allocation8 + $0xa0] ss:$20 sps:$4 sm:$0xff]  }
 0x38f   : > { %2322 = vmatpush3.bf16.msra.mxu1 %v760_v34 }
 0x390   : > { %v751_v35 = vpop.permute.xlu0 %750  ;;  %2323 = vmatprep.subr.bf16.mxu1 %v811_v56  ;;  %v753_v61 = vpop.permute.xlu1 %752  ;;  %v2665_v56 = vld [vmem:[#allocation8 + $0x5c] ss:$20 sps:$4 sm:$0xff]  }
 0x391   : > { %v761_v58 = vsel %vm758_vm7, %v751_v35, %v753_v61  ;;  %v2667_v35 = vld [vmem:[#allocation8 + $0xcc] ss:$20 sps:$4 sm:$0xff]  }
 0x393   : > { %2324 = vmatpush3.bf16.msra.mxu1 %v761_v58 }
 0x394   : > { %v876_v63 = vpop.permute.xlu0 %875  ;;  %2325 = vmatprep.subr.bf16.mxu1 %v812_v59  ;;  %v878_v60 = vpop.permute.xlu1 %877 }
 0x395   : > { %v886_v36 = vsel %vm883_vm4, %v876_v63, %v878_v60  ;;  %v2669_v63 = vld [vmem:[#allocation8 + $0x58] ss:$20 sps:$4 sm:$0xff]   ;;  %v2670_v60 = vld [vmem:[#allocation8 + $0xc8] ss:$20 sps:$4 sm:$0xff]  }
 0x396   : > { %2379 = vmatprep.subr.bf16.mxu0 %v886_v36  ;;  %v2671_v36 = vld [vmem:[#allocation8 + $0x84] ss:$20 sps:$4 sm:$0xff]  }
 0x397   : > { %2326 = vmatpush3.bf16.msra.mxu1 %v762_v1  ;;  %v2673_v1 = vld [vmem:[#allocation8 + $0xf4] ss:$20 sps:$4 sm:$0xff]  }
 0x398   : > { %v826_v4 = vpop.permute.xlu0 %825  ;;  %v828_v5 = vpop.permute.xlu1 %827 }
 0x399   : > { %v836_v6 = vsel %vm833_vm5, %v826_v4, %v828_v5  ;;  %v2677_v4 = vld [vmem:[#allocation8 + $0xac] ss:$20 sps:$4 sm:$0xff]   ;;  %v2679_v5 = vld [vmem:[#allocation8 + $0x11c] ss:$20 sps:$4 sm:$0xff]  }
 0x39a   : > { %1247 = vmatmul.mubr.bf16.vlgmr.msra.gmra.mrb[0].mxu1 %v2644_v2  ;;  %2380 = vmatpush3.bf16.msra.mxu0 %v836_v6  ;;  %v2675_v2 = vld [vmem:[#allocation8 + $0x80] ss:$20 sps:$4 sm:$0xff]   ;;  %v2681_v6 = vld [vmem:[#allocation8 + $0xa8] ss:$20 sps:$4 sm:$0xff]  }
 0x39b   : > { %2381 = vmatprep.subr.bf16.mxu0 %v887_v8  ;;  %1254 = vmatprep.mubr.bf16.mxu1 %v2647_v3  ;;  %v2676_v3 = vld [vmem:[#allocation8 + $0xf0] ss:$20 sps:$4 sm:$0xff]   ;;  %v2682_v8 = vld [vmem:[#allocation8 + $0x118] ss:$20 sps:$4 sm:$0xff]  }
 0x39c   : > { %v847_v9 = vpop.permute.xlu0 %846  ;;  %v849_v10 = vpop.permute.xlu1 %848 }
 0x39d   : > { %v860_v30 = vsel %vm858_vm9, %v847_v9, %v849_v10  ;;  %v2683_v9 = vld [vmem:[#allocation8 + $0xd4] ss:$20 sps:$4 sm:$0xff]  }
 0x39e   : > { %2382 = vmatpush3.bf16.msra.mxu0 %v837_v12  ;;  %v2686_v10 = vld [vmem:[#allocation8 + $0x60] ss:$20 sps:$4 sm:$0xff]   ;;  %v2685_v12 = vld [vmem:[#allocation8 + $0xd0] ss:$20 sps:$4 sm:$0xff]  }
 0x39f   : > { %2383 = vmatprep.subr.bf16.mxu0 %v909_v13  ;;  %v2687_v13 = vld [vmem:[#allocation8 + $0x88] ss:$20 sps:$4 sm:$0xff]  }
 0x3a0   : > { %v905_v20 = vpop.permute.xlu0 %904  ;;  %v907_v21 = vpop.permute.xlu1 %906 }
 0x3a1   : > { %v912_v16 = vsel %vm908_vm8, %v905_v20, %v907_v21  ;;  %v2690_v20 = vld [vmem:[#allocation8 + $0xf8] ss:$20 sps:$4 sm:$0xff]  }
 0x3a2   : > { %1255 = vmatmul.mubr.bf16.gmra.mrb[4].mxu1 %v2649_v14  ;;  %2384 = vmatpush3.bf16.msra.mxu0 %v859_v23  ;;  %v2688_v14 = vld [vmem:[#allocation8 + $0xfc] ss:$20 sps:$4 sm:$0xff]   ;;  %v2692_v21 = vld [vmem:[#allocation8 + $0xd8] ss:$20 sps:$4 sm:$0xff]  }
 0x3a3   : > { %2385 = vmatprep.subr.bf16.mxu0 %v910_v27  ;;  %1262 = vmatprep.mubr.bf16.mxu1 %v2650_v15  ;;  %v2691_v15 = vld [vmem:[#allocation8 + $0xb0] ss:$20 sps:$4 sm:$0xff]   ;;  %v2696_v27 = vld [vmem:[#allocation8 + $0x100] ss:$20 sps:$4 sm:$0xff]  }
 0x3a4   : > { %v901_v28 = vpop.permute.xlu0 %900  ;;  %v903_v29 = vpop.permute.xlu1 %902  ;;  %v2693_v23 = vld [vmem:[#allocation8 + $0x124] ss:$20 sps:$4 sm:$0xff]  }
 0x3a5   : > { %v911_v31 = vsel %vm908_vm8, %v901_v28, %v903_v29  ;;  %v2695_v28 = vld [vmem:[#allocation8 + $0x120] ss:$20 sps:$4 sm:$0xff]   ;;  %v2697_v29 = vld [vmem:[#allocation8 + $0x128] ss:$20 sps:$4 sm:$0xff]  }
 0x3a6   : > { %2386 = vmatpush3.bf16.msra.mxu0 %v860_v30  ;;  %v2698_v30 = vld [vmem:[#allocation8 + $0x10] ss:$20 sps:$4 sm:$0xff]  }
 0x3a7   : > { %2387 = vmatprep.subr.bf16.mxu0 %v911_v31  ;;  %v2699_v31 = vld [vmem:[#allocation8 + $0x38] ss:$20 sps:$4 sm:$0xff]  }
 0x3a8   : > { %v851_v47 = vpop.permute.xlu0 %850  ;;  %v853_v50 = vpop.permute.xlu1 %852 }
 0x3a9   : > { %v861_v53 = vsel %vm858_vm9, %v851_v47, %v853_v50  ;;  %v1678_v47 = vld [vmem:[#allocation10 + $0x68] sm:$0xff]  ;;  %v3672_v50 = vld [vmem:[#allocation10 + $0x78] sm:$0xff] }
 0x3aa   : > { %1263 = vmatmul.mubr.bf16.gmra.mrb[8].mxu1 %v2652_v32  ;;  %2388 = vmatpush3.bf16.msra.mxu0 %v861_v53  ;;  %v3669_v32 = vld [vmem:[#allocation10 + $0x8] sm:$0xff] }
 0x3ab   : > { %2389 = vmatprep.subr.bf16.mxu0 %v912_v16  ;;  %1270 = vmatprep.mubr.bf16.mxu1 %v2656_v33  ;;  %v1676_v33 = vld [vmem:[#allocation10 + $0x58] sm:$0xff] }
 0x3ac   : > { %v855_v22 = vpop.permute.xlu0 %854  ;;  %v857_v18 = vpop.permute.xlu1 %856  ;;  %1752 = vperm.xlu0 %2631, %v3669_v32   ;;  %1886 = vperm.xlu1 %2632, %v1676_v33  }
 0x3ad   : > { %v862_v25 = vsel %vm858_vm9, %v855_v22, %v857_v18 }
 0x3ae   : > { %2390 = vmatpush3.bf16.msra.mxu0 %v862_v25 }
 0x3b0   : > { %v918_v38 = vpop.permute.xlu0 %917  ;;  %v920_v19 = vpop.permute.xlu1 %919  ;;  %1802 = vperm.xlu0 %2631, %v1676_v33   ;;  %1894 = vperm.xlu1 %2632, %v1678_v47  }
 0x3b1   : > { %v934_v43 = vsel %vm933_vm10, %v918_v38, %v920_v19  ;;  %1344 = vmatmul.mubr.bf16.vlgmr.msra.gmra.mrb[8].mxu0 %v2653_v24 }
 0x3b2   : > { %1271 = vmatmul.mubr.bf16.gmra.mrb[12].mxu1 %v2658_v37  ;;  %2467 = vmatprep.subr.bf16.mxu0 %v934_v43 }
 0x3b3   : > { %2491 = vmatprep.subr.bf16.mxu1 %v934_v43  ;;  %2468 = vmatpush3.bf16.msra.mxu0 %v934_v43 }
 0x3b4   : > { %2495 = vmatpush3.bf16.msra.mxu1 %v934_v43  ;;  %v922_v49 = vpop.permute.xlu0 %921  ;;  %v924_v40 = vpop.permute.xlu1 %923  ;;  %1351 = vmatprep.mubr.bf16.mxu0 %v2659_v42 }
 0x3b5   : > { %v935_v51 = vsel %vm933_vm10, %v922_v49, %v924_v40  ;;  %1278 = vmatprep.mubr.bf16.mxu1 %v2661_v44  ;;  %1812 = vperm.xlu0 %2631, %v1678_v47  }
 0x3b6   : > { %2469 = vmatprep.subr.bf16.mxu0 %v935_v51  ;;  %2492 = vmatprep.subr.bf16.mxu1 %v935_v51 }
 0x3b7   : > { %2470 = vmatpush3.bf16.msra.mxu0 %v935_v51 }
 0x3b8   : > { %2496 = vmatpush3.bf16.msra.mxu1 %v935_v51  ;;  %v926_v55 = vpop.permute.xlu0 %925  ;;  %v928_v34 = vpop.permute.xlu1 %927 }
 0x3b9   : > { %v936_v57 = vsel %vm933_vm10, %v926_v55, %v928_v34  ;;  %1352 = vmatmul.mubr.bf16.gmra.mrb[12].mxu0 %v2663_v41  ;;  %1822 = vperm.xlu0 %2631, %v3672_v50  }
 0x3ba   : > { %1279 = vmatmul.mubr.bf16.gmra.mrb[16].mxu1 %v2664_v39  ;;  %2471 = vmatprep.subr.bf16.mxu0 %v936_v57 }
 0x3bb   : > { %2493 = vmatprep.subr.bf16.mxu1 %v936_v57  ;;  %2472 = vmatpush3.bf16.msra.mxu0 %v936_v57 }
 0x3bc   : > { %2497 = vmatpush3.bf16.msra.mxu1 %v936_v57  ;;  %v930_v61 = vpop.permute.xlu0 %929  ;;  %v932_v58 = vpop.permute.xlu1 %931  ;;  %1359 = vmatprep.mubr.bf16.mxu0 %v2665_v56 }
 0x3bd   : > { %v937_v59 = vsel %vm933_vm10, %v930_v61, %v932_v58  ;;  %1286 = vmatprep.mubr.bf16.mxu1 %v2667_v35  ;;  %2633 = vset.pattern.permute.xlu0 %v3026_v11 }
 0x3be   : > { %2473 = vmatprep.subr.bf16.mxu0 %v937_v59  ;;  %2494 = vmatprep.subr.bf16.mxu1 %v937_v59 }
 0x3bf   : > { %2474 = vmatpush3.bf16.msra.mxu0 %v937_v59  ;;  %1878 = vperm.xlu0 %2633, %v3619_v54  }
 0x3c0   : > { %2498 = vmatpush3.bf16.msra.mxu1 %v937_v59 }
 0x3c1   : > { %1360 = vmatmul.mubr.bf16.gmra.mrb[16].mxu0 %v2669_v63 }
 0x3c2   : > { %1287 = vmatmul.mubr.bf16.gmra.mrb[20].mxu1 %v2670_v60  ;;  %1367 = vmatprep.mubr.bf16.mxu0 %v2671_v36 }
 0x3c3   : > { %1294 = vmatprep.mubr.bf16.mxu1 %v2673_v1  ;;  %1890 = vperm.xlu0 %2633, %v3628_v62  }
 0x3c9   : > { %1368 = vmatmul.mubr.bf16.gmra.mrb[20].mxu0 %v2675_v2 }
 0x3ca   : > { %1295 = vmatmul.mubr.bf16.gmra.mrb[24].mxu1 %v2676_v3  ;;  %1375 = vmatprep.mubr.bf16.mxu0 %v2677_v4 }
 0x3cb   : > { %1302 = vmatprep.mubr.bf16.mxu1 %v2679_v5 }
 0x3d1   : > { %1376 = vmatmul.mubr.bf16.gmra.mrb[24].mxu0 %v2681_v6 }
 0x3d2   : > { %1303 = vmatmul.mubr.bf16.gmra.mrb[28].mxu1 %v2682_v8  ;;  %1383 = vmatprep.mubr.bf16.mxu0 %v2683_v9 }
 0x3d3   : > { %2479 = vmatprep.mubr.msk.bf16.mxu1 %vm414_vm0, %v2686_v10 }
 0x3d9   : > { %1384 = vmatmul.mubr.bf16.gmra.mrb[28].mxu0 %v2685_v12 }
 0x3da   : > { %2480 = vmatmul.mubr.msk.bf16.vlgmr.msra.gmra.mrb[32].mxu1 %vm414_vm0, %v2687_v13  ;;  %1391 = vmatprep.mubr.bf16.mxu0 %v2688_v14 }
 0x3db   : > { %2483 = vmatprep.mubr.msk.bf16.mxu1 %vm414_vm0, %v2691_v15 }
 0x3e1   : > { %1392 = vmatmul.mubr.bf16.gmra.mrb[32].mxu0 %v2690_v20 }
 0x3e2   : > { %2484 = vmatmul.mubr.msk.bf16.gmra.mrb[36].mxu1 %vm414_vm0, %v2692_v21  ;;  %1399 = vmatprep.mubr.bf16.mxu0 %v2693_v23 }
 0x3e3   : > { %2487 = vmatprep.mubr.msk.bf16.mxu1 %vm414_vm0, %v2696_v27 }
 0x3e9   : > { %1400 = vmatmul.mubr.bf16.gmra.mrb[36].mxu0 %v2695_v28 }
 0x3ea   : > { %2488 = vmatmul.mubr.msk.bf16.gmra.mrb[40].mxu1 %vm414_vm0, %v2697_v29  ;;  %2475 = vmatprep.mubr.msk.bf16.mxu0 %vm414_vm0, %v2698_v30 }
 0x3f1   : > { %2476 = vmatmul.mubr.msk.bf16.vlgmr.msra.gmra.mrb[40].mxu0 %vm414_vm0, %v2699_v31 }
 0x46d   : > { %v2327_v53 = vpop.f32.mrb[0].mxu1 }
 0x46e   : > { %v2328_v16 = vpop.f32.mrb[1].mxu1 }
 0x46f   : > { %v2329_v22 = vadd.f32 %v2328_v16, %v2327_v53  ;;  %v2330_v18 = vpop.f32.mrb[2].mxu1 }
 0x470   : > { %v2331_v25 = vpop.f32.mrb[3].mxu1 }
 0x471   : > { %v2332_v24 = vadd.f32 %v2331_v25, %v2330_v18 }
 0x475   : > { %v2333_v37 = vpop.f32.mrb[4].mxu1 }
 0x476   : > { %v2334_v38 = vpop.f32.mrb[5].mxu1 }
 0x477   : > { %v2335_v19 = vadd.f32 %v2334_v38, %v2333_v37  ;;  %v2336_v42 = vpop.f32.mrb[6].mxu1 }
 0x478   : > { %v2337_v43 = vpop.f32.mrb[7].mxu1 }
 0x479   : > { %v2338_v44 = vadd.f32 %v2337_v43, %v2336_v42 }
 0x47d   : > { %v2339_v49 = vpop.f32.mrb[8].mxu1 }
 0x47e   : > { %v2340_v40 = vpop.f32.mrb[9].mxu1 }
 0x47f   : > { %v2341_v51 = vadd.f32 %v2340_v40, %v2339_v49  ;;  %v2342_v41 = vpop.f32.mrb[10].mxu1 }
 0x480   : > { %v2343_v39 = vpop.f32.mrb[11].mxu1 }
 0x481   : > { %v2344_v54 = vadd.f32 %v2343_v39, %v2342_v41 }
 0x484   : > { %v2391_v55 = vpop.f32.mrb[8].mxu0 }
 0x485   : > { %v2392_v62 = vpop.f32.mrb[9].mxu0  ;;  %v2345_v34 = vpop.f32.mrb[12].mxu1 }
 0x486   : > { %v2393_v56 = vadd.f32 %v2392_v62, %v2391_v55  ;;  %v2394_v57 = vpop.f32.mrb[10].mxu0  ;;  %v2346_v35 = vpop.f32.mrb[13].mxu1 }
 0x487   : > { %v2395_v61 = vpop.f32.mrb[11].mxu0  ;;  %v2347_v58 = vadd.f32 %v2346_v35, %v2345_v34  ;;  %v2348_v59 = vpop.f32.mrb[14].mxu1 }
 0x488   : > { %v2396_v63 = vadd.f32 %v2395_v61, %v2394_v57  ;;  %v2349_v60 = vpop.f32.mrb[15].mxu1  ;;  %v3678_v36 = vadd.f32 %v2393_v56, %v2329_v22 }
 0x489   : > { %v2350_v1 = vadd.f32 %v2349_v60, %v2348_v59 }
 0x48a   : > { %v3680_v2 = vadd.f32 %v2396_v63, %v2332_v24 }
 0x48c   : > { %v2397_v3 = vpop.f32.mrb[12].mxu0 }
 0x48d   : > { %v2398_v4 = vpop.f32.mrb[13].mxu0  ;;  %v2351_v5 = vpop.f32.mrb[16].mxu1 }
 0x48e   : > { %v2399_v6 = vadd.f32 %v2398_v4, %v2397_v3  ;;  %v2400_v8 = vpop.f32.mrb[14].mxu0  ;;  %v2352_v9 = vpop.f32.mrb[17].mxu1 }
 0x48f   : > { %v2401_v10 = vpop.f32.mrb[15].mxu0  ;;  %v2353_v12 = vadd.f32 %v2352_v9, %v2351_v5  ;;  %v2354_v13 = vpop.f32.mrb[18].mxu1 }
 0x490   : > { %v2402_v14 = vadd.f32 %v2401_v10, %v2400_v8  ;;  %v2355_v15 = vpop.f32.mrb[19].mxu1  ;;  %v3682_v20 = vadd.f32 %v2399_v6, %v2335_v19 }
 0x491   : > { %v2356_v21 = vadd.f32 %v2355_v15, %v2354_v13 }
 0x492   : > { %v3684_v23 = vadd.f32 %v2402_v14, %v2338_v44 }
 0x494   : > { %v2403_v27 = vpop.f32.mrb[16].mxu0 }
 0x495   : > { %v2404_v28 = vpop.f32.mrb[17].mxu0  ;;  %v2357_v29 = vpop.f32.mrb[20].mxu1 }
 0x496   : > { %v2405_v30 = vadd.f32 %v2404_v28, %v2403_v27  ;;  %v2406_v31 = vpop.f32.mrb[18].mxu0  ;;  %v2358_v33 = vpop.f32.mrb[21].mxu1 }
 0x497   : > { %v2407_v47 = vpop.f32.mrb[19].mxu0  ;;  %v2359_v53 = vadd.f32 %v2358_v33, %v2357_v29  ;;  %v2360_v16 = vpop.f32.mrb[22].mxu1 }
 0x498   : > { %v2408_v22 = vadd.f32 %v2407_v47, %v2406_v31  ;;  %v2361_v18 = vpop.f32.mrb[23].mxu1  ;;  %v1362_v25 = vadd.f32 %v2405_v30, %v2341_v51 }
 0x499   : > { %v2362_v24 = vadd.f32 %v2361_v18, %v2360_v16 }
 0x49a   : > { %v1365_v37 = vadd.f32 %v2408_v22, %v2344_v54 }
 0x49c   : > { %v2409_v38 = vpop.f32.mrb[20].mxu0 }
 0x49d   : > { %v2410_v19 = vpop.f32.mrb[21].mxu0  ;;  %v2363_v42 = vpop.f32.mrb[24].mxu1 }
 0x49e   : > { %v2411_v43 = vadd.f32 %v2410_v19, %v2409_v38  ;;  %v2412_v44 = vpop.f32.mrb[22].mxu0  ;;  %v2364_v49 = vpop.f32.mrb[25].mxu1 }
 0x49f   : > { %v2413_v40 = vpop.f32.mrb[23].mxu0  ;;  %v2365_v41 = vadd.f32 %v2364_v49, %v2363_v42  ;;  %v2366_v39 = vpop.f32.mrb[26].mxu1 }
 0x4a0   : > { %v2414_v55 = vadd.f32 %v2413_v40, %v2412_v44  ;;  %v2367_v62 = vpop.f32.mrb[27].mxu1  ;;  %v1370_v34 = vadd.f32 %v2411_v43, %v2347_v58 }
 0x4a1   : > { %v2368_v56 = vadd.f32 %v2367_v62, %v2366_v39 }
 0x4a2   : > { %v1373_v57 = vadd.f32 %v2414_v55, %v2350_v1 }
 0x4a4   : > { %v2415_v35 = vpop.f32.mrb[24].mxu0 }
 0x4a5   : > { %v2416_v61 = vpop.f32.mrb[25].mxu0  ;;  %v2369_v59 = vpop.f32.mrb[28].mxu1 }
 0x4a6   : > { %v2417_v51 = vadd.f32 %v2416_v61, %v2415_v35  ;;  %v2418_v63 = vpop.f32.mrb[26].mxu0  ;;  %v2370_v54 = vpop.f32.mrb[29].mxu1 }
 0x4a7   : > { %v2419_v60 = vpop.f32.mrb[27].mxu0  ;;  %v2371_v3 = vadd.f32 %v2370_v54, %v2369_v59  ;;  %v2372_v4 = vpop.f32.mrb[30].mxu1 }
 0x4a8   : > { %v2420_v5 = vadd.f32 %v2419_v60, %v2418_v63  ;;  %v2373_v6 = vpop.f32.mrb[31].mxu1  ;;  %v1378_v8 = vadd.f32 %v2417_v51, %v2353_v12 }
 0x4a9   : > { %v2374_v9 = vadd.f32 %v2373_v6, %v2372_v4 }
 0x4aa   : > { %v1381_v10 = vadd.f32 %v2420_v5, %v2356_v21 }
 0x4ac   : > { %v2421_v13 = vpop.f32.mrb[28].mxu0 }
 0x4ad   : > { %v2422_v14 = vpop.f32.mrb[29].mxu0  ;;  %v2481_v15 = vpop.f32.mrb[32].mxu1 }
 0x4ae   : > { %v2423_v58 = vadd.f32 %v2422_v14, %v2421_v13  ;;  %v3686_v27 = vadd.f32 %v2481_v15, %v1370_v34  ;;  %v2424_v1 = vpop.f32.mrb[30].mxu0  ;;  %v1458_v28 = vpop.f32.mrb[33].mxu1 }
 0x4af   : > { %v3688_v29 = vadd.f32 %v1458_v28, %v1362_v25  ;;  %v2425_v30 = vpop.f32.mrb[31].mxu0  ;;  %v2482_v31 = vpop.f32.mrb[34].mxu1 }
 0x4b0   : > { %v2426_v33 = vadd.f32 %v2425_v30, %v2424_v1  ;;  %v3690_v47 = vadd.f32 %v2482_v31, %v1373_v57  ;;  %1517 = vadd.xlane.f32.xlu1 %v3686_v27  ;;  %v1461_v12 = vpop.f32.mrb[35].mxu1  ;;  %v1386_v16 = vadd.f32 %v2423_v58, %v2359_v53 }
 0x4b1   : > { %4075 = vst [vmem:[#allocation17_spill] sm:$0xff] %v3688_v29  ;;  %v3693_v21 = vadd.f32 %v1461_v12, %v1365_v37 }
 0x4b2   : > { %4076 = vst [vmem:[#allocation18_spill] sm:$0xff] %v3690_v47  ;;  %v1389_v22 = vadd.f32 %v2426_v33, %v2362_v24  ;;  %v1544_v33 = vmul.f32 %v3690_v47, %v3690_v47 }
 0x4b3   : > { %4077 = vst [vmem:[#allocation19_spill] sm:$0xff] %v3693_v21 }
 0x4b4   : > { %v2427_v18 = vpop.f32.mrb[32].mxu0  ;;  %1513 = vadd.xlane.f32.xlu1 %v3688_v29 }
 0x4b5   : > { %v2428_v38 = vpop.f32.mrb[33].mxu0  ;;  %v2485_v19 = vpop.f32.mrb[36].mxu1 }
 0x4b6   : > { %v2429_v42 = vadd.f32 %v2428_v38, %v2427_v18  ;;  %v3696_v25 = vadd.f32 %v2485_v19, %v1386_v16  ;;  %v2430_v43 = vpop.f32.mrb[34].mxu0  ;;  %v1474_v44 = vpop.f32.mrb[37].mxu1 }
 0x4b7   : > { %v3698_v49 = vadd.f32 %v1474_v44, %v1378_v8  ;;  %v2431_v40 = vpop.f32.mrb[35].mxu0  ;;  %v2486_v39 = vpop.f32.mrb[38].mxu1 }
 0x4b8   : > { %v2432_v55 = vadd.f32 %v2431_v40, %v2430_v43  ;;  %v3700_v62 = vadd.f32 %v2486_v39, %v1389_v22  ;;  %v1477_v53 = vpop.f32.mrb[39].mxu1  ;;  %v1394_v37 = vadd.f32 %v2429_v42, %v2365_v41  ;;  %v1547_v16 = vmul.f32 %v3696_v25, %v3696_v25  ;;  %v3762_v43 = vpop.permute.xlu1 %1747 }
 0x4b9   : > { %v3702_v24 = vadd.f32 %v1477_v53, %v1381_v10  ;;  %v1542_v22 = vmul.f32 %v3693_v21, %v3693_v21  ;;  %v1545_v18 = vmul.f32 %v3698_v49, %v3698_v49  ;;  %4079 = vst [vmem:[#allocation21_spill] sm:$0xff] %v3762_v43 }
 0x4ba   : > { %v1397_v34 = vadd.f32 %v2432_v55, %v2368_v56  ;;  %v1548_v38 = vmul.f32 %v3700_v62, %v3700_v62 }
 0x4bb   : > { %v1546_v42 = vmul.f32 %v3702_v24, %v3702_v24 }
 0x4bc   : > { %v2433_v57 = vpop.f32.mrb[36].mxu0  ;;  %v3767_v40 = vpop.permute.xlu1 %1757 }
 0x4bd   : > { %v2434_v35 = vpop.f32.mrb[37].mxu0  ;;  %v2489_v61 = vpop.f32.mrb[40].mxu1  ;;  %4080 = vst [vmem:[#allocation22_spill] sm:$0xff] %v3767_v40 }
 0x4be   : > { %v2435_v59 = vadd.f32 %v2434_v35, %v2433_v57  ;;  %v2436_v51 = vpop.f32.mrb[38].mxu0  ;;  %v1490_v63 = vpop.f32.mrb[41].mxu1 }
 0x4bf   : > { %v3704_v54 = vadd.f32 %v1490_v63, %v1394_v37  ;;  %v2437_v60 = vpop.f32.mrb[39].mxu0  ;;  %v2490_v4 = vpop.f32.mrb[42].mxu1 }
 0x4c0   : > { %v1402_v5 = vadd.f32 %v2435_v59, %v2371_v3  ;;  %v2438_v6 = vadd.f32 %v2437_v60, %v2436_v51  ;;  %v1493_v8 = vpop.f32.mrb[43].mxu1  ;;  %v3772_v55 = vpop.permute.xlu1 %1762 }
 0x4c1   : > { %v3706_v13 = vadd.f32 %v1493_v8, %v1397_v34  ;;  %v1549_v44 = vmul.f32 %v3704_v54, %v3704_v54  ;;  %4081 = vst [vmem:[#allocation23_spill] sm:$0xff] %v3772_v55 }
 0x4c2   : > { %v3708_v14 = vadd.f32 %v2489_v61, %v1402_v5  ;;  %v1405_v41 = vadd.f32 %v2438_v6, %v2374_v9  ;;  %v1672_v61 = vld [vmem:[#allocation10 + $0x38] sm:$0xff] }
 0x4c3   : > { %v1550_v53 = vmul.f32 %v3706_v13, %v3706_v13 }
 0x4c4   : > { %v3710_v10 = vadd.f32 %v2490_v4, %v1405_v41  ;;  %v2477_v56 = vpop.f32.mrb[40].mxu0  ;;  %v1551_v19 = vmul.f32 %v3708_v14, %v3708_v14  ;;  %v3776_v37 = vpop.permute.xlu1 %1767 }
 0x4c5   : > { %v3713_v15 = vadd.f32 %v2477_v56, %v3682_v20  ;;  %v1442_v58 = vpop.f32.mrb[41].mxu0  ;;  %4082 = vst [vmem:[#allocation24_spill] sm:$0xff] %v3776_v37 }
 0x4c6   : > { %v3716_v1 = vadd.f32 %v1442_v58, %v3678_v36  ;;  %v2478_v28 = vpop.f32.mrb[42].mxu0  ;;  %v1543_v36 = vmul.f32 %v3686_v27, %v3686_v27  ;;  %v1552_v39 = vmul.f32 %v3710_v10, %v3710_v10 }
 0x4c7   : > { %v3719_v3 = vadd.f32 %v2478_v28, %v3684_v23  ;;  %1509 = vadd.xlane.f32.xlu0 %v3713_v15  ;;  %v1445_v30 = vpop.f32.mrb[43].mxu0  ;;  %v1539_v9 = vmul.f32 %v3713_v15, %v3713_v15 }
 0x4c8   : > { %v3725_v31 = vadd.f32 %v1445_v30, %v3680_v2  ;;  %v1537_v20 = vmul.f32 %v3716_v1, %v3716_v1  ;;  %v1541_v2 = vmul.f32 %v3688_v29, %v3688_v29  ;;  %v3779_v34 = vpop.permute.xlu1 %1772 }
 0x4c9   : > { %1557 = vadd.xlane.f32.xlu1 %v1539_v9  ;;  %v1540_v23 = vmul.f32 %v3719_v3, %v3719_v3  ;;  %4083 = vst [vmem:[#allocation25_spill] sm:$0xff] %v3779_v34 }
 0x4ca   : > { %4078 = vst [vmem:[#allocation20_spill] sm:$0xff] %v3725_v31  ;;  %v1538_v12 = vmul.f32 %v3725_v31, %v3725_v31 }
 0x4cb   : > { %1505 = vadd.xlane.f32.xlu0 %v3716_v1 }
 0x4cc   : > { %v3783_v57 = vpop.permute.xlu1 %1777 }
 0x4cd   : > { %1565 = vadd.xlane.f32.xlu1 %v1543_v36  ;;  %4084 = vst [vmem:[#allocation26_spill] sm:$0xff] %v3783_v57 }
 0x4cf   : > { %1511 = vadd.xlane.f32.xlu0 %v3719_v3 }
 0x4d0   : > { %v3786_v35 = vpop.permute.xlu1 %1787 }
 0x4d1   : > { %1507 = vadd.xlane.f32.xlu1 %v3725_v31 }
 0x4d3   : > { %1519 = vadd.xlane.f32.xlu0 %v3690_v47 }
 0x4d5   : > { %1553 = vadd.xlane.f32.xlu1 %v1537_v20 }
 0x4d7   : > { %1515 = vadd.xlane.f32.xlu0 %v3693_v21 }
 0x4d9   : > { %1561 = vadd.xlane.f32.xlu1 %v1541_v2 }
 0x4db   : > { %1559 = vadd.xlane.f32.xlu0 %v1540_v23 }
 0x4dd   : > { %1525 = vadd.xlane.f32.xlu1 %v3696_v25 }
 0x4df   : > { %1567 = vadd.xlane.f32.xlu0 %v1544_v33 }
 0x4e1   : > { %1521 = vadd.xlane.f32.xlu1 %v3698_v49 }
 0x4e3   : > { %1555 = vadd.xlane.f32.xlu0 %v1538_v12 }
 0x4e5   : > { %1573 = vadd.xlane.f32.xlu1 %v1547_v16 }
 0x4e7   : > { %1563 = vadd.xlane.f32.xlu0 %v1542_v22 }
 0x4e9   : > { %1569 = vadd.xlane.f32.xlu1 %v1545_v18 }
 0x4eb   : > { %1527 = vadd.xlane.f32.xlu0 %v3700_v62 }
 0x4ed   : > { %1533 = vadd.xlane.f32.xlu1 %v3708_v14 }
 0x4ef   : > { %1523 = vadd.xlane.f32.xlu0 %v3702_v24 }
 0x4f1   : > { %1529 = vadd.xlane.f32.xlu1 %v3704_v54 }
 0x4f3   : > { %1575 = vadd.xlane.f32.xlu0 %v1548_v38 }
 0x4f5   : > { %1581 = vadd.xlane.f32.xlu1 %v1551_v19 }
 0x4f7   : > { %1571 = vadd.xlane.f32.xlu0 %v1546_v42 }
 0x4f9   : > { %1577 = vadd.xlane.f32.xlu1 %v1549_v44 }
 0x4fb   : > { %1535 = vadd.xlane.f32.xlu0 %v3710_v10 }
 0x4ff   : > { %1531 = vadd.xlane.f32.xlu0 %v3706_v13 }
 0x503   : > { %1583 = vadd.xlane.f32.xlu0 %v1552_v39 }
 0x507   : > { %1579 = vadd.xlane.f32.xlu0 %v1550_v53 }
 0x50a   : > { %1902 = vperm.xlu1 %2632, %v3672_v50   ;;  %v3791_v50 = vpop.permute.xlu1 %1792 }
 0x50e   : > { %1842 = vperm.xlu1 %2632, %v3573_v45   ;;  %v3794_v45 = vpop.permute.xlu1 %1797 }
 0x512   : > { %1846 = vperm.xlu1 %2632, %v3669_v32  }
 0x516   : > { %1854 = vperm.xlu1 %2632, %v3579_v52   ;;  %v3799_v52 = vpop.permute.xlu1 %1807 }
 0x51a   : > { %1858 = vperm.xlu1 %2632, %v3586_v48   ;;  %v3801_v48 = vpop.permute.xlu1 %1817 }
 0x51d   : > { %1898 = vperm.xlu0 %2633, %v3634_v7  }
 0x51e   : > { %1866 = vperm.xlu1 %2632, %v3601_v26   ;;  %v3803_v26 = vpop.permute.xlu0 %1752  ;;  %v3805_v7 = vpop.permute.xlu1 %1874 }
 0x51f   : > { %4085 = vst [vmem:[#allocation27_spill] sm:$0xff] %v3803_v26 }
 0x521   : > { %2634 = vset.pattern.permute.xlu0 %v3025_v0 }
 0x522   : > { %1782 = vperm.xlu0 %2634, %v1672_v61   ;;  %v3807_v32 = vpop.permute.xlu0 %1802  ;;  %v3809_v0 = vpop.permute.xlu1 %1882 }
 0x526   : > { %2635 = vset.pattern.permute.xlu0 %v3026_v11  ;;  %v3811_v59 = vpop.permute.xlu0 %1812  ;;  %v3813_v11 = vpop.permute.xlu1 %1886 }
 0x527   : > { %1850 = vperm.xlu0 %2635, %v3576_v46  }
 0x52a   : > { %v3815_v46 = vpop.permute.xlu0 %1822 }
 0x52b   : > { %1862 = vperm.xlu0 %2635, %v3593_v17   ;;  %v3817_v17 = vpop.permute.xlu1 %1894 }
 0x52e   : > { %v3819_v51 = vpop.permute.xlu0 %1878 }
 0x52f   : > { %1870 = vperm.xlu0 %2635, %v1672_v61  }
 0x532   : > { %v3821_v60 = vpop.permute.xlu0 %1890 }
 0x53d   : > { %v1518_v63 = vpop.xlane.xlu1 %1517 }
 0x53e   : > { %v1591_v8 = vmul.f32 0.0078125, %v1518_v63 }
 0x540   : > { %v1623_v58 = vmul.f32 %v1591_v8, %v1591_v8  ;;  %v1687_v38 = vsub.f32 %v3686_v27, %v1591_v8 }
 0x541   : > { %v3823_v4 = vpop.xlane.xlu1 %1513 }
 0x554   : > { %v1510_v5 = vpop.xlane.xlu0 %1509 }
 0x556   : > { %v3825_v6 = vpop.xlane.xlu1 %1557 }
 0x558   : > { %v3827_v41 = vpop.xlane.xlu0 %1505 }
 0x55a   : > { %v1566_v56 = vpop.xlane.xlu1 %1565 }
 0x55b   : > { %v1607_v28 = vmul.f32 0.0078125, %v1566_v56 }
 0x55c   : > { %v3829_v30 = vpop.xlane.xlu0 %1511 }
 0x55d   : > { %v1639_v9 = vsub.f32 %v1607_v28, %v1623_v58 }
 0x55e   : > { %v3831_v36 = vpop.xlane.xlu1 %1507 }
 0x55f   : > { %v1655_v20 = vmax.f32 %v1639_v9, 0.0 }
 0x560   : > { %v3833_v2 = vpop.xlane.xlu0 %1519 }
 0x561   : > { %v1703_v23 = vadd.f32 1e-05, %v1655_v20 }
 0x562   : > { %v3835_v33 = vpop.xlane.xlu1 %1553 }
 0x563   : > { %2716 = vrsqrt.f32 %v1703_v23 }
 0x564   : > { %v3837_v12 = vpop.xlane.xlu0 %1515 }
 0x566   : > { %v3839_v16 = vpop.xlane.xlu1 %1561 }
 0x568   : > { %v3841_v22 = vpop.xlane.xlu0 %1559 }
 0x56a   : > { %v1526_v18 = vpop.xlane.xlu1 %1525 }
 0x56b   : > { %v1595_v53 = vmul.f32 0.0078125, %v1526_v18 }
 0x56c   : > { %v3844_v19 = vpop.xlane.xlu0 %1567 }
 0x56d   : > { %v2717_v42 = vpop.eup %2716  ;;  %v1627_v56 = vmul.f32 %v1595_v53, %v1595_v53 }
 0x56e   : > { %v1522_v44 = vpop.xlane.xlu1 %1521  ;;  %v3846_v39 = vmul.f32 %v2717_v42, %v1687_v38 }
 0x56f   : > { %v1593_v58 = vmul.f32 0.0078125, %v1522_v44 }
 0x570   : > { %4086 = vst [vmem:[#allocation28_spill] sm:$0xff] %v3846_v39  ;;  %v3848_v61 = vpop.xlane.xlu0 %1555 }
 0x571   : > { %v1625_v34 = vmul.f32 %v1593_v58, %v1593_v58 }
 0x572   : > { %v1574_v63 = vpop.xlane.xlu1 %1573 }
 0x573   : > { %v1611_v28 = vmul.f32 0.0078125, %v1574_v63 }
 0x574   : > { %v3850_v9 = vpop.xlane.xlu0 %1563 }
 0x575   : > { %v1643_v20 = vsub.f32 %v1611_v28, %v1627_v56 }
 0x576   : > { %v1570_v23 = vpop.xlane.xlu1 %1569 }
 0x577   : > { %v1659_v37 = vmax.f32 %v1643_v20, 0.0  ;;  %v1609_v27 = vmul.f32 0.0078125, %v1570_v23 }
 0x578   : > { %v1528_v8 = vpop.xlane.xlu0 %1527 }
 0x579   : > { %v1707_v57 = vadd.f32 1e-05, %v1659_v37  ;;  %v1641_v21 = vsub.f32 %v1609_v27, %v1625_v34  ;;  %v3852_v39 = vmul.f32 0.0078125, %v1528_v8  ;;  %v3864_v27 = vmul.f32 0.0078125, %v1510_v5 }
 0x57a   : > { %v1534_v29 = vpop.xlane.xlu1 %1533 }
 0x57b   : > { %2718 = vrsqrt.f32 %v1707_v57  ;;  %v1657_v38 = vmax.f32 %v1641_v21, 0.0  ;;  %v3854_v44 = vmul.f32 0.0078125, %v1534_v29  ;;  %v1628_v56 = vmul.f32 %v3852_v39, %v3852_v39 }
 0x57c   : > { %v1524_v18 = vpop.xlane.xlu0 %1523  ;;  %v1691_v29 = vsub.f32 %v3696_v25, %v1595_v53  ;;  %v1619_v25 = vmul.f32 %v3864_v27, %v3864_v27  ;;  %v1603_v53 = vmul.f32 0.0078125, %v3825_v6  ;;  %v1604_v6 = vmul.f32 0.0078125, %v3841_v22 }
 0x57d   : > { %v1705_v42 = vadd.f32 1e-05, %v1657_v38  ;;  %v3858_v28 = vmul.f32 0.0078125, %v1524_v18  ;;  %v1631_v21 = vmul.f32 %v3854_v44, %v3854_v44  ;;  %v1601_v22 = vmul.f32 0.0078125, %v3835_v33 }
 0x57e   : > { %v1530_v47 = vpop.xlane.xlu1 %1529 }
 0x57f   : > { %2720 = vrsqrt.f32 %v1705_v42  ;;  %v3860_v37 = vmul.f32 0.0078125, %v1530_v47  ;;  %v1626_v42 = vmul.f32 %v3858_v28, %v3858_v28 }
 0x580   : > { %v1576_v63 = vpop.xlane.xlu0 %1575 }
 0x581   : > { %v1612_v20 = vmul.f32 0.0078125, %v1576_v63  ;;  %v1629_v43 = vmul.f32 %v3860_v37, %v3860_v37 }
 0x582   : > { %v1582_v34 = vpop.xlane.xlu1 %1581 }
 0x583   : > { %v1644_v57 = vsub.f32 %v1612_v20, %v1628_v56  ;;  %v1615_v23 = vmul.f32 0.0078125, %v1582_v34  ;;  %v1689_v34 = vsub.f32 %v3698_v49, %v1593_v58 }
 0x584   : > { %v1572_v8 = vpop.xlane.xlu0 %1571 }
 0x585   : > { %v2719_v38 = vpop.eup %2718  ;;  %v1660_v18 = vmax.f32 %v1644_v57, 0.0  ;;  %v1647_v26 = vsub.f32 %v1615_v23, %v1631_v21  ;;  %v1610_v63 = vmul.f32 0.0078125, %v1572_v8  ;;  %v3876_v8 = vmul.f32 0.0078125, %v3829_v30 }
 0x586   : > { %v1739_v47 = vmul.f32 %v2719_v38, %v1691_v29  ;;  %v1578_v55 = vpop.xlane.xlu1 %1577 }
 0x587   : > { %v1708_v40 = vadd.f32 1e-05, %v1660_v18  ;;  %v1663_v56 = vmax.f32 %v1647_v26, 0.0  ;;  %v1642_v20 = vsub.f32 %v1610_v63, %v1626_v42  ;;  %v1613_v5 = vmul.f32 0.0078125, %v1578_v55 }
 0x588   : > { %v1536_v31 = vpop.xlane.xlu0 %1535  ;;  %v1835_v26 = vmul.f32 %v3794_v45, %v1739_v47  ;;  %v1635_v18 = vsub.f32 %v1603_v53, %v1619_v25  ;;  %v1620_v30 = vmul.f32 %v3876_v8, %v3876_v8 }
 0x589   : > { %v2721_v57 = vpop.eup %2720  ;;  %2722 = vrsqrt.f32 %v1708_v40  ;;  %v1711_v21 = vadd.f32 1e-05, %v1663_v56  ;;  %v1658_v23 = vmax.f32 %v1642_v20, 0.0  ;;  %v1645_v29 = vsub.f32 %v1613_v5, %v1629_v43 }
 0x58a   : > { %v1737_v38 = vmul.f32 %v2721_v57, %v1689_v34  ;;  %v3880_v58 = vmul.f32 0.0078125, %v1536_v31  ;;  %v3883_v40 = vmul.f32 0.0078125, %v3827_v41  ;;  %v1915_v45 = vadd.f32 %v3809_v0, %v1835_v26 }
 0x58b   : > { %2724 = vrsqrt.f32 %v1711_v21  ;;  %v1706_v55 = vadd.f32 1e-05, %v1658_v23  ;;  %v1661_v42 = vmax.f32 %v1645_v29, 0.0  ;;  %v1651_v47 = vmax.f32 %v1635_v18, 0.0 }
 0x58c   : > { %v1532_v63 = vpop.xlane.xlu0 %1531  ;;  %v1833_v43 = vmul.f32 %v3786_v35, %v1737_v38  ;;  %v3890_v56 = vmul.f32 0.0078125, %v3831_v36  ;;  %v1636_v31 = vsub.f32 %v1604_v6, %v1620_v30  ;;  %v1632_v41 = vmul.f32 %v3880_v58, %v3880_v58 }
 0x58d   : > { %2726 = vrsqrt.f32 %v1706_v55  ;;  %v1709_v49 = vadd.f32 1e-05, %v1661_v42  ;;  %v3895_v5 = vmul.f32 0.0078125, %v1532_v63  ;;  %v1617_v25 = vmul.f32 %v3883_v40, %v3883_v40 }
 0x58e   : > { %v1692_v0 = vsub.f32 %v3700_v62, %v3852_v39  ;;  %v1913_v53 = vadd.f32 %v3805_v7, %v1833_v43  ;;  %v1602_v34 = vmul.f32 0.0078125, %v3848_v61  ;;  %v2251_v57 = vmul.f32 -1.442695, %v1915_v45 }
 0x58f   : > { %2728 = vrsqrt.f32 %v1709_v49  ;;  %v1699_v21 = vadd.f32 1e-05, %v1651_v47  ;;  %v1618_v23 = vmul.f32 %v3890_v56, %v3890_v56  ;;  %v1633_v29 = vsub.f32 %v1601_v22, %v1617_v25 }
 0x590   : > { %v1584_v20 = vpop.xlane.xlu0 %1583  ;;  %v1652_v42 = vmax.f32 %v1636_v31, 0.0  ;;  %v1630_v18 = vmul.f32 %v3895_v5, %v3895_v5  ;;  %v1695_v7 = vsub.f32 %v3708_v14, %v3854_v44  ;;  %v1690_v61 = vsub.f32 %v3702_v24, %v3858_v28 }
 0x591   : > { %v1616_v35 = vmul.f32 0.0078125, %v1584_v20  ;;  %v2249_v6 = vmul.f32 -1.442695, %v1913_v53  ;;  %v1634_v43 = vsub.f32 %v1602_v34, %v1618_v23  ;;  %2730 = vpow2.f32 %v2251_v57 }
 0x592   : > { %v1693_v47 = vsub.f32 %v3704_v54, %v3860_v37  ;;  %v1649_v14 = vmax.f32 %v1633_v29, 0.0  ;;  %v1903_v37 = vpop.permute.xlu1 %1902  ;;  %v3920_v57 = vmul.f32 0.0078125, %v3823_v4  ;;  %v3926_v29 = vmul.f32 0.0078125, %v3837_v12 }
 0x593   : > { %v2723_v36 = vpop.eup %2722  ;;  %v1648_v33 = vsub.f32 %v1616_v35, %v1632_v41  ;;  %v1700_v35 = vadd.f32 1e-05, %v1652_v42  ;;  %v1650_v25 = vmax.f32 %v1634_v43, 0.0  ;;  %v1606_v12 = vmul.f32 0.0078125, %v3850_v9 }
 0x594   : > { %v1740_v38 = vmul.f32 %v2723_v36, %v1692_v0  ;;  %v1580_v26 = vpop.xlane.xlu0 %1579  ;;  %v1697_v36 = vadd.f32 1e-05, %v1649_v14 }
 0x595   : > { %v2725_v55 = vpop.eup %2724  ;;  %v1664_v62 = vmax.f32 %v1648_v33, 0.0  ;;  %v1614_v39 = vmul.f32 0.0078125, %v1580_v26  ;;  %v1698_v23 = vadd.f32 1e-05, %v1650_v25 }
 0x596   : > { %v1836_v63 = vmul.f32 %v3807_v32, %v1740_v38  ;;  %v1743_v31 = vmul.f32 %v2725_v55, %v1695_v7  ;;  %v1608_v38 = vmul.f32 0.0078125, %v3844_v19  ;;  %v1621_v55 = vmul.f32 %v3920_v57, %v3920_v57 }
 0x597   : > { %v2727_v49 = vpop.eup %2726  ;;  %v1712_v30 = vadd.f32 1e-05, %v1664_v62  ;;  %v1646_v45 = vsub.f32 %v1614_v39, %v1630_v18 }
 0x598   : > { %v1738_v22 = vmul.f32 %v2727_v49, %v1690_v61  ;;  %v1916_v20 = vadd.f32 %v3813_v11, %v1836_v63  ;;  %v1839_v11 = vmul.f32 %v3801_v48, %v1743_v31  ;;  %v1605_v48 = vmul.f32 0.0078125, %v3839_v16  ;;  %v3938_v16 = vpop.permute.xlu1 %1842 }
 0x599   : > { %v2729_v41 = vpop.eup %2728  ;;  %2732 = vrsqrt.f32 %v1712_v30  ;;  %v1662_v44 = vmax.f32 %v1646_v45, 0.0  ;;  %v1694_v61 = vsub.f32 %v3706_v13, %v3895_v5  ;;  %v1683_v49 = vsub.f32 %v3713_v15, %v3864_v27 }
 0x59a   : > { %v1834_v24 = vmul.f32 %v3791_v50, %v1738_v22  ;;  %v1741_v32 = vmul.f32 %v2729_v41, %v1693_v47  ;;  %2734 = vpow2.f32 %v2249_v6  ;;  %v2252_v28 = vmul.f32 -1.442695, %v1916_v20 }
 0x59b   : > { %2736 = vrsqrt.f32 %v1699_v21  ;;  %v1710_v0 = vadd.f32 1e-05, %v1662_v44  ;;  %v3923_v21 = vmul.f32 0.0078125, %v3833_v2  ;;  %v1684_v13 = vsub.f32 %v3719_v3, %v3876_v8 }
 0x59c   : > { %v1914_v53 = vadd.f32 %v3819_v51, %v1834_v24  ;;  %2738 = vpow2.f32 %v2252_v28  ;;  %v1899_v54 = vpop.permute.xlu0 %1898  ;;  %v1837_v34 = vmul.f32 %v3799_v52, %v1741_v32  ;;  %v2731_v51 = vpop.eup %2730  ;;  %v1696_v52 = vsub.f32 %v3710_v10, %v3880_v58 }
 0x59d   : > { %2740 = vrsqrt.f32 %v1710_v0  ;;  %v1919_v50 = vadd.f32 %v1899_v54, %v1839_v11  ;;  %v1624_v42 = vmul.f32 %v3923_v21, %v3923_v21  ;;  %v1947_v62 = vadd.f32 1.0, %v2731_v51  ;;  %v4087_v54 = vld [vmem:[#allocation20_spill] sm:$0xff] }
 0x59e   : > { %v2250_v33 = vmul.f32 -1.442695, %v1914_v53  ;;  %2742 = vrsqrt.f32 %v1700_v35  ;;  %v1917_v4 = vadd.f32 %v3821_v60, %v1837_v34  ;;  %v1622_v10 = vmul.f32 %v3926_v29, %v3926_v29 }
 0x59f   : > { %v2255_v26 = vmul.f32 -1.442695, %v1919_v50  ;;  %v1637_v60 = vsub.f32 %v1605_v48, %v1621_v55  ;;  %v1640_v58 = vsub.f32 %v1608_v38, %v1624_v42  ;;  %v1681_v3 = vsub.f32 %v3716_v1, %v3883_v40  ;;  %v4089_v48 = vld [vmem:[#allocation23_spill] sm:$0xff] }
 0x5a0   : > { %2744 = vpow2.f32 %v2250_v33  ;;  %v2253_v6 = vmul.f32 -1.442695, %v1917_v4  ;;  %v1638_v43 = vsub.f32 %v1606_v12, %v1622_v10  ;;  %v4091_v42 = vld [vmem:[#allocation27_spill] sm:$0xff] }
 0x5a1   : > { %2746 = vrsqrt.f32 %v1697_v36  ;;  %v3947_v47 = vpop.permute.xlu0 %1782  ;;  %v1656_v5 = vmax.f32 %v1640_v58, 0.0  ;;  %v1653_v44 = vmax.f32 %v1637_v60, 0.0 }
 0x5a2   : > { %2748 = vrsqrt.f32 %v1698_v23  ;;  %v1654_v24 = vmax.f32 %v1638_v43, 0.0 }
 0x5a3   : > { %v2733_v2 = vpop.eup %2732  ;;  %2750 = vpow2.f32 %v2255_v26  ;;  %v1704_v8 = vadd.f32 1e-05, %v1656_v5  ;;  %v1701_v11 = vadd.f32 1e-05, %v1653_v44 }
 0x5a4   : > { %v2735_v19 = vpop.eup %2734  ;;  %v1744_v18 = vmul.f32 %v2733_v2, %v1696_v52  ;;  %2752 = vrcp.f32 %v1947_v62  ;;  %v1702_v33 = vadd.f32 1e-05, %v1654_v24  ;;  %v4090_v2 = vld [vmem:[#allocation21_spill] sm:$0xff] }
 0x5a5   : > { %v2737_v39 = vpop.eup %2736  ;;  %v1945_v30 = vadd.f32 1.0, %v2735_v19 }
 0x5a6   : > { %v2739_v7 = vpop.eup %2738  ;;  %v1840_v63 = vmul.f32 %v3815_v46, %v1744_v18  ;;  %v1847_v46 = vpop.permute.xlu1 %1846  ;;  %v1731_v41 = vmul.f32 %v2737_v39, %v1683_v49 }
 0x5a7   : > { %v2741_v9 = vpop.eup %2740  ;;  %v1948_v45 = vadd.f32 1.0, %v2739_v7  ;;  %v1851_v53 = vpop.permute.xlu0 %1850 }
 0x5a8   : > { %v1742_v22 = vmul.f32 %v2741_v9, %v1694_v61  ;;  %v1920_v20 = vadd.f32 %v1903_v37, %v1840_v63  ;;  %v2743_v31 = vpop.eup %2742  ;;  %v4088_v37 = vld [vmem:[#allocation22_spill] sm:$0xff] }
 0x5a9   : > { %2754 = vrcp.f32 %v1948_v45  ;;  %v1732_v35 = vmul.f32 %v2743_v31, %v1684_v13  ;;  %v1827_v36 = vmul.f32 %v4088_v37, %v1731_v41  ;;  %v4092_v31 = vld [vmem:[#allocation18_spill] sm:$0xff] }
 0x5aa   : > { %v2745_v14 = vpop.eup %2744  ;;  %v1838_v15 = vmul.f32 %v3811_v59, %v1742_v22  ;;  %2756 = vpow2.f32 %v2253_v6  ;;  %v2256_v27 = vmul.f32 -1.442695, %v1920_v20  ;;  %v1682_v59 = vsub.f32 %v4087_v54, %v3890_v56  ;;  %v1855_v23 = vpop.permute.xlu1 %1854  ;;  %v4097_v54 = vld [vmem:[#allocation24_spill] sm:$0xff] }
 0x5ab   : > { %2758 = vrcp.f32 %v1945_v30  ;;  %v1946_v32 = vadd.f32 1.0, %v2745_v14  ;;  %v2747_v28 = vpop.eup %2746  ;;  %v1828_v38 = vmul.f32 %v4089_v48, %v1732_v35  ;;  %v1907_v52 = vadd.f32 %v1851_v53, %v1827_v36  ;;  %v1863_v43 = vpop.permute.xlu0 %1862  ;;  %v4094_v14 = vld [vmem:[#allocation19_spill] sm:$0xff]  ;;  %v4096_v35 = vld [vmem:[#allocation26_spill] sm:$0xff] }
 0x5ac   : > { %v1918_v25 = vadd.f32 %v3817_v17, %v1838_v15  ;;  %2760 = vpow2.f32 %v2256_v27  ;;  %v2749_v0 = vpop.eup %2748  ;;  %v1729_v50 = vmul.f32 %v2747_v28, %v1681_v3  ;;  %v1688_v13 = vsub.f32 %v4092_v31, %v3923_v21  ;;  %v4095_v28 = vld [vmem:[#allocation28_spill] sm:$0xff] }
 0x5ad   : > { %2762 = vrcp.f32 %v1946_v32  ;;  %v2751_v51 = vpop.eup %2750  ;;  %v1730_v17 = vmul.f32 %v2749_v0, %v1682_v59  ;;  %v1908_v40 = vadd.f32 %v1855_v23, %v1828_v38  ;;  %v1686_v44 = vsub.f32 %v4094_v14, %v3926_v29 }
 0x5ae   : > { %v2254_v34 = vmul.f32 -1.442695, %v1918_v25  ;;  %v2753_v1 = vpop.eup %2752  ;;  %v1951_v56 = vadd.f32 1.0, %v2751_v51  ;;  %v1825_v55 = vmul.f32 %v4090_v2, %v1729_v50  ;;  %v1859_v49 = vpop.permute.xlu1 %1858  ;;  %v1831_v25 = vmul.f32 %v4096_v35, %v4095_v28 }
 0x5af   : > { %v1826_v12 = vmul.f32 %v4091_v42, %v1730_v17  ;;  %v1971_v18 = vmul.f32 %v2753_v1, %v1907_v52  ;;  %v1871_v24 = vpop.permute.xlu0 %1870 }
 0x5b0   : > { %2764 = vpow2.f32 %v2254_v34  ;;  %v1905_v10 = vadd.f32 %v3938_v16, %v1825_v55 }
 0x5b1   : > { %2766 = vrsqrt.f32 %v1704_v8  ;;  %v1906_v60 = vadd.f32 %v1847_v46, %v1826_v12  ;;  %v4093_v46 = vld [vmem:[#allocation17_spill] sm:$0xff] }
 0x5b2   : > { %2768 = vrsqrt.f32 %v1701_v11  ;;  %v1685_v41 = vsub.f32 %v4093_v46, %v3920_v57  ;;  %v1867_v27 = vpop.permute.xlu1 %1866  ;;  %v4098_v11 = vld [vmem:[#allocation25_spill] sm:$0xff] }
 0x5b3   : > { %v2755_v4 = vpop.eup %2754  ;;  %2770 = vrsqrt.f32 %v1702_v33  ;;  %v1911_v8 = vadd.f32 %v1867_v27, %v1831_v25 }
 0x5b4   : > { %v2757_v26 = vpop.eup %2756  ;;  %v1972_v19 = vmul.f32 %v2755_v4, %v1908_v40  ;;  %2772 = vrcp.f32 %v1951_v56 }
 0x5b5   : > { %v2759_v62 = vpop.eup %2758  ;;  %v1949_v61 = vadd.f32 1.0, %v2757_v26 }
 0x5b6   : > { %v2761_v39 = vpop.eup %2760  ;;  %v2288_v58 = vpack.c.bf16 %v1972_v19, %v1971_v18  ;;  %v1969_v6 = vmul.f32 %v2759_v62, %v1905_v10 }
 0x5b7   : > { %v2763_v7 = vpop.eup %2762  ;;  %v1952_v63 = vadd.f32 1.0, %v2761_v39 }
 0x5b8   : > { %v1970_v9 = vmul.f32 %v2763_v7, %v1906_v60  ;;  %2300 = vst [vmem:[%s3964_s24 + $0x8] sm:$0xff] %v2288_v58  }
 0x5b9   : > { %2774 = vrcp.f32 %v1952_v63 }
 0x5ba   : > { %v2765_v30 = vpop.eup %2764  ;;  %v2283_v45 = vpack.c.bf16 %v1970_v9, %v1969_v6  ;;  %2776 = vrcp.f32 %v1949_v61 }
 0x5bb   : > { %v2767_v16 = vpop.eup %2766  ;;  %v1950_v22 = vadd.f32 1.0, %v2765_v30 }
 0x5bc   : > { %v2769_v20 = vpop.eup %2768  ;;  %2284 = vst [vmem:[%s3964_s24] sm:$0xff] %v2283_v45   ;;  %v1736_v15 = vmul.f32 %v2767_v16, %v1688_v13 }
 0x5bd   : > { %v2771_v5 = vpop.eup %2770  ;;  %2778 = vrcp.f32 %v1950_v22  ;;  %v1733_v32 = vmul.f32 %v2769_v20, %v1685_v41 }
 0x5be   : > { %v1832_v0 = vmul.f32 %v3947_v47, %v1736_v15  ;;  %v1734_v21 = vmul.f32 %v2771_v5, %v1686_v44  ;;  %v2773_v3 = vpop.eup %2772 }
 0x5bf   : > { %v1829_v59 = vmul.f32 %v4097_v54, %v1733_v32  ;;  %v1975_v29 = vmul.f32 %v2773_v3, %v1911_v8 }
 0x5c0   : > { %v1912_v53 = vadd.f32 %v1871_v24, %v1832_v0  ;;  %v1830_v37 = vmul.f32 %v4098_v11, %v1734_v21 }
 0x5c1   : > { %v1909_v33 = vadd.f32 %v1859_v49, %v1829_v59 }
 0x5c2   : > { %v1910_v47 = vadd.f32 %v1863_v43, %v1830_v37 }
 0x5c3   : > { %v2775_v57 = vpop.eup %2774 }
 0x5c4   : > { %v1976_v36 = vmul.f32 %v2775_v57, %v1912_v53  ;;  %v2777_v34 = vpop.eup %2776 }
 0x5c5   : > { %v1973_v51 = vmul.f32 %v2777_v34, %v1909_v33 }
 0x5c6   : > { %v2298_v50 = vpack.c.bf16 %v1976_v36, %v1975_v29 }
 0x5c7   : > { %v2779_v23 = vpop.eup %2778 }
 0x5c8   : > { %v1974_v17 = vmul.f32 %v2779_v23, %v1910_v47  ;;  %2302 = vst [vmem:[%s3964_s24 + $0x18] sm:$0xff] %v2298_v50  }
 0x5ca   : > { %v2293_v48 = vpack.c.bf16 %v1974_v17, %v1973_v51 }
 0x5cc   : > { %2301 = vst [vmem:[%s3964_s24 + $0x10] sm:$0xff] %v2293_v48  }
 0x5cd   : > { %2935 = shalt.err (!%p2932_p0)
}
 0x5ce   : > { %s2936_s7 = scalar_lea.hbm %s3987_s6, 512  ;;  %s2940_s14 = scalar_lea.hbm %s4043_s5, 1024 }
 0x5cf   : > { %p2937_p4 = scmp.ne.s32.totalorder %s3987_s6, %s2936_s7  ;;  %p2941_p12 = scmp.lt.u32.totalorder %s3987_s6, %s4043_s5 }
 0x5d0   : > { %p2942_p1 = scmp.lt.u32.totalorder %s2940_s14, %s2936_s7  ;;  %p2944_p8 = scmp.lt.u32.totalorder %s2936_s7, %s3987_s6 }
 0x5d1   : > { %p2938_p13 = pnand %p2937_p4, %p3240_p5 }
 0x5d2   : > { %p2943_p11 = por %p2942_p1, %p2941_p12 }
 0x5d3   : > { %p2939_p2 = pneg %p2938_p13 }
 0x5d4   : > { %p2945_p6 = por %p2944_p8, %p2943_p11 }
 0x5d6   : > { %p2946_p10 = pnand %p2945_p6, %p2939_p2 }
 0x5d8   : > { %2949 = shalt.err (!%p2946_p10)
}
 0x5d9   : > { %s3037_s1 = smov 64  }
 0x5da   : > { %2517 = dma.vmem_to_hbm [thread:$0]  (%p3240_p5), %s3982_s27, 512, %s3987_s6, %s2018_s10, %s3037_s1, %s3037_s1, %s3027_s26  }
 0x5db PF: > { %s4099_s9 = sld [smem:[#allocation16_spill]]  ;;  %s2048_s13 = sand.u32 1, %s2992_s18  }
 0x5dc   : > { %p4101_p7 = scmp.ge.s32.totalorder %s3012_s23, 2  ;;  %s2049_s28 = scalar_lea.sflag [#allocation4], %s2048_s13 }
 0x5e1   : > { %p4100_p3 = scmp.ne.s32.totalorder %s4099_s9, 0 }
 0x5e3   : > { %p2537_p9 = pnand %p4101_p7, %p4100_p3 }
 0x5e5   : > { %2987 = dma.done.wait (!%p2537_p9), %s2049_s28, 512  }
 0x5e6   : > { %2989 = vsyncadd (!%p2537_p9), %s2049_s28, 4294966784  ;;  %s23_s23 = sadd.s32 1, %s3012_s23   ;;  %s4102_s18 = smov %s2996_s19 }
 0x5e7   : > { %p20_p0 = scmp.ge.s32.totalorder %s23_s23, 4   ;;  %s4103_s19 = smov %s3000_s20 }
 0x5e8   : > { %s4104_s20 = smov %s3249_s12  ;;  %s4105_s21 = smov %s3008_s22 }
 0x5e9   : > { %s4106_s22 = smov %s4108_s16  ;;  %22 = sbr.rel (!%p20_p0) target bundleno = 10 (0xa), region = 105 }
 0x5f0   :  { %2054 = vsyncpa [#allocation3], 1 }
 0x5f1   :  { %2056 = vsyncpa [#allocation3 + $0x1], 1 }
 0x5f2   :  { %2057 = vsyncpa [#allocation6], 1 }
 0x5f3   :  { %2058 = vsyncpa [#allocation9], 1 }
 0x5f4   :  { %2059 = vsyncpa [#allocation4], 1 }
 0x5f5   :  { %2061 = vsyncpa [#allocation4 + $0x1], 1 }

// kernel: generator_forward.11
= control target key start
LH: loop header
LB: loop body
LE: loop exit
PB: predicated region body
PF: predicated region fallthrough
CT: control target
= control target key end

     0   :  { %7 = vsyncpa [#allocation3], 0  ;;  %s1152_s0 = inlined_call_operand.hbm [shape: bf16[2,32,128], index: 0, kind: input, shape index: {}]   ;;  %s1153_s1 = inlined_call_operand.hbm [shape: bf16[80,160], index: 1, kind: input, shape index: {}]   ;;  %s1154_s2 = inlined_call_operand.hbm [shape: f32[2,80,128], index: 2, kind: output, shape index: {}]  }
   0x1   :  { %9 = vsyncpa [#allocation3 + $0x1], 0 }
   0x2   :  { %10 = vsyncpa [#allocation6], 0 }
   0x3   :  { %11 = vsyncpa [#allocation4], 0 }
   0x4   :  { %13 = vsyncpa [#allocation4 + $0x1], 0  ;;  %s889_s9 = smov 0   ;;  %s891_s10 = smov 0  }
   0x5   :  { %s893_s11 = smov 0   ;;  %s895_s12 = smov 0  }
   0x6   :  { %s897_s13 = smov 0   ;;  %s899_s14 = smov 0  }
   0x7 LB: > { %s553_s15 = sadd.s32 4294967295, %s857_s14   ;;  %s554_s16 = sadd.s32 4294967294, %s857_s14   ;;  %s857_s14 = sphi %s899_s14, %s19_s14   ;;  %s853_s13 = sphi %s897_s13, %s1178_s13   ;;  %s849_s12 = sphi %s895_s12, %s1177_s12   ;;  %s845_s11 = sphi %s893_s11, %s1176_s11   ;;  %s841_s10 = sphi %s891_s10, %s1175_s10   ;;  %s837_s9 = sphi %s889_s9, %s1174_s9  }
   0x8   : > { %p51_p0 = scmp.ne.s32.totalorder %s841_s10, %s837_s9  ;;  %p923_p1 = scmp.eq.s32.totalorder %s553_s15, 0 }
   0x9   : > { %p927_p2 = scmp.eq.s32.totalorder %s553_s15, 1  ;;  %p109_p3 = scmp.eq.s32.totalorder %s554_s16, 1 }
   0xa   : > { %s1159_s17 = scalar_select %p923_p1, 1, 0 }
   0xb   : > { %s1160_s18 = scalar_select %p927_p2, 1, 0 }
   0xc   : > { %p933_p4 = por %p923_p1, %p51_p0  ;;  %p555_p5 = scmp.ge.s32.totalorder %s857_s14, 1 }
   0xd   : > { %p938_p6 = por %p109_p3, %p51_p0  ;;  %p116_p7 = scmp.lt.s32.totalorder %s857_s14, 3 }
   0xe   : > { %s1161_s19 = scalar_select %p933_p4, 1, 0 }
   0xf   : > { %s1162_s20 = scalar_select %p938_p6, 1, 0 }
  0x10   : > { %p943_p8 = pnand %p555_p5, %p116_p7  ;;  %s859_s22 = smov [#allocation5]  }
  0x11   : > { %s132_s23 = sshll.u32 %s859_s22, 4  ;;  %s31_s25 = sadd.s32 1, %s853_s13  ;;  %s133_s23 = int_to_ptr.vmem [resolvable:$true] %s132_s23 }
  0x12   : > { %s1163_s21 = scalar_select %p943_p8, 1, 0 }
  0x13   : > { %p619_p9 = pneg %p943_p8  ;;  %s713_s28 = scalar_lea.hbm %s1153_s1, 1280 }
  0x14   : > { %p714_p12 = scmp.ne.s32.totalorder %s1153_s1, %s713_s28  ;;  %p720_p5 = scmp.lt.u32.totalorder %s713_s28, %s1153_s1 }
  0x15   : > { %p952_p11 = pnand %p619_p9, %p923_p1 }
  0x17   : > { %p715_p13 = pneg %p952_p11 }
  0x19   : > { %p716_p0 = pnand %p715_p13, %p714_p12 }
  0x1b   : > { %p717_p3 = pneg %p716_p0 }
  0x1d   : > { %p722_p7 = pnand %p720_p5, %p717_p3 }
  0x1f   : > { %725 = shalt.err (!%p722_p7)
}
  0x20   : > { %s726_s5 = scalar_lea.vmem %s133_s23, 1280  ;;  %p734_p1 = scmp.lt.s32.totalorder %s133_s23, %s133_s23 }
  0x21   : > { %p727_p9 = scmp.ne.s32.totalorder %s133_s23, %s726_s5  ;;  %p735_p4 = scmp.lt.s32.totalorder %s726_s5, %s726_s5 }
  0x23   : > { %p729_p10 = pnand %p727_p9, %p715_p13  ;;  %p736_p8 = por %p735_p4, %p734_p1 }
  0x25   : > { %p730_p6 = pneg %p729_p10 }
  0x27   : > { %p737_p2 = pnand %p736_p8, %p730_p6 }
  0x29   : > { %740 = shalt.err (!%p737_p2)
}
  0x2a   : > { %s860_s6 = smov 128   ;;  %s861_s7 = smov 8  }
  0x2b   : > { %622 = dma.hbm_to_vmem [thread:$0]  (!%p952_p11), %s1153_s1, 1280, %s133_s23, [#allocation6], %s860_s6, %s860_s6, %s861_s7  }
  0x2c   : > { %p33_p1 = scmp.ge.s32.totalorder %s31_s25, 2  ;;  %s38_s16 = sadd.s32 1, %s845_s11 }
  0x2d   : > { %p45_p2 = scmp.ne.s32.totalorder %s845_s11, %s841_s10  ;;  %p46_p4 = scmp.eq.s32.totalorder %s857_s14, 0 }
  0x2e   : > { %s1180_s25 = smov (%p33_p1, %s31_s25), 0  ;;  %p1166_p8 = scmp.ne.s32.totalorder %s1160_s18, 0 }
  0x2f   : > { %p979_p6 = por %p46_p4, %p45_p2  ;;  %s35_s24 = ssub.s32 %s853_s13, %s1180_s25 }
  0x30   : > { %p985_p10 = por %p1166_p8, %p45_p2  ;;  %p632_p12 = scmp.lt.s32.totalorder %s857_s14, 2 }
  0x31   : > { %p36_p11 = scmp.eq.s32.totalorder %s35_s24, 0  ;;  %s146_s23 = sand.u32 1, %s845_s11  }
  0x32   : > { %s558_s27 = sshll.u32 %s146_s23, 4  ;;  %s588_s29 = sshll.u32 %s853_s13, 8 }
  0x33   : > { %s994_s28 = scalar_select %p36_p11, %s845_s11, %s38_s16  }
  0x34   : > { %s1000_s4 = scalar_lea.hbm %s1152_s0, %s588_s29  ;;  %s150_s18 = scalar_lea.vmem [#allocation2], %s558_s27 }
  0x35   : > { %s157_s5 = sshll.u32 %s150_s18, 4  ;;  %p1006_p13 = pnand %p632_p12, %p979_p6  ;;  %s1002_s5 = int_to_ptr.vmem [resolvable:$true] %s157_s5 }
  0x36   : > { %s1010_s7 = scalar_lea.sflag [#allocation3], %s146_s23  ;;  %s741_s8 = scalar_lea.hbm %s1000_s4, 256 }
  0x37   : > { %p742_p0 = scmp.ne.s32.totalorder %s1000_s4, %s741_s8  ;;  %p743_p3 = pneg %p1006_p13 }
  0x38   : > { %s746_s22 = scalar_lea.hbm %s1152_s0, 512  ;;  %p747_p9 = scmp.lt.u32.totalorder %s1000_s4, %s1152_s0 }
  0x39   : > { %p744_p5 = pnand %p743_p3, %p742_p0  ;;  %p748_p1 = scmp.lt.u32.totalorder %s746_s22, %s741_s8 }
  0x3a   : > { %p750_p4 = scmp.lt.u32.totalorder %s741_s8, %s1000_s4 }
  0x3b   : > { %p745_p7 = pneg %p744_p5  ;;  %p749_p2 = por %p748_p1, %p747_p9 }
  0x3d   : > { %p751_p6 = por %p750_p4, %p749_p2 }
  0x3f   : > { %p752_p8 = pnand %p751_p6, %p745_p7 }
  0x41   : > { %755 = shalt.err (!%p752_p8)
}
  0x42   : > { %s756_s23 = scalar_lea.vmem %s1002_s5, 256  ;;  %s862_s29 = smov [#allocation2]  }
  0x43   : > { %p757_p12 = scmp.ne.s32.totalorder %s1002_s5, %s756_s23  ;;  %s761_s30 = sshll.u32 %s862_s29, 4  ;;  %s762_s30 = int_to_ptr.vmem [resolvable:$false] %s761_s30 }
  0x44   : > { %s763_s3 = scalar_lea.vmem %s762_s30, 512  ;;  %p764_p5 = scmp.lt.s32.totalorder %s1002_s5, %s762_s30 }
  0x45   : > { %p759_p11 = pnand %p757_p12, %p743_p3  ;;  %p765_p9 = scmp.lt.s32.totalorder %s763_s3, %s756_s23 }
  0x47   : > { %p760_p0 = pneg %p759_p11  ;;  %p766_p1 = por %p765_p9, %p764_p5 }
  0x49   : > { %p767_p2 = pnand %p766_p1, %p760_p0 }
  0x4b   : > { %770 = shalt.err (!%p767_p2)
}
  0x4c   : > { %s863_s18 = smov 64   ;;  %s864_s8 = smov 4  }
  0x4d   : > { %626 = dma.hbm_to_vmem [thread:$0]  (!%p1006_p13), %s1000_s4, 256, %s1002_s5, %s1010_s7, %s863_s18, %s863_s18, %s864_s8  }
  0x4e   : > { %p1169_p3 = scmp.ne.s32.totalorder %s1163_s21, 0 }
  0x4f   : > { %s1041_s15 = sand.u32 (!%p1169_p3), 1, %s841_s10   ;;  %p1170_p7 = scmp.ne.s32.totalorder (!%p1169_p3), %s1161_s19, 0 }
  0x50   : > { %169 = sbr.rel (%p1169_p3) target bundleno = 605 (0x25d), region = 28  ;;  %s562_s16 = sshll.u32 (!%p1169_p3), %s1041_s15, 4 }
  0x51   : > { %s172_s22 = scalar_lea.sflag (!%p1169_p3), [#allocation3], %s1041_s15  ;;  %s175_s24 = scalar_lea.vmem (!%p1169_p3), [#allocation2], %s562_s16 }
  0x57   : > { %824 = dma.done.wait (%p1170_p7), %s172_s22, 256  }
  0x58   : > { %826 = vsyncadd (%p1170_p7), %s172_s22, 4294967040  ;;  %p1171_p4 = scmp.ne.s32.totalorder %s1159_s17, 0 }
  0x5a   : > { %828 = dma.done.wait (%p1171_p4), [#allocation6], 1280  }
  0x5b   : > { %830 = vsyncadd (%p1171_p4), [#allocation6], 4294966016  ;;  %v865_v0 = vmov 0   ;;  %v696_v1 = vld [vmem:[%s175_s24] sm:$0xff]   ;;  %v697_v2 = vld [vmem:[%s175_s24 + $0x8] sm:$0xff]   ;;  %s866_s21 = smov 2  }
  0x5c   : > { %358 = vmatprep.subr.bf16.mxu0 %v865_v0  ;;  %589 = vmatprep.subr.bf16.mxu1 %v865_v0  ;;  %vm221_vm0 = vcmask 15360   ;;  %s867_s17 = smov 127   ;;  %s868_s19 = smov 126   ;;  %v700_v9 = vld [vmem:[#allocation5 + $0x4] ss:$8 sps:$4 sm:$0xff]   ;;  %vm342_vm2 = vcmask 261120  }
  0x5d   : > { %217 = vrot.lane.b32.xlu0 %v696_v1, %s866_s21  ;;  %vm576_vm1 = vmneg %vm221_vm0  ;;  %s869_s4 = smov 125   ;;  %580 = vmatprep.mubr.msk.bf16.mxu0 %vm342_vm2, %v700_v9  ;;  %v703_v10 = vld [vmem:[#allocation5 + $0x34] ss:$8 sps:$4 sm:$0xff]   ;;  %s870_s5 = smov 124   ;;  %vm243_vm3 = vcmask 1039360   ;;  %vm256_vm4 = vcmask 1031168  }
  0x5e   : > { %583 = vmatprep.mubr.msk.bf16.mxu1 %vm342_vm2, %v703_v10  ;;  %vm269_vm5 = vcmask 1022976   ;;  %vm282_vm6 = vcmask 1014784   ;;  %v698_v35 = vld [vmem:[#allocation5] ss:$8 sps:$4 sm:$0xff]   ;;  %v701_v36 = vld [vmem:[#allocation5 + $0x30] ss:$8 sps:$4 sm:$0xff]  }
  0x5f   : > { %v704_v37 = vld [vmem:[#allocation5 + $0x14] ss:$8 sps:$4 sm:$0xff]   ;;  %v707_v38 = vld [vmem:[#allocation5 + $0x44] ss:$8 sps:$4 sm:$0xff]   ;;  %v706_v39 = vld [vmem:[#allocation5 + $0x10] ss:$8 sps:$4 sm:$0xff]  }
  0x60   : > { %v709_v40 = vld [vmem:[#allocation5 + $0x40] ss:$8 sps:$4 sm:$0xff]   ;;  %v710_v41 = vld [vmem:[#allocation5 + $0x24] ss:$8 sps:$4 sm:$0xff]   ;;  %s609_s6 = smul.u32 80, %s1041_s15  ;;  %s442_s18 = scalar_lea.sflag [#allocation4], %s1041_s15 }
  0x61   : > { %219 = vrot.lane.b32.xlu0 %v697_v2, %s866_s21  ;;  %v712_v42 = vld [vmem:[#allocation5 + $0x20] ss:$8 sps:$4 sm:$0xff]   ;;  %s610_s23 = smul.u32 1280, %s849_s12  ;;  %s871_s12 = smov [#allocation7]  }
  0x62   : > { %s1084_s7 = scalar_lea.vmem [#allocation7], %s609_s6  ;;  %s775_s16 = sshll.u32 %s871_s12, 4  ;;  %s776_s16 = int_to_ptr.vmem [resolvable:$false] %s775_s16 }
  0x63   : > { %s457_s27 = sshll.u32 %s1084_s7, 4  ;;  %s1101_s3 = scalar_lea.hbm %s1154_s2, %s610_s23  ;;  %s1096_s27 = int_to_ptr.vmem [resolvable:$true] %s457_s27 }
  0x64   : > { %s771_s8 = scalar_lea.vmem %s1096_s27, 1280  ;;  %s777_s22 = scalar_lea.vmem %s776_s16, 2560 }
  0x65   : > { %p772_p13 = scmp.ne.s32.totalorder %s1096_s27, %s771_s8  ;;  %p778_p12 = scmp.lt.s32.totalorder %s1096_s27, %s776_s16 }
  0x66   : > { %p779_p11 = scmp.lt.s32.totalorder %s777_s22, %s771_s8 }
  0x67   : > { %p773_p6 = pnand %p772_p13, %p985_p10 }
  0x68   : > { %p780_p0 = por %p779_p11, %p778_p12 }
  0x69   : > { %p774_p8 = pneg %p773_p6 }
  0x6b   : > { %p781_p5 = pnand %p780_p0, %p774_p8 }
  0xcf   : > { %v218_v3 = vpop.permute.xlu0 %217 }
  0xd0   : > { %577 = vmatpush1.bf16.msk.msra.mxu0 %vm576_vm1, %v218_v3  ;;  %599 = vmatpush1.bf16.msk.msra.mxu1 %vm576_vm1, %v218_v3  ;;  %v224_v4 = vsel %vm221_vm0, 0, %v218_v3  ;;  %v229_v6 = vsel %vm221_vm0, %v218_v3, 0 }
  0xd1   : > { %235 = vrot.lane.b32.xlu1 %v224_v4, %s867_s17  ;;  %360 = vmatprep.subr.bf16.mxu0 %v865_v0 }
  0xd2   : > { %590 = vmatprep.subr.bf16.mxu1 %v865_v0 }
  0xd3   : > { %v220_v5 = vpop.permute.xlu0 %219 }
  0xd4   : > { %v227_v7 = vsel %vm221_vm0, 0, %v220_v5  ;;  %579 = vmatpush1.bf16.msk.msra.mxu0 %vm576_vm1, %v220_v5  ;;  %600 = vmatpush1.bf16.msk.msra.mxu1 %vm576_vm1, %v220_v5  ;;  %v230_v8 = vsel %vm221_vm0, %v220_v5, 0 }
  0xd5   : > { %237 = vrot.lane.b32.xlu1 %v229_v6, %s867_s17  ;;  %239 = vrot.lane.b32.xlu0 %v227_v7, %s867_s17 }
  0xd6   : > { %362 = vmatprep.subr.bf16.mxu0 %v865_v0  ;;  %591 = vmatprep.subr.bf16.mxu1 %v865_v0 }
  0xd9   : > { %241 = vrot.lane.b32.xlu1 %v230_v8, %s867_s17  ;;  %248 = vrot.lane.b32.xlu0 %v224_v4, %s868_s19 }
  0xdd   : > { %250 = vrot.lane.b32.xlu1 %v229_v6, %s868_s19  ;;  %252 = vrot.lane.b32.xlu0 %v227_v7, %s868_s19 }
  0xe1   : > { %254 = vrot.lane.b32.xlu1 %v230_v8, %s868_s19  ;;  %261 = vrot.lane.b32.xlu0 %v224_v4, %s869_s4 }
  0xe5   : > { %263 = vrot.lane.b32.xlu1 %v229_v6, %s869_s4  ;;  %265 = vrot.lane.b32.xlu0 %v227_v7, %s869_s4 }
  0xe9   : > { %267 = vrot.lane.b32.xlu1 %v230_v8, %s869_s4  ;;  %274 = vrot.lane.b32.xlu0 %v224_v4, %s870_s5 }
  0xed   : > { %276 = vrot.lane.b32.xlu1 %v229_v6, %s870_s5  ;;  %278 = vrot.lane.b32.xlu0 %v227_v7, %s870_s5 }
  0xf1   : > { %280 = vrot.lane.b32.xlu1 %v230_v8, %s870_s5 }
 0x143   : > { %v236_v11 = vpop.permute.xlu1 %235 }
 0x147   : > { %v238_v12 = vpop.permute.xlu1 %237  ;;  %v240_v13 = vpop.permute.xlu0 %239 }
 0x148   : > { %v244_v14 = vsel %vm243_vm3, %v236_v11, %v238_v12 }
 0x149   : > { %363 = vmatpush1.bf16.msra.mxu0 %v244_v14  ;;  %601 = vmatpush1.bf16.msra.mxu1 %v244_v14 }
 0x14a   : > { %364 = vmatprep.subr.bf16.mxu0 %v865_v0  ;;  %592 = vmatprep.subr.bf16.mxu1 %v865_v0 }
 0x14b   : > { %v242_v15 = vpop.permute.xlu1 %241  ;;  %v249_v16 = vpop.permute.xlu0 %248 }
 0x14c   : > { %v245_v17 = vsel %vm243_vm3, %v240_v13, %v242_v15 }
 0x14d   : > { %365 = vmatpush1.bf16.msra.mxu0 %v245_v17  ;;  %602 = vmatpush1.bf16.msra.mxu1 %v245_v17 }
 0x14e   : > { %366 = vmatprep.subr.bf16.mxu0 %v865_v0  ;;  %593 = vmatprep.subr.bf16.mxu1 %v865_v0 }
 0x14f   : > { %v251_v18 = vpop.permute.xlu1 %250  ;;  %v253_v19 = vpop.permute.xlu0 %252 }
 0x150   : > { %v257_v20 = vsel %vm256_vm4, %v249_v16, %v251_v18 }
 0x151   : > { %367 = vmatpush1.bf16.msra.mxu0 %v257_v20  ;;  %603 = vmatpush1.bf16.msra.mxu1 %v257_v20 }
 0x152   : > { %368 = vmatprep.subr.bf16.mxu0 %v865_v0  ;;  %594 = vmatprep.subr.bf16.mxu1 %v865_v0 }
 0x153   : > { %v255_v21 = vpop.permute.xlu1 %254  ;;  %v262_v22 = vpop.permute.xlu0 %261 }
 0x154   : > { %v258_v23 = vsel %vm256_vm4, %v253_v19, %v255_v21 }
 0x155   : > { %369 = vmatpush1.bf16.msra.mxu0 %v258_v23  ;;  %604 = vmatpush1.bf16.msra.mxu1 %v258_v23 }
 0x156   : > { %370 = vmatprep.subr.bf16.mxu0 %v865_v0  ;;  %595 = vmatprep.subr.bf16.mxu1 %v865_v0 }
 0x157   : > { %v264_v24 = vpop.permute.xlu1 %263  ;;  %v266_v25 = vpop.permute.xlu0 %265 }
 0x158   : > { %v270_v26 = vsel %vm269_vm5, %v262_v22, %v264_v24 }
 0x159   : > { %371 = vmatpush1.bf16.msra.mxu0 %v270_v26  ;;  %605 = vmatpush1.bf16.msra.mxu1 %v270_v26 }
 0x15a   : > { %372 = vmatprep.subr.bf16.mxu0 %v865_v0  ;;  %596 = vmatprep.subr.bf16.mxu1 %v865_v0 }
 0x15b   : > { %v268_v27 = vpop.permute.xlu1 %267  ;;  %v275_v29 = vpop.permute.xlu0 %274 }
 0x15c   : > { %v271_v28 = vsel %vm269_vm5, %v266_v25, %v268_v27 }
 0x15d   : > { %373 = vmatpush1.bf16.msra.mxu0 %v271_v28  ;;  %606 = vmatpush1.bf16.msra.mxu1 %v271_v28 }
 0x15e   : > { %374 = vmatprep.subr.bf16.mxu0 %v865_v0  ;;  %597 = vmatprep.subr.bf16.mxu1 %v865_v0 }
 0x15f   : > { %v277_v30 = vpop.permute.xlu1 %276  ;;  %v279_v32 = vpop.permute.xlu0 %278 }
 0x160   : > { %v283_v31 = vsel %vm282_vm6, %v275_v29, %v277_v30 }
 0x161   : > { %375 = vmatpush1.bf16.msra.mxu0 %v283_v31  ;;  %607 = vmatpush1.bf16.msra.mxu1 %v283_v31 }
 0x162   : > { %376 = vmatprep.subr.bf16.mxu0 %v865_v0  ;;  %598 = vmatprep.subr.bf16.mxu1 %v865_v0 }
 0x163   : > { %v281_v33 = vpop.permute.xlu1 %280 }
 0x164   : > { %v284_v34 = vsel %vm282_vm6, %v279_v32, %v281_v33 }
 0x165   : > { %377 = vmatpush1.bf16.msra.mxu0 %v284_v34  ;;  %608 = vmatpush1.bf16.msra.mxu1 %v284_v34 }
 0x168   : > { %391 = vmatmul.mubr.bf16.vlgmr.msra.gmra.mrb[0].mxu0 %v698_v35  ;;  %415 = vmatmul.mubr.bf16.vlgmr.msra.gmra.mrb[0].mxu1 %v701_v36 }
 0x169   : > { %581 = vmatprep.mubr.msk.bf16.mxu0 %vm342_vm2, %v704_v37  ;;  %584 = vmatprep.mubr.msk.bf16.mxu1 %vm342_vm2, %v707_v38 }
 0x170   : > { %399 = vmatmul.mubr.bf16.gmra.mrb[4].mxu0 %v706_v39  ;;  %423 = vmatmul.mubr.bf16.gmra.mrb[4].mxu1 %v709_v40 }
 0x171   : > { %582 = vmatprep.mubr.msk.bf16.mxu0 %vm342_vm2, %v710_v41 }
 0x178   : > { %407 = vmatmul.mubr.bf16.gmra.mrb[8].mxu0 %v712_v42 }
 0x23b   : > { %v392_v43 = vpop.f32.mrb[0].mxu0  ;;  %v416_v44 = vpop.f32.mrb[0].mxu1 }
 0x23c   : > { %431 = vst [vmem:[%s1084_s7] sm:$0xff] %v392_v43  ;;  %v394_v45 = vpop.f32.mrb[1].mxu0  ;;  %437 = vst [vmem:[%s1084_s7 + $0x30] sm:$0xff] %v416_v44  ;;  %v418_v46 = vpop.f32.mrb[1].mxu1 }
 0x23d   : > { %v395_v47 = vpop.f32.mrb[2].mxu0  ;;  %v419_v48 = vpop.f32.mrb[2].mxu1 }
 0x23e   : > { %432 = vst [vmem:[%s1084_s7 + $0x8] sm:$0xff] %v395_v47  ;;  %v397_v49 = vpop.f32.mrb[3].mxu0  ;;  %438 = vst [vmem:[%s1084_s7 + $0x38] sm:$0xff] %v419_v48  ;;  %v421_v50 = vpop.f32.mrb[3].mxu1 }
 0x243   : > { %v400_v51 = vpop.f32.mrb[4].mxu0  ;;  %v424_v52 = vpop.f32.mrb[4].mxu1 }
 0x244   : > { %433 = vst [vmem:[%s1084_s7 + $0x10] sm:$0xff] %v400_v51  ;;  %v402_v53 = vpop.f32.mrb[5].mxu0  ;;  %439 = vst [vmem:[%s1084_s7 + $0x40] sm:$0xff] %v424_v52  ;;  %v426_v54 = vpop.f32.mrb[5].mxu1 }
 0x245   : > { %v403_v55 = vpop.f32.mrb[6].mxu0  ;;  %v427_v56 = vpop.f32.mrb[6].mxu1 }
 0x246   : > { %434 = vst [vmem:[%s1084_s7 + $0x18] sm:$0xff] %v403_v55  ;;  %v405_v57 = vpop.f32.mrb[7].mxu0  ;;  %440 = vst [vmem:[%s1084_s7 + $0x48] sm:$0xff] %v427_v56  ;;  %v429_v58 = vpop.f32.mrb[7].mxu1 }
 0x24b   : > { %v408_v59 = vpop.f32.mrb[8].mxu0 }
 0x24c   : > { %435 = vst [vmem:[%s1084_s7 + $0x20] sm:$0xff] %v408_v59  ;;  %v410_v60 = vpop.f32.mrb[9].mxu0 }
 0x24d   : > { %v411_v61 = vpop.f32.mrb[10].mxu0 }
 0x24e   : > { %436 = vst [vmem:[%s1084_s7 + $0x28] sm:$0xff] %v411_v61  ;;  %v413_v62 = vpop.f32.mrb[11].mxu0 }
 0x24f   : > { %784 = shalt.err (!%p781_p5)
}
 0x250   : > { %s785_s24 = scalar_lea.hbm %s1101_s3, 1280  ;;  %s789_s19 = scalar_lea.hbm %s1154_s2, 2560 }
 0x251   : > { %p786_p9 = scmp.ne.s32.totalorder %s1101_s3, %s785_s24  ;;  %p790_p3 = scmp.lt.u32.totalorder %s1101_s3, %s1154_s2 }
 0x252   : > { %p791_p7 = scmp.lt.u32.totalorder %s789_s19, %s785_s24  ;;  %p793_p13 = scmp.lt.u32.totalorder %s785_s24, %s1101_s3 }
 0x253   : > { %p787_p1 = pnand %p786_p9, %p985_p10 }
 0x254   : > { %p792_p4 = por %p791_p7, %p790_p3 }
 0x255   : > { %p788_p2 = pneg %p787_p1 }
 0x256   : > { %p794_p6 = por %p793_p13, %p792_p4 }
 0x258   : > { %p795_p8 = pnand %p794_p6, %p788_p2 }
 0x25a   : > { %798 = shalt.err (!%p795_p8)
}
 0x25b   : > { %s872_s6 = smov 128   ;;  %s873_s7 = smov 8  }
 0x25c   : > { %617 = dma.vmem_to_hbm [thread:$0]  (%p985_p10), %s1096_s27, 1280, %s1101_s3, %s442_s18, %s872_s6, %s872_s6, %s873_s7  }
 0x25d PF: > { %s472_s23 = sand.u32 1, %s837_s9   ;;  %p1172_p12 = scmp.ne.s32.totalorder %s1162_s20, 0 }
 0x25e   : > { %p1173_p11 = scmp.ge.s32.totalorder %s857_s14, 2  ;;  %s473_s29 = scalar_lea.sflag [#allocation4], %s472_s23 }
 0x260   : > { %p628_p0 = pnand %p1173_p11, %p1172_p12 }
 0x262   : > { %832 = dma.done.wait (!%p628_p0), %s473_s29, 1280  }
 0x263   : > { %834 = vsyncadd (!%p628_p0), %s473_s29, 4294966016  ;;  %s19_s14 = sadd.s32 1, %s857_s14   ;;  %s1174_s9 = smov %s841_s10 }
 0x264   : > { %p16_p5 = scmp.ge.s32.totalorder %s19_s14, 4   ;;  %s1175_s10 = smov %s845_s11 }
 0x265   : > { %s1176_s11 = smov %s994_s28  ;;  %s1177_s12 = smov %s853_s13 }
 0x266   : > { %s1178_s13 = smov %s1180_s25  ;;  %18 = sbr.rel (!%p16_p5) target bundleno = 7 (0x7), region = 78 }
 0x26d   :  { %478 = vsyncpa [#allocation3], 1 }
 0x26e   :  { %480 = vsyncpa [#allocation3 + $0x1], 1 }
 0x26f   :  { %481 = vsyncpa [#allocation6], 1 }
 0x270   :  { %482 = vsyncpa [#allocation4], 1 }
 0x271   :  { %484 = vsyncpa [#allocation4 + $0x1], 1 }

// kernel: generator_forward.10
= control target key start
LH: loop header
LB: loop body
LE: loop exit
PB: predicated region body
PF: predicated region fallthrough
CT: control target
= control target key end

     0   :  { %8 = vsyncpa [#allocation3], 0  ;;  %s2339_s0 = inlined_call_operand.hbm [shape: bf16[2,64,128], index: 0, kind: input, shape index: {}]   ;;  %s2340_s1 = inlined_call_operand.hbm [shape: bf16[64,576], index: 1, kind: input, shape index: {}]   ;;  %s2341_s2 = inlined_call_operand.hbm [shape: f32[64,2], index: 2, kind: input, shape index: {}]   ;;  %s2342_s3 = inlined_call_operand.hbm [shape: bf16[2,32,128], index: 3, kind: output, shape index: {}]  }
   0x1   :  { %10 = vsyncpa [#allocation3 + $0x1], 0 }
   0x2   :  { %11 = vsyncpa [#allocation6], 0 }
   0x3   :  { %12 = vsyncpa [#allocation4], 0 }
   0x4   :  { %14 = vsyncpa [#allocation4 + $0x1], 0  ;;  %s1805_s12 = smov 0   ;;  %s1807_s13 = smov 0  }
   0x5   :  { %s1809_s14 = smov 0   ;;  %s1811_s15 = smov 0  }
   0x6   :  { %s1813_s16 = smov 0   ;;  %s1815_s17 = smov 0  }
   0x7 LB: > { %s1226_s18 = sadd.s32 4294967295, %s1761_s17   ;;  %s1227_s19 = sadd.s32 4294967294, %s1761_s17   ;;  %s1761_s17 = sphi %s1815_s17, %s20_s17   ;;  %s1757_s16 = sphi %s1813_s16, %s2366_s16   ;;  %s1753_s15 = sphi %s1811_s15, %s2365_s15   ;;  %s1749_s14 = sphi %s1809_s14, %s2364_s14   ;;  %s1745_s13 = sphi %s1807_s13, %s2363_s13   ;;  %s1741_s12 = sphi %s1805_s12, %s2362_s12  }
   0x8   : > { %p52_p0 = scmp.ne.s32.totalorder %s1745_s13, %s1741_s12  ;;  %p1839_p1 = scmp.eq.s32.totalorder %s1226_s18, 0 }
   0x9   : > { %p1843_p2 = scmp.eq.s32.totalorder %s1226_s18, 1  ;;  %p136_p3 = scmp.eq.s32.totalorder %s1227_s19, 1 }
   0xa   : > { %s2347_s20 = scalar_select %p1839_p1, 1, 0 }
   0xb   : > { %p1849_p4 = por %p1839_p1, %p52_p0  ;;  %p1228_p5 = scmp.ge.s32.totalorder %s1761_s17, 1 }
   0xc   : > { %p1854_p6 = por %p136_p3, %p52_p0  ;;  %p143_p7 = scmp.lt.s32.totalorder %s1761_s17, 3 }
   0xd   : > { %s2349_s22 = scalar_select %p1849_p4, 1, 0 }
   0xe   : > { %s2350_s23 = scalar_select %p1854_p6, 1, 0 }
   0xf   : > { %p1859_p8 = pnand %p1228_p5, %p143_p7  ;;  %s1763_s25 = smov [#allocation5]  }
  0x10   : > { %s159_s26 = sshll.u32 %s1763_s25, 4  ;;  %s1764_s28 = smov [#allocation7]   ;;  %s1863_s26 = int_to_ptr.vmem [resolvable:$true] %s159_s26 }
  0x11   : > { %p1430_p9 = pneg %p1859_p8  ;;  %s175_s29 = sshll.u32 %s1764_s28, 4  ;;  %s1874_s29 = int_to_ptr.vmem [resolvable:$true] %s175_s29 }
  0x12   : > { %s1589_s5 = scalar_lea.hbm %s2340_s1, 2560 }
  0x13   : > { %p1870_p11 = pnand %p1430_p9, %p1839_p1  ;;  %p1590_p12 = scmp.ne.s32.totalorder %s2340_s1, %s1589_s5 }
  0x14   : > { %p1596_p5 = scmp.lt.u32.totalorder %s1589_s5, %s2340_s1 }
  0x15   : > { %p1591_p13 = pneg %p1870_p11 }
  0x17   : > { %p1592_p0 = pnand %p1591_p13, %p1590_p12 }
  0x19   : > { %p1593_p3 = pneg %p1592_p0 }
  0x1b   : > { %p1598_p7 = pnand %p1596_p5, %p1593_p3 }
  0x1d   : > { %1601 = shalt.err (!%p1598_p7)
}
  0x1e   : > { %s1602_s10 = scalar_lea.vmem %s1863_s26, 2560  ;;  %p1610_p1 = scmp.lt.s32.totalorder %s1863_s26, %s1863_s26 }
  0x1f   : > { %p1603_p9 = scmp.ne.s32.totalorder %s1863_s26, %s1602_s10  ;;  %p1611_p12 = scmp.lt.s32.totalorder %s1602_s10, %s1602_s10 }
  0x21   : > { %p1605_p10 = pnand %p1603_p9, %p1591_p13  ;;  %p1612_p0 = por %p1611_p12, %p1610_p1 }
  0x23   : > { %p1606_p6 = pneg %p1605_p10 }
  0x25   : > { %p1613_p4 = pnand %p1612_p0, %p1606_p6 }
  0x27   : > { %1616 = shalt.err (!%p1613_p4)
}
  0x28   : > { %s1765_s11 = smov 320   ;;  %s1766_s18 = smov 20  }
  0x29   : > { %1433 = dma.hbm_to_vmem [thread:$0]  (!%p1870_p11), %s2340_s1, 2560, %s1863_s26, [#allocation6], %s1765_s11, %s1765_s11, %s1766_s18  }
  0x2a   : > { %s1617_s4 = scalar_lea.hbm %s2341_s2, 1024 }
  0x2b   : > { %p1618_p1 = scmp.ne.s32.totalorder %s2341_s2, %s1617_s4  ;;  %p1624_p10 = scmp.lt.u32.totalorder %s1617_s4, %s2341_s2 }
  0x2d   : > { %p1620_p4 = pnand %p1618_p1, %p1591_p13 }
  0x2f   : > { %p1621_p6 = pneg %p1620_p4 }
  0x31   : > { %p1626_p3 = pnand %p1624_p10, %p1621_p6 }
  0x33   : > { %1629 = shalt.err (!%p1626_p3)
}
  0x34   : > { %s1630_s26 = scalar_lea.vmem %s1874_s29, 1024  ;;  %p1638_p12 = scmp.lt.s32.totalorder %s1874_s29, %s1874_s29 }
  0x35   : > { %p1631_p5 = scmp.ne.s32.totalorder %s1874_s29, %s1630_s26  ;;  %p1639_p0 = scmp.lt.s32.totalorder %s1630_s26, %s1630_s26 }
  0x37   : > { %p1633_p7 = pnand %p1631_p5, %p1591_p13  ;;  %p1640_p1 = por %p1639_p0, %p1638_p12 }
  0x39   : > { %p1634_p9 = pneg %p1633_p7 }
  0x3b   : > { %p1641_p4 = pnand %p1640_p1, %p1634_p9 }
  0x3d   : > { %1644 = shalt.err (!%p1641_p4)
}
  0x3e   : > { %s1767_s9 = smov 128   ;;  %s1768_s10 = smov 8  }
  0x3f   : > { %1436 = dma.hbm_to_vmem [thread:$0]  (!%p1870_p11), %s2341_s2, 1024, %s1874_s29, [#allocation6], %s1767_s9, %s1767_s9, %s1768_s10  }
  0x40   : > { %s32_s19 = sadd.s32 1, %s1757_s16  ;;  %s39_s25 = sadd.s32 1, %s1749_s14 }
  0x41   : > { %p34_p13 = scmp.ge.s32.totalorder %s32_s19, 2  ;;  %p46_p6 = scmp.ne.s32.totalorder %s1749_s14, %s1745_s13 }
  0x42   : > { %p47_p10 = scmp.eq.s32.totalorder %s1761_s17, 0  ;;  %p1447_p3 = scmp.lt.s32.totalorder %s1761_s17, 2 }
  0x43   : > { %s2368_s19 = smov (%p34_p13, %s32_s19), 0  ;;  %p1938_p7 = por %p1843_p2, %p46_p6 }
  0x44   : > { %p48_p5 = por %p47_p10, %p46_p6  ;;  %s36_s27 = ssub.s32 %s1757_s16, %s2368_s19 }
  0x45   : > { %s2353_s28 = scalar_select %p1938_p7, 1, 0 }
  0x46   : > { %s189_s30 = sand.u32 1, %s1749_s14   ;;  %p37_p9 = scmp.eq.s32.totalorder %s36_s27, 0 }
  0x47   : > { %s1232_s29 = sshll.u32 %s189_s30, 5  ;;  %s1289_s4 = sshll.u32 %s1757_s16, 9 }
  0x48   : > { %s1947_s5 = scalar_select %p37_p9, %s1749_s14, %s39_s25  }
  0x49   : > { %s1952_s8 = scalar_lea.hbm %s2339_s0, %s1289_s4  ;;  %s193_s21 = scalar_lea.vmem [#allocation2], %s1232_s29 }
  0x4a   : > { %s200_s26 = sshll.u32 %s193_s21, 4  ;;  %p1956_p2 = pnand %p1447_p3, %p48_p5  ;;  %s1960_s26 = int_to_ptr.vmem [resolvable:$true] %s200_s26 }
  0x4b   : > { %s1962_s10 = scalar_lea.sflag [#allocation3], %s189_s30  ;;  %s1645_s11 = scalar_lea.hbm %s1952_s8, 512 }
  0x4c   : > { %p1646_p11 = scmp.ne.s32.totalorder %s1952_s8, %s1645_s11  ;;  %p1647_p12 = pneg %p1956_p2 }
  0x4d   : > { %s1650_s27 = scalar_lea.hbm %s2339_s0, 1024  ;;  %p1651_p4 = scmp.lt.u32.totalorder %s1952_s8, %s2339_s0 }
  0x4e   : > { %p1648_p0 = pnand %p1647_p12, %p1646_p11  ;;  %p1652_p13 = scmp.lt.u32.totalorder %s1650_s27, %s1645_s11 }
  0x4f   : > { %p1654_p10 = scmp.lt.u32.totalorder %s1645_s11, %s1952_s8 }
  0x50   : > { %p1649_p1 = pneg %p1648_p0  ;;  %p1653_p6 = por %p1652_p13, %p1651_p4 }
  0x52   : > { %p1655_p3 = por %p1654_p10, %p1653_p6 }
  0x54   : > { %p1656_p5 = pnand %p1655_p3, %p1649_p1 }
  0x56   : > { %1659 = shalt.err (!%p1656_p5)
}
  0x57   : > { %s1660_s30 = scalar_lea.vmem %s1960_s26, 512  ;;  %s1769_s6 = smov [#allocation2]  }
  0x58   : > { %p1661_p9 = scmp.ne.s32.totalorder %s1960_s26, %s1660_s30  ;;  %s1665_s7 = sshll.u32 %s1769_s6, 4  ;;  %s1666_s7 = int_to_ptr.vmem [resolvable:$false] %s1665_s7 }
  0x59   : > { %s1667_s21 = scalar_lea.vmem %s1666_s7, 1024  ;;  %p1668_p7 = scmp.lt.s32.totalorder %s1960_s26, %s1666_s7 }
  0x5a   : > { %p1663_p11 = pnand %p1661_p9, %p1647_p12  ;;  %p1669_p4 = scmp.lt.s32.totalorder %s1667_s21, %s1660_s30 }
  0x5c   : > { %p1664_p0 = pneg %p1663_p11  ;;  %p1670_p13 = por %p1669_p4, %p1668_p7 }
  0x5e   : > { %p1671_p6 = pnand %p1670_p13, %p1664_p0 }
  0x60   : > { %1674 = shalt.err (!%p1671_p6)
}
  0x61   : > { %s1770_s11 = smov 64   ;;  %s1771_s18 = smov 4  }
  0x62   : > { %1440 = dma.hbm_to_vmem [thread:$0]  (!%p1956_p2), %s1952_s8, 512, %s1960_s26, %s1962_s10, %s1770_s11, %s1770_s11, %s1771_s18  }
  0x63   : > { %212 = sbr.rel (%p1859_p8) target bundleno = 964 (0x3c4), region = 32  ;;  %s1993_s25 = sand.u32 (!%p1859_p8), 1, %s1745_s13  }
  0x64   : > { %s1236_s27 = sshll.u32 (!%p1859_p8), %s1993_s25, 5  ;;  %s215_s29 = scalar_lea.sflag (!%p1859_p8), [#allocation3], %s1993_s25 }
  0x65   : > { %s218_s4 = scalar_lea.vmem (!%p1859_p8), [#allocation2], %s1236_s27  ;;  %p2355_p7 = scmp.ne.s32.totalorder (!%p1859_p8), %s2349_s22, 0 }
  0x6a   : > { %1728 = dma.done.wait (%p2355_p7), %s215_s29, 512  }
  0x6b   : > { %1730 = vsyncadd (%p2355_p7), %s215_s29, 4294966784  ;;  %p2356_p12 = scmp.ne.s32.totalorder %s2347_s20, 0 }
  0x6d   : > { %1732 = dma.done.wait (%p2356_p12), [#allocation6], 3584  }
  0x6e   : > { %1734 = vsyncadd (%p2356_p12), [#allocation6], 4294963712  ;;  %v1525_v0 = vld [vmem:[%s218_s4] sm:$0xff]   ;;  %v1526_v1 = vld [vmem:[%s218_s4 + $0x8] sm:$0xff]   ;;  %s1772_s24 = smov 4   ;;  %vm289_vm0 = vcmask 31744  }
  0x6f   : > { %281 = vrot.lane.b32.xlu0 %v1525_v0, %s1772_s24  ;;  %v1527_v2 = vld [vmem:[%s218_s4 + $0x10] sm:$0xff]   ;;  %v1528_v3 = vld [vmem:[%s218_s4 + $0x18] sm:$0xff]   ;;  %s1773_s20 = smov 122   ;;  %s1774_s22 = smov 124   ;;  %v1531_v16 = vld [vmem:[#allocation5 + $0xc] ss:$20 sps:$4 sm:$0xff]  }
  0x70   : > { %285 = vrot.lane.b32.xlu1 %v1527_v2, %s1772_s24  ;;  %s1775_s8 = smov 126   ;;  %s1776_s26 = smov 121   ;;  %749 = vmatprep.mubr.bf16.mxu1 %v1531_v16  ;;  %v1534_v17 = vld [vmem:[#allocation5 + $0x4] ss:$20 sps:$4 sm:$0xff]   ;;  %vm456_vm1 = vcmask 998400   ;;  %vm406_vm2 = vcmask 1014784   ;;  %vm2139_vm4 = vmneg %vm289_vm0 }
  0x71   : > { %s1777_s9 = smov 123   ;;  %s1778_s10 = smov 125   ;;  %684 = vmatprep.mubr.bf16.mxu0 %v1534_v17  ;;  %vm356_vm3 = vcmask 1031168   ;;  %v931_v34 = vld [vmem:[#allocation7 + $0x20] sm:$0xff]  ;;  %v1781_v35 = vmov 0   ;;  %v932_v36 = vld [vmem:[#allocation7 + $0x28] sm:$0xff] }
  0x72   : > { %s1779_s30 = smov 127   ;;  %s1780_s6 = smov 120   ;;  %1519 = vset.pattern.permute.xlu1 %v1781_v35  ;;  %1520 = vset.pattern.permute.xlu0 %v1781_v35  ;;  %v933_v39 = vld [vmem:[#allocation7 + $0x30] sm:$0xff]  ;;  %v934_v43 = vld [vmem:[#allocation7 + $0x38] sm:$0xff]  ;;  %v1782_v48 = vmov 1   ;;  %vm481_vm5 = vcmask 990208  }
  0x73   : > { %283 = vrot.lane.b32.xlu0 %v1526_v1, %s1772_s24  ;;  %v2164_v61 = vld [vmem:[#allocation7] sm:$0xff]  ;;  %vm431_vm6 = vcmask 1006592   ;;  %v2171_v1 = vld [vmem:[#allocation7 + $0x8] sm:$0xff]  ;;  %vm381_vm7 = vcmask 1022976   ;;  %vm331_vm8 = vcmask 1039360   ;;  %vm506_vm9 = vcmask 982016  }
  0x74   : > { %287 = vrot.lane.b32.xlu1 %v1528_v3, %s1772_s24  ;;  %vm639_vm10 = vcmask 523264   ;;  %s1239_s7 = sshll.u32 %s1993_s25, 4  ;;  %s1294_s18 = sshll.u32 %s1753_s15, 8 }
  0x75   : > { %s248_s21 = scalar_lea.vmem [#allocation8], %s1239_s7  ;;  %s2289_s4 = scalar_lea.hbm %s2342_s3, %s1294_s18 }
  0x76   : > { %s1119_s11 = sshll.u32 %s248_s21, 4  ;;  %p2359_p2 = scmp.ne.s32.totalorder %s2353_s28, 0  ;;  %s2284_s11 = int_to_ptr.vmem [resolvable:$true] %s1119_s11 }
  0x77   : > { %s1783_s15 = smov [#allocation8]  }
  0xe1   : > { %v2009_v4 = vpop.permute.xlu0 %281 }
  0xe2   : > { %v2013_v5 = vsel %vm289_vm0, 0, %v2009_v4  ;;  %v2017_v6 = vsel %vm289_vm0, %v2009_v4, 0  ;;  %v2043_v10 = vpop.permute.xlu1 %285 }
  0xe3   : > { %442 = vrot.lane.b32.xlu1 %v2017_v6, %s1773_s20  ;;  %440 = vrot.lane.b32.xlu0 %v2013_v5, %s1773_s20  ;;  %v2049_v11 = vsel %vm289_vm0, 0, %v2043_v10  ;;  %v2053_v12 = vsel %vm289_vm0, %v2043_v10, 0 }
  0xe5   : > { %v2025_v7 = vpop.permute.xlu0 %283 }
  0xe6   : > { %v2031_v8 = vsel %vm289_vm0, 0, %v2025_v7  ;;  %v2035_v9 = vsel %vm289_vm0, %v2025_v7, 0  ;;  %v2061_v13 = vpop.permute.xlu1 %287 }
  0xe7   : > { %392 = vrot.lane.b32.xlu1 %v2017_v6, %s1774_s22  ;;  %390 = vrot.lane.b32.xlu0 %v2013_v5, %s1774_s22  ;;  %v2067_v14 = vsel %vm289_vm0, 0, %v2061_v13  ;;  %v2071_v15 = vsel %vm289_vm0, %v2061_v13, 0 }
  0xeb   : > { %342 = vrot.lane.b32.xlu1 %v2017_v6, %s1775_s8  ;;  %340 = vrot.lane.b32.xlu0 %v2013_v5, %s1775_s8 }
  0xef   : > { %446 = vrot.lane.b32.xlu1 %v2035_v9, %s1773_s20  ;;  %444 = vrot.lane.b32.xlu0 %v2031_v8, %s1773_s20 }
  0xf3   : > { %396 = vrot.lane.b32.xlu1 %v2035_v9, %s1774_s22  ;;  %394 = vrot.lane.b32.xlu0 %v2031_v8, %s1774_s22 }
  0xf7   : > { %346 = vrot.lane.b32.xlu1 %v2035_v9, %s1775_s8  ;;  %344 = vrot.lane.b32.xlu0 %v2031_v8, %s1775_s8 }
  0xfb   : > { %450 = vrot.lane.b32.xlu1 %v2053_v12, %s1773_s20  ;;  %448 = vrot.lane.b32.xlu0 %v2049_v11, %s1773_s20 }
  0xff   : > { %400 = vrot.lane.b32.xlu1 %v2053_v12, %s1774_s22  ;;  %398 = vrot.lane.b32.xlu0 %v2049_v11, %s1774_s22 }
 0x103   : > { %350 = vrot.lane.b32.xlu1 %v2053_v12, %s1775_s8  ;;  %348 = vrot.lane.b32.xlu0 %v2049_v11, %s1775_s8 }
 0x107   : > { %454 = vrot.lane.b32.xlu1 %v2071_v15, %s1773_s20  ;;  %452 = vrot.lane.b32.xlu0 %v2067_v14, %s1773_s20  ;;  %s1104_s20 = scalar_lea.sflag [#allocation4], %s1993_s25 }
 0x10b   : > { %404 = vrot.lane.b32.xlu1 %v2071_v15, %s1774_s22  ;;  %402 = vrot.lane.b32.xlu0 %v2067_v14, %s1774_s22  ;;  %s1675_s22 = scalar_lea.vmem %s2284_s11, 256 }
 0x10c   : > { %p1676_p8 = scmp.ne.s32.totalorder %s2284_s11, %s1675_s22 }
 0x10e   : > { %p1677_p1 = pnand %p1676_p8, %p2359_p2 }
 0x10f   : > { %354 = vrot.lane.b32.xlu1 %v2071_v15, %s1775_s8  ;;  %352 = vrot.lane.b32.xlu0 %v2067_v14, %s1775_s8  ;;  %s1679_s8 = sshll.u32 %s1783_s15, 4  ;;  %s1680_s8 = int_to_ptr.vmem [resolvable:$false] %s1679_s8 }
 0x110   : > { %p1678_p10 = pneg %p1677_p1  ;;  %p1682_p3 = scmp.lt.s32.totalorder %s2284_s11, %s1680_s8 }
 0x113   : > { %467 = vrot.lane.b32.xlu1 %v2017_v6, %s1776_s26  ;;  %465 = vrot.lane.b32.xlu0 %v2013_v5, %s1776_s26 }
 0x117   : > { %417 = vrot.lane.b32.xlu1 %v2017_v6, %s1777_s9  ;;  %415 = vrot.lane.b32.xlu0 %v2013_v5, %s1777_s9 }
 0x11b   : > { %367 = vrot.lane.b32.xlu1 %v2017_v6, %s1778_s10  ;;  %365 = vrot.lane.b32.xlu0 %v2013_v5, %s1778_s10 }
 0x11f   : > { %471 = vrot.lane.b32.xlu1 %v2035_v9, %s1776_s26  ;;  %469 = vrot.lane.b32.xlu0 %v2031_v8, %s1776_s26 }
 0x123   : > { %317 = vrot.lane.b32.xlu1 %v2017_v6, %s1779_s30  ;;  %315 = vrot.lane.b32.xlu0 %v2013_v5, %s1779_s30 }
 0x127   : > { %421 = vrot.lane.b32.xlu1 %v2035_v9, %s1777_s9  ;;  %419 = vrot.lane.b32.xlu0 %v2031_v8, %s1777_s9 }
 0x12b   : > { %371 = vrot.lane.b32.xlu1 %v2035_v9, %s1778_s10  ;;  %369 = vrot.lane.b32.xlu0 %v2031_v8, %s1778_s10 }
 0x12f   : > { %475 = vrot.lane.b32.xlu1 %v2053_v12, %s1776_s26  ;;  %473 = vrot.lane.b32.xlu0 %v2049_v11, %s1776_s26 }
 0x133   : > { %321 = vrot.lane.b32.xlu1 %v2035_v9, %s1779_s30  ;;  %319 = vrot.lane.b32.xlu0 %v2031_v8, %s1779_s30 }
 0x137   : > { %425 = vrot.lane.b32.xlu1 %v2053_v12, %s1777_s9  ;;  %423 = vrot.lane.b32.xlu0 %v2049_v11, %s1777_s9 }
 0x13b   : > { %375 = vrot.lane.b32.xlu1 %v2053_v12, %s1778_s10  ;;  %373 = vrot.lane.b32.xlu0 %v2049_v11, %s1778_s10 }
 0x13f   : > { %479 = vrot.lane.b32.xlu1 %v2071_v15, %s1776_s26  ;;  %477 = vrot.lane.b32.xlu0 %v2067_v14, %s1776_s26  ;;  %s1681_s26 = scalar_lea.vmem %s1680_s8, 512 }
 0x140   : > { %p1683_p5 = scmp.lt.s32.totalorder %s1681_s26, %s1675_s22 }
 0x142   : > { %p1684_p9 = por %p1683_p5, %p1682_p3 }
 0x143   : > { %325 = vrot.lane.b32.xlu1 %v2053_v12, %s1779_s30  ;;  %323 = vrot.lane.b32.xlu0 %v2049_v11, %s1779_s30 }
 0x144   : > { %p1685_p11 = pnand %p1684_p9, %p1678_p10 }
 0x147   : > { %429 = vrot.lane.b32.xlu1 %v2071_v15, %s1777_s9  ;;  %427 = vrot.lane.b32.xlu0 %v2067_v14, %s1777_s9 }
 0x14b   : > { %379 = vrot.lane.b32.xlu1 %v2071_v15, %s1778_s10  ;;  %377 = vrot.lane.b32.xlu0 %v2067_v14, %s1778_s10 }
 0x14f   : > { %329 = vrot.lane.b32.xlu1 %v2071_v15, %s1779_s30  ;;  %327 = vrot.lane.b32.xlu0 %v2067_v14, %s1779_s30 }
 0x153   : > { %492 = vrot.lane.b32.xlu1 %v2017_v6, %s1780_s6  ;;  %490 = vrot.lane.b32.xlu0 %v2013_v5, %s1780_s6 }
 0x155   : > { %v443_v18 = vpop.permute.xlu1 %442  ;;  %v441_v19 = vpop.permute.xlu0 %440 }
 0x156   : > { %v457_v20 = vsel %vm456_vm1, %v441_v19, %v443_v18 }
 0x157   : > { %496 = vrot.lane.b32.xlu1 %v2035_v9, %s1780_s6  ;;  %494 = vrot.lane.b32.xlu0 %v2031_v8, %s1780_s6 }
 0x158   : > { %1346 = vmatprep.subr.bf16.mxu1 %v457_v20 }
 0x159   : > { %v393_v21 = vpop.permute.xlu1 %392  ;;  %v391_v22 = vpop.permute.xlu0 %390 }
 0x15a   : > { %v407_v23 = vsel %vm406_vm2, %v391_v22, %v393_v21 }
 0x15b   : > { %500 = vrot.lane.b32.xlu1 %v2053_v12, %s1780_s6  ;;  %498 = vrot.lane.b32.xlu0 %v2049_v11, %s1780_s6 }
 0x15c   : > { %1347 = vmatpush3.bf16.msra.mxu1 %v407_v23 }
 0x15d   : > { %v343_v24 = vpop.permute.xlu1 %342  ;;  %v341_v25 = vpop.permute.xlu0 %340 }
 0x15e   : > { %v357_v26 = vsel %vm356_vm3, %v341_v25, %v343_v24 }
 0x15f   : > { %504 = vrot.lane.b32.xlu1 %v2071_v15, %s1780_s6  ;;  %502 = vrot.lane.b32.xlu0 %v2067_v14, %s1780_s6 }
 0x160   : > { %1306 = vmatprep.subr.bf16.mxu0 %v357_v26 }
 0x161   : > { %1307 = vmatpush3.bf16.msk.msra.mxu0 %vm2139_vm4, %v2009_v4  ;;  %v447_v28 = vpop.permute.xlu1 %446  ;;  %v445_v29 = vpop.permute.xlu0 %444 }
 0x162   : > { %v458_v30 = vsel %vm456_vm1, %v445_v29, %v447_v28 }
 0x163   : > { %1348 = vmatprep.subr.bf16.mxu1 %v458_v30  ;;  %989 = vperm.xlu1 %1519, %v931_v34  }
 0x164   : > { %994 = vperm.xlu0 %1520, %v932_v36  }
 0x165   : > { %v397_v31 = vpop.permute.xlu1 %396  ;;  %v395_v32 = vpop.permute.xlu0 %394 }
 0x166   : > { %v408_v33 = vsel %vm406_vm2, %v395_v32, %v397_v31 }
 0x167   : > { %1349 = vmatpush3.bf16.msra.mxu1 %v408_v33  ;;  %999 = vperm.xlu1 %1519, %v933_v39  }
 0x169   : > { %v347_v37 = vpop.permute.xlu1 %346  ;;  %v345_v38 = vpop.permute.xlu0 %344 }
 0x16a   : > { %v358_v40 = vsel %vm356_vm3, %v345_v38, %v347_v37 }
 0x16b   : > { %1308 = vmatprep.subr.bf16.mxu0 %v358_v40  ;;  %1004 = vperm.xlu1 %1519, %v934_v43  }
 0x16c   : > { %1309 = vmatpush3.bf16.msk.msra.mxu0 %vm2139_vm4, %v2025_v7 }
 0x16d   : > { %v451_v41 = vpop.permute.xlu1 %450  ;;  %v449_v42 = vpop.permute.xlu0 %448 }
 0x16e   : > { %v459_v44 = vsel %vm456_vm1, %v449_v42, %v451_v41  ;;  %v1529_v41 = vld [vmem:[#allocation5 + $0x8] ss:$20 sps:$4 sm:$0xff]  }
 0x16f   : > { %1350 = vmatprep.subr.bf16.mxu1 %v459_v44  ;;  %1521 = vset.pattern.permute.xlu1 %v1782_v48  ;;  %v1535_v42 = vld [vmem:[#allocation5 + $0x34] ss:$20 sps:$4 sm:$0xff]  }
 0x170   : > { %1032 = vperm.xlu1 %1521, %v931_v34  }
 0x171   : > { %v401_v45 = vpop.permute.xlu1 %400  ;;  %v399_v46 = vpop.permute.xlu0 %398 }
 0x172   : > { %v409_v47 = vsel %vm406_vm2, %v399_v46, %v401_v45 }
 0x173   : > { %1351 = vmatpush3.bf16.msra.mxu1 %v409_v47 }
 0x174   : > { %1036 = vperm.xlu1 %1521, %v932_v36  }
 0x175   : > { %v351_v49 = vpop.permute.xlu1 %350  ;;  %v349_v50 = vpop.permute.xlu0 %348 }
 0x176   : > { %v359_v51 = vsel %vm356_vm3, %v349_v50, %v351_v49  ;;  %v1532_v50 = vld [vmem:[#allocation5] ss:$20 sps:$4 sm:$0xff]  }
 0x177   : > { %1310 = vmatprep.subr.bf16.mxu0 %v359_v51  ;;  %v1537_v51 = vld [vmem:[#allocation5 + $0x30] ss:$20 sps:$4 sm:$0xff]  }
 0x178   : > { %1311 = vmatpush3.bf16.msk.msra.mxu0 %vm2139_vm4, %v2043_v10  ;;  %1040 = vperm.xlu1 %1521, %v933_v39  }
 0x179   : > { %v455_v52 = vpop.permute.xlu1 %454  ;;  %v453_v53 = vpop.permute.xlu0 %452 }
 0x17a   : > { %v460_v54 = vsel %vm456_vm1, %v453_v53, %v455_v52 }
 0x17b   : > { %1352 = vmatprep.subr.bf16.mxu1 %v460_v54  ;;  %v1538_v54 = vld [vmem:[#allocation5 + $0x2c] ss:$20 sps:$4 sm:$0xff]  }
 0x17c   : > { %1044 = vperm.xlu1 %1521, %v934_v43  }
 0x17d   : > { %v405_v55 = vpop.permute.xlu1 %404  ;;  %v403_v56 = vpop.permute.xlu0 %402 }
 0x17e   : > { %v410_v57 = vsel %vm406_vm2, %v403_v56, %v405_v55  ;;  %v1540_v55 = vld [vmem:[#allocation5 + $0x5c] ss:$20 sps:$4 sm:$0xff]  }
 0x17f   : > { %1353 = vmatpush3.bf16.msra.mxu1 %v410_v57 }
 0x180   : > { %1522 = vset.pattern.permute.xlu1 %v1781_v35 }
 0x181   : > { %v355_v58 = vpop.permute.xlu1 %354  ;;  %v353_v59 = vpop.permute.xlu0 %352  ;;  %969 = vperm.xlu1 %1522, %v2164_v61  }
 0x182   : > { %v360_v60 = vsel %vm356_vm3, %v353_v59, %v355_v58 }
 0x183   : > { %1312 = vmatprep.subr.bf16.mxu0 %v360_v60  ;;  %v1542_v60 = vld [vmem:[#allocation5 + $0x28] ss:$20 sps:$4 sm:$0xff]  }
 0x184   : > { %1313 = vmatpush3.bf16.msk.msra.mxu0 %vm2139_vm4, %v2061_v13 }
 0x185   : > { %v468_v62 = vpop.permute.xlu1 %467  ;;  %v466_v63 = vpop.permute.xlu0 %465  ;;  %974 = vperm.xlu1 %1522, %v2171_v1  }
 0x186   : > { %v482_v0 = vsel %vm481_vm5, %v466_v63, %v468_v62  ;;  %v1543_v62 = vld [vmem:[#allocation5 + $0x58] ss:$20 sps:$4 sm:$0xff]  }
 0x187   : > { %1354 = vmatprep.subr.bf16.mxu1 %v482_v0 }
 0x189   : > { %v418_v2 = vpop.permute.xlu1 %417  ;;  %v416_v3 = vpop.permute.xlu0 %415 }
 0x18a   : > { %v432_v4 = vsel %vm431_vm6, %v416_v3, %v418_v2  ;;  %v1544_v2 = vld [vmem:[#allocation5 + $0x54] ss:$20 sps:$4 sm:$0xff]   ;;  %v1546_v3 = vld [vmem:[#allocation5 + $0x84] ss:$20 sps:$4 sm:$0xff]  }
 0x18b   : > { %1355 = vmatpush3.bf16.msra.mxu1 %v432_v4 }
 0x18d   : > { %v368_v5 = vpop.permute.xlu1 %367  ;;  %v366_v6 = vpop.permute.xlu0 %365 }
 0x18e   : > { %v382_v7 = vsel %vm381_vm7, %v366_v6, %v368_v5 }
 0x18f   : > { %1314 = vmatprep.subr.bf16.mxu0 %v382_v7 }
 0x191   : > { %v472_v8 = vpop.permute.xlu1 %471  ;;  %v470_v9 = vpop.permute.xlu0 %469 }
 0x192   : > { %v483_v10 = vsel %vm481_vm5, %v470_v9, %v472_v8  ;;  %v1548_v8 = vld [vmem:[#allocation5 + $0x50] ss:$20 sps:$4 sm:$0xff]   ;;  %v1549_v9 = vld [vmem:[#allocation5 + $0x80] ss:$20 sps:$4 sm:$0xff]  }
 0x193   : > { %1356 = vmatprep.subr.bf16.mxu1 %v483_v10  ;;  %v1550_v10 = vld [vmem:[#allocation5 + $0x7c] ss:$20 sps:$4 sm:$0xff]  }
 0x195   : > { %v318_v11 = vpop.permute.xlu1 %317  ;;  %v316_v12 = vpop.permute.xlu0 %315 }
 0x196   : > { %v332_v13 = vsel %vm331_vm8, %v316_v12, %v318_v11  ;;  %v1552_v11 = vld [vmem:[#allocation5 + $0x60] ss:$20 sps:$4 sm:$0xff]   ;;  %v1553_v12 = vld [vmem:[#allocation5 + $0x78] ss:$20 sps:$4 sm:$0xff]  }
 0x197   : > { %1315 = vmatpush3.bf16.msra.mxu0 %v332_v13  ;;  %v1554_v13 = vld [vmem:[#allocation5 + $0x88] ss:$20 sps:$4 sm:$0xff]  }
 0x199   : > { %v422_v14 = vpop.permute.xlu1 %421  ;;  %v420_v15 = vpop.permute.xlu0 %419 }
 0x19a   : > { %v433_v16 = vsel %vm431_vm6, %v420_v15, %v422_v14  ;;  %v1555_v14 = vld [vmem:[#allocation5 + $0x10] ss:$20 sps:$4 sm:$0xff]   ;;  %v1556_v15 = vld [vmem:[#allocation5 + $0x38] ss:$20 sps:$4 sm:$0xff]  }
 0x19b   : > { %1357 = vmatpush3.bf16.msra.mxu1 %v433_v16  ;;  %v2193_v16 = vld [vmem:[#allocation7 + $0x10] sm:$0xff] }
 0x19c   : > { %979 = vperm.xlu0 %1520, %v2193_v16  }
 0x19d   : > { %v372_v17 = vpop.permute.xlu1 %371  ;;  %v370_v18 = vpop.permute.xlu0 %369 }
 0x19e   : > { %v383_v19 = vsel %vm381_vm7, %v370_v18, %v372_v17 }
 0x19f   : > { %1316 = vmatprep.subr.bf16.mxu0 %v383_v19 }
 0x1a0   : > { %1523 = vset.pattern.permute.xlu0 %v1782_v48 }
 0x1a1   : > { %v476_v20 = vpop.permute.xlu1 %475  ;;  %v474_v21 = vpop.permute.xlu0 %473 }
 0x1a2   : > { %v484_v22 = vsel %vm481_vm5, %v474_v21, %v476_v20 }
 0x1a3   : > { %1358 = vmatprep.subr.bf16.mxu1 %v484_v22 }
 0x1a5   : > { %v322_v23 = vpop.permute.xlu1 %321  ;;  %v320_v24 = vpop.permute.xlu0 %319 }
 0x1a6   : > { %v333_v25 = vsel %vm331_vm8, %v320_v24, %v322_v23 }
 0x1a7   : > { %1317 = vmatpush3.bf16.msra.mxu0 %v333_v25 }
 0x1a9   : > { %v426_v26 = vpop.permute.xlu1 %425  ;;  %v424_v27 = vpop.permute.xlu0 %423 }
 0x1aa   : > { %v434_v28 = vsel %vm431_vm6, %v424_v27, %v426_v26 }
 0x1ab   : > { %1359 = vmatpush3.bf16.msra.mxu1 %v434_v28 }
 0x1ad   : > { %v376_v29 = vpop.permute.xlu1 %375  ;;  %v374_v30 = vpop.permute.xlu0 %373 }
 0x1ae   : > { %v384_v31 = vsel %vm381_vm7, %v374_v30, %v376_v29 }
 0x1af   : > { %1318 = vmatprep.subr.bf16.mxu0 %v384_v31 }
 0x1b1   : > { %v480_v32 = vpop.permute.xlu1 %479  ;;  %v478_v33 = vpop.permute.xlu0 %477 }
 0x1b2   : > { %v485_v34 = vsel %vm481_vm5, %v478_v33, %v480_v32 }
 0x1b3   : > { %1360 = vmatprep.subr.bf16.mxu1 %v485_v34 }
 0x1b5   : > { %v326_v35 = vpop.permute.xlu1 %325  ;;  %v324_v36 = vpop.permute.xlu0 %323 }
 0x1b6   : > { %v334_v37 = vsel %vm331_vm8, %v324_v36, %v326_v35 }
 0x1b7   : > { %1319 = vmatpush3.bf16.msra.mxu0 %v334_v37 }
 0x1b9   : > { %v430_v38 = vpop.permute.xlu1 %429  ;;  %v428_v39 = vpop.permute.xlu0 %427 }
 0x1ba   : > { %v435_v40 = vsel %vm431_vm6, %v428_v39, %v430_v38 }
 0x1bb   : > { %1361 = vmatpush3.bf16.msra.mxu1 %v435_v40 }
 0x1bd   : > { %v380_v43 = vpop.permute.xlu1 %379  ;;  %v378_v44 = vpop.permute.xlu0 %377 }
 0x1be   : > { %750 = vmatmul.mubr.bf16.vlgmr.msra.gmra.mrb[0].mxu1 %v1529_v41  ;;  %v385_v45 = vsel %vm381_vm7, %v378_v44, %v380_v43 }
 0x1bf   : > { %1320 = vmatprep.subr.bf16.mxu0 %v385_v45  ;;  %757 = vmatprep.mubr.bf16.mxu1 %v1535_v42 }
 0x1c1   : > { %v330_v46 = vpop.permute.xlu1 %329  ;;  %v328_v47 = vpop.permute.xlu0 %327 }
 0x1c2   : > { %v335_v49 = vsel %vm331_vm8, %v328_v47, %v330_v46 }
 0x1c3   : > { %1321 = vmatpush3.bf16.msra.mxu0 %v335_v49 }
 0x1c5   : > { %v493_v52 = vpop.permute.xlu1 %492  ;;  %v491_v53 = vpop.permute.xlu0 %490 }
 0x1c6   : > { %v507_v56 = vsel %vm506_vm9, %v491_v53, %v493_v52  ;;  %685 = vmatmul.mubr.bf16.vlgmr.msra.gmra.mrb[0].mxu0 %v1532_v50  ;;  %758 = vmatmul.mubr.bf16.gmra.mrb[4].mxu1 %v1537_v51 }
 0x1c7   : > { %1394 = vmatprep.subr.bf16.mxu0 %v507_v56  ;;  %1410 = vmatprep.subr.bf16.mxu1 %v507_v56 }
 0x1c8   : > { %1395 = vmatpush3.bf16.msra.mxu0 %v507_v56  ;;  %1414 = vmatpush3.bf16.msra.mxu1 %v507_v56 }
 0x1c9   : > { %v497_v57 = vpop.permute.xlu1 %496  ;;  %v495_v58 = vpop.permute.xlu0 %494  ;;  %692 = vmatprep.mubr.bf16.mxu0 %v1538_v54  ;;  %765 = vmatprep.mubr.bf16.mxu1 %v1540_v55 }
 0x1ca   : > { %v508_v59 = vsel %vm506_vm9, %v495_v58, %v497_v57 }
 0x1cb   : > { %1396 = vmatprep.subr.bf16.mxu0 %v508_v59  ;;  %1411 = vmatprep.subr.bf16.mxu1 %v508_v59 }
 0x1cc   : > { %1397 = vmatpush3.bf16.msra.mxu0 %v508_v59  ;;  %1415 = vmatpush3.bf16.msra.mxu1 %v508_v59 }
 0x1cd   : > { %v501_v63 = vpop.permute.xlu1 %500  ;;  %v499_v0 = vpop.permute.xlu0 %498 }
 0x1ce   : > { %v509_v4 = vsel %vm506_vm9, %v499_v0, %v501_v63  ;;  %693 = vmatmul.mubr.bf16.gmra.mrb[4].mxu0 %v1542_v60  ;;  %766 = vmatmul.mubr.bf16.gmra.mrb[8].mxu1 %v1543_v62 }
 0x1cf   : > { %1398 = vmatprep.subr.bf16.mxu0 %v509_v4  ;;  %1412 = vmatprep.subr.bf16.mxu1 %v509_v4 }
 0x1d0   : > { %1399 = vmatpush3.bf16.msra.mxu0 %v509_v4  ;;  %1416 = vmatpush3.bf16.msra.mxu1 %v509_v4 }
 0x1d1   : > { %v505_v5 = vpop.permute.xlu1 %504  ;;  %v503_v6 = vpop.permute.xlu0 %502  ;;  %700 = vmatprep.mubr.bf16.mxu0 %v1544_v2  ;;  %773 = vmatprep.mubr.bf16.mxu1 %v1546_v3 }
 0x1d2   : > { %v510_v7 = vsel %vm506_vm9, %v503_v6, %v505_v5 }
 0x1d3   : > { %1400 = vmatprep.subr.bf16.mxu0 %v510_v7  ;;  %1413 = vmatprep.subr.bf16.mxu1 %v510_v7 }
 0x1d4   : > { %1401 = vmatpush3.bf16.msra.mxu0 %v510_v7  ;;  %1417 = vmatpush3.bf16.msra.mxu1 %v510_v7 }
 0x1d6   : > { %701 = vmatmul.mubr.bf16.gmra.mrb[8].mxu0 %v1548_v8  ;;  %774 = vmatmul.mubr.bf16.gmra.mrb[12].mxu1 %v1549_v9 }
 0x1d7   : > { %708 = vmatprep.mubr.bf16.mxu0 %v1550_v10  ;;  %1406 = vmatprep.mubr.msk.bf16.mxu1 %vm639_vm10, %v1552_v11 }
 0x1de   : > { %709 = vmatmul.mubr.bf16.gmra.mrb[12].mxu0 %v1553_v12  ;;  %1407 = vmatmul.mubr.msk.bf16.vlgmr.msra.gmra.mrb[16].mxu1 %vm639_vm10, %v1554_v13 }
 0x1df   : > { %1402 = vmatprep.mubr.msk.bf16.mxu0 %vm639_vm10, %v1555_v14 }
 0x1e6   : > { %1403 = vmatmul.mubr.msk.bf16.vlgmr.msra.gmra.mrb[16].mxu0 %vm639_vm10, %v1556_v15 }
 0x291   : > { %v1362_v17 = vpop.f32.mrb[0].mxu1 }
 0x292   : > { %v1363_v18 = vpop.f32.mrb[1].mxu1 }
 0x293   : > { %v1364_v19 = vadd.f32 %v1363_v18, %v1362_v17  ;;  %v1365_v20 = vpop.f32.mrb[2].mxu1 }
 0x294   : > { %v1366_v21 = vpop.f32.mrb[3].mxu1 }
 0x295   : > { %v1367_v22 = vadd.f32 %v1366_v21, %v1365_v20 }
 0x299   : > { %v1322_v23 = vpop.f32.mrb[0].mxu0  ;;  %v1368_v24 = vpop.f32.mrb[4].mxu1 }
 0x29a   : > { %v1323_v25 = vpop.f32.mrb[1].mxu0  ;;  %v1369_v26 = vpop.f32.mrb[5].mxu1 }
 0x29b   : > { %v1324_v27 = vadd.f32 %v1323_v25, %v1322_v23  ;;  %v1325_v28 = vpop.f32.mrb[2].mxu0  ;;  %v1370_v29 = vadd.f32 %v1369_v26, %v1368_v24  ;;  %v1371_v30 = vpop.f32.mrb[6].mxu1 }
 0x29c   : > { %v1326_v31 = vpop.f32.mrb[3].mxu0  ;;  %v1372_v32 = vpop.f32.mrb[7].mxu1 }
 0x29d   : > { %v1327_v33 = vadd.f32 %v1326_v31, %v1325_v28  ;;  %v1373_v34 = vadd.f32 %v1372_v32, %v1371_v30  ;;  %v752_v35 = vadd.f32 %v1364_v19, %v1324_v27 }
 0x29f   : > { %v755_v36 = vadd.f32 %v1367_v22, %v1327_v33 }
 0x2a1   : > { %v1328_v37 = vpop.f32.mrb[4].mxu0  ;;  %v1374_v38 = vpop.f32.mrb[8].mxu1 }
 0x2a2   : > { %v1329_v39 = vpop.f32.mrb[5].mxu0  ;;  %v1375_v40 = vpop.f32.mrb[9].mxu1 }
 0x2a3   : > { %v1330_v41 = vadd.f32 %v1329_v39, %v1328_v37  ;;  %v1331_v42 = vpop.f32.mrb[6].mxu0  ;;  %v1376_v43 = vadd.f32 %v1375_v40, %v1374_v38  ;;  %v1377_v44 = vpop.f32.mrb[10].mxu1 }
 0x2a4   : > { %v1332_v45 = vpop.f32.mrb[7].mxu0  ;;  %v1378_v46 = vpop.f32.mrb[11].mxu1 }
 0x2a5   : > { %v1333_v47 = vadd.f32 %v1332_v45, %v1331_v42  ;;  %v1379_v49 = vadd.f32 %v1378_v46, %v1377_v44  ;;  %v760_v50 = vadd.f32 %v1370_v29, %v1330_v41  ;;  %v2240_v38 = vpop.permute.xlu1 %989 }
 0x2a7   : > { %v763_v51 = vadd.f32 %v1373_v34, %v1333_v47 }
 0x2a9   : > { %v1334_v52 = vpop.f32.mrb[8].mxu0  ;;  %v1380_v53 = vpop.f32.mrb[12].mxu1 }
 0x2aa   : > { %v1335_v54 = vpop.f32.mrb[9].mxu0  ;;  %v1381_v55 = vpop.f32.mrb[13].mxu1 }
 0x2ab   : > { %v1336_v56 = vadd.f32 %v1335_v54, %v1334_v52  ;;  %v1337_v57 = vpop.f32.mrb[10].mxu0  ;;  %v1382_v58 = vadd.f32 %v1381_v55, %v1380_v53  ;;  %v1383_v59 = vpop.f32.mrb[14].mxu1 }
 0x2ac   : > { %v1338_v60 = vpop.f32.mrb[11].mxu0  ;;  %v1384_v62 = vpop.f32.mrb[15].mxu1 }
 0x2ad   : > { %v1339_v63 = vadd.f32 %v1338_v60, %v1337_v57  ;;  %v1385_v0 = vadd.f32 %v1384_v62, %v1383_v59  ;;  %v768_v2 = vadd.f32 %v1376_v43, %v1336_v56  ;;  %v2243_v39 = vpop.permute.xlu1 %999  ;;  %v995_v43 = vpop.permute.xlu0 %994 }
 0x2af   : > { %v771_v3 = vadd.f32 %v1379_v49, %v1339_v63 }
 0x2b1   : > { %v1340_v4 = vpop.f32.mrb[12].mxu0  ;;  %v1408_v5 = vpop.f32.mrb[16].mxu1 }
 0x2b2   : > { %v1341_v6 = vpop.f32.mrb[13].mxu0  ;;  %v832_v7 = vpop.f32.mrb[17].mxu1 }
 0x2b3   : > { %v1342_v8 = vadd.f32 %v1341_v6, %v1340_v4  ;;  %v2197_v9 = vadd.f32 %v832_v7, %v768_v2  ;;  %v1343_v10 = vpop.f32.mrb[14].mxu0  ;;  %v1409_v11 = vpop.f32.mrb[18].mxu1 }
 0x2b4   : > { %v1344_v12 = vpop.f32.mrb[15].mxu0  ;;  %v835_v13 = vpop.f32.mrb[19].mxu1 }
 0x2b5   : > { %v776_v14 = vadd.f32 %v1382_v58, %v1342_v8  ;;  %v1345_v15 = vadd.f32 %v1344_v12, %v1343_v10  ;;  %v2199_v17 = vadd.f32 %v835_v13, %v771_v3  ;;  %v867_v32 = vmul.f32 %v2197_v9, %v2197_v9 }
 0x2b7   : > { %v779_v18 = vadd.f32 %v1385_v0, %v1345_v15  ;;  %v2201_v19 = vadd.f32 %v1408_v5, %v776_v14  ;;  %v868_v34 = vmul.f32 %v2199_v17, %v2199_v17 }
 0x2b9   : > { %859 = vadd.xlane.f32.xlu0 %v2201_v19  ;;  %v1404_v20 = vpop.f32.mrb[16].mxu0  ;;  %v2204_v21 = vadd.f32 %v1409_v11, %v779_v18  ;;  %v869_v29 = vmul.f32 %v2201_v19, %v2201_v19 }
 0x2ba   : > { %v2206_v22 = vadd.f32 %v1404_v20, %v760_v50  ;;  %v816_v23 = vpop.f32.mrb[17].mxu0 }
 0x2bb   : > { %v2208_v24 = vadd.f32 %v816_v23, %v752_v35  ;;  %v1405_v25 = vpop.f32.mrb[18].mxu0  ;;  %v870_v31 = vmul.f32 %v2204_v21, %v2204_v21  ;;  %v930_v35 = vld [vmem:[#allocation7 + $0x18] sm:$0xff] }
 0x2bc   : > { %v2210_v26 = vadd.f32 %v1405_v25, %v763_v51  ;;  %851 = vadd.xlane.f32.xlu1 %v2206_v22  ;;  %v819_v27 = vpop.f32.mrb[19].mxu0  ;;  %v865_v30 = vmul.f32 %v2206_v22, %v2206_v22 }
 0x2bd   : > { %v2213_v28 = vadd.f32 %v819_v27, %v755_v36  ;;  %855 = vadd.xlane.f32.xlu0 %v2197_v9  ;;  %v863_v36 = vmul.f32 %v2208_v24, %v2208_v24 }
 0x2be   : > { %v866_v33 = vmul.f32 %v2210_v26, %v2210_v26 }
 0x2bf   : > { %v864_v37 = vmul.f32 %v2213_v28, %v2213_v28 }
 0x2c0   : > { %847 = vadd.xlane.f32.xlu1 %v2208_v24 }
 0x2c1   : > { %861 = vadd.xlane.f32.xlu0 %v2204_v21 }
 0x2c4   : > { %883 = vadd.xlane.f32.xlu1 %v869_v29 }
 0x2c5   : > { %853 = vadd.xlane.f32.xlu0 %v2210_v26 }
 0x2c8   : > { %875 = vadd.xlane.f32.xlu1 %v865_v30 }
 0x2c9   : > { %849 = vadd.xlane.f32.xlu0 %v2213_v28 }
 0x2cc   : > { %857 = vadd.xlane.f32.xlu1 %v2199_v17 }
 0x2cd   : > { %885 = vadd.xlane.f32.xlu0 %v870_v31 }
 0x2d0   : > { %879 = vadd.xlane.f32.xlu1 %v867_v32 }
 0x2d1   : > { %877 = vadd.xlane.f32.xlu0 %v866_v33 }
 0x2d5   : > { %881 = vadd.xlane.f32.xlu0 %v868_v34 }
 0x2e1   : > { %984 = vperm.xlu1 %1522, %v930_v35  }
 0x2e5   : > { %1524 = vset.pattern.permute.xlu1 %v1782_v48  ;;  %v2245_v48 = vpop.permute.xlu1 %1004 }
 0x2eb   : > { %1016 = vperm.xlu0 %1523, %v2164_v61   ;;  %v2247_v61 = vpop.permute.xlu1 %1032 }
 0x2ef   : > { %v1037_v40 = vpop.permute.xlu1 %1036 }
 0x2f3   : > { %v2249_v41 = vpop.permute.xlu1 %1040 }
 0x2f7   : > { %v2251_v42 = vpop.permute.xlu1 %1044 }
 0x2fb   : > { %v2253_v44 = vpop.permute.xlu1 %969 }
 0x2ff   : > { %v2257_v45 = vpop.permute.xlu1 %974 }
 0x305   : > { %871 = vadd.xlane.f32.xlu1 %v863_v36 }
 0x30a   : > { %873 = vadd.xlane.f32.xlu0 %v864_v37 }
 0x316   : > { %1020 = vperm.xlu1 %1524, %v2171_v1   ;;  %v2255_v1 = vpop.permute.xlu0 %979 }
 0x31a   : > { %1024 = vperm.xlu1 %1524, %v2193_v16  }
 0x320   : > { %1028 = vperm.xlu0 %1523, %v930_v35  }
 0x346   : > { %v860_v16 = vpop.xlane.xlu0 %859 }
 0x347   : > { %v893_v53 = vmul.f32 0.0078125, %v860_v16 }
 0x349   : > { %v852_v46 = vpop.xlane.xlu1 %851  ;;  %v909_v58 = vmul.f32 %v893_v53, %v893_v53  ;;  %v941_v32 = vsub.f32 %v2201_v19, %v893_v53 }
 0x34a   : > { %v856_v47 = vpop.xlane.xlu0 %855 }
 0x34b   : > { %v891_v13 = vmul.f32 0.0078125, %v856_v47 }
 0x34d   : > { %v2259_v49 = vpop.xlane.xlu1 %847  ;;  %v907_v23 = vmul.f32 %v891_v13, %v891_v13 }
 0x34e   : > { %v862_v50 = vpop.xlane.xlu0 %861 }
 0x34f   : > { %v894_v56 = vmul.f32 0.0078125, %v862_v50 }
 0x351   : > { %v884_v51 = vpop.xlane.xlu1 %883  ;;  %v910_v60 = vmul.f32 %v894_v56, %v894_v56  ;;  %v942_v34 = vsub.f32 %v2204_v21, %v894_v56 }
 0x352   : > { %v854_v52 = vpop.xlane.xlu0 %853  ;;  %v901_v57 = vmul.f32 0.0078125, %v884_v51  ;;  %v889_v51 = vmul.f32 0.0078125, %v852_v46 }
 0x354   : > { %v917_v63 = vsub.f32 %v901_v57, %v909_v58  ;;  %v905_v19 = vmul.f32 %v889_v51, %v889_v51 }
 0x355   : > { %v876_v54 = vpop.xlane.xlu1 %875 }
 0x356   : > { %v2261_v55 = vpop.xlane.xlu0 %849  ;;  %v925_v5 = vmax.f32 %v917_v63, 0.0 }
 0x358   : > { %v949_v11 = vadd.f32 1e-05, %v925_v5 }
 0x359   : > { %v858_v0 = vpop.xlane.xlu1 %857 }
 0x35a   : > { %v886_v59 = vpop.xlane.xlu0 %885  ;;  %v892_v4 = vmul.f32 0.0078125, %v858_v0  ;;  %1557 = vrsqrt.f32 %v949_v11 }
 0x35b   : > { %v902_v62 = vmul.f32 0.0078125, %v886_v59 }
 0x35c   : > { %v908_v8 = vmul.f32 %v892_v4, %v892_v4  ;;  %v940_v35 = vsub.f32 %v2199_v17, %v892_v4 }
 0x35d   : > { %v918_v2 = vsub.f32 %v902_v62, %v910_v60  ;;  %v880_v12 = vpop.xlane.xlu1 %879  ;;  %v890_v60 = vmul.f32 0.0078125, %v854_v52  ;;  %v897_v62 = vmul.f32 0.0078125, %v876_v54 }
 0x35e   : > { %v878_v3 = vpop.xlane.xlu0 %877  ;;  %v899_v18 = vmul.f32 0.0078125, %v880_v12 }
 0x35f   : > { %v926_v6 = vmax.f32 %v918_v2, 0.0  ;;  %v898_v53 = vmul.f32 0.0078125, %v878_v3  ;;  %v906_v56 = vmul.f32 %v890_v60, %v890_v60  ;;  %v913_v63 = vsub.f32 %v897_v62, %v905_v19 }
 0x360   : > { %v915_v27 = vsub.f32 %v899_v18, %v907_v23 }
 0x361   : > { %v950_v14 = vadd.f32 1e-05, %v926_v6  ;;  %v914_v2 = vsub.f32 %v898_v53, %v906_v56  ;;  %v887_v6 = vmul.f32 0.0078125, %v2259_v49 }
 0x362   : > { %v882_v7 = vpop.xlane.xlu0 %881  ;;  %v923_v29 = vmax.f32 %v915_v27, 0.0 }
 0x363   : > { %v900_v10 = vmul.f32 0.0078125, %v882_v7  ;;  %1559 = vrsqrt.f32 %v950_v14  ;;  %v903_v12 = vmul.f32 %v887_v6, %v887_v6 }
 0x364   : > { %v1558_v30 = vpop.eup %1557  ;;  %v947_v33 = vadd.f32 1e-05, %v923_v29  ;;  %v938_v29 = vsub.f32 %v2210_v26, %v890_v60 }
 0x365   : > { %v916_v15 = vsub.f32 %v900_v10, %v908_v8  ;;  %v965_v37 = vmul.f32 %v1558_v30, %v941_v32 }
 0x367   : > { %v924_v20 = vmax.f32 %v916_v15, 0.0  ;;  %v1013_v57 = vmul.f32 %v2243_v39, %v965_v37  ;;  %v921_v39 = vmax.f32 %v913_v63, 0.0 }
 0x369   : > { %v948_v25 = vadd.f32 1e-05, %v924_v20  ;;  %v1053_v21 = vadd.f32 %v2249_v41, %v1013_v57  ;;  %v937_v20 = vsub.f32 %v2206_v22, %v889_v51 }
 0x36b   : > { %1561 = vrsqrt.f32 %v948_v25  ;;  %v1278_v4 = vmul.f32 -1.442695, %v1053_v21  ;;  %v935_v21 = vsub.f32 %v2208_v24, %v887_v6 }
 0x36c   : > { %1563 = vrsqrt.f32 %v947_v33 }
 0x36d   : > { %v1560_v31 = vpop.eup %1559  ;;  %1565 = vpow2.f32 %v1278_v4 }
 0x36e   : > { %v966_v16 = vmul.f32 %v1560_v31, %v942_v34 }
 0x370   : > { %v1014_v58 = vmul.f32 %v2245_v48, %v966_v16  ;;  %v922_v48 = vmax.f32 %v914_v2, 0.0 }
 0x372   : > { %v1054_v17 = vadd.f32 %v2251_v42, %v1014_v58  ;;  %v946_v54 = vadd.f32 1e-05, %v922_v48  ;;  %v985_v42 = vpop.permute.xlu1 %984 }
 0x374   : > { %v1279_v46 = vmul.f32 -1.442695, %v1054_v17 }
 0x375   : > { %v1562_v36 = vpop.eup %1561 }
 0x376   : > { %v964_v47 = vmul.f32 %v1562_v36, %v940_v35  ;;  %v1564_v0 = vpop.eup %1563  ;;  %1567 = vpow2.f32 %v1279_v46 }
 0x377   : > { %v1566_v3 = vpop.eup %1565 }
 0x378   : > { %v1012_v50 = vmul.f32 %v995_v43, %v964_v47  ;;  %v939_v43 = vsub.f32 %v2197_v9, %v891_v13  ;;  %v1069_v11 = vadd.f32 1.0, %v1566_v3  ;;  %v1017_v13 = vpop.permute.xlu0 %1016 }
 0x37a   : > { %v1052_v59 = vadd.f32 %v1037_v40, %v1012_v50  ;;  %v963_v5 = vmul.f32 %v1564_v0, %v939_v43  ;;  %v945_v40 = vadd.f32 1e-05, %v921_v39 }
 0x37c   : > { %v1011_v52 = vmul.f32 %v2240_v38, %v963_v5  ;;  %1569 = vrsqrt.f32 %v945_v40  ;;  %v1277_v8 = vmul.f32 -1.442695, %v1052_v59  ;;  %v888_v38 = vmul.f32 0.0078125, %v2261_v55 }
 0x37d   : > { %1571 = vrsqrt.f32 %v946_v54 }
 0x37e   : > { %v1051_v41 = vadd.f32 %v2247_v61, %v1011_v52  ;;  %v904_v30 = vmul.f32 %v888_v38, %v888_v38  ;;  %v936_v63 = vsub.f32 %v2213_v28, %v888_v38 }
 0x380   : > { %v1568_v7 = vpop.eup %1567  ;;  %v1276_v9 = vmul.f32 -1.442695, %v1051_v41 }
 0x381   : > { %v1070_v15 = vadd.f32 1.0, %v1568_v7 }
 0x382   : > { %1573 = vpow2.f32 %v1276_v9 }
 0x383   : > { %1575 = vpow2.f32 %v1277_v8 }
 0x384   : > { %1577 = vrcp.f32 %v1069_v11 }
 0x385   : > { %1579 = vrcp.f32 %v1070_v15 }
 0x386   : > { %v1570_v18 = vpop.eup %1569 }
 0x387   : > { %v1572_v49 = vpop.eup %1571  ;;  %v961_v32 = vmul.f32 %v1570_v18, %v937_v20 }
 0x388   : > { %v962_v55 = vmul.f32 %v1572_v49, %v938_v29 }
 0x389   : > { %v1009_v22 = vmul.f32 %v2255_v1, %v961_v32 }
 0x38a   : > { %v1010_v16 = vmul.f32 %v985_v42, %v962_v55 }
 0x38c   : > { %v1574_v37 = vpop.eup %1573 }
 0x38d   : > { %v1576_v51 = vpop.eup %1575  ;;  %v1067_v60 = vadd.f32 1.0, %v1574_v37 }
 0x38e   : > { %v1578_v58 = vpop.eup %1577  ;;  %v1068_v62 = vadd.f32 1.0, %v1576_v51 }
 0x38f   : > { %v1580_v59 = vpop.eup %1579 }
 0x392   : > { %v872_v10 = vpop.xlane.xlu1 %871 }
 0x393   : > { %v895_v14 = vmul.f32 0.0078125, %v872_v10 }
 0x395   : > { %v911_v61 = vsub.f32 %v895_v14, %v903_v12 }
 0x396   : > { %v1021_v23 = vpop.permute.xlu1 %1020 }
 0x397   : > { %v919_v25 = vmax.f32 %v911_v61, 0.0  ;;  %v874_v27 = vpop.xlane.xlu0 %873 }
 0x398   : > { %v896_v31 = vmul.f32 0.0078125, %v874_v27 }
 0x399   : > { %v943_v33 = vadd.f32 1e-05, %v919_v25 }
 0x39a   : > { %v912_v34 = vsub.f32 %v896_v31, %v904_v30  ;;  %v1025_v35 = vpop.permute.xlu1 %1024 }
 0x39b   : > { %1581 = vrsqrt.f32 %v943_v33  ;;  %v1049_v50 = vadd.f32 %v1025_v35, %v1009_v22 }
 0x39c   : > { %v920_v36 = vmax.f32 %v912_v34, 0.0 }
 0x39d   : > { %v1081_v19 = vmul.f32 %v1578_v58, %v1049_v50 }
 0x39e   : > { %v944_v47 = vadd.f32 1e-05, %v920_v36 }
 0x39f   : > { %v1029_v57 = vpop.permute.xlu0 %1028 }
 0x3a0   : > { %1583 = vrsqrt.f32 %v944_v47  ;;  %v1050_v26 = vadd.f32 %v1029_v57, %v1010_v16 }
 0x3a1   : > { %1585 = vrcp.f32 %v1067_v60 }
 0x3a2   : > { %v1082_v53 = vmul.f32 %v1580_v59, %v1050_v26  ;;  %1587 = vrcp.f32 %v1068_v62 }
 0x3a4   : > { %v1303_v17 = vpack.c.bf16 %v1082_v53, %v1081_v19 }
 0x3a5   : > { %v1582_v56 = vpop.eup %1581 }
 0x3a6   : > { %v959_v1 = vmul.f32 %v1582_v56, %v935_v21  ;;  %1305 = vst [vmem:[%s248_s21 + $0x8] sm:$0xff] %v1303_v17  }
 0x3a8   : > { %v1007_v0 = vmul.f32 %v2253_v44, %v959_v1 }
 0x3aa   : > { %v1584_v2 = vpop.eup %1583  ;;  %v1047_v43 = vadd.f32 %v1017_v13, %v1007_v0 }
 0x3ab   : > { %v960_v4 = vmul.f32 %v1584_v2, %v936_v63  ;;  %v1586_v24 = vpop.eup %1585 }
 0x3ac   : > { %v1588_v5 = vpop.eup %1587  ;;  %v1079_v48 = vmul.f32 %v1586_v24, %v1047_v43 }
 0x3ad   : > { %v1008_v46 = vmul.f32 %v2257_v45, %v960_v4 }
 0x3af   : > { %v1048_v39 = vadd.f32 %v1021_v23, %v1008_v46 }
 0x3b1   : > { %v1080_v40 = vmul.f32 %v1588_v5, %v1048_v39 }
 0x3b3   : > { %v1298_v28 = vpack.c.bf16 %v1080_v40, %v1079_v48 }
 0x3b5   : > { %1299 = vst [vmem:[%s248_s21] sm:$0xff] %v1298_v28  }
 0x3b6   : > { %1688 = shalt.err (!%p1685_p11)
}
 0x3b7   : > { %s1689_s9 = scalar_lea.hbm %s2289_s4, 256  ;;  %s1693_s6 = scalar_lea.hbm %s2342_s3, 512 }
 0x3b8   : > { %p1690_p0 = scmp.ne.s32.totalorder %s2289_s4, %s1689_s9  ;;  %p1694_p6 = scmp.lt.u32.totalorder %s2289_s4, %s2342_s3 }
 0x3b9   : > { %p1695_p7 = scmp.lt.u32.totalorder %s1693_s6, %s1689_s9  ;;  %p1697_p8 = scmp.lt.u32.totalorder %s1689_s9, %s2289_s4 }
 0x3ba   : > { %p1691_p4 = pnand %p1690_p0, %p2359_p2 }
 0x3bb   : > { %p1696_p12 = por %p1695_p7, %p1694_p6 }
 0x3bc   : > { %p1692_p13 = pneg %p1691_p4 }
 0x3bd   : > { %p1698_p1 = por %p1697_p8, %p1696_p12 }
 0x3bf   : > { %p1699_p10 = pnand %p1698_p1, %p1692_p13 }
 0x3c1   : > { %1702 = shalt.err (!%p1699_p10)
}
 0x3c2   : > { %s1784_s18 = smov 64  }
 0x3c3   : > { %1428 = dma.vmem_to_hbm [thread:$0]  (%p2359_p2), %s2284_s11, 256, %s2289_s4, %s1104_s20, %s1784_s18, %s1784_s18, %s1772_s24  }
 0x3c4 PF: > { %s1134_s27 = sand.u32 1, %s1741_s12   ;;  %p2360_p3 = scmp.ne.s32.totalorder %s2350_s23, 0 }
 0x3c5   : > { %p2361_p5 = scmp.ge.s32.totalorder %s1761_s17, 2  ;;  %s1135_s29 = scalar_lea.sflag [#allocation4], %s1134_s27 }
 0x3c7   : > { %p1442_p9 = pnand %p2361_p5, %p2360_p3 }
 0x3c9   : > { %1736 = dma.done.wait (!%p1442_p9), %s1135_s29, 256  }
 0x3ca   : > { %1738 = vsyncadd (!%p1442_p9), %s1135_s29, 4294967040  ;;  %s20_s17 = sadd.s32 1, %s1761_s17   ;;  %s2362_s12 = smov %s1745_s13 }
 0x3cb   : > { %p17_p11 = scmp.ge.s32.totalorder %s20_s17, 4   ;;  %s2363_s13 = smov %s1749_s14 }
 0x3cc   : > { %s2364_s14 = smov %s1947_s5  ;;  %s2365_s15 = smov %s1757_s16 }
 0x3cd   : > { %s2366_s16 = smov %s2368_s19  ;;  %19 = sbr.rel (!%p17_p11) target bundleno = 7 (0x7), region = 87 }
 0x3d4   :  { %1140 = vsyncpa [#allocation3], 1 }
 0x3d5   :  { %1142 = vsyncpa [#allocation3 + $0x1], 1 }
 0x3d6   :  { %1143 = vsyncpa [#allocation6], 1 }
 0x3d7   :  { %1144 = vsyncpa [#allocation4], 1 }
 0x3d8   :  { %1146 = vsyncpa [#allocation4 + $0x1], 1 }

</bundles_post_ra>
